<compile_context>
chip_gen: v6e
topology: v6e:2x2x1
jax: 0.10.0
libtpu: 0.0.40
codegen_flags: <defaults>
</compile_context>

<pallas_src>
import jax
import jax.numpy as jnp
from jax.experimental import pallas as pl
from jax.experimental.pallas import tpu as pltpu


# ----------------------------------------------------------------------------
# Pallas kernel: hoisted time-major input projection + fully unrolled 2-layer
# GRU recurrence (fused block-diag hidden matmul, 128-lane-aligned gates),
# followed by the lane-dense FC head.  Single grid point, fully VMEM resident.
# ----------------------------------------------------------------------------
def gru_fc_kernel(
    x_ref,            # (T*B, I)      time-major, flattened input
    w_ih0_ref,        # (I, 3*HP)     layer-0 input->gates (gate-per-128-lane blocks)
    b_ih0_ref,        # (1, 3*HP)
    w_hh_ref,         # (2*HP, 6*HP)  block-diag [w_hh0 | w_hh1], gate-padded
    b_hh_ref,         # (1, 6*HP)
    w_ih1_ref,        # (HP, 3*HP)    layer-1 input->gates
    b_ih1_ref,        # (1, 3*HP)
    fc1_w_ref, fc1_b_ref,   # (HP, 128), (1, 128)
    fc2_w_ref, fc2_b_ref,   # (128, 128), (1, 128)   (out 32 -> 128 zero-padded)
    fc3_w_ref, fc3_b_ref,   # (128, 128), (1, 128)   (32x3 zero-padded)
    out_ref,          # (B, 128)      lane-dense padded output
):
    TB, I = x_ref.shape
    B = out_ref.shape[0]
    T = TB // B
    HP = w_ih1_ref.shape[0]          # padded per-gate width (128)
    G = 3 * HP                       # per-layer padded gate width (384)

    # Recurrence weights/biases are needed every unrolled step -> load once.
    # (FC weights are intentionally NOT read here; see use sites below.)
    w_ih0 = w_ih0_ref[...]
    w_hh = w_hh_ref[...]
    w_ih1 = w_ih1_ref[...]
    # Hoisted bias broadcasts (JAX does not CSE broadcast_in_dim inside loops).
    b_hh = jnp.broadcast_to(b_hh_ref[...], (B, 2 * G))
    b_ih1 = jnp.broadcast_to(b_ih1_ref[...], (B, G))

    # --- Hoisted, time-major layer-0 input projection: one matmul, all steps. ---
    gi0_all = (jnp.dot(x_ref[...], w_ih0, preferred_element_type=jnp.float32)
               + b_ih0_ref[...])                                  # (T*B, 3*HP)

    # Persistent state: [h0 | h1], each in its own 128-lane block (pad lanes stay 0).
    hs = jnp.zeros((B, 2 * HP), jnp.float32)

    # --- Fully unrolled recurrence (T is a compile-time constant). ---
    for t in range(T):
        gi0 = gi0_all[t * B:(t + 1) * B, :]          # two adjacent rows, static slice

        # One fused hidden-state projection for both layers (uses prev-step hs).
        gh = jnp.dot(hs, w_hh, preferred_element_type=jnp.float32) + b_hh   # (B, 6*HP)

        # ---- layer 0 (PyTorch gate order r, z, n); all slices 128-lane aligned ----
        rz0 = jax.nn.sigmoid(gi0[:, :2 * HP] + gh[:, :2 * HP])
        r0, z0 = rz0[:, :HP], rz0[:, HP:]
        n0 = jnp.tanh(gi0[:, 2 * HP:] + r0 * gh[:, 2 * HP:G])   # b_hn stays inside r*(.)
        h0 = (1.0 - z0) * n0 + z0 * hs[:, :HP]

        # ---- layer 1 (input = new h0, so this matmul cannot be hoisted) ----
        gi1 = jnp.dot(h0, w_ih1, preferred_element_type=jnp.float32) + b_ih1  # (B, 3*HP)
        rz1 = jax.nn.sigmoid(gi1[:, :2 * HP] + gh[:, G:G + 2 * HP])
        r1, z1 = rz1[:, :HP], rz1[:, HP:]
        n1 = jnp.tanh(gi1[:, 2 * HP:] + r1 * gh[:, G + 2 * HP:])
        h1 = (1.0 - z1) * n1 + z1 * hs[:, HP:]

        hs = jnp.concatenate([h0, h1], axis=-1)      # two adjacent 128-lane blocks: free

    # --- FC head: Linear -> Dropout(eval) -> ReLU -> Linear -> Dropout -> ReLU -> Linear
    # TODO(synk): Dropout implemented in eval mode (identity); training-mode RNG mask omitted.
    # FC weights are read here (use sites), after the recurrence, to avoid keeping them
    # live across the unrolled loop.
    y = jnp.maximum(
        jnp.dot(hs[:, HP:], fc1_w_ref[...], preferred_element_type=jnp.float32)
        + fc1_b_ref[...], 0.0)
    y = jnp.maximum(
        jnp.dot(y, fc2_w_ref[...], preferred_element_type=jnp.float32)
        + fc2_b_ref[...], 0.0)
    out_ref[...] = (
        jnp.dot(y, fc3_w_ref[...], preferred_element_type=jnp.float32)
        + fc3_b_ref[...])


# ----------------------------------------------------------------------------
# One-time weight packing (run at init, NOT inside the jitted forward).
# Gate-per-128-lane layout + block-diag fused hidden weight + lane-dense FC head.
# All padding is zero-filled, so padded lanes carry exact zeros end-to-end.
# ----------------------------------------------------------------------------
def pack_params(params, pad=128):
    H = params["w_hh0"].shape[0]
    HP = pad
    G = 3 * HP

    def pad_gate_cols(w, rows_out=None):
        rows = w.shape[0]
        rows_out = rows if rows_out is None else rows_out
        out = jnp.zeros((rows_out, G), jnp.float32)
        for g in range(3):
            out = out.at[:rows, g * HP:g * HP + H].set(w[:, g * H:(g + 1) * H])
        return out

    def pad_gate_bias(b):
        out = jnp.zeros((1, G), jnp.float32)
        for g in range(3):
            out = out.at[:, g * HP:g * HP + H].set(b[:, g * H:(g + 1) * H])
        return out

    # Input->gate weights (gate blocks at 128-lane boundaries).
    w_ih0_p = pad_gate_cols(params["w_ih0"])                 # (I, 3*HP)
    b_ih0_p = pad_gate_bias(params["b_ih0"])
    w_ih1_p = pad_gate_cols(params["w_ih1"], rows_out=HP)    # (HP, 3*HP)
    b_ih1_p = pad_gate_bias(params["b_ih1"])

    # Block-diagonal fused hidden->hidden weight: [h0 | h1] @ W = [gh0 | gh1].
    w_hh_p = jnp.zeros((2 * HP, 2 * G), jnp.float32)
    b_hh_p = jnp.zeros((1, 2 * G), jnp.float32)
    for g in range(3):
        w_hh_p = w_hh_p.at[:H, g * HP:g * HP + H].set(
            params["w_hh0"][:, g * H:(g + 1) * H])
        w_hh_p = w_hh_p.at[HP:HP + H, G + g * HP:G + g * HP + H].set(
            params["w_hh1"][:, g * H:(g + 1) * H])
        b_hh_p = b_hh_p.at[:, g * HP:g * HP + H].set(
            params["b_hh0"][:, g * H:(g + 1) * H])
        b_hh_p = b_hh_p.at[:, G + g * HP:G + g * HP + H].set(
            params["b_hh1"][:, g * H:(g + 1) * H])

    # Lane-dense FC head.
    fc1_w_p = jnp.zeros((HP, 128), jnp.float32).at[:H, :].set(params["fc1_w"])
    fc1_b_p = params["fc1_b"]                                               # (1, 128)
    fc2_w_p = jnp.zeros((128, 128), jnp.float32).at[:, :32].set(params["fc2_w"])
    fc2_b_p = jnp.zeros((1, 128), jnp.float32).at[:, :32].set(params["fc2_b"])
    fc3_w_p = jnp.zeros((128, 128), jnp.float32).at[:32, :3].set(params["fc3_w"])
    fc3_b_p = jnp.zeros((1, 128), jnp.float32).at[:, :3].set(params["fc3_b"])

    return {
        "w_ih0": w_ih0_p, "b_ih0": b_ih0_p,
        "w_hh": w_hh_p, "b_hh": b_hh_p,
        "w_ih1": w_ih1_p, "b_ih1": b_ih1_p,
        "fc1_w": fc1_w_p, "fc1_b": fc1_b_p,
        "fc2_w": fc2_w_p, "fc2_b": fc2_b_p,
        "fc3_w": fc3_w_p, "fc3_b": fc3_b_p,
    }


# ----------------------------------------------------------------------------
# Forward wrapper: only a tiny time-major transpose/reshape of x (fuses in XLA)
# plus the single pallas_call on the pre-packed weights.
# ----------------------------------------------------------------------------
def gru_model_forward(x_btI, packed):
    B, T, I = x_btI.shape
    OUT_PAD = 128  # lane-dense output store; real width is 3

    # Time-major (T, B, I) -> (T*B, I): per-step gi0 becomes two adjacent rows.
    x2d = jnp.transpose(x_btI, (1, 0, 2)).reshape(T * B, I)

    inputs = (
        x2d,
        packed["w_ih0"], packed["b_ih0"],
        packed["w_hh"], packed["b_hh"],
        packed["w_ih1"], packed["b_ih1"],
        packed["fc1_w"], packed["fc1_b"],
        packed["fc2_w"], packed["fc2_b"],
        packed["fc3_w"], packed["fc3_b"],
    )

    out_padded = pl.pallas_call(
        gru_fc_kernel,
        out_shape=jax.ShapeDtypeStruct((B, OUT_PAD), jnp.float32),
        in_specs=[pl.BlockSpec(memory_space=pltpu.MemorySpace.VMEM)] * len(inputs),
        out_specs=pl.BlockSpec(memory_space=pltpu.MemorySpace.VMEM),
    )(*inputs)
    return out_padded[:, :3]


# ----------------------------------------------------------------------------
# Deterministic parameter construction (PyTorch-style uniform(-k, k), k=1/sqrt(H)).
# Weights stored pre-transposed: (in_features, out_features).
# ----------------------------------------------------------------------------
def init_params(key, num_letters, hidden_size):
    H = hidden_size
    k = 1.0 / jnp.sqrt(jnp.float32(H))

    def u(key, shape):
        return jax.random.uniform(key, shape, jnp.float32, -k, k)

    keys = jax.random.split(key, 14)
    return {
        # GRU layer 0 (input size = num_letters)
        "w_ih0": u(keys[0], (num_letters, 3 * H)),
        "w_hh0": u(keys[1], (H, 3 * H)),
        "b_ih0": u(keys[2], (1, 3 * H)),
        "b_hh0": u(keys[3], (1, 3 * H)),
        # GRU layer 1 (input size = hidden_size)
        "w_ih1": u(keys[4], (H, 3 * H)),
        "w_hh1": u(keys[5], (H, 3 * H)),
        "b_ih1": u(keys[6], (1, 3 * H)),
        "b_hh1": u(keys[7], (1, 3 * H)),
        # FC head: H -> 128 -> 32 -> 3
        "fc1_w": u(keys[8], (H, 128)),
        "fc1_b": u(keys[9], (1, 128)),
        "fc2_w": u(keys[10], (128, 32)),
        "fc2_b": u(keys[11], (1, 32)),
        "fc3_w": u(keys[12], (32, 3)),
        "fc3_b": u(keys[13], (1, 3)),
    }


# ----------------------------------------------------------------------------
# Pure-JAX reference (mirrors torch.nn.GRU batch_first + nn.Sequential head).
# ----------------------------------------------------------------------------
def reference_forward(x_btI, params):
    B, T, I = x_btI.shape
    H = params["w_hh0"].shape[0]

    def cell(x_t, h, w_ih, w_hh, b_ih, b_hh):
        gi = x_t @ w_ih + b_ih
        gh = h @ w_hh + b_hh
        r = jax.nn.sigmoid(gi[:, :H] + gh[:, :H])
        z = jax.nn.sigmoid(gi[:, H:2 * H] + gh[:, H:2 * H])
        n = jnp.tanh(gi[:, 2 * H:] + r * gh[:, 2 * H:])
        return (1.0 - z) * n + z * h

    h0 = jnp.zeros((B, H), jnp.float32)
    h1 = jnp.zeros((B, H), jnp.float32)
    for t in range(T):
        x_t = x_btI[:, t, :]
        h0 = cell(x_t, h0, params["w_ih0"], params["w_hh0"], params["b_ih0"], params["b_hh0"])
        h1 = cell(h0, h1, params["w_ih1"], params["w_hh1"], params["b_ih1"], params["b_hh1"])

    y = jnp.maximum(h1 @ params["fc1_w"] + params["fc1_b"], 0.0)
    y = jnp.maximum(y @ params["fc2_w"] + params["fc2_b"], 0.0)
    return y @ params["fc3_w"] + params["fc3_b"]


if __name__ == "__main__":
    num_letters = 16   # GRU input_size
    num_layers = 2
    hidden_size = 32
    batch, seq = 2, 8

    root = jax.random.PRNGKey(0)
    k_x, k_p = jax.random.split(root)
    x = jax.random.normal(k_x, (batch, seq, num_letters), jnp.float32)
    params = init_params(k_p, num_letters, hidden_size)

    # One-time weight packing (reused across all forward calls).
    packed = pack_params(params)
    packed = jax.tree_util.tree_map(jax.block_until_ready, packed)

    fwd = jax.jit(gru_model_forward)
    out = jax.block_until_ready(fwd(x, packed))

    ref = reference_forward(x, params)
    assert out.shape == (batch, 3), out.shape
    assert jnp.allclose(out, ref, atol=1e-4, rtol=1e-4), (out, ref)

    print("KERNEL_OK")
</pallas_src>

<mosaic_0001>
module attributes {stable_mosaic.version = 11 : i64} {
  func.func @gru_fc_kernel(%arg0: memref<16x16xf32, #tpu.memory_space<vmem>>, %arg1: memref<16x384xf32, #tpu.memory_space<vmem>>, %arg2: memref<1x384xf32, #tpu.memory_space<vmem>>, %arg3: memref<256x768xf32, #tpu.memory_space<vmem>>, %arg4: memref<1x768xf32, #tpu.memory_space<vmem>>, %arg5: memref<128x384xf32, #tpu.memory_space<vmem>>, %arg6: memref<1x384xf32, #tpu.memory_space<vmem>>, %arg7: memref<128x128xf32, #tpu.memory_space<vmem>>, %arg8: memref<1x128xf32, #tpu.memory_space<vmem>>, %arg9: memref<128x128xf32, #tpu.memory_space<vmem>>, %arg10: memref<1x128xf32, #tpu.memory_space<vmem>>, %arg11: memref<128x128xf32, #tpu.memory_space<vmem>>, %arg12: memref<1x128xf32, #tpu.memory_space<vmem>>, %arg13: memref<2x128xf32, #tpu.memory_space<vmem>>) attributes {dimension_semantics = [], scalar_prefetch = 0 : i64, scratch_operands = 0 : i64, tpu.core_type = #tpu.core_type<tc>} {
    %c0 = arith.constant 0 : index
    %c0_0 = arith.constant 0 : index
    %0 = vector.load %arg1[%c0, %c0_0] : memref<16x384xf32, #tpu.memory_space<vmem>>, vector<16x384xf32>
    %c0_1 = arith.constant 0 : index
    %c0_2 = arith.constant 0 : index
    %1 = vector.load %arg3[%c0_1, %c0_2] : memref<256x768xf32, #tpu.memory_space<vmem>>, vector<256x768xf32>
    %c0_3 = arith.constant 0 : index
    %c0_4 = arith.constant 0 : index
    %2 = vector.load %arg5[%c0_3, %c0_4] : memref<128x384xf32, #tpu.memory_space<vmem>>, vector<128x384xf32>
    %c0_5 = arith.constant 0 : index
    %c0_6 = arith.constant 0 : index
    %3 = vector.load %arg4[%c0_5, %c0_6] : memref<1x768xf32, #tpu.memory_space<vmem>>, vector<1x768xf32>
    %4 = vector.shape_cast %3 : vector<1x768xf32> to vector<1x768xf32>
    %5 = vector.broadcast %4 : vector<1x768xf32> to vector<2x768xf32>
    %c0_7 = arith.constant 0 : index
    %c0_8 = arith.constant 0 : index
    %6 = vector.load %arg6[%c0_7, %c0_8] : memref<1x384xf32, #tpu.memory_space<vmem>>, vector<1x384xf32>
    %7 = vector.shape_cast %6 : vector<1x384xf32> to vector<1x384xf32>
    %8 = vector.broadcast %7 : vector<1x384xf32> to vector<2x384xf32>
    %c0_9 = arith.constant 0 : index
    %c0_10 = arith.constant 0 : index
    %9 = vector.load %arg0[%c0_9, %c0_10] : memref<16x16xf32, #tpu.memory_space<vmem>>, vector<16x16xf32>
    %cst = arith.constant dense<0.000000e+00> : vector<16x384xf32>
    %10 = tpu.matmul %9, %0, %cst {dimension_numbers = #tpu.dot_dimension_numbers<[1], [0], [0], [1], [0, 0, 1, 1], [], []>} : vector<16x16xf32>, vector<16x384xf32>, vector<16x384xf32> -> vector<16x384xf32>
    %c0_11 = arith.constant 0 : index
    %c0_12 = arith.constant 0 : index
    %11 = vector.load %arg2[%c0_11, %c0_12] : memref<1x384xf32, #tpu.memory_space<vmem>>, vector<1x384xf32>
    %12 = vector.broadcast %11 : vector<1x384xf32> to vector<16x384xf32>
    %13 = arith.addf %10, %12 : vector<16x384xf32>
    %cst_13 = arith.constant 0.000000e+00 : f32
    %14 = vector.broadcast %cst_13 : f32 to vector<2x256xf32>
    %15 = vector.extract_strided_slice %13 {offsets = [0, 0], sizes = [2, 384], strides = [1, 1]} : vector<16x384xf32> to vector<2x384xf32>
    %cst_14 = arith.constant dense<0.000000e+00> : vector<2x768xf32>
    %16 = tpu.matmul %14, %1, %cst_14 {dimension_numbers = #tpu.dot_dimension_numbers<[1], [0], [0], [1], [0, 0, 1, 1], [], []>} : vector<2x256xf32>, vector<256x768xf32>, vector<2x768xf32> -> vector<2x768xf32>
    %17 = arith.addf %16, %5 : vector<2x768xf32>
    %18 = vector.extract_strided_slice %15 {offsets = [0, 0], sizes = [2, 256], strides = [1, 1]} : vector<2x384xf32> to vector<2x256xf32>
    %19 = vector.extract_strided_slice %17 {offsets = [0, 0], sizes = [2, 256], strides = [1, 1]} : vector<2x768xf32> to vector<2x256xf32>
    %20 = arith.addf %18, %19 : vector<2x256xf32>
    %21 = arith.negf %20 : vector<2x256xf32>
    %22 = math.exp %21 : vector<2x256xf32>
    %cst_15 = arith.constant 1.000000e+00 : f32
    %23 = vector.broadcast %cst_15 : f32 to vector<2x256xf32>
    %24 = arith.addf %23, %22 : vector<2x256xf32>
    %25 = arith.divf %23, %24 : vector<2x256xf32>
    %26 = vector.extract_strided_slice %25 {offsets = [0, 0], sizes = [2, 128], strides = [1, 1]} : vector<2x256xf32> to vector<2x128xf32>
    %27 = vector.extract_strided_slice %25 {offsets = [0, 128], sizes = [2, 128], strides = [1, 1]} : vector<2x256xf32> to vector<2x128xf32>
    %28 = vector.extract_strided_slice %15 {offsets = [0, 256], sizes = [2, 128], strides = [1, 1]} : vector<2x384xf32> to vector<2x128xf32>
    %29 = vector.extract_strided_slice %17 {offsets = [0, 256], sizes = [2, 128], strides = [1, 1]} : vector<2x768xf32> to vector<2x128xf32>
    %30 = arith.mulf %26, %29 : vector<2x128xf32>
    %31 = arith.addf %28, %30 : vector<2x128xf32>
    %32 = math.tanh %31 : vector<2x128xf32>
    %cst_16 = arith.constant 1.000000e+00 : f32
    %33 = vector.broadcast %cst_16 : f32 to vector<2x128xf32>
    %34 = arith.subf %33, %27 : vector<2x128xf32>
    %35 = arith.mulf %34, %32 : vector<2x128xf32>
    %36 = vector.extract_strided_slice %14 {offsets = [0, 0], sizes = [2, 128], strides = [1, 1]} : vector<2x256xf32> to vector<2x128xf32>
    %37 = arith.mulf %27, %36 : vector<2x128xf32>
    %38 = arith.addf %35, %37 : vector<2x128xf32>
    %cst_17 = arith.constant dense<0.000000e+00> : vector<2x384xf32>
    %39 = tpu.matmul %38, %2, %cst_17 {dimension_numbers = #tpu.dot_dimension_numbers<[1], [0], [0], [1], [0, 0, 1, 1], [], []>} : vector<2x128xf32>, vector<128x384xf32>, vector<2x384xf32> -> vector<2x384xf32>
    %40 = arith.addf %39, %8 : vector<2x384xf32>
    %41 = vector.extract_strided_slice %40 {offsets = [0, 0], sizes = [2, 256], strides = [1, 1]} : vector<2x384xf32> to vector<2x256xf32>
    %42 = vector.extract_strided_slice %17 {offsets = [0, 384], sizes = [2, 256], strides = [1, 1]} : vector<2x768xf32> to vector<2x256xf32>
    %43 = arith.addf %41, %42 : vector<2x256xf32>
    %44 = arith.negf %43 : vector<2x256xf32>
    %45 = math.exp %44 : vector<2x256xf32>
    %cst_18 = arith.constant 1.000000e+00 : f32
    %46 = vector.broadcast %cst_18 : f32 to vector<2x256xf32>
    %47 = arith.addf %46, %45 : vector<2x256xf32>
    %48 = arith.divf %46, %47 : vector<2x256xf32>
    %49 = vector.extract_strided_slice %48 {offsets = [0, 0], sizes = [2, 128], strides = [1, 1]} : vector<2x256xf32> to vector<2x128xf32>
    %50 = vector.extract_strided_slice %48 {offsets = [0, 128], sizes = [2, 128], strides = [1, 1]} : vector<2x256xf32> to vector<2x128xf32>
    %51 = vector.extract_strided_slice %40 {offsets = [0, 256], sizes = [2, 128], strides = [1, 1]} : vector<2x384xf32> to vector<2x128xf32>
    %52 = vector.extract_strided_slice %17 {offsets = [0, 640], sizes = [2, 128], strides = [1, 1]} : vector<2x768xf32> to vector<2x128xf32>
    %53 = arith.mulf %49, %52 : vector<2x128xf32>
    %54 = arith.addf %51, %53 : vector<2x128xf32>
    %55 = math.tanh %54 : vector<2x128xf32>
    %cst_19 = arith.constant 1.000000e+00 : f32
    %56 = vector.broadcast %cst_19 : f32 to vector<2x128xf32>
    %57 = arith.subf %56, %50 : vector<2x128xf32>
    %58 = arith.mulf %57, %55 : vector<2x128xf32>
    %59 = vector.extract_strided_slice %14 {offsets = [0, 128], sizes = [2, 128], strides = [1, 1]} : vector<2x256xf32> to vector<2x128xf32>
    %60 = arith.mulf %50, %59 : vector<2x128xf32>
    %61 = arith.addf %58, %60 : vector<2x128xf32>
    %62 = tpu.concatenate %38, %61 in 1 : vector<2x128xf32>, vector<2x128xf32> -> vector<2x256xf32>
    %63 = vector.extract_strided_slice %13 {offsets = [2, 0], sizes = [2, 384], strides = [1, 1]} : vector<16x384xf32> to vector<2x384xf32>
    %cst_20 = arith.constant dense<0.000000e+00> : vector<2x768xf32>
    %64 = tpu.matmul %62, %1, %cst_20 {dimension_numbers = #tpu.dot_dimension_numbers<[1], [0], [0], [1], [0, 0, 1, 1], [], []>} : vector<2x256xf32>, vector<256x768xf32>, vector<2x768xf32> -> vector<2x768xf32>
    %65 = arith.addf %64, %5 : vector<2x768xf32>
    %66 = vector.extract_strided_slice %63 {offsets = [0, 0], sizes = [2, 256], strides = [1, 1]} : vector<2x384xf32> to vector<2x256xf32>
    %67 = vector.extract_strided_slice %65 {offsets = [0, 0], sizes = [2, 256], strides = [1, 1]} : vector<2x768xf32> to vector<2x256xf32>
    %68 = arith.addf %66, %67 : vector<2x256xf32>
    %69 = arith.negf %68 : vector<2x256xf32>
    %70 = math.exp %69 : vector<2x256xf32>
    %cst_21 = arith.constant 1.000000e+00 : f32
    %71 = vector.broadcast %cst_21 : f32 to vector<2x256xf32>
    %72 = arith.addf %71, %70 : vector<2x256xf32>
    %73 = arith.divf %71, %72 : vector<2x256xf32>
    %74 = vector.extract_strided_slice %73 {offsets = [0, 0], sizes = [2, 128], strides = [1, 1]} : vector<2x256xf32> to vector<2x128xf32>
    %75 = vector.extract_strided_slice %73 {offsets = [0, 128], sizes = [2, 128], strides = [1, 1]} : vector<2x256xf32> to vector<2x128xf32>
    %76 = vector.extract_strided_slice %63 {offsets = [0, 256], sizes = [2, 128], strides = [1, 1]} : vector<2x384xf32> to vector<2x128xf32>
    %77 = vector.extract_strided_slice %65 {offsets = [0, 256], sizes = [2, 128], strides = [1, 1]} : vector<2x768xf32> to vector<2x128xf32>
    %78 = arith.mulf %74, %77 : vector<2x128xf32>
    %79 = arith.addf %76, %78 : vector<2x128xf32>
    %80 = math.tanh %79 : vector<2x128xf32>
    %cst_22 = arith.constant 1.000000e+00 : f32
    %81 = vector.broadcast %cst_22 : f32 to vector<2x128xf32>
    %82 = arith.subf %81, %75 : vector<2x128xf32>
    %83 = arith.mulf %82, %80 : vector<2x128xf32>
    %84 = vector.extract_strided_slice %62 {offsets = [0, 0], sizes = [2, 128], strides = [1, 1]} : vector<2x256xf32> to vector<2x128xf32>
    %85 = arith.mulf %75, %84 : vector<2x128xf32>
    %86 = arith.addf %83, %85 : vector<2x128xf32>
    %cst_23 = arith.constant dense<0.000000e+00> : vector<2x384xf32>
    %87 = tpu.matmul %86, %2, %cst_23 {dimension_numbers = #tpu.dot_dimension_numbers<[1], [0], [0], [1], [0, 0, 1, 1], [], []>} : vector<2x128xf32>, vector<128x384xf32>, vector<2x384xf32> -> vector<2x384xf32>
    %88 = arith.addf %87, %8 : vector<2x384xf32>
    %89 = vector.extract_strided_slice %88 {offsets = [0, 0], sizes = [2, 256], strides = [1, 1]} : vector<2x384xf32> to vector<2x256xf32>
    %90 = vector.extract_strided_slice %65 {offsets = [0, 384], sizes = [2, 256], strides = [1, 1]} : vector<2x768xf32> to vector<2x256xf32>
    %91 = arith.addf %89, %90 : vector<2x256xf32>
    %92 = arith.negf %91 : vector<2x256xf32>
    %93 = math.exp %92 : vector<2x256xf32>
    %cst_24 = arith.constant 1.000000e+00 : f32
    %94 = vector.broadcast %cst_24 : f32 to vector<2x256xf32>
    %95 = arith.addf %94, %93 : vector<2x256xf32>
    %96 = arith.divf %94, %95 : vector<2x256xf32>
    %97 = vector.extract_strided_slice %96 {offsets = [0, 0], sizes = [2, 128], strides = [1, 1]} : vector<2x256xf32> to vector<2x128xf32>
    %98 = vector.extract_strided_slice %96 {offsets = [0, 128], sizes = [2, 128], strides = [1, 1]} : vector<2x256xf32> to vector<2x128xf32>
    %99 = vector.extract_strided_slice %88 {offsets = [0, 256], sizes = [2, 128], strides = [1, 1]} : vector<2x384xf32> to vector<2x128xf32>
    %100 = vector.extract_strided_slice %65 {offsets = [0, 640], sizes = [2, 128], strides = [1, 1]} : vector<2x768xf32> to vector<2x128xf32>
    %101 = arith.mulf %97, %100 : vector<2x128xf32>
    %102 = arith.addf %99, %101 : vector<2x128xf32>
    %103 = math.tanh %102 : vector<2x128xf32>
    %cst_25 = arith.constant 1.000000e+00 : f32
    %104 = vector.broadcast %cst_25 : f32 to vector<2x128xf32>
    %105 = arith.subf %104, %98 : vector<2x128xf32>
    %106 = arith.mulf %105, %103 : vector<2x128xf32>
    %107 = vector.extract_strided_slice %62 {offsets = [0, 128], sizes = [2, 128], strides = [1, 1]} : vector<2x256xf32> to vector<2x128xf32>
    %108 = arith.mulf %98, %107 : vector<2x128xf32>
    %109 = arith.addf %106, %108 : vector<2x128xf32>
    %110 = tpu.concatenate %86, %109 in 1 : vector<2x128xf32>, vector<2x128xf32> -> vector<2x256xf32>
    %111 = vector.extract_strided_slice %13 {offsets = [4, 0], sizes = [2, 384], strides = [1, 1]} : vector<16x384xf32> to vector<2x384xf32>
    %cst_26 = arith.constant dense<0.000000e+00> : vector<2x768xf32>
    %112 = tpu.matmul %110, %1, %cst_26 {dimension_numbers = #tpu.dot_dimension_numbers<[1], [0], [0], [1], [0, 0, 1, 1], [], []>} : vector<2x256xf32>, vector<256x768xf32>, vector<2x768xf32> -> vector<2x768xf32>
    %113 = arith.addf %112, %5 : vector<2x768xf32>
    %114 = vector.extract_strided_slice %111 {offsets = [0, 0], sizes = [2, 256], strides = [1, 1]} : vector<2x384xf32> to vector<2x256xf32>
    %115 = vector.extract_strided_slice %113 {offsets = [0, 0], sizes = [2, 256], strides = [1, 1]} : vector<2x768xf32> to vector<2x256xf32>
    %116 = arith.addf %114, %115 : vector<2x256xf32>
    %117 = arith.negf %116 : vector<2x256xf32>
    %118 = math.exp %117 : vector<2x256xf32>
    %cst_27 = arith.constant 1.000000e+00 : f32
    %119 = vector.broadcast %cst_27 : f32 to vector<2x256xf32>
    %120 = arith.addf %119, %118 : vector<2x256xf32>
    %121 = arith.divf %119, %120 : vector<2x256xf32>
    %122 = vector.extract_strided_slice %121 {offsets = [0, 0], sizes = [2, 128], strides = [1, 1]} : vector<2x256xf32> to vector<2x128xf32>
    %123 = vector.extract_strided_slice %121 {offsets = [0, 128], sizes = [2, 128], strides = [1, 1]} : vector<2x256xf32> to vector<2x128xf32>
    %124 = vector.extract_strided_slice %111 {offsets = [0, 256], sizes = [2, 128], strides = [1, 1]} : vector<2x384xf32> to vector<2x128xf32>
    %125 = vector.extract_strided_slice %113 {offsets = [0, 256], sizes = [2, 128], strides = [1, 1]} : vector<2x768xf32> to vector<2x128xf32>
    %126 = arith.mulf %122, %125 : vector<2x128xf32>
    %127 = arith.addf %124, %126 : vector<2x128xf32>
    %128 = math.tanh %127 : vector<2x128xf32>
    %cst_28 = arith.constant 1.000000e+00 : f32
    %129 = vector.broadcast %cst_28 : f32 to vector<2x128xf32>
    %130 = arith.subf %129, %123 : vector<2x128xf32>
    %131 = arith.mulf %130, %128 : vector<2x128xf32>
    %132 = vector.extract_strided_slice %110 {offsets = [0, 0], sizes = [2, 128], strides = [1, 1]} : vector<2x256xf32> to vector<2x128xf32>
    %133 = arith.mulf %123, %132 : vector<2x128xf32>
    %134 = arith.addf %131, %133 : vector<2x128xf32>
    %cst_29 = arith.constant dense<0.000000e+00> : vector<2x384xf32>
    %135 = tpu.matmul %134, %2, %cst_29 {dimension_numbers = #tpu.dot_dimension_numbers<[1], [0], [0], [1], [0, 0, 1, 1], [], []>} : vector<2x128xf32>, vector<128x384xf32>, vector<2x384xf32> -> vector<2x384xf32>
    %136 = arith.addf %135, %8 : vector<2x384xf32>
    %137 = vector.extract_strided_slice %136 {offsets = [0, 0], sizes = [2, 256], strides = [1, 1]} : vector<2x384xf32> to vector<2x256xf32>
    %138 = vector.extract_strided_slice %113 {offsets = [0, 384], sizes = [2, 256], strides = [1, 1]} : vector<2x768xf32> to vector<2x256xf32>
    %139 = arith.addf %137, %138 : vector<2x256xf32>
    %140 = arith.negf %139 : vector<2x256xf32>
    %141 = math.exp %140 : vector<2x256xf32>
    %cst_30 = arith.constant 1.000000e+00 : f32
    %142 = vector.broadcast %cst_30 : f32 to vector<2x256xf32>
    %143 = arith.addf %142, %141 : vector<2x256xf32>
    %144 = arith.divf %142, %143 : vector<2x256xf32>
    %145 = vector.extract_strided_slice %144 {offsets = [0, 0], sizes = [2, 128], strides = [1, 1]} : vector<2x256xf32> to vector<2x128xf32>
    %146 = vector.extract_strided_slice %144 {offsets = [0, 128], sizes = [2, 128], strides = [1, 1]} : vector<2x256xf32> to vector<2x128xf32>
    %147 = vector.extract_strided_slice %136 {offsets = [0, 256], sizes = [2, 128], strides = [1, 1]} : vector<2x384xf32> to vector<2x128xf32>
    %148 = vector.extract_strided_slice %113 {offsets = [0, 640], sizes = [2, 128], strides = [1, 1]} : vector<2x768xf32> to vector<2x128xf32>
    %149 = arith.mulf %145, %148 : vector<2x128xf32>
    %150 = arith.addf %147, %149 : vector<2x128xf32>
    %151 = math.tanh %150 : vector<2x128xf32>
    %cst_31 = arith.constant 1.000000e+00 : f32
    %152 = vector.broadcast %cst_31 : f32 to vector<2x128xf32>
    %153 = arith.subf %152, %146 : vector<2x128xf32>
    %154 = arith.mulf %153, %151 : vector<2x128xf32>
    %155 = vector.extract_strided_slice %110 {offsets = [0, 128], sizes = [2, 128], strides = [1, 1]} : vector<2x256xf32> to vector<2x128xf32>
    %156 = arith.mulf %146, %155 : vector<2x128xf32>
    %157 = arith.addf %154, %156 : vector<2x128xf32>
    %158 = tpu.concatenate %134, %157 in 1 : vector<2x128xf32>, vector<2x128xf32> -> vector<2x256xf32>
    %159 = vector.extract_strided_slice %13 {offsets = [6, 0], sizes = [2, 384], strides = [1, 1]} : vector<16x384xf32> to vector<2x384xf32>
    %cst_32 = arith.constant dense<0.000000e+00> : vector<2x768xf32>
    %160 = tpu.matmul %158, %1, %cst_32 {dimension_numbers = #tpu.dot_dimension_numbers<[1], [0], [0], [1], [0, 0, 1, 1], [], []>} : vector<2x256xf32>, vector<256x768xf32>, vector<2x768xf32> -> vector<2x768xf32>
    %161 = arith.addf %160, %5 : vector<2x768xf32>
    %162 = vector.extract_strided_slice %159 {offsets = [0, 0], sizes = [2, 256], strides = [1, 1]} : vector<2x384xf32> to vector<2x256xf32>
    %163 = vector.extract_strided_slice %161 {offsets = [0, 0], sizes = [2, 256], strides = [1, 1]} : vector<2x768xf32> to vector<2x256xf32>
    %164 = arith.addf %162, %163 : vector<2x256xf32>
    %165 = arith.negf %164 : vector<2x256xf32>
    %166 = math.exp %165 : vector<2x256xf32>
    %cst_33 = arith.constant 1.000000e+00 : f32
    %167 = vector.broadcast %cst_33 : f32 to vector<2x256xf32>
    %168 = arith.addf %167, %166 : vector<2x256xf32>
    %169 = arith.divf %167, %168 : vector<2x256xf32>
    %170 = vector.extract_strided_slice %169 {offsets = [0, 0], sizes = [2, 128], strides = [1, 1]} : vector<2x256xf32> to vector<2x128xf32>
    %171 = vector.extract_strided_slice %169 {offsets = [0, 128], sizes = [2, 128], strides = [1, 1]} : vector<2x256xf32> to vector<2x128xf32>
    %172 = vector.extract_strided_slice %159 {offsets = [0, 256], sizes = [2, 128], strides = [1, 1]} : vector<2x384xf32> to vector<2x128xf32>
    %173 = vector.extract_strided_slice %161 {offsets = [0, 256], sizes = [2, 128], strides = [1, 1]} : vector<2x768xf32> to vector<2x128xf32>
    %174 = arith.mulf %170, %173 : vector<2x128xf32>
    %175 = arith.addf %172, %174 : vector<2x128xf32>
    %176 = math.tanh %175 : vector<2x128xf32>
    %cst_34 = arith.constant 1.000000e+00 : f32
    %177 = vector.broadcast %cst_34 : f32 to vector<2x128xf32>
    %178 = arith.subf %177, %171 : vector<2x128xf32>
    %179 = arith.mulf %178, %176 : vector<2x128xf32>
    %180 = vector.extract_strided_slice %158 {offsets = [0, 0], sizes = [2, 128], strides = [1, 1]} : vector<2x256xf32> to vector<2x128xf32>
    %181 = arith.mulf %171, %180 : vector<2x128xf32>
    %182 = arith.addf %179, %181 : vector<2x128xf32>
    %cst_35 = arith.constant dense<0.000000e+00> : vector<2x384xf32>
    %183 = tpu.matmul %182, %2, %cst_35 {dimension_numbers = #tpu.dot_dimension_numbers<[1], [0], [0], [1], [0, 0, 1, 1], [], []>} : vector<2x128xf32>, vector<128x384xf32>, vector<2x384xf32> -> vector<2x384xf32>
    %184 = arith.addf %183, %8 : vector<2x384xf32>
    %185 = vector.extract_strided_slice %184 {offsets = [0, 0], sizes = [2, 256], strides = [1, 1]} : vector<2x384xf32> to vector<2x256xf32>
    %186 = vector.extract_strided_slice %161 {offsets = [0, 384], sizes = [2, 256], strides = [1, 1]} : vector<2x768xf32> to vector<2x256xf32>
    %187 = arith.addf %185, %186 : vector<2x256xf32>
    %188 = arith.negf %187 : vector<2x256xf32>
    %189 = math.exp %188 : vector<2x256xf32>
    %cst_36 = arith.constant 1.000000e+00 : f32
    %190 = vector.broadcast %cst_36 : f32 to vector<2x256xf32>
    %191 = arith.addf %190, %189 : vector<2x256xf32>
    %192 = arith.divf %190, %191 : vector<2x256xf32>
    %193 = vector.extract_strided_slice %192 {offsets = [0, 0], sizes = [2, 128], strides = [1, 1]} : vector<2x256xf32> to vector<2x128xf32>
    %194 = vector.extract_strided_slice %192 {offsets = [0, 128], sizes = [2, 128], strides = [1, 1]} : vector<2x256xf32> to vector<2x128xf32>
    %195 = vector.extract_strided_slice %184 {offsets = [0, 256], sizes = [2, 128], strides = [1, 1]} : vector<2x384xf32> to vector<2x128xf32>
    %196 = vector.extract_strided_slice %161 {offsets = [0, 640], sizes = [2, 128], strides = [1, 1]} : vector<2x768xf32> to vector<2x128xf32>
    %197 = arith.mulf %193, %196 : vector<2x128xf32>
    %198 = arith.addf %195, %197 : vector<2x128xf32>
    %199 = math.tanh %198 : vector<2x128xf32>
    %cst_37 = arith.constant 1.000000e+00 : f32
    %200 = vector.broadcast %cst_37 : f32 to vector<2x128xf32>
    %201 = arith.subf %200, %194 : vector<2x128xf32>
    %202 = arith.mulf %201, %199 : vector<2x128xf32>
    %203 = vector.extract_strided_slice %158 {offsets = [0, 128], sizes = [2, 128], strides = [1, 1]} : vector<2x256xf32> to vector<2x128xf32>
    %204 = arith.mulf %194, %203 : vector<2x128xf32>
    %205 = arith.addf %202, %204 : vector<2x128xf32>
    %206 = tpu.concatenate %182, %205 in 1 : vector<2x128xf32>, vector<2x128xf32> -> vector<2x256xf32>
    %207 = vector.extract_strided_slice %13 {offsets = [8, 0], sizes = [2, 384], strides = [1, 1]} : vector<16x384xf32> to vector<2x384xf32>
    %cst_38 = arith.constant dense<0.000000e+00> : vector<2x768xf32>
    %208 = tpu.matmul %206, %1, %cst_38 {dimension_numbers = #tpu.dot_dimension_numbers<[1], [0], [0], [1], [0, 0, 1, 1], [], []>} : vector<2x256xf32>, vector<256x768xf32>, vector<2x768xf32> -> vector<2x768xf32>
    %209 = arith.addf %208, %5 : vector<2x768xf32>
    %210 = vector.extract_strided_slice %207 {offsets = [0, 0], sizes = [2, 256], strides = [1, 1]} : vector<2x384xf32> to vector<2x256xf32>
    %211 = vector.extract_strided_slice %209 {offsets = [0, 0], sizes = [2, 256], strides = [1, 1]} : vector<2x768xf32> to vector<2x256xf32>
    %212 = arith.addf %210, %211 : vector<2x256xf32>
    %213 = arith.negf %212 : vector<2x256xf32>
    %214 = math.exp %213 : vector<2x256xf32>
    %cst_39 = arith.constant 1.000000e+00 : f32
    %215 = vector.broadcast %cst_39 : f32 to vector<2x256xf32>
    %216 = arith.addf %215, %214 : vector<2x256xf32>
    %217 = arith.divf %215, %216 : vector<2x256xf32>
    %218 = vector.extract_strided_slice %217 {offsets = [0, 0], sizes = [2, 128], strides = [1, 1]} : vector<2x256xf32> to vector<2x128xf32>
    %219 = vector.extract_strided_slice %217 {offsets = [0, 128], sizes = [2, 128], strides = [1, 1]} : vector<2x256xf32> to vector<2x128xf32>
    %220 = vector.extract_strided_slice %207 {offsets = [0, 256], sizes = [2, 128], strides = [1, 1]} : vector<2x384xf32> to vector<2x128xf32>
    %221 = vector.extract_strided_slice %209 {offsets = [0, 256], sizes = [2, 128], strides = [1, 1]} : vector<2x768xf32> to vector<2x128xf32>
    %222 = arith.mulf %218, %221 : vector<2x128xf32>
    %223 = arith.addf %220, %222 : vector<2x128xf32>
    %224 = math.tanh %223 : vector<2x128xf32>
    %cst_40 = arith.constant 1.000000e+00 : f32
    %225 = vector.broadcast %cst_40 : f32 to vector<2x128xf32>
    %226 = arith.subf %225, %219 : vector<2x128xf32>
    %227 = arith.mulf %226, %224 : vector<2x128xf32>
    %228 = vector.extract_strided_slice %206 {offsets = [0, 0], sizes = [2, 128], strides = [1, 1]} : vector<2x256xf32> to vector<2x128xf32>
    %229 = arith.mulf %219, %228 : vector<2x128xf32>
    %230 = arith.addf %227, %229 : vector<2x128xf32>
    %cst_41 = arith.constant dense<0.000000e+00> : vector<2x384xf32>
    %231 = tpu.matmul %230, %2, %cst_41 {dimension_numbers = #tpu.dot_dimension_numbers<[1], [0], [0], [1], [0, 0, 1, 1], [], []>} : vector<2x128xf32>, vector<128x384xf32>, vector<2x384xf32> -> vector<2x384xf32>
    %232 = arith.addf %231, %8 : vector<2x384xf32>
    %233 = vector.extract_strided_slice %232 {offsets = [0, 0], sizes = [2, 256], strides = [1, 1]} : vector<2x384xf32> to vector<2x256xf32>
    %234 = vector.extract_strided_slice %209 {offsets = [0, 384], sizes = [2, 256], strides = [1, 1]} : vector<2x768xf32> to vector<2x256xf32>
    %235 = arith.addf %233, %234 : vector<2x256xf32>
    %236 = arith.negf %235 : vector<2x256xf32>
    %237 = math.exp %236 : vector<2x256xf32>
    %cst_42 = arith.constant 1.000000e+00 : f32
    %238 = vector.broadcast %cst_42 : f32 to vector<2x256xf32>
    %239 = arith.addf %238, %237 : vector<2x256xf32>
    %240 = arith.divf %238, %239 : vector<2x256xf32>
    %241 = vector.extract_strided_slice %240 {offsets = [0, 0], sizes = [2, 128], strides = [1, 1]} : vector<2x256xf32> to vector<2x128xf32>
    %242 = vector.extract_strided_slice %240 {offsets = [0, 128], sizes = [2, 128], strides = [1, 1]} : vector<2x256xf32> to vector<2x128xf32>
    %243 = vector.extract_strided_slice %232 {offsets = [0, 256], sizes = [2, 128], strides = [1, 1]} : vector<2x384xf32> to vector<2x128xf32>
    %244 = vector.extract_strided_slice %209 {offsets = [0, 640], sizes = [2, 128], strides = [1, 1]} : vector<2x768xf32> to vector<2x128xf32>
    %245 = arith.mulf %241, %244 : vector<2x128xf32>
    %246 = arith.addf %243, %245 : vector<2x128xf32>
    %247 = math.tanh %246 : vector<2x128xf32>
    %cst_43 = arith.constant 1.000000e+00 : f32
    %248 = vector.broadcast %cst_43 : f32 to vector<2x128xf32>
    %249 = arith.subf %248, %242 : vector<2x128xf32>
    %250 = arith.mulf %249, %247 : vector<2x128xf32>
    %251 = vector.extract_strided_slice %206 {offsets = [0, 128], sizes = [2, 128], strides = [1, 1]} : vector<2x256xf32> to vector<2x128xf32>
    %252 = arith.mulf %242, %251 : vector<2x128xf32>
    %253 = arith.addf %250, %252 : vector<2x128xf32>
    %254 = tpu.concatenate %230, %253 in 1 : vector<2x128xf32>, vector<2x128xf32> -> vector<2x256xf32>
    %255 = vector.extract_strided_slice %13 {offsets = [10, 0], sizes = [2, 384], strides = [1, 1]} : vector<16x384xf32> to vector<2x384xf32>
    %cst_44 = arith.constant dense<0.000000e+00> : vector<2x768xf32>
    %256 = tpu.matmul %254, %1, %cst_44 {dimension_numbers = #tpu.dot_dimension_numbers<[1], [0], [0], [1], [0, 0, 1, 1], [], []>} : vector<2x256xf32>, vector<256x768xf32>, vector<2x768xf32> -> vector<2x768xf32>
    %257 = arith.addf %256, %5 : vector<2x768xf32>
    %258 = vector.extract_strided_slice %255 {offsets = [0, 0], sizes = [2, 256], strides = [1, 1]} : vector<2x384xf32> to vector<2x256xf32>
    %259 = vector.extract_strided_slice %257 {offsets = [0, 0], sizes = [2, 256], strides = [1, 1]} : vector<2x768xf32> to vector<2x256xf32>
    %260 = arith.addf %258, %259 : vector<2x256xf32>
    %261 = arith.negf %260 : vector<2x256xf32>
    %262 = math.exp %261 : vector<2x256xf32>
    %cst_45 = arith.constant 1.000000e+00 : f32
    %263 = vector.broadcast %cst_45 : f32 to vector<2x256xf32>
    %264 = arith.addf %263, %262 : vector<2x256xf32>
    %265 = arith.divf %263, %264 : vector<2x256xf32>
    %266 = vector.extract_strided_slice %265 {offsets = [0, 0], sizes = [2, 128], strides = [1, 1]} : vector<2x256xf32> to vector<2x128xf32>
    %267 = vector.extract_strided_slice %265 {offsets = [0, 128], sizes = [2, 128], strides = [1, 1]} : vector<2x256xf32> to vector<2x128xf32>
    %268 = vector.extract_strided_slice %255 {offsets = [0, 256], sizes = [2, 128], strides = [1, 1]} : vector<2x384xf32> to vector<2x128xf32>
    %269 = vector.extract_strided_slice %257 {offsets = [0, 256], sizes = [2, 128], strides = [1, 1]} : vector<2x768xf32> to vector<2x128xf32>
    %270 = arith.mulf %266, %269 : vector<2x128xf32>
    %271 = arith.addf %268, %270 : vector<2x128xf32>
    %272 = math.tanh %271 : vector<2x128xf32>
    %cst_46 = arith.constant 1.000000e+00 : f32
    %273 = vector.broadcast %cst_46 : f32 to vector<2x128xf32>
    %274 = arith.subf %273, %267 : vector<2x128xf32>
    %275 = arith.mulf %274, %272 : vector<2x128xf32>
    %276 = vector.extract_strided_slice %254 {offsets = [0, 0], sizes = [2, 128], strides = [1, 1]} : vector<2x256xf32> to vector<2x128xf32>
    %277 = arith.mulf %267, %276 : vector<2x128xf32>
    %278 = arith.addf %275, %277 : vector<2x128xf32>
    %cst_47 = arith.constant dense<0.000000e+00> : vector<2x384xf32>
    %279 = tpu.matmul %278, %2, %cst_47 {dimension_numbers = #tpu.dot_dimension_numbers<[1], [0], [0], [1], [0, 0, 1, 1], [], []>} : vector<2x128xf32>, vector<128x384xf32>, vector<2x384xf32> -> vector<2x384xf32>
    %280 = arith.addf %279, %8 : vector<2x384xf32>
    %281 = vector.extract_strided_slice %280 {offsets = [0, 0], sizes = [2, 256], strides = [1, 1]} : vector<2x384xf32> to vector<2x256xf32>
    %282 = vector.extract_strided_slice %257 {offsets = [0, 384], sizes = [2, 256], strides = [1, 1]} : vector<2x768xf32> to vector<2x256xf32>
    %283 = arith.addf %281, %282 : vector<2x256xf32>
    %284 = arith.negf %283 : vector<2x256xf32>
    %285 = math.exp %284 : vector<2x256xf32>
    %cst_48 = arith.constant 1.000000e+00 : f32
    %286 = vector.broadcast %cst_48 : f32 to vector<2x256xf32>
    %287 = arith.addf %286, %285 : vector<2x256xf32>
    %288 = arith.divf %286, %287 : vector<2x256xf32>
    %289 = vector.extract_strided_slice %288 {offsets = [0, 0], sizes = [2, 128], strides = [1, 1]} : vector<2x256xf32> to vector<2x128xf32>
    %290 = vector.extract_strided_slice %288 {offsets = [0, 128], sizes = [2, 128], strides = [1, 1]} : vector<2x256xf32> to vector<2x128xf32>
    %291 = vector.extract_strided_slice %280 {offsets = [0, 256], sizes = [2, 128], strides = [1, 1]} : vector<2x384xf32> to vector<2x128xf32>
    %292 = vector.extract_strided_slice %257 {offsets = [0, 640], sizes = [2, 128], strides = [1, 1]} : vector<2x768xf32> to vector<2x128xf32>
    %293 = arith.mulf %289, %292 : vector<2x128xf32>
    %294 = arith.addf %291, %293 : vector<2x128xf32>
    %295 = math.tanh %294 : vector<2x128xf32>
    %cst_49 = arith.constant 1.000000e+00 : f32
    %296 = vector.broadcast %cst_49 : f32 to vector<2x128xf32>
    %297 = arith.subf %296, %290 : vector<2x128xf32>
    %298 = arith.mulf %297, %295 : vector<2x128xf32>
    %299 = vector.extract_strided_slice %254 {offsets = [0, 128], sizes = [2, 128], strides = [1, 1]} : vector<2x256xf32> to vector<2x128xf32>
    %300 = arith.mulf %290, %299 : vector<2x128xf32>
    %301 = arith.addf %298, %300 : vector<2x128xf32>
    %302 = tpu.concatenate %278, %301 in 1 : vector<2x128xf32>, vector<2x128xf32> -> vector<2x256xf32>
    %303 = vector.extract_strided_slice %13 {offsets = [12, 0], sizes = [2, 384], strides = [1, 1]} : vector<16x384xf32> to vector<2x384xf32>
    %cst_50 = arith.constant dense<0.000000e+00> : vector<2x768xf32>
    %304 = tpu.matmul %302, %1, %cst_50 {dimension_numbers = #tpu.dot_dimension_numbers<[1], [0], [0], [1], [0, 0, 1, 1], [], []>} : vector<2x256xf32>, vector<256x768xf32>, vector<2x768xf32> -> vector<2x768xf32>
    %305 = arith.addf %304, %5 : vector<2x768xf32>
    %306 = vector.extract_strided_slice %303 {offsets = [0, 0], sizes = [2, 256], strides = [1, 1]} : vector<2x384xf32> to vector<2x256xf32>
    %307 = vector.extract_strided_slice %305 {offsets = [0, 0], sizes = [2, 256], strides = [1, 1]} : vector<2x768xf32> to vector<2x256xf32>
    %308 = arith.addf %306, %307 : vector<2x256xf32>
    %309 = arith.negf %308 : vector<2x256xf32>
    %310 = math.exp %309 : vector<2x256xf32>
    %cst_51 = arith.constant 1.000000e+00 : f32
    %311 = vector.broadcast %cst_51 : f32 to vector<2x256xf32>
    %312 = arith.addf %311, %310 : vector<2x256xf32>
    %313 = arith.divf %311, %312 : vector<2x256xf32>
    %314 = vector.extract_strided_slice %313 {offsets = [0, 0], sizes = [2, 128], strides = [1, 1]} : vector<2x256xf32> to vector<2x128xf32>
    %315 = vector.extract_strided_slice %313 {offsets = [0, 128], sizes = [2, 128], strides = [1, 1]} : vector<2x256xf32> to vector<2x128xf32>
    %316 = vector.extract_strided_slice %303 {offsets = [0, 256], sizes = [2, 128], strides = [1, 1]} : vector<2x384xf32> to vector<2x128xf32>
    %317 = vector.extract_strided_slice %305 {offsets = [0, 256], sizes = [2, 128], strides = [1, 1]} : vector<2x768xf32> to vector<2x128xf32>
    %318 = arith.mulf %314, %317 : vector<2x128xf32>
    %319 = arith.addf %316, %318 : vector<2x128xf32>
    %320 = math.tanh %319 : vector<2x128xf32>
    %cst_52 = arith.constant 1.000000e+00 : f32
    %321 = vector.broadcast %cst_52 : f32 to vector<2x128xf32>
    %322 = arith.subf %321, %315 : vector<2x128xf32>
    %323 = arith.mulf %322, %320 : vector<2x128xf32>
    %324 = vector.extract_strided_slice %302 {offsets = [0, 0], sizes = [2, 128], strides = [1, 1]} : vector<2x256xf32> to vector<2x128xf32>
    %325 = arith.mulf %315, %324 : vector<2x128xf32>
    %326 = arith.addf %323, %325 : vector<2x128xf32>
    %cst_53 = arith.constant dense<0.000000e+00> : vector<2x384xf32>
    %327 = tpu.matmul %326, %2, %cst_53 {dimension_numbers = #tpu.dot_dimension_numbers<[1], [0], [0], [1], [0, 0, 1, 1], [], []>} : vector<2x128xf32>, vector<128x384xf32>, vector<2x384xf32> -> vector<2x384xf32>
    %328 = arith.addf %327, %8 : vector<2x384xf32>
    %329 = vector.extract_strided_slice %328 {offsets = [0, 0], sizes = [2, 256], strides = [1, 1]} : vector<2x384xf32> to vector<2x256xf32>
    %330 = vector.extract_strided_slice %305 {offsets = [0, 384], sizes = [2, 256], strides = [1, 1]} : vector<2x768xf32> to vector<2x256xf32>
    %331 = arith.addf %329, %330 : vector<2x256xf32>
    %332 = arith.negf %331 : vector<2x256xf32>
    %333 = math.exp %332 : vector<2x256xf32>
    %cst_54 = arith.constant 1.000000e+00 : f32
    %334 = vector.broadcast %cst_54 : f32 to vector<2x256xf32>
    %335 = arith.addf %334, %333 : vector<2x256xf32>
    %336 = arith.divf %334, %335 : vector<2x256xf32>
    %337 = vector.extract_strided_slice %336 {offsets = [0, 0], sizes = [2, 128], strides = [1, 1]} : vector<2x256xf32> to vector<2x128xf32>
    %338 = vector.extract_strided_slice %336 {offsets = [0, 128], sizes = [2, 128], strides = [1, 1]} : vector<2x256xf32> to vector<2x128xf32>
    %339 = vector.extract_strided_slice %328 {offsets = [0, 256], sizes = [2, 128], strides = [1, 1]} : vector<2x384xf32> to vector<2x128xf32>
    %340 = vector.extract_strided_slice %305 {offsets = [0, 640], sizes = [2, 128], strides = [1, 1]} : vector<2x768xf32> to vector<2x128xf32>
    %341 = arith.mulf %337, %340 : vector<2x128xf32>
    %342 = arith.addf %339, %341 : vector<2x128xf32>
    %343 = math.tanh %342 : vector<2x128xf32>
    %cst_55 = arith.constant 1.000000e+00 : f32
    %344 = vector.broadcast %cst_55 : f32 to vector<2x128xf32>
    %345 = arith.subf %344, %338 : vector<2x128xf32>
    %346 = arith.mulf %345, %343 : vector<2x128xf32>
    %347 = vector.extract_strided_slice %302 {offsets = [0, 128], sizes = [2, 128], strides = [1, 1]} : vector<2x256xf32> to vector<2x128xf32>
    %348 = arith.mulf %338, %347 : vector<2x128xf32>
    %349 = arith.addf %346, %348 : vector<2x128xf32>
    %350 = tpu.concatenate %326, %349 in 1 : vector<2x128xf32>, vector<2x128xf32> -> vector<2x256xf32>
    %351 = vector.extract_strided_slice %13 {offsets = [14, 0], sizes = [2, 384], strides = [1, 1]} : vector<16x384xf32> to vector<2x384xf32>
    %cst_56 = arith.constant dense<0.000000e+00> : vector<2x768xf32>
    %352 = tpu.matmul %350, %1, %cst_56 {dimension_numbers = #tpu.dot_dimension_numbers<[1], [0], [0], [1], [0, 0, 1, 1], [], []>} : vector<2x256xf32>, vector<256x768xf32>, vector<2x768xf32> -> vector<2x768xf32>
    %353 = arith.addf %352, %5 : vector<2x768xf32>
    %354 = vector.extract_strided_slice %351 {offsets = [0, 0], sizes = [2, 256], strides = [1, 1]} : vector<2x384xf32> to vector<2x256xf32>
    %355 = vector.extract_strided_slice %353 {offsets = [0, 0], sizes = [2, 256], strides = [1, 1]} : vector<2x768xf32> to vector<2x256xf32>
    %356 = arith.addf %354, %355 : vector<2x256xf32>
    %357 = arith.negf %356 : vector<2x256xf32>
    %358 = math.exp %357 : vector<2x256xf32>
    %cst_57 = arith.constant 1.000000e+00 : f32
    %359 = vector.broadcast %cst_57 : f32 to vector<2x256xf32>
    %360 = arith.addf %359, %358 : vector<2x256xf32>
    %361 = arith.divf %359, %360 : vector<2x256xf32>
    %362 = vector.extract_strided_slice %361 {offsets = [0, 0], sizes = [2, 128], strides = [1, 1]} : vector<2x256xf32> to vector<2x128xf32>
    %363 = vector.extract_strided_slice %361 {offsets = [0, 128], sizes = [2, 128], strides = [1, 1]} : vector<2x256xf32> to vector<2x128xf32>
    %364 = vector.extract_strided_slice %351 {offsets = [0, 256], sizes = [2, 128], strides = [1, 1]} : vector<2x384xf32> to vector<2x128xf32>
    %365 = vector.extract_strided_slice %353 {offsets = [0, 256], sizes = [2, 128], strides = [1, 1]} : vector<2x768xf32> to vector<2x128xf32>
    %366 = arith.mulf %362, %365 : vector<2x128xf32>
    %367 = arith.addf %364, %366 : vector<2x128xf32>
    %368 = math.tanh %367 : vector<2x128xf32>
    %cst_58 = arith.constant 1.000000e+00 : f32
    %369 = vector.broadcast %cst_58 : f32 to vector<2x128xf32>
    %370 = arith.subf %369, %363 : vector<2x128xf32>
    %371 = arith.mulf %370, %368 : vector<2x128xf32>
    %372 = vector.extract_strided_slice %350 {offsets = [0, 0], sizes = [2, 128], strides = [1, 1]} : vector<2x256xf32> to vector<2x128xf32>
    %373 = arith.mulf %363, %372 : vector<2x128xf32>
    %374 = arith.addf %371, %373 : vector<2x128xf32>
    %cst_59 = arith.constant dense<0.000000e+00> : vector<2x384xf32>
    %375 = tpu.matmul %374, %2, %cst_59 {dimension_numbers = #tpu.dot_dimension_numbers<[1], [0], [0], [1], [0, 0, 1, 1], [], []>} : vector<2x128xf32>, vector<128x384xf32>, vector<2x384xf32> -> vector<2x384xf32>
    %376 = arith.addf %375, %8 : vector<2x384xf32>
    %377 = vector.extract_strided_slice %376 {offsets = [0, 0], sizes = [2, 256], strides = [1, 1]} : vector<2x384xf32> to vector<2x256xf32>
    %378 = vector.extract_strided_slice %353 {offsets = [0, 384], sizes = [2, 256], strides = [1, 1]} : vector<2x768xf32> to vector<2x256xf32>
    %379 = arith.addf %377, %378 : vector<2x256xf32>
    %380 = arith.negf %379 : vector<2x256xf32>
    %381 = math.exp %380 : vector<2x256xf32>
    %cst_60 = arith.constant 1.000000e+00 : f32
    %382 = vector.broadcast %cst_60 : f32 to vector<2x256xf32>
    %383 = arith.addf %382, %381 : vector<2x256xf32>
    %384 = arith.divf %382, %383 : vector<2x256xf32>
    %385 = vector.extract_strided_slice %384 {offsets = [0, 0], sizes = [2, 128], strides = [1, 1]} : vector<2x256xf32> to vector<2x128xf32>
    %386 = vector.extract_strided_slice %384 {offsets = [0, 128], sizes = [2, 128], strides = [1, 1]} : vector<2x256xf32> to vector<2x128xf32>
    %387 = vector.extract_strided_slice %376 {offsets = [0, 256], sizes = [2, 128], strides = [1, 1]} : vector<2x384xf32> to vector<2x128xf32>
    %388 = vector.extract_strided_slice %353 {offsets = [0, 640], sizes = [2, 128], strides = [1, 1]} : vector<2x768xf32> to vector<2x128xf32>
    %389 = arith.mulf %385, %388 : vector<2x128xf32>
    %390 = arith.addf %387, %389 : vector<2x128xf32>
    %391 = math.tanh %390 : vector<2x128xf32>
    %cst_61 = arith.constant 1.000000e+00 : f32
    %392 = vector.broadcast %cst_61 : f32 to vector<2x128xf32>
    %393 = arith.subf %392, %386 : vector<2x128xf32>
    %394 = arith.mulf %393, %391 : vector<2x128xf32>
    %395 = vector.extract_strided_slice %350 {offsets = [0, 128], sizes = [2, 128], strides = [1, 1]} : vector<2x256xf32> to vector<2x128xf32>
    %396 = arith.mulf %386, %395 : vector<2x128xf32>
    %397 = arith.addf %394, %396 : vector<2x128xf32>
    %398 = tpu.concatenate %374, %397 in 1 : vector<2x128xf32>, vector<2x128xf32> -> vector<2x256xf32>
    %399 = vector.extract_strided_slice %398 {offsets = [0, 128], sizes = [2, 128], strides = [1, 1]} : vector<2x256xf32> to vector<2x128xf32>
    %c0_62 = arith.constant 0 : index
    %c0_63 = arith.constant 0 : index
    %400 = vector.load %arg7[%c0_62, %c0_63] : memref<128x128xf32, #tpu.memory_space<vmem>>, vector<128x128xf32>
    %cst_64 = arith.constant dense<0.000000e+00> : vector<2x128xf32>
    %401 = tpu.matmul %399, %400, %cst_64 {dimension_numbers = #tpu.dot_dimension_numbers<[1], [0], [0], [1], [0, 0, 1, 1], [], []>} : vector<2x128xf32>, vector<128x128xf32>, vector<2x128xf32> -> vector<2x128xf32>
    %c0_65 = arith.constant 0 : index
    %c0_66 = arith.constant 0 : index
    %402 = vector.load %arg8[%c0_65, %c0_66] : memref<1x128xf32, #tpu.memory_space<vmem>>, vector<1x128xf32>
    %403 = vector.broadcast %402 : vector<1x128xf32> to vector<2x128xf32>
    %404 = arith.addf %401, %403 : vector<2x128xf32>
    %cst_67 = arith.constant 0.000000e+00 : f32
    %405 = vector.broadcast %cst_67 : f32 to vector<2x128xf32>
    %406 = arith.maximumf %404, %405 : vector<2x128xf32>
    %c0_68 = arith.constant 0 : index
    %c0_69 = arith.constant 0 : index
    %407 = vector.load %arg9[%c0_68, %c0_69] : memref<128x128xf32, #tpu.memory_space<vmem>>, vector<128x128xf32>
    %cst_70 = arith.constant dense<0.000000e+00> : vector<2x128xf32>
    %408 = tpu.matmul %406, %407, %cst_70 {dimension_numbers = #tpu.dot_dimension_numbers<[1], [0], [0], [1], [0, 0, 1, 1], [], []>} : vector<2x128xf32>, vector<128x128xf32>, vector<2x128xf32> -> vector<2x128xf32>
    %c0_71 = arith.constant 0 : index
    %c0_72 = arith.constant 0 : index
    %409 = vector.load %arg10[%c0_71, %c0_72] : memref<1x128xf32, #tpu.memory_space<vmem>>, vector<1x128xf32>
    %410 = vector.broadcast %409 : vector<1x128xf32> to vector<2x128xf32>
    %411 = arith.addf %408, %410 : vector<2x128xf32>
    %cst_73 = arith.constant 0.000000e+00 : f32
    %412 = vector.broadcast %cst_73 : f32 to vector<2x128xf32>
    %413 = arith.maximumf %411, %412 : vector<2x128xf32>
    %c0_74 = arith.constant 0 : index
    %c0_75 = arith.constant 0 : index
    %414 = vector.load %arg11[%c0_74, %c0_75] : memref<128x128xf32, #tpu.memory_space<vmem>>, vector<128x128xf32>
    %cst_76 = arith.constant dense<0.000000e+00> : vector<2x128xf32>
    %415 = tpu.matmul %413, %414, %cst_76 {dimension_numbers = #tpu.dot_dimension_numbers<[1], [0], [0], [1], [0, 0, 1, 1], [], []>} : vector<2x128xf32>, vector<128x128xf32>, vector<2x128xf32> -> vector<2x128xf32>
    %c0_77 = arith.constant 0 : index
    %c0_78 = arith.constant 0 : index
    %416 = vector.load %arg12[%c0_77, %c0_78] : memref<1x128xf32, #tpu.memory_space<vmem>>, vector<1x128xf32>
    %417 = vector.broadcast %416 : vector<1x128xf32> to vector<2x128xf32>
    %418 = arith.addf %415, %417 : vector<2x128xf32>
    %c0_79 = arith.constant 0 : index
    %c0_80 = arith.constant 0 : index
    %419 = vector.load %arg13[%c0_79, %c0_80] : memref<2x128xf32, #tpu.memory_space<vmem>>, vector<2x128xf32>
    tpu.vector_store %arg13[%c0_79, %c0_80], %418 {strides = array<i32>} : memref<2x128xf32, #tpu.memory_space<vmem>>, vector<2x128xf32>,
    return
  }
}

</mosaic_0001>

<bundles_post_ra>
// kernel: gru_model_forward.1
= control target key start
LH: loop header
LB: loop body
LE: loop exit
PB: predicated region body
PF: predicated region fallthrough
CT: control target
= control target key end

     0   :  { %18 = vsyncpa [#allocation3], 0  ;;  %s10362_s0 = inlined_call_operand.vmem [shape: f32[16,16], index: 0, kind: input, shape index: {}]   ;;  %s10363_s1 = inlined_call_operand.vmem [shape: f32[16,384], index: 1, kind: input, shape index: {}]   ;;  %s10364_s2 = inlined_call_operand.hbm [shape: f32[1,384], index: 2, kind: input, shape index: {}]   ;;  %s10365_s3 = inlined_call_operand.hbm [shape: f32[256,768], index: 3, kind: input, shape index: {}]   ;;  %s10366_s4 = inlined_call_operand.vmem [shape: f32[1,768], index: 4, kind: input, shape index: {}]   ;;  %s10367_s5 = inlined_call_operand.hbm [shape: f32[128,384], index: 5, kind: input, shape index: {}]   ;;  %s10368_s6 = inlined_call_operand.hbm [shape: f32[1,384], index: 6, kind: input, shape index: {}]   ;;  %s10369_s7 = inlined_call_operand.hbm [shape: f32[128,128], index: 7, kind: input, shape index: {}]   ;;  %s10370_s8 = inlined_call_operand.vmem [shape: f32[1,128], index: 8, kind: input, shape index: {}]   ;;  %s10371_s9 = inlined_call_operand.hbm [shape: f32[128,128], index: 9, kind: input, shape index: {}]   ;;  %s10372_s10 = inlined_call_operand.hbm [shape: f32[1,128], index: 10, kind: input, shape index: {}]   ;;  %s10373_s11 = inlined_call_operand.hbm [shape: f32[128,128], index: 11, kind: input, shape index: {}]   ;;  %s10374_s12 = inlined_call_operand.hbm [shape: f32[1,128], index: 12, kind: input, shape index: {}]   ;;  %s10375_s13 = inlined_call_operand.hbm [shape: f32[2,128], index: 13, kind: output, shape index: {}]  }
   0x1   :  { %19 = vsyncpa [#allocation6], 0 }
   0x2   :  { %20 = vsyncpa [#allocation9], 0 }
   0x3   :  { %21 = vsyncpa [#allocation12], 0 }
   0x4   :  { %22 = vsyncpa [#allocation15], 0 }
   0x5   :  { %23 = vsyncpa [#allocation4], 0  ;;  %s5970_s25 = smov [#allocation5]  }
   0x6   :  { %s43_s26 = sshll.u32 %s5970_s25, 4  ;;  %s44_s26 = int_to_ptr.vmem [resolvable:$true] %s43_s26 }
   0x7   :  { %s5766_s27 = scalar_lea.vmem %s44_s26, 24576  ;;  %p5771_p1 = scmp.lt.s32.totalorder %s44_s26, %s44_s26 }
   0x8   :  { %p5767_p0 = scmp.ne.s32.totalorder %s44_s26, %s5766_s27  ;;  %p5772_p2 = scmp.lt.s32.totalorder %s5766_s27, %s5766_s27 }
   0xa   :  { %p5773_p3 = por %p5772_p2, %p5771_p1 }
   0xc   :  { %p5774_p4 = pnand %p5773_p3, %p5767_p0 }
   0xe   :  { %5777 = shalt.err (!%p5774_p4)
}
   0xf   :  { %s5971_s28 = smov 768   ;;  %s5972_s29 = smov 48  }
  0x10   :  { %49 = dma.hbm_to_vmem [thread:$0]  %s10365_s3, 24576, %s44_s26, [#allocation6], %s5971_s28, %s5971_s28, %s5972_s29  }
  0x11   :  { %s5973_s15 = smov [#allocation8]  }
  0x12   :  { %s70_s16 = sshll.u32 %s5973_s15, 4  ;;  %s71_s16 = int_to_ptr.vmem [resolvable:$true] %s70_s16 }
  0x13   :  { %s5786_s17 = scalar_lea.vmem %s71_s16, 48  ;;  %s5790_s18 = scalar_lea.vmem %s71_s16, 64 }
  0x14   :  { %p5787_p5 = scmp.ne.s32.totalorder %s71_s16, %s5786_s17  ;;  %p5791_p6 = scmp.lt.s32.totalorder %s71_s16, %s71_s16 }
  0x15   :  { %p5792_p7 = scmp.lt.s32.totalorder %s5790_s18, %s5786_s17 }
  0x17   :  { %p5793_p8 = por %p5792_p7, %p5791_p6 }
  0x19   :  { %p5794_p9 = pnand %p5793_p8, %p5787_p5 }
  0x1b   :  { %5797 = shalt.err (!%p5794_p9)
}
  0x1c   :  { %73 = dma.hbm_to_vmem [thread:$0]  %s10368_s6, 48, %s71_s16, [#allocation9]  }
  0x1d   :  { %s5974_s21 = smov [#allocation11]   ;;  %s5975_s23 = smov [#allocation14]  }
  0x1e   :  { %s93_s22 = sshll.u32 %s5974_s21, 4  ;;  %s115_s24 = sshll.u32 %s5975_s23, 4  ;;  %s94_s22 = int_to_ptr.vmem [resolvable:$true] %s93_s22  ;;  %s116_s24 = int_to_ptr.vmem [resolvable:$true] %s115_s24 }
  0x1f   :  { %s5806_s3 = scalar_lea.vmem %s94_s22, 2048  ;;  %p5811_p11 = scmp.lt.s32.totalorder %s94_s22, %s94_s22 }
  0x20   :  { %p5807_p10 = scmp.ne.s32.totalorder %s94_s22, %s5806_s3  ;;  %p5812_p12 = scmp.lt.s32.totalorder %s5806_s3, %s5806_s3 }
  0x22   :  { %p5813_p13 = por %p5812_p12, %p5811_p11 }
  0x24   :  { %p5814_p0 = pnand %p5813_p13, %p5807_p10 }
  0x26   :  { %5817 = shalt.err (!%p5814_p0)
}
  0x27   :  { %s5976_s25 = smov 128   ;;  %s5977_s26 = smov 8  }
  0x28   :  { %99 = dma.hbm_to_vmem [thread:$0]  %s10371_s9, 2048, %s94_s22, [#allocation12], %s5976_s25, %s5976_s25, %s5977_s26  }
  0x29   :  { %s5826_s28 = scalar_lea.vmem %s116_s24, 2048  ;;  %p5831_p2 = scmp.lt.s32.totalorder %s116_s24, %s116_s24 }
  0x2a   :  { %p5827_p1 = scmp.ne.s32.totalorder %s116_s24, %s5826_s28  ;;  %p5832_p3 = scmp.lt.s32.totalorder %s5826_s28, %s5826_s28 }
  0x2c   :  { %p5833_p4 = por %p5832_p3, %p5831_p2 }
  0x2e   :  { %p5834_p5 = pnand %p5833_p4, %p5827_p1 }
  0x30   :  { %5837 = shalt.err (!%p5834_p5)
}
  0x31   :  { %121 = dma.hbm_to_vmem [thread:$0]  %s10373_s11, 2048, %s116_s24, [#allocation15], %s5976_s25, %s5976_s25, %s5977_s26  }
  0x32   :  { %s5978_s14 = smov [#allocation2]   ;;  %s5979_s16 = smov [#allocation7]  }
  0x33   :  { %s34_s15 = sshll.u32 %s5978_s14, 4  ;;  %s57_s17 = sshll.u32 %s5979_s16, 4  ;;  %s35_s15 = int_to_ptr.vmem [resolvable:$true] %s34_s15  ;;  %s58_s17 = int_to_ptr.vmem [resolvable:$true] %s57_s17 }
  0x34   :  { %s5846_s9 = scalar_lea.vmem %s35_s15, 48  ;;  %s5850_s18 = scalar_lea.vmem %s35_s15, 64 }
  0x35   :  { %p5847_p6 = scmp.ne.s32.totalorder %s35_s15, %s5846_s9  ;;  %p5851_p7 = scmp.lt.s32.totalorder %s35_s15, %s35_s15 }
  0x36   :  { %p5852_p8 = scmp.lt.s32.totalorder %s5850_s18, %s5846_s9 }
  0x38   :  { %p5853_p9 = por %p5852_p8, %p5851_p7 }
  0x3a   :  { %p5854_p10 = pnand %p5853_p9, %p5847_p6 }
  0x3c   :  { %5857 = shalt.err (!%p5854_p10)
}
  0x3d   :  { %37 = dma.hbm_to_vmem [thread:$0]  %s10364_s2, 48, %s35_s15, [#allocation3]  }
  0x3e   :  { %s5866_s21 = scalar_lea.vmem %s58_s17, 6144  ;;  %p5871_p12 = scmp.lt.s32.totalorder %s58_s17, %s58_s17 }
  0x3f   :  { %p5867_p11 = scmp.ne.s32.totalorder %s58_s17, %s5866_s21  ;;  %p5872_p13 = scmp.lt.s32.totalorder %s5866_s21, %s5866_s21 }
  0x41   :  { %p5873_p0 = por %p5872_p13, %p5871_p12 }
  0x43   :  { %p5874_p1 = pnand %p5873_p0, %p5867_p11 }
  0x45   :  { %5877 = shalt.err (!%p5874_p1)
}
  0x46   :  { %s5980_s11 = smov 384   ;;  %s5981_s22 = smov 24  }
  0x47   :  { %63 = dma.hbm_to_vmem [thread:$0]  %s10367_s5, 6144, %s58_s17, [#allocation6], %s5980_s11, %s5980_s11, %s5981_s22  }
  0x48   :  { %s5982_s3 = smov [#allocation10]   ;;  %s5983_s6 = smov [#allocation13]  }
  0x49   :  { %s79_s27 = sshll.u32 %s5982_s3, 4  ;;  %s106_s28 = sshll.u32 %s5983_s6, 4  ;;  %s80_s27 = int_to_ptr.vmem [resolvable:$true] %s79_s27  ;;  %s107_s28 = int_to_ptr.vmem [resolvable:$true] %s106_s28 }
  0x4a   :  { %s5886_s2 = scalar_lea.vmem %s80_s27, 2048  ;;  %p5891_p3 = scmp.lt.s32.totalorder %s80_s27, %s80_s27 }
  0x4b   :  { %p5887_p2 = scmp.ne.s32.totalorder %s80_s27, %s5886_s2  ;;  %p5892_p4 = scmp.lt.s32.totalorder %s5886_s2, %s5886_s2 }
  0x4d   :  { %p5893_p5 = por %p5892_p4, %p5891_p3 }
  0x4f   :  { %p5894_p6 = pnand %p5893_p5, %p5887_p2 }
  0x51   :  { %5897 = shalt.err (!%p5894_p6)
}
  0x52   :  { %85 = dma.hbm_to_vmem [thread:$0]  %s10369_s7, 2048, %s80_s27, [#allocation9], %s5976_s25, %s5976_s25, %s5977_s26  }
  0x53   :  { %s5906_s5 = scalar_lea.vmem %s107_s28, 16  ;;  %s5910_s14 = scalar_lea.vmem %s107_s28, 32 }
  0x54   :  { %p5907_p7 = scmp.ne.s32.totalorder %s107_s28, %s5906_s5  ;;  %p5911_p8 = scmp.lt.s32.totalorder %s107_s28, %s107_s28 }
  0x55   :  { %p5912_p9 = scmp.lt.s32.totalorder %s5910_s14, %s5906_s5 }
  0x57   :  { %p5913_p10 = por %p5912_p9, %p5911_p8 }
  0x59   :  { %p5914_p11 = pnand %p5913_p10, %p5907_p7 }
  0x5b   :  { %5917 = shalt.err (!%p5914_p11)
}
  0x5c   :  { %109 = dma.hbm_to_vmem [thread:$0]  %s10372_s10, 16, %s107_s28, [#allocation12]  }
  0x5d   :  { %s5984_s17 = smov [#allocation16]  }
  0x5e   :  { %s128_s9 = sshll.u32 %s5984_s17, 4  ;;  %s129_s9 = int_to_ptr.vmem [resolvable:$true] %s128_s9 }
  0x5f   :  { %s5926_s18 = scalar_lea.vmem %s129_s9, 16  ;;  %s5930_s19 = scalar_lea.vmem %s129_s9, 32 }
  0x60   :  { %p5927_p12 = scmp.ne.s32.totalorder %s129_s9, %s5926_s18  ;;  %p5931_p13 = scmp.lt.s32.totalorder %s129_s9, %s129_s9 }
  0x61   :  { %p5932_p0 = scmp.lt.s32.totalorder %s5930_s19, %s5926_s18 }
  0x63   :  { %p5933_p1 = por %p5932_p0, %p5931_p13 }
  0x65   :  { %p5934_p2 = pnand %p5933_p1, %p5927_p12 }
  0x67   :  { %5937 = shalt.err (!%p5934_p2)
}
  0x68   :  { %131 = dma.hbm_to_vmem [thread:$0]  %s10374_s12, 16, %s129_s9, [#allocation15]  }
  0x69   :  { %5958 = dma.done.wait [#allocation3], 48  }
  0x6a   :  { %5959 = vsyncadd [#allocation3], 4294967248 }
  0x6b   :  { %5960 = dma.done.wait [#allocation6], 30720  }
  0x6c   :  { %5961 = vsyncadd [#allocation6], 4294936576 }
  0x6d   :  { %5962 = dma.done.wait [#allocation9], 2096  }
  0x6e   :  { %5963 = vsyncadd [#allocation9], 4294965200 }
  0x6f   :  { %5964 = dma.done.wait [#allocation12], 2064  }
  0x70   :  { %5965 = vsyncadd [#allocation12], 4294965232 }
  0x71   :  { %5966 = dma.done.wait [#allocation15], 2064  }
  0x72   :  { %5967 = vsyncadd [#allocation15], 4294965232  ;;  %v10376_v0 = vmov 0.0   ;;  %v6096_v1 = vld [vmem:[#allocation5 + $0x2d8] sm:$0xff]  ;;  %v6098_v2 = vld [vmem:[#allocation5 + $0x2d0] sm:$0xff]  ;;  %vm473_vm0 = vcmask 130048  }
  0x73   :  { %544 = vmatprep.mubr.f32.mxu1 %v10376_v0  ;;  %696 = vmatprep.mubr.f32.mxu0 %v10376_v0  ;;  %v6100_v3 = vld [vmem:[#allocation5 + $0x2a8] sm:$0xff]  ;;  %v6103_v4 = vld [vmem:[#allocation5 + $0x2a0] sm:$0xff]  ;;  %v6106_v5 = vld [vmem:[#allocation5 + $0x278] sm:$0xff]  ;;  %vm5986_vm1 = vmmov 0  }
  0x74   :  { %632 = vmatprep.subr.mxu0 %v6096_v1  ;;  %v6109_v6 = vld [vmem:[#allocation5 + $0x270] sm:$0xff]  ;;  %v6112_v7 = vld [vmem:[#allocation5 + $0x248] sm:$0xff]  ;;  %v6115_v8 = vld [vmem:[#allocation5 + $0x240] sm:$0xff] }
  0x75   :  { %633 = vmatpush1.msra.mxu0 %v6098_v2  ;;  %v6118_v9 = vld [vmem:[#allocation5 + $0x218] sm:$0xff]  ;;  %v6121_v10 = vld [vmem:[#allocation5 + $0x210] sm:$0xff]  ;;  %v6130_v13 = vld [vmem:[#allocation5 + $0x1e8] sm:$0xff] }
  0x76   :  { %634 = vmatprep.subr.mxu0 %v6100_v3  ;;  %v163_v11 = vld [vmem:[%s10363_s1 + $0x20] sm:$0xff]  ;;  %v162_v12 = vld [vmem:[%s10363_s1 + $0x18] sm:$0xff]  ;;  %v160_v14 = vld [vmem:[%s10363_s1 + $0x8] sm:$0xff] }
  0x77   :  { %635 = vmatpush1.msra.mxu0 %v6103_v4  ;;  %508 = vmatprep.subr.mxu1 %v163_v11  ;;  %v6136_v15 = vld [vmem:[#allocation5 + $0x1e0] sm:$0xff]  ;;  %v6145_v18 = vld [vmem:[#allocation5 + $0x1b8] sm:$0xff]  ;;  %v6151_v20 = vld [vmem:[#allocation5 + $0x1b0] sm:$0xff] }
  0x78   :  { %636 = vmatprep.subr.mxu0 %v6106_v5  ;;  %509 = vmatpush1.msra.mxu1 %v162_v12  ;;  %v159_v16 = vld [vmem:[%s10363_s1] sm:$0xff]  ;;  %v164_v19 = vld [vmem:[%s10363_s1 + $0x28] sm:$0xff]  ;;  %v161_v25 = vld [vmem:[%s10363_s1 + $0x10] sm:$0xff] }
  0x79   :  { %637 = vmatpush1.msra.mxu0 %v6109_v6  ;;  %v454_v17 = vld [vmem:[%s10362_s0] sm:$0xff]  ;;  %510 = vmatprep.subr.mxu1 %v160_v14  ;;  %v6154_v21 = vld [vmem:[#allocation5 + $0x188] sm:$0xff]  ;;  %v6170_v26 = vld [vmem:[#allocation5 + $0x150] sm:$0xff] }
  0x7a   :  { %638 = vmatprep.subr.mxu0 %v6112_v7  ;;  %511 = vmatpush1.msra.mxu1 %v159_v16  ;;  %v6158_v22 = vld [vmem:[#allocation5 + $0x180] sm:$0xff]  ;;  %v6164_v24 = vld [vmem:[#allocation5 + $0x158] sm:$0xff]  ;;  %v6174_v27 = vld [vmem:[#allocation5 + $0x128] sm:$0xff] }
  0x7b   :  { %639 = vmatpush1.msra.mxu0 %v6115_v8  ;;  %4211 = vmatmul.mubr.msk.f32.vlgmr.msra.gmra.mxu1 %vm473_vm0, %v454_v17  ;;  %v455_v23 = vld [vmem:[%s10362_s0 + $0x8] sm:$0xff]  ;;  %v6181_v30 = vld [vmem:[#allocation5 + $0xf8] sm:$0xff]  ;;  %v6184_v31 = vld [vmem:[#allocation5 + $0xf0] sm:$0xff] }
  0x7c   :  { %640 = vmatprep.subr.mxu0 %v6118_v9  ;;  %4442 = vmatprep.subr.mxu1 %v164_v19  ;;  %v6178_v28 = vld [vmem:[#allocation5 + $0x120] sm:$0xff]  ;;  %v258_v29 = vld [vmem:[#allocation5 + $0x2e8] sm:$0xff]  ;;  %v252_v34 = vld [vmem:[#allocation5 + $0x2b8] sm:$0xff] }
  0x7d   :  { %641 = vmatpush1.msra.mxu0 %v6121_v10  ;;  %4443 = vmatpush3.msra.mxu1 %v164_v19  ;;  %v257_v32 = vld [vmem:[#allocation5 + $0x2e0] sm:$0xff]  ;;  %v6188_v33 = vld [vmem:[#allocation5 + $0xc8] sm:$0xff]  ;;  %v251_v36 = vld [vmem:[#allocation5 + $0x2b0] sm:$0xff] }
  0x7e   :  { %642 = vmatprep.subr.mxu0 %v6130_v13  ;;  %550 = vmatprep.mubr.f32.mxu1 %v10376_v0  ;;  %v6191_v35 = vld [vmem:[#allocation5 + $0xc0] sm:$0xff]  ;;  %v6195_v37 = vld [vmem:[#allocation5 + $0x98] sm:$0xff]  ;;  %v246_v38 = vld [vmem:[#allocation5 + $0x288] sm:$0xff] }
  0x7f   :  { %643 = vmatpush1.msra.mxu0 %v6136_v15  ;;  %4212 = vmatmul.mubr.msk.f32.gmra.mxu1 %vm473_vm0, %v455_v23  ;;  %v6198_v39 = vld [vmem:[#allocation5 + $0x90] sm:$0xff]  ;;  %v245_v40 = vld [vmem:[#allocation5 + $0x280] sm:$0xff]  ;;  %v6201_v41 = vld [vmem:[#allocation5 + $0x68] sm:$0xff] }
  0x80   :  { %644 = vmatprep.subr.mxu0 %v6145_v18  ;;  %4444 = vmatprep.subr.mxu1 %v161_v25  ;;  %v240_v42 = vld [vmem:[#allocation5 + $0x258] sm:$0xff]  ;;  %v6204_v43 = vld [vmem:[#allocation5 + $0x60] sm:$0xff]  ;;  %v239_v44 = vld [vmem:[#allocation5 + $0x250] sm:$0xff] }
  0x81   :  { %645 = vmatpush1.msra.mxu0 %v6151_v20  ;;  %4445 = vmatpush3.msra.mxu1 %v161_v25  ;;  %v6207_v45 = vld [vmem:[#allocation5 + $0x38] sm:$0xff]  ;;  %v234_v46 = vld [vmem:[#allocation5 + $0x228] sm:$0xff]  ;;  %v6210_v47 = vld [vmem:[#allocation5 + $0x30] sm:$0xff] }
  0x82   :  { %646 = vmatprep.subr.mxu0 %v6154_v21  ;;  %4446 = vmatprep.mubr.msk.f32.mxu1 %vm473_vm0, %v454_v17  ;;  %v233_v48 = vld [vmem:[#allocation5 + $0x220] sm:$0xff]  ;;  %v6213_v49 = vld [vmem:[#allocation5 + $0x8] sm:$0xff]  ;;  %v228_v50 = vld [vmem:[#allocation5 + $0x1f8] sm:$0xff] }
  0x83   :  { %647 = vmatpush1.msra.mxu0 %v6158_v22  ;;  %703 = vmatprep.subr.mxu1 %v258_v29  ;;  %v6216_v51 = vld [vmem:[#allocation5] sm:$0xff]  ;;  %v227_v52 = vld [vmem:[#allocation5 + $0x1f0] sm:$0xff]  ;;  %v6219_v53 = vld [vmem:[#allocation5 + $0x5d8] sm:$0xff] }
  0x84   :  { %648 = vmatprep.subr.mxu0 %v6164_v24  ;;  %4447 = vmatmul.mubr.msk.f32.vlgmr.msra.gmra.mxu1 %vm473_vm0, %v455_v23  ;;  %v222_v54 = vld [vmem:[#allocation5 + $0x1c8] sm:$0xff]  ;;  %v6222_v55 = vld [vmem:[#allocation5 + $0x5d0] sm:$0xff]  ;;  %v221_v56 = vld [vmem:[#allocation5 + $0x1c0] sm:$0xff] }
  0x85   :  { %649 = vmatpush1.msra.mxu0 %v6170_v26  ;;  %704 = vmatpush1.msra.mxu1 %v257_v32  ;;  %v6225_v57 = vld [vmem:[#allocation5 + $0x5a8] sm:$0xff]  ;;  %v216_v58 = vld [vmem:[#allocation5 + $0x198] sm:$0xff]  ;;  %v6228_v59 = vld [vmem:[#allocation5 + $0x5a0] sm:$0xff] }
  0x86   :  { %650 = vmatprep.subr.mxu0 %v6174_v27  ;;  %705 = vmatprep.subr.mxu1 %v252_v34  ;;  %v215_v60 = vld [vmem:[#allocation5 + $0x190] sm:$0xff]  ;;  %v6231_v61 = vld [vmem:[#allocation5 + $0x578] sm:$0xff]  ;;  %v210_v62 = vld [vmem:[#allocation5 + $0x168] sm:$0xff] }
  0x87   :  { %651 = vmatpush1.msra.mxu0 %v6178_v28  ;;  %706 = vmatpush1.msra.mxu1 %v251_v36  ;;  %v6234_v63 = vld [vmem:[#allocation5 + $0x570] sm:$0xff]  ;;  %v209_v11 = vld [vmem:[#allocation5 + $0x160] sm:$0xff]  ;;  %v6237_v12 = vld [vmem:[#allocation5 + $0x548] sm:$0xff] }
  0x88   :  { %652 = vmatprep.subr.mxu0 %v6181_v30  ;;  %707 = vmatprep.subr.mxu1 %v246_v38  ;;  %v204_v14 = vld [vmem:[#allocation5 + $0x138] sm:$0xff]  ;;  %v6240_v16 = vld [vmem:[#allocation5 + $0x540] sm:$0xff]  ;;  %v203_v17 = vld [vmem:[#allocation5 + $0x130] sm:$0xff] }
  0x89   :  { %653 = vmatpush1.msra.mxu0 %v6184_v31  ;;  %708 = vmatpush1.msra.mxu1 %v245_v40  ;;  %v6243_v19 = vld [vmem:[#allocation5 + $0x518] sm:$0xff]  ;;  %v198_v23 = vld [vmem:[#allocation5 + $0x108] sm:$0xff]  ;;  %v6246_v25 = vld [vmem:[#allocation5 + $0x510] sm:$0xff] }
  0x8a   :  { %654 = vmatprep.subr.mxu0 %v6188_v33  ;;  %709 = vmatprep.subr.mxu1 %v240_v42  ;;  %v197_v29 = vld [vmem:[#allocation5 + $0x100] sm:$0xff]  ;;  %v6249_v32 = vld [vmem:[#allocation5 + $0x4e8] sm:$0xff]  ;;  %v192_v34 = vld [vmem:[#allocation5 + $0xd8] sm:$0xff] }
  0x8b   :  { %655 = vmatpush1.msra.mxu0 %v6191_v35  ;;  %710 = vmatpush1.msra.mxu1 %v239_v44  ;;  %v6252_v36 = vld [vmem:[#allocation5 + $0x4e0] sm:$0xff]  ;;  %v191_v38 = vld [vmem:[#allocation5 + $0xd0] sm:$0xff]  ;;  %v6255_v40 = vld [vmem:[#allocation5 + $0x4b8] sm:$0xff] }
  0x8c   :  { %656 = vmatprep.subr.mxu0 %v6195_v37  ;;  %711 = vmatprep.subr.mxu1 %v234_v46  ;;  %v186_v42 = vld [vmem:[#allocation5 + $0xa8] sm:$0xff]  ;;  %v6258_v44 = vld [vmem:[#allocation5 + $0x4b0] sm:$0xff]  ;;  %v185_v46 = vld [vmem:[#allocation5 + $0xa0] sm:$0xff] }
  0x8d   :  { %657 = vmatpush1.msra.mxu0 %v6198_v39  ;;  %712 = vmatpush1.msra.mxu1 %v233_v48  ;;  %v6261_v48 = vld [vmem:[#allocation5 + $0x488] sm:$0xff]  ;;  %v6309_v0 = vld [vmem:[#allocation5 + $0x5b8] sm:$0xff] }
  0x8e   :  { %658 = vmatprep.subr.mxu0 %v6201_v41  ;;  %713 = vmatprep.subr.mxu1 %v228_v50  ;;  %v6263_v50 = vld [vmem:[#allocation5 + $0x78] sm:$0xff]  ;;  %11061 = vst [vmem:[#allocation34_spill] sm:$0xff] %v6309_v0 }
  0x8f   :  { %659 = vmatpush1.msra.mxu0 %v6204_v43  ;;  %714 = vmatpush1.msra.mxu1 %v227_v52  ;;  %11051 = vst [vmem:[#allocation24_spill] sm:$0xff] %v6263_v50  ;;  %v6266_v52 = vld [vmem:[#allocation5 + $0x480] sm:$0xff] }
  0x90   :  { %660 = vmatprep.subr.mxu0 %v6207_v45  ;;  %715 = vmatprep.subr.mxu1 %v222_v54  ;;  %v6268_v54 = vld [vmem:[#allocation5 + $0x70] sm:$0xff] }
  0x91   :  { %661 = vmatpush1.msra.mxu0 %v6210_v47  ;;  %716 = vmatpush1.msra.mxu1 %v221_v56  ;;  %11052 = vst [vmem:[#allocation25_spill] sm:$0xff] %v6268_v54  ;;  %v6271_v56 = vld [vmem:[#allocation5 + $0x458] sm:$0xff] }
  0x92   :  { %662 = vmatprep.subr.mxu0 %v6213_v49  ;;  %717 = vmatprep.subr.mxu1 %v216_v58  ;;  %v6273_v58 = vld [vmem:[#allocation5 + $0x48] sm:$0xff] }
  0x93   :  { %663 = vmatpush1.msra.mxu0 %v6216_v51  ;;  %718 = vmatpush1.msra.mxu1 %v215_v60  ;;  %11053 = vst [vmem:[#allocation26_spill] sm:$0xff] %v6273_v58  ;;  %v6276_v60 = vld [vmem:[#allocation5 + $0x450] sm:$0xff] }
  0x94   :  { %664 = vmatprep.subr.mxu0 %v6219_v53  ;;  %719 = vmatprep.subr.mxu1 %v210_v62  ;;  %v6279_v62 = vld [vmem:[#allocation5 + $0x40] sm:$0xff] }
  0x95   :  { %665 = vmatpush2.msra.mxu0 %v6222_v55  ;;  %720 = vmatpush1.msra.mxu1 %v209_v11  ;;  %11054 = vst [vmem:[#allocation27_spill] sm:$0xff] %v6279_v62  ;;  %v6282_v11 = vld [vmem:[#allocation5 + $0x428] sm:$0xff] }
  0x96   :  { %666 = vmatprep.subr.mxu0 %v6225_v57  ;;  %721 = vmatprep.subr.mxu1 %v204_v14  ;;  %v6285_v14 = vld [vmem:[#allocation5 + $0x18] sm:$0xff] }
  0x97   :  { %667 = vmatpush2.msra.mxu0 %v6228_v59  ;;  %722 = vmatpush1.msra.mxu1 %v203_v17  ;;  %11055 = vst [vmem:[#allocation28_spill] sm:$0xff] %v6285_v14  ;;  %v6288_v17 = vld [vmem:[#allocation5 + $0x420] sm:$0xff] }
  0x98   :  { %668 = vmatprep.subr.mxu0 %v6231_v61  ;;  %723 = vmatprep.subr.mxu1 %v198_v23  ;;  %v6291_v23 = vld [vmem:[#allocation5 + $0x10] sm:$0xff] }
  0x99   :  { %669 = vmatpush2.msra.mxu0 %v6234_v63  ;;  %724 = vmatpush1.msra.mxu1 %v197_v29  ;;  %11056 = vst [vmem:[#allocation29_spill] sm:$0xff] %v6291_v23  ;;  %v6294_v29 = vld [vmem:[#allocation5 + $0x3f8] sm:$0xff] }
  0x9a   :  { %670 = vmatprep.subr.mxu0 %v6237_v12  ;;  %725 = vmatprep.subr.mxu1 %v192_v34  ;;  %v6297_v34 = vld [vmem:[#allocation5 + $0x5e8] sm:$0xff] }
  0x9b   :  { %671 = vmatpush2.msra.mxu0 %v6240_v16  ;;  %726 = vmatpush1.msra.mxu1 %v191_v38  ;;  %11057 = vst [vmem:[#allocation30_spill] sm:$0xff] %v6297_v34  ;;  %v6300_v38 = vld [vmem:[#allocation5 + $0x3f0] sm:$0xff] }
  0x9c   :  { %672 = vmatprep.subr.mxu0 %v6243_v19  ;;  %727 = vmatprep.subr.mxu1 %v186_v42  ;;  %11058 = vst [vmem:[#allocation31_spill] sm:$0xff] %v6300_v38  ;;  %v6303_v42 = vld [vmem:[#allocation5 + $0x5e0] sm:$0xff] }
  0x9d   :  { %673 = vmatpush2.msra.mxu0 %v6246_v25  ;;  %728 = vmatpush1.msra.mxu1 %v185_v46  ;;  %11059 = vst [vmem:[#allocation32_spill] sm:$0xff] %v6303_v42  ;;  %v6306_v46 = vld [vmem:[#allocation5 + $0x3c8] sm:$0xff] }
  0x9e   :  { %674 = vmatprep.subr.mxu0 %v6249_v32  ;;  %729 = vmatprep.subr.mxu1 %v6263_v50  ;;  %11060 = vst [vmem:[#allocation33_spill] sm:$0xff] %v6306_v46  ;;  %v6327_v50 = vld [vmem:[#allocation5 + $0x580] sm:$0xff] }
  0x9f   :  { %675 = vmatpush2.msra.mxu0 %v6252_v36  ;;  %730 = vmatpush1.msra.mxu1 %v6268_v54  ;;  %v6321_v54 = vld [vmem:[#allocation5 + $0x588] sm:$0xff]  ;;  %11067 = vst [vmem:[#allocation40_spill] sm:$0xff] %v6327_v50 }
  0xa0   :  { %676 = vmatprep.subr.mxu0 %v6255_v40  ;;  %731 = vmatprep.subr.mxu1 %v6273_v58  ;;  %v6315_v58 = vld [vmem:[#allocation5 + $0x5b0] sm:$0xff]  ;;  %11065 = vst [vmem:[#allocation38_spill] sm:$0xff] %v6321_v54 }
  0xa1   :  { %677 = vmatpush2.msra.mxu0 %v6258_v44  ;;  %732 = vmatpush1.msra.mxu1 %v6279_v62  ;;  %v6312_v62 = vld [vmem:[#allocation5 + $0x3c0] sm:$0xff]  ;;  %11063 = vst [vmem:[#allocation36_spill] sm:$0xff] %v6315_v58 }
  0xa2   :  { %678 = vmatprep.subr.mxu0 %v6261_v48  ;;  %733 = vmatprep.subr.mxu1 %v6285_v14  ;;  %11062 = vst [vmem:[#allocation35_spill] sm:$0xff] %v6312_v62  ;;  %v6318_v14 = vld [vmem:[#allocation5 + $0x398] sm:$0xff] }
  0xa3   :  { %679 = vmatpush2.msra.mxu0 %v6266_v52  ;;  %734 = vmatpush1.msra.mxu1 %v6291_v23  ;;  %11064 = vst [vmem:[#allocation37_spill] sm:$0xff] %v6318_v14  ;;  %v6324_v23 = vld [vmem:[#allocation5 + $0x390] sm:$0xff] }
  0xa4   :  { %680 = vmatprep.subr.mxu0 %v6271_v56  ;;  %735 = vmatprep.subr.mxu1 %v6297_v34  ;;  %11066 = vst [vmem:[#allocation39_spill] sm:$0xff] %v6324_v23  ;;  %v6330_v34 = vld [vmem:[#allocation5 + $0x368] sm:$0xff] }
  0xa5   :  { %681 = vmatpush2.msra.mxu0 %v6276_v60  ;;  %736 = vmatpush2.msra.mxu1 %v6303_v42  ;;  %11068 = vst [vmem:[#allocation41_spill] sm:$0xff] %v6330_v34  ;;  %v6336_v42 = vld [vmem:[#allocation5 + $0x360] sm:$0xff] }
  0xa6   :  { %682 = vmatprep.subr.mxu0 %v6282_v11  ;;  %737 = vmatprep.subr.mxu1 %v6309_v0  ;;  %11070 = vst [vmem:[#allocation43_spill] sm:$0xff] %v6336_v42  ;;  %v6342_v0 = vld [vmem:[#allocation5 + $0x338] sm:$0xff] }
  0xa7   :  { %683 = vmatpush2.msra.mxu0 %v6288_v17  ;;  %738 = vmatpush2.msra.mxu1 %v6315_v58  ;;  %11072 = vst [vmem:[#allocation45_spill] sm:$0xff] %v6342_v0  ;;  %v6348_v58 = vld [vmem:[#allocation5 + $0x330] sm:$0xff] }
  0xa8   :  { %684 = vmatprep.subr.mxu0 %v6294_v29  ;;  %739 = vmatprep.subr.mxu1 %v6321_v54  ;;  %11074 = vst [vmem:[#allocation47_spill] sm:$0xff] %v6348_v58  ;;  %v6354_v54 = vld [vmem:[#allocation5 + $0x308] sm:$0xff] }
  0xa9   :  { %685 = vmatpush2.msra.mxu0 %v6300_v38  ;;  %v6333_v38 = vld [vmem:[#allocation5 + $0x558] sm:$0xff]  ;;  %740 = vmatpush2.msra.mxu1 %v6327_v50  ;;  %11076 = vst [vmem:[#allocation49_spill] sm:$0xff] %v6354_v54  ;;  %v6360_v50 = vld [vmem:[#allocation5 + $0x300] sm:$0xff] }
  0xaa   :  { %686 = vmatprep.subr.mxu0 %v6306_v46  ;;  %11069 = vst [vmem:[#allocation42_spill] sm:$0xff] %v6333_v38  ;;  %v6339_v46 = vld [vmem:[#allocation5 + $0x550] sm:$0xff]  ;;  %741 = vmatprep.subr.mxu1 %v6333_v38  ;;  %11078 = vst [vmem:[#allocation51_spill] sm:$0xff] %v6360_v50  ;;  %v6367_v38 = vld [vmem:[#allocation5 + $0x4c8] sm:$0xff] }
  0xab   :  { %687 = vmatpush2.msra.mxu0 %v6312_v62  ;;  %11071 = vst [vmem:[#allocation44_spill] sm:$0xff] %v6339_v46  ;;  %v6345_v62 = vld [vmem:[#allocation5 + $0x528] sm:$0xff]  ;;  %742 = vmatpush2.msra.mxu1 %v6339_v46  ;;  %11080 = vst [vmem:[#allocation53_spill] sm:$0xff] %v6367_v38  ;;  %v6371_v46 = vld [vmem:[#allocation5 + $0x4c0] sm:$0xff] }
  0xac   :  { %688 = vmatprep.subr.mxu0 %v6318_v14  ;;  %11073 = vst [vmem:[#allocation46_spill] sm:$0xff] %v6345_v62  ;;  %v6351_v14 = vld [vmem:[#allocation5 + $0x520] sm:$0xff]  ;;  %743 = vmatprep.subr.mxu1 %v6345_v62  ;;  %11081 = vst [vmem:[#allocation54_spill] sm:$0xff] %v6371_v46  ;;  %v11083_v62 = vmov 0.0  }
  0xad   :  { %689 = vmatpush2.msra.mxu0 %v6324_v23  ;;  %11075 = vst [vmem:[#allocation48_spill] sm:$0xff] %v6351_v14  ;;  %v6357_v23 = vld [vmem:[#allocation5 + $0x4f8] sm:$0xff]  ;;  %744 = vmatpush2.msra.mxu1 %v6351_v14  ;;  %v6382_v14 = vld [vmem:[#allocation5 + $0x468] sm:$0xff] }
  0xae   :  { %690 = vmatprep.subr.mxu0 %v6330_v34  ;;  %11077 = vst [vmem:[#allocation50_spill] sm:$0xff] %v6357_v23  ;;  %v6363_v34 = vld [vmem:[#allocation5 + $0x4f0] sm:$0xff]  ;;  %745 = vmatprep.subr.mxu1 %v6357_v23  ;;  %11085 = vst [vmem:[#allocation57_spill] sm:$0xff] %v6382_v14  ;;  %v6386_v23 = vld [vmem:[#allocation5 + $0x460] sm:$0xff] }
  0xaf   :  { %691 = vmatpush2.msra.mxu0 %v6336_v42  ;;  %11079 = vst [vmem:[#allocation52_spill] sm:$0xff] %v6363_v34  ;;  %746 = vmatpush2.msra.mxu1 %v6363_v34  ;;  %11086 = vst [vmem:[#allocation58_spill] sm:$0xff] %v6386_v23  ;;  %v6390_v34 = vld [vmem:[#allocation5 + $0x438] sm:$0xff] }
  0xb0   :  { %692 = vmatprep.subr.mxu0 %v6342_v0  ;;  %v6375_v0 = vld [vmem:[#allocation5 + $0x498] sm:$0xff]  ;;  %747 = vmatprep.subr.mxu1 %v6367_v38  ;;  %11087 = vst [vmem:[#allocation59_spill] sm:$0xff] %v6390_v34  ;;  %v6393_v38 = vld [vmem:[#allocation5 + $0x430] sm:$0xff] }
  0xb1   :  { %693 = vmatpush2.msra.mxu0 %v6348_v58  ;;  %11082 = vst [vmem:[#allocation55_spill] sm:$0xff] %v6375_v0  ;;  %v6379_v58 = vld [vmem:[#allocation5 + $0x490] sm:$0xff]  ;;  %748 = vmatpush2.msra.mxu1 %v6371_v46  ;;  %11088 = vst [vmem:[#allocation60_spill] sm:$0xff] %v6393_v38  ;;  %v6396_v46 = vld [vmem:[#allocation5 + $0x408] sm:$0xff] }
  0xb2   :  { %694 = vmatprep.subr.mxu0 %v6354_v54  ;;  %11084 = vst [vmem:[#allocation56_spill] sm:$0xff] %v6379_v58  ;;  %767 = vmatprep.mubr.f32.mxu1 %v11083_v62  ;;  %11089 = vst [vmem:[#allocation61_spill] sm:$0xff] %v6396_v46  ;;  %v6543_v54 = vld [vmem:[#allocation5 + $0x5f0] sm:$0xff]  ;;  %v6551_v42 = vld [vmem:[#allocation7 + $0x138] sm:$0xff] }
  0xb3   :  { %695 = vmatpush2.msra.mxu0 %v6360_v50  ;;  %749 = vmatprep.subr.mxu1 %v6375_v0  ;;  %v6399_v50 = vld [vmem:[#allocation5 + $0x400] sm:$0xff]  ;;  %v6402_v0 = vld [vmem:[#allocation5 + $0x3d8] sm:$0xff]  ;;  %11136 = vst [vmem:[#allocation108_spill] sm:$0xff] %v6543_v54  ;;  %11139 = vst [vmem:[#allocation111_spill] sm:$0xff] %v6551_v42 }
  0xb4   :  { %697 = vmatmul.mubr.f32.vlgmr.msra.gmra.mxu0 %v11083_v62  ;;  %750 = vmatpush2.msra.mxu1 %v6379_v58  ;;  %11090 = vst [vmem:[#allocation62_spill] sm:$0xff] %v6399_v50  ;;  %11091 = vst [vmem:[#allocation63_spill] sm:$0xff] %v6402_v0  ;;  %v6405_v58 = vld [vmem:[#allocation5 + $0x3d0] sm:$0xff] }
  0xb5   :  { %838 = vmatprep.mubr.f32.mxu0 %v11083_v62  ;;  %751 = vmatprep.subr.mxu1 %v6382_v14  ;;  %11092 = vst [vmem:[#allocation64_spill] sm:$0xff] %v6405_v58  ;;  %v6408_v14 = vld [vmem:[#allocation5 + $0x3a8] sm:$0xff] }
  0xb6   :  { %752 = vmatpush2.msra.mxu1 %v6386_v23  ;;  %11093 = vst [vmem:[#allocation65_spill] sm:$0xff] %v6408_v14  ;;  %v6411_v23 = vld [vmem:[#allocation5 + $0x3a0] sm:$0xff] }
  0xb7   :  { %753 = vmatprep.subr.mxu1 %v6390_v34  ;;  %11094 = vst [vmem:[#allocation66_spill] sm:$0xff] %v6411_v23  ;;  %v6414_v34 = vld [vmem:[#allocation5 + $0x378] sm:$0xff] }
  0xb8   :  { %754 = vmatpush2.msra.mxu1 %v6393_v38  ;;  %11095 = vst [vmem:[#allocation67_spill] sm:$0xff] %v6414_v34  ;;  %v6417_v38 = vld [vmem:[#allocation5 + $0x370] sm:$0xff] }
  0xb9   :  { %755 = vmatprep.subr.mxu1 %v6396_v46  ;;  %11096 = vst [vmem:[#allocation68_spill] sm:$0xff] %v6417_v38  ;;  %v6420_v46 = vld [vmem:[#allocation5 + $0x348] sm:$0xff] }
  0xba   :  { %756 = vmatpush2.msra.mxu1 %v6399_v50  ;;  %11097 = vst [vmem:[#allocation69_spill] sm:$0xff] %v6420_v46  ;;  %v6423_v50 = vld [vmem:[#allocation5 + $0x340] sm:$0xff] }
  0xbb   :  { %757 = vmatprep.subr.mxu1 %v6402_v0  ;;  %11098 = vst [vmem:[#allocation70_spill] sm:$0xff] %v6423_v50  ;;  %v6426_v0 = vld [vmem:[#allocation5 + $0x318] sm:$0xff] }
  0xbc   :  { %758 = vmatpush2.msra.mxu1 %v6405_v58  ;;  %11099 = vst [vmem:[#allocation71_spill] sm:$0xff] %v6426_v0  ;;  %v6429_v58 = vld [vmem:[#allocation5 + $0x310] sm:$0xff] }
  0xbd   :  { %759 = vmatprep.subr.mxu1 %v6408_v14  ;;  %11100 = vst [vmem:[#allocation72_spill] sm:$0xff] %v6429_v58  ;;  %v6457_v14 = vld [vmem:[#allocation5 + $0x260] sm:$0xff] }
  0xbe   :  { %760 = vmatpush2.msra.mxu1 %v6411_v23  ;;  %v6438_v23 = vld [vmem:[#allocation5 + $0x2f0] sm:$0xff]  ;;  %11108 = vst [vmem:[#allocation80_spill] sm:$0xff] %v6457_v14 }
  0xbf   :  { %761 = vmatprep.subr.mxu1 %v6414_v34  ;;  %v6436_v34 = vld [vmem:[#allocation5 + $0x2f8] sm:$0xff]  ;;  %11102 = vst [vmem:[#allocation74_spill] sm:$0xff] %v6438_v23 }
  0xc0   :  { %762 = vmatpush2.msra.mxu1 %v6417_v38  ;;  %11101 = vst [vmem:[#allocation73_spill] sm:$0xff] %v6436_v34  ;;  %v6440_v38 = vld [vmem:[#allocation5 + $0x2c8] sm:$0xff]  ;;  %774 = vmatprep.subr.mxu0 %v6436_v34  ;;  %v6535_v34 = vld [vmem:[#allocation7 + $0x158] sm:$0xff] }
  0xc1   :  { %763 = vmatprep.subr.mxu1 %v6420_v46  ;;  %11103 = vst [vmem:[#allocation75_spill] sm:$0xff] %v6440_v38  ;;  %775 = vmatpush1.msra.mxu0 %v6438_v23  ;;  %v6454_v46 = vld [vmem:[#allocation5 + $0x268] sm:$0xff]  ;;  %v6525_v23 = vld [vmem:[#allocation7 + $0x170] sm:$0xff]  ;;  %11134 = vst [vmem:[#allocation106_spill] sm:$0xff] %v6535_v34 }
  0xc2   :  { %764 = vmatpush2.msra.mxu1 %v6423_v50  ;;  %776 = vmatprep.subr.mxu0 %v6440_v38  ;;  %v6445_v50 = vld [vmem:[#allocation5 + $0x2c0] sm:$0xff]  ;;  %11107 = vst [vmem:[#allocation79_spill] sm:$0xff] %v6454_v46  ;;  %v6460_v38 = vld [vmem:[#allocation5 + $0x238] sm:$0xff]  ;;  %11131 = vst [vmem:[#allocation103_spill] sm:$0xff] %v6525_v23 }
  0xc3   :  { %765 = vmatprep.subr.mxu1 %v6426_v0  ;;  %11104 = vst [vmem:[#allocation76_spill] sm:$0xff] %v6445_v50  ;;  %777 = vmatpush1.msra.mxu0 %v6445_v50  ;;  %v6451_v0 = vld [vmem:[#allocation5 + $0x290] sm:$0xff]  ;;  %11109 = vst [vmem:[#allocation81_spill] sm:$0xff] %v6460_v38 }
  0xc4   :  { %766 = vmatpush2.msra.mxu1 %v6429_v58  ;;  %v6448_v58 = vld [vmem:[#allocation5 + $0x298] sm:$0xff]  ;;  %11106 = vst [vmem:[#allocation78_spill] sm:$0xff] %v6451_v0  ;;  %v6463_v50 = vld [vmem:[#allocation5 + $0x230] sm:$0xff] }
  0xc5   :  { %768 = vmatmul.mubr.f32.vlgmr.msra.gmra.mxu1 %v11083_v62  ;;  %11105 = vst [vmem:[#allocation77_spill] sm:$0xff] %v6448_v58  ;;  %778 = vmatprep.subr.mxu0 %v6448_v58  ;;  %11110 = vst [vmem:[#allocation82_spill] sm:$0xff] %v6463_v50  ;;  %v6466_v58 = vld [vmem:[#allocation5 + $0x208] sm:$0xff] }
  0xc6   :  { %930 = vmatprep.mubr.f32.mxu1 %v11083_v62  ;;  %779 = vmatpush1.msra.mxu0 %v6451_v0  ;;  %11111 = vst [vmem:[#allocation83_spill] sm:$0xff] %v6466_v58  ;;  %v6469_v0 = vld [vmem:[#allocation5 + $0x200] sm:$0xff] }
  0xc7   :  { %780 = vmatprep.subr.mxu0 %v6454_v46  ;;  %11112 = vst [vmem:[#allocation84_spill] sm:$0xff] %v6469_v0  ;;  %v6472_v46 = vld [vmem:[#allocation5 + $0x1d8] sm:$0xff]  ;;  %866 = vmatprep.subr.mxu1 %v6525_v23  ;;  %v6549_v23 = vld [vmem:[#allocation5 + $0x5c8] sm:$0xff] }
  0xc8   :  { %781 = vmatpush1.msra.mxu0 %v6457_v14  ;;  %11113 = vst [vmem:[#allocation85_spill] sm:$0xff] %v6472_v46  ;;  %v6475_v14 = vld [vmem:[#allocation5 + $0x1d0] sm:$0xff]  ;;  %11138 = vst [vmem:[#allocation110_spill] sm:$0xff] %v6549_v23 }
  0xc9   :  { %782 = vmatprep.subr.mxu0 %v6460_v38  ;;  %11114 = vst [vmem:[#allocation86_spill] sm:$0xff] %v6475_v14  ;;  %v6478_v38 = vld [vmem:[#allocation5 + $0x1a8] sm:$0xff] }
  0xca   :  { %783 = vmatpush1.msra.mxu0 %v6463_v50  ;;  %11115 = vst [vmem:[#allocation87_spill] sm:$0xff] %v6478_v38  ;;  %v6481_v50 = vld [vmem:[#allocation5 + $0x1a0] sm:$0xff] }
  0xcb   :  { %784 = vmatprep.subr.mxu0 %v6466_v58  ;;  %11116 = vst [vmem:[#allocation88_spill] sm:$0xff] %v6481_v50  ;;  %v6484_v58 = vld [vmem:[#allocation5 + $0x178] sm:$0xff] }
  0xcc   :  { %785 = vmatpush1.msra.mxu0 %v6469_v0  ;;  %11117 = vst [vmem:[#allocation89_spill] sm:$0xff] %v6484_v58  ;;  %v6487_v0 = vld [vmem:[#allocation5 + $0x170] sm:$0xff] }
  0xcd   :  { %786 = vmatprep.subr.mxu0 %v6472_v46  ;;  %11118 = vst [vmem:[#allocation90_spill] sm:$0xff] %v6487_v0  ;;  %v6490_v46 = vld [vmem:[#allocation5 + $0x148] sm:$0xff] }
  0xce   :  { %787 = vmatpush1.msra.mxu0 %v6475_v14  ;;  %11119 = vst [vmem:[#allocation91_spill] sm:$0xff] %v6490_v46  ;;  %v6493_v14 = vld [vmem:[#allocation5 + $0x140] sm:$0xff] }
  0xcf   :  { %788 = vmatprep.subr.mxu0 %v6478_v38  ;;  %11120 = vst [vmem:[#allocation92_spill] sm:$0xff] %v6493_v14  ;;  %v6496_v38 = vld [vmem:[#allocation5 + $0x118] sm:$0xff] }
  0xd0   :  { %789 = vmatpush1.msra.mxu0 %v6481_v50  ;;  %11121 = vst [vmem:[#allocation93_spill] sm:$0xff] %v6496_v38  ;;  %v6499_v50 = vld [vmem:[#allocation5 + $0x110] sm:$0xff] }
  0xd1   :  { %790 = vmatprep.subr.mxu0 %v6484_v58  ;;  %11122 = vst [vmem:[#allocation94_spill] sm:$0xff] %v6499_v50  ;;  %v6502_v58 = vld [vmem:[#allocation5 + $0xe8] sm:$0xff] }
  0xd2   :  { %791 = vmatpush1.msra.mxu0 %v6487_v0  ;;  %11123 = vst [vmem:[#allocation95_spill] sm:$0xff] %v6502_v58  ;;  %v6505_v0 = vld [vmem:[#allocation5 + $0xe0] sm:$0xff] }
  0xd3   :  { %792 = vmatprep.subr.mxu0 %v6490_v46  ;;  %11124 = vst [vmem:[#allocation96_spill] sm:$0xff] %v6505_v0  ;;  %v6508_v46 = vld [vmem:[#allocation5 + $0xb8] sm:$0xff] }
  0xd4   :  { %793 = vmatpush1.msra.mxu0 %v6493_v14  ;;  %11125 = vst [vmem:[#allocation97_spill] sm:$0xff] %v6508_v46  ;;  %v6511_v14 = vld [vmem:[#allocation5 + $0xb0] sm:$0xff] }
  0xd5   :  { %794 = vmatprep.subr.mxu0 %v6496_v38  ;;  %11126 = vst [vmem:[#allocation98_spill] sm:$0xff] %v6511_v14  ;;  %v6514_v38 = vld [vmem:[#allocation5 + $0x88] sm:$0xff] }
  0xd6   :  { %795 = vmatpush1.msra.mxu0 %v6499_v50  ;;  %11127 = vst [vmem:[#allocation99_spill] sm:$0xff] %v6514_v38  ;;  %v6517_v50 = vld [vmem:[#allocation5 + $0x80] sm:$0xff] }
  0xd7   :  { %796 = vmatprep.subr.mxu0 %v6502_v58  ;;  %11128 = vst [vmem:[#allocation100_spill] sm:$0xff] %v6517_v50  ;;  %v6520_v58 = vld [vmem:[#allocation5 + $0x58] sm:$0xff] }
  0xd8   :  { %797 = vmatpush1.msra.mxu0 %v6505_v0  ;;  %11129 = vst [vmem:[#allocation101_spill] sm:$0xff] %v6520_v58  ;;  %v6523_v0 = vld [vmem:[#allocation5 + $0x50] sm:$0xff] }
  0xd9   :  { %798 = vmatprep.subr.mxu0 %v6508_v46  ;;  %11130 = vst [vmem:[#allocation102_spill] sm:$0xff] %v6523_v0  ;;  %v6527_v46 = vld [vmem:[#allocation5 + $0x28] sm:$0xff] }
  0xda   :  { %799 = vmatpush1.msra.mxu0 %v6511_v14  ;;  %11132 = vst [vmem:[#allocation104_spill] sm:$0xff] %v6527_v46  ;;  %v6531_v14 = vld [vmem:[#allocation7 + $0x168] sm:$0xff] }
  0xdb   :  { %800 = vmatprep.subr.mxu0 %v6514_v38  ;;  %v6533_v38 = vld [vmem:[#allocation5 + $0x20] sm:$0xff]  ;;  %867 = vmatpush1.msra.mxu1 %v6531_v14 }
  0xdc   :  { %801 = vmatpush1.msra.mxu0 %v6517_v50  ;;  %11133 = vst [vmem:[#allocation105_spill] sm:$0xff] %v6533_v38  ;;  %v6541_v50 = vld [vmem:[#allocation7 + $0x150] sm:$0xff]  ;;  %868 = vmatprep.subr.mxu1 %v6535_v34  ;;  %v6565_v34 = vld [vmem:[#allocation5 + $0x598] sm:$0xff] }
  0xdd   :  { %802 = vmatprep.subr.mxu0 %v6520_v58  ;;  %v6539_v58 = vld [vmem:[#allocation5 + $0x5f8] sm:$0xff]  ;;  %869 = vmatpush1.msra.mxu1 %v6541_v50  ;;  %11142 = vst [vmem:[#allocation114_spill] sm:$0xff] %v6565_v34 }
  0xde   :  { %803 = vmatpush1.msra.mxu0 %v6523_v0  ;;  %11135 = vst [vmem:[#allocation107_spill] sm:$0xff] %v6539_v58  ;;  %v6547_v0 = vld [vmem:[#allocation7 + $0x140] sm:$0xff] }
  0xdf   :  { %804 = vmatprep.subr.mxu0 %v6527_v46  ;;  %11137 = vst [vmem:[#allocation109_spill] sm:$0xff] %v6547_v0  ;;  %870 = vmatprep.subr.mxu1 %v6547_v0  ;;  %v6561_v46 = vld [vmem:[#allocation7 + $0x128] sm:$0xff] }
  0xe0   :  { %805 = vmatpush1.msra.mxu0 %v6533_v38  ;;  %871 = vmatpush1.msra.mxu1 %v6551_v42  ;;  %v6559_v38 = vld [vmem:[#allocation5 + $0x5c0] sm:$0xff]  ;;  %11141 = vst [vmem:[#allocation113_spill] sm:$0xff] %v6561_v46  ;;  %v6577_v42 = vld [vmem:[#allocation5 + $0x568] sm:$0xff] }
  0xe1   :  { %806 = vmatprep.subr.mxu0 %v6539_v58  ;;  %11140 = vst [vmem:[#allocation112_spill] sm:$0xff] %v6559_v38  ;;  %872 = vmatprep.subr.mxu1 %v6561_v46  ;;  %v6567_v58 = vld [vmem:[#allocation7 + $0x120] sm:$0xff]  ;;  %11146 = vst [vmem:[#allocation118_spill] sm:$0xff] %v6577_v42  ;;  %v6715_v0 = vld [vmem:[#allocation5 + $0x328] sm:$0xff] }
  0xe2   :  { %807 = vmatpush2.msra.mxu0 %v6543_v54  ;;  %11143 = vst [vmem:[#allocation115_spill] sm:$0xff] %v6567_v58  ;;  %873 = vmatpush1.msra.mxu1 %v6567_v58  ;;  %v6571_v54 = vld [vmem:[#allocation5 + $0x590] sm:$0xff]  ;;  %v6583_v46 = vld [vmem:[#allocation5 + $0x560] sm:$0xff]  ;;  %v6589_v58 = vld [vmem:[#allocation5 + $0x538] sm:$0xff] }
  0xe3   :  { %808 = vmatprep.subr.mxu0 %v6549_v23  ;;  %11144 = vst [vmem:[#allocation116_spill] sm:$0xff] %v6571_v54  ;;  %v6573_v23 = vld [vmem:[#allocation7 + $0x110] sm:$0xff]  ;;  %11148 = vst [vmem:[#allocation120_spill] sm:$0xff] %v6583_v46 }
  0xe4   :  { %809 = vmatpush2.msra.mxu0 %v6559_v38  ;;  %11145 = vst [vmem:[#allocation117_spill] sm:$0xff] %v6573_v23  ;;  %874 = vmatprep.subr.mxu1 %v6573_v23  ;;  %v6579_v38 = vld [vmem:[#allocation7 + $0x108] sm:$0xff]  ;;  %11150 = vst [vmem:[#allocation122_spill] sm:$0xff] %v6589_v58  ;;  %v6595_v23 = vld [vmem:[#allocation5 + $0x530] sm:$0xff] }
  0xe5   :  { %810 = vmatprep.subr.mxu0 %v6565_v34  ;;  %11147 = vst [vmem:[#allocation119_spill] sm:$0xff] %v6579_v38  ;;  %875 = vmatpush1.msra.mxu1 %v6579_v38  ;;  %v6585_v34 = vld [vmem:[#allocation7 + $0xf8] sm:$0xff]  ;;  %11152 = vst [vmem:[#allocation124_spill] sm:$0xff] %v6595_v23  ;;  %v6601_v38 = vld [vmem:[#allocation5 + $0x508] sm:$0xff] }
  0xe6   :  { %811 = vmatpush2.msra.mxu0 %v6571_v54  ;;  %11149 = vst [vmem:[#allocation121_spill] sm:$0xff] %v6585_v34  ;;  %876 = vmatprep.subr.mxu1 %v6585_v34  ;;  %v6591_v54 = vld [vmem:[#allocation7 + $0xf0] sm:$0xff]  ;;  %11154 = vst [vmem:[#allocation126_spill] sm:$0xff] %v6601_v38  ;;  %v6607_v34 = vld [vmem:[#allocation5 + $0x500] sm:$0xff] }
  0xe7   :  { %812 = vmatprep.subr.mxu0 %v6577_v42  ;;  %11151 = vst [vmem:[#allocation123_spill] sm:$0xff] %v6591_v54  ;;  %877 = vmatpush1.msra.mxu1 %v6591_v54  ;;  %v6597_v42 = vld [vmem:[#allocation7 + $0xe0] sm:$0xff]  ;;  %11156 = vst [vmem:[#allocation128_spill] sm:$0xff] %v6607_v34  ;;  %v6613_v54 = vld [vmem:[#allocation5 + $0x4d8] sm:$0xff] }
  0xe8   :  { %813 = vmatpush2.msra.mxu0 %v6583_v46  ;;  %11153 = vst [vmem:[#allocation125_spill] sm:$0xff] %v6597_v42  ;;  %878 = vmatprep.subr.mxu1 %v6597_v42  ;;  %v6603_v46 = vld [vmem:[#allocation7 + $0xd8] sm:$0xff]  ;;  %11158 = vst [vmem:[#allocation130_spill] sm:$0xff] %v6613_v54  ;;  %v6619_v42 = vld [vmem:[#allocation5 + $0x4d0] sm:$0xff] }
  0xe9   :  { %814 = vmatprep.subr.mxu0 %v6589_v58  ;;  %11155 = vst [vmem:[#allocation127_spill] sm:$0xff] %v6603_v46  ;;  %879 = vmatpush1.msra.mxu1 %v6603_v46  ;;  %v6609_v58 = vld [vmem:[#allocation7 + $0xc8] sm:$0xff]  ;;  %11160 = vst [vmem:[#allocation132_spill] sm:$0xff] %v6619_v42 }
  0xea   :  { %815 = vmatpush2.msra.mxu0 %v6595_v23  ;;  %11157 = vst [vmem:[#allocation129_spill] sm:$0xff] %v6609_v58  ;;  %880 = vmatprep.subr.mxu1 %v6609_v58  ;;  %v6615_v23 = vld [vmem:[#allocation7 + $0xc0] sm:$0xff]  ;;  %v6625_v46 = vld [vmem:[#allocation5 + $0x4a8] sm:$0xff] }
  0xeb   :  { %816 = vmatprep.subr.mxu0 %v6601_v38  ;;  %11159 = vst [vmem:[#allocation131_spill] sm:$0xff] %v6615_v23  ;;  %881 = vmatpush1.msra.mxu1 %v6615_v23  ;;  %v6621_v38 = vld [vmem:[#allocation7 + $0xb0] sm:$0xff]  ;;  %11162 = vst [vmem:[#allocation134_spill] sm:$0xff] %v6625_v46  ;;  %v6631_v58 = vld [vmem:[#allocation5 + $0x4a0] sm:$0xff] }
  0xec   :  { %817 = vmatpush2.msra.mxu0 %v6607_v34  ;;  %11161 = vst [vmem:[#allocation133_spill] sm:$0xff] %v6621_v38  ;;  %882 = vmatprep.subr.mxu1 %v6621_v38  ;;  %v6627_v34 = vld [vmem:[#allocation7 + $0xa8] sm:$0xff]  ;;  %11164 = vst [vmem:[#allocation136_spill] sm:$0xff] %v6631_v58  ;;  %v6637_v23 = vld [vmem:[#allocation5 + $0x478] sm:$0xff] }
  0xed   :  { %818 = vmatprep.subr.mxu0 %v6613_v54  ;;  %11163 = vst [vmem:[#allocation135_spill] sm:$0xff] %v6627_v34  ;;  %883 = vmatpush1.msra.mxu1 %v6627_v34  ;;  %v6633_v54 = vld [vmem:[#allocation7 + $0x98] sm:$0xff]  ;;  %11166 = vst [vmem:[#allocation138_spill] sm:$0xff] %v6637_v23  ;;  %v6643_v38 = vld [vmem:[#allocation5 + $0x470] sm:$0xff] }
  0xee   :  { %819 = vmatpush2.msra.mxu0 %v6619_v42  ;;  %11165 = vst [vmem:[#allocation137_spill] sm:$0xff] %v6633_v54  ;;  %884 = vmatprep.subr.mxu1 %v6633_v54  ;;  %v6639_v42 = vld [vmem:[#allocation7 + $0x90] sm:$0xff]  ;;  %11168 = vst [vmem:[#allocation140_spill] sm:$0xff] %v6643_v38  ;;  %v6649_v34 = vld [vmem:[#allocation5 + $0x448] sm:$0xff] }
  0xef   :  { %820 = vmatprep.subr.mxu0 %v6625_v46  ;;  %11167 = vst [vmem:[#allocation139_spill] sm:$0xff] %v6639_v42  ;;  %885 = vmatpush1.msra.mxu1 %v6639_v42  ;;  %v6645_v46 = vld [vmem:[#allocation7 + $0x80] sm:$0xff]  ;;  %11170 = vst [vmem:[#allocation142_spill] sm:$0xff] %v6649_v34  ;;  %v6661_v42 = vld [vmem:[#allocation5 + $0x418] sm:$0xff] }
  0xf0   :  { %821 = vmatpush2.msra.mxu0 %v6631_v58  ;;  %11169 = vst [vmem:[#allocation141_spill] sm:$0xff] %v6645_v46  ;;  %886 = vmatprep.subr.mxu1 %v6645_v46  ;;  %v6651_v58 = vld [vmem:[#allocation7 + $0x78] sm:$0xff]  ;;  %v6655_v54 = vld [vmem:[#allocation5 + $0x440] sm:$0xff]  ;;  %11174 = vst [vmem:[#allocation146_spill] sm:$0xff] %v6661_v42 }
  0xf1   :  { %822 = vmatprep.subr.mxu0 %v6637_v23  ;;  %11171 = vst [vmem:[#allocation143_spill] sm:$0xff] %v6651_v58  ;;  %887 = vmatpush1.msra.mxu1 %v6651_v58  ;;  %11172 = vst [vmem:[#allocation144_spill] sm:$0xff] %v6655_v54  ;;  %v6657_v23 = vld [vmem:[#allocation7 + $0x68] sm:$0xff]  ;;  %v6667_v46 = vld [vmem:[#allocation5 + $0x410] sm:$0xff] }
  0xf2   :  { %823 = vmatpush2.msra.mxu0 %v6643_v38  ;;  %11173 = vst [vmem:[#allocation145_spill] sm:$0xff] %v6657_v23  ;;  %888 = vmatprep.subr.mxu1 %v6657_v23  ;;  %v6663_v38 = vld [vmem:[#allocation7 + $0x60] sm:$0xff]  ;;  %11176 = vst [vmem:[#allocation148_spill] sm:$0xff] %v6667_v46  ;;  %v6673_v58 = vld [vmem:[#allocation5 + $0x3e8] sm:$0xff] }
  0xf3   :  { %824 = vmatprep.subr.mxu0 %v6649_v34  ;;  %11175 = vst [vmem:[#allocation147_spill] sm:$0xff] %v6663_v38  ;;  %889 = vmatpush1.msra.mxu1 %v6663_v38  ;;  %v6669_v34 = vld [vmem:[#allocation7 + $0x50] sm:$0xff]  ;;  %11178 = vst [vmem:[#allocation150_spill] sm:$0xff] %v6673_v58  ;;  %v6679_v23 = vld [vmem:[#allocation5 + $0x3e0] sm:$0xff] }
  0xf4   :  { %825 = vmatpush2.msra.mxu0 %v6655_v54  ;;  %11177 = vst [vmem:[#allocation149_spill] sm:$0xff] %v6669_v34  ;;  %890 = vmatprep.subr.mxu1 %v6669_v34  ;;  %v6675_v54 = vld [vmem:[#allocation7 + $0x48] sm:$0xff]  ;;  %11180 = vst [vmem:[#allocation152_spill] sm:$0xff] %v6679_v23  ;;  %v6685_v38 = vld [vmem:[#allocation5 + $0x3b8] sm:$0xff] }
  0xf5   :  { %826 = vmatprep.subr.mxu0 %v6661_v42  ;;  %11179 = vst [vmem:[#allocation151_spill] sm:$0xff] %v6675_v54  ;;  %891 = vmatpush1.msra.mxu1 %v6675_v54  ;;  %v6681_v42 = vld [vmem:[#allocation7 + $0x38] sm:$0xff]  ;;  %11182 = vst [vmem:[#allocation154_spill] sm:$0xff] %v6685_v38  ;;  %v6691_v34 = vld [vmem:[#allocation5 + $0x3b0] sm:$0xff] }
  0xf6   :  { %827 = vmatpush2.msra.mxu0 %v6667_v46  ;;  %11181 = vst [vmem:[#allocation153_spill] sm:$0xff] %v6681_v42  ;;  %892 = vmatprep.subr.mxu1 %v6681_v42  ;;  %v6687_v46 = vld [vmem:[#allocation7 + $0x30] sm:$0xff]  ;;  %11184 = vst [vmem:[#allocation156_spill] sm:$0xff] %v6691_v34  ;;  %v6697_v54 = vld [vmem:[#allocation5 + $0x388] sm:$0xff] }
  0xf7   :  { %828 = vmatprep.subr.mxu0 %v6673_v58  ;;  %11183 = vst [vmem:[#allocation155_spill] sm:$0xff] %v6687_v46  ;;  %893 = vmatpush1.msra.mxu1 %v6687_v46  ;;  %v6693_v58 = vld [vmem:[#allocation7 + $0x20] sm:$0xff]  ;;  %11186 = vst [vmem:[#allocation158_spill] sm:$0xff] %v6697_v54  ;;  %v6707_v46 = vld [vmem:[#allocation5 + $0x358] sm:$0xff] }
  0xf8   :  { %829 = vmatpush2.msra.mxu0 %v6679_v23  ;;  %11185 = vst [vmem:[#allocation157_spill] sm:$0xff] %v6693_v58  ;;  %894 = vmatprep.subr.mxu1 %v6693_v58  ;;  %v6699_v23 = vld [vmem:[#allocation7 + $0x18] sm:$0xff]  ;;  %v6703_v42 = vld [vmem:[#allocation5 + $0x380] sm:$0xff]  ;;  %11187 = vst [vmem:[#allocation159_spill] sm:$0xff] %v6707_v46 }
  0xf9   :  { %830 = vmatprep.subr.mxu0 %v6685_v38  ;;  %895 = vmatpush1.msra.mxu1 %v6699_v23  ;;  %v6705_v38 = vld [vmem:[#allocation7 + $0x8] sm:$0xff]  ;;  %v6713_v58 = vld [vmem:[#allocation5 + $0x350] sm:$0xff] }
  0xfa   :  { %831 = vmatpush2.msra.mxu0 %v6691_v34  ;;  %896 = vmatprep.subr.mxu1 %v6705_v38  ;;  %v6711_v34 = vld [vmem:[#allocation7] sm:$0xff] }
  0xfb   :  { %832 = vmatprep.subr.mxu0 %v6697_v54  ;;  %897 = vmatpush1.msra.mxu1 %v6711_v34  ;;  %v6722_v54 = vld [vmem:[#allocation5 + $0x320] sm:$0xff] }
  0xfc   :  { %833 = vmatpush2.msra.mxu0 %v6703_v42  ;;  %4449 = vmatprep.subr.mxu1 %v11083_v62  ;;  %11188 = vst [vmem:[#allocation160_spill] sm:$0xff] %v6722_v54 }
  0xfd   :  { %834 = vmatprep.subr.mxu0 %v6707_v46  ;;  %v407_v46 = vlaneseq }
  0xfe   :  { %835 = vmatpush2.msra.mxu0 %v6713_v58 }
  0xff   :  { %836 = vmatprep.subr.mxu0 %v6715_v0 }
 0x100   :  { %837 = vmatpush2.msra.mxu0 %v6722_v54  ;;  %v6734_v54 = vshrl.u32 %v407_v46, 7 }
 0x101   :  { %839 = vmatmul.mubr.f32.vlgmr.msra.gmra.mxu0 %v11083_v62  ;;  %1028 = vmatprep.subr.mxu0 %v6096_v1 }
 0x102   :  { %1029 = vmatpush1.msra.mxu0 %v6098_v2  ;;  %v6741_v1 = vsub.s32 0, %v6734_v54  ;;  %v456_v2 = vld [vmem:[#allocation2] sm:$0x7] }
 0x103   :  { %1030 = vmatprep.subr.mxu0 %v6100_v3 }
 0x104   :  { %1031 = vmatpush1.msra.mxu0 %v6103_v4  ;;  %v6748_v4 = vsub.s32 1, %v6734_v54 }
 0x105   :  { %1032 = vmatprep.subr.mxu0 %v6106_v5 }
 0x106   :  { %1033 = vmatpush1.msra.mxu0 %v6109_v6  ;;  %v6754_v6 = vsub.s32 2, %v6734_v54 }
 0x107   :  { %1034 = vmatprep.subr.mxu0 %v6112_v7  ;;  %v461_v7 = vrot.slane %v456_v2, %v6741_v1 }
 0x108   :  { %1035 = vmatpush1.msra.mxu0 %v6115_v8 }
 0x109   :  { %1036 = vmatprep.subr.mxu0 %v6118_v9  ;;  %v6761_v9 = vrot.slane %v456_v2, %v6748_v4 }
 0x10a   :  { %1037 = vmatpush1.msra.mxu0 %v6121_v10 }
 0x10b   :  { %1038 = vmatprep.subr.mxu0 %v6130_v13 }
 0x10c   :  { %1039 = vmatpush1.msra.mxu0 %v6136_v15  ;;  %v6767_v15 = vrot.slane %v456_v2, %v6754_v6 }
 0x10d   :  { %1040 = vmatprep.subr.mxu0 %v6145_v18 }
 0x10e   :  { %1041 = vmatpush1.msra.mxu0 %v6151_v20 }
 0x10f   :  { %1042 = vmatprep.subr.mxu0 %v6154_v21 }
 0x110   :  { %1043 = vmatpush1.msra.mxu0 %v6158_v22  ;;  %v11192_v22 = vld [vmem:[#allocation31_spill] sm:$0xff] }
 0x111   :  { %1044 = vmatprep.subr.mxu0 %v6164_v24  ;;  %v11193_v24 = vld [vmem:[#allocation33_spill] sm:$0xff] }
 0x112   :  { %1045 = vmatpush1.msra.mxu0 %v6170_v26  ;;  %v11194_v26 = vld [vmem:[#allocation35_spill] sm:$0xff] }
 0x113   :  { %1046 = vmatprep.subr.mxu0 %v6174_v27  ;;  %v11195_v27 = vld [vmem:[#allocation37_spill] sm:$0xff] }
 0x114   :  { %1047 = vmatpush1.msra.mxu0 %v6178_v28  ;;  %v11196_v28 = vld [vmem:[#allocation39_spill] sm:$0xff] }
 0x115   :  { %1048 = vmatprep.subr.mxu0 %v6181_v30  ;;  %v11197_v30 = vld [vmem:[#allocation41_spill] sm:$0xff] }
 0x116   :  { %1049 = vmatpush1.msra.mxu0 %v6184_v31  ;;  %v11198_v31 = vld [vmem:[#allocation43_spill] sm:$0xff] }
 0x117   :  { %1050 = vmatprep.subr.mxu0 %v6188_v33  ;;  %v6819_v33 = vld [vmem:[%s10366_s4] sm:$0x3f] }
 0x118   :  { %1051 = vmatpush1.msra.mxu0 %v6191_v35  ;;  %v11199_v35 = vld [vmem:[#allocation45_spill] sm:$0xff] }
 0x119   :  { %1052 = vmatprep.subr.mxu0 %v6195_v37  ;;  %v11200_v37 = vld [vmem:[#allocation47_spill] sm:$0xff] }
 0x11a   :  { %1053 = vmatpush1.msra.mxu0 %v6198_v39  ;;  %v11201_v39 = vld [vmem:[#allocation49_spill] sm:$0xff] }
 0x11b   :  { %1054 = vmatprep.subr.mxu0 %v6201_v41  ;;  %v6826_v41 = vrot.slane %v6819_v33, %v6741_v1 }
 0x11c   :  { %1055 = vmatpush1.msra.mxu0 %v6204_v43  ;;  %v11203_v43 = vld [vmem:[#allocation51_spill] sm:$0xff] }
 0x11d   :  { %1056 = vmatprep.subr.mxu0 %v6207_v45  ;;  %11202 = vst [vmem:[#allocation31_spill] sm:$0xff] %v6826_v41  ;;  %v11204_v45 = vld [vmem:[#allocation73_spill] sm:$0xff] }
 0x11e   :  { %1057 = vmatpush1.msra.mxu0 %v6210_v47 }
 0x11f   :  { %1058 = vmatprep.subr.mxu0 %v6213_v49 }
 0x120   :  { %1059 = vmatpush1.msra.mxu0 %v6216_v51  ;;  %v6835_v51 = vrot.slane %v6819_v33, %v6748_v4 }
 0x121   :  { %1060 = vmatprep.subr.mxu0 %v6219_v53 }
 0x122   :  { %1061 = vmatpush2.msra.mxu0 %v6222_v55 }
 0x123   :  { %1062 = vmatprep.subr.mxu0 %v6225_v57 }
 0x124   :  { %1063 = vmatpush2.msra.mxu0 %v6228_v59 }
 0x125   :  { %1064 = vmatprep.subr.mxu0 %v6231_v61 }
 0x126   :  { %1065 = vmatpush2.msra.mxu0 %v6234_v63 }
 0x127   :  { %1066 = vmatprep.subr.mxu0 %v6237_v12 }
 0x128   :  { %1067 = vmatpush2.msra.mxu0 %v6240_v16 }
 0x129   :  { %1068 = vmatprep.subr.mxu0 %v6243_v19 }
 0x12a   :  { %1069 = vmatpush2.msra.mxu0 %v6246_v25 }
 0x12b   :  { %1070 = vmatprep.subr.mxu0 %v6249_v32  ;;  %v6847_v32 = vrot.slane %v6819_v33, %v6754_v6 }
 0x12c   :  { %1071 = vmatpush2.msra.mxu0 %v6252_v36 }
 0x12d   :  { %1072 = vmatprep.subr.mxu0 %v6255_v40 }
 0x12e   :  { %1073 = vmatpush2.msra.mxu0 %v6258_v44 }
 0x12f   :  { %1074 = vmatprep.subr.mxu0 %v6261_v48 }
 0x130   :  { %1075 = vmatpush2.msra.mxu0 %v6266_v52 }
 0x131   :  { %1076 = vmatprep.subr.mxu0 %v6271_v56 }
 0x132   :  { %1077 = vmatpush2.msra.mxu0 %v6276_v60 }
 0x133   :  { %1078 = vmatprep.subr.mxu0 %v6282_v11 }
 0x134   :  { %1079 = vmatpush2.msra.mxu0 %v6288_v17 }
 0x135   :  { %1080 = vmatprep.subr.mxu0 %v6294_v29 }
 0x136   :  { %1081 = vmatpush2.msra.mxu0 %v11192_v22  ;;  %v6877_v22 = vld [vmem:[#allocation7 + $0x100] sm:$0xff] }
 0x137   :  { %1082 = vmatprep.subr.mxu0 %v11193_v24  ;;  %v6881_v24 = vld [vmem:[#allocation7 + $0xe8] sm:$0xff] }
 0x138   :  { %1083 = vmatpush2.msra.mxu0 %v11194_v26  ;;  %v6885_v26 = vld [vmem:[#allocation7 + $0xd0] sm:$0xff] }
 0x139   :  { %1084 = vmatprep.subr.mxu0 %v11195_v27  ;;  %v6889_v27 = vld [vmem:[#allocation7 + $0xb8] sm:$0xff] }
 0x13a   :  { %1085 = vmatpush2.msra.mxu0 %v11196_v28  ;;  %v6893_v28 = vld [vmem:[#allocation7 + $0xa0] sm:$0xff] }
 0x13b   :  { %v6744_v3 = vpop.f32.mrf.mxu1  ;;  %1086 = vmatprep.subr.mxu0 %v11197_v30  ;;  %v6897_v30 = vld [vmem:[#allocation7 + $0x88] sm:$0xff] }
 0x13c   :  { %1087 = vmatpush2.msra.mxu0 %v11198_v31  ;;  %v6831_v49 = vadd.f32 %v6744_v3, %v461_v7  ;;  %v6901_v31 = vld [vmem:[#allocation7 + $0x70] sm:$0xff] }
 0x13d   :  { %v6751_v5 = vpop.f32.mrf.mxu1  ;;  %1088 = vmatprep.subr.mxu0 %v11199_v35  ;;  %v6905_v35 = vld [vmem:[#allocation7 + $0x58] sm:$0xff] }
 0x13e   :  { %1089 = vmatpush2.msra.mxu0 %v11200_v37  ;;  %v6842_v63 = vadd.f32 %v6751_v5, %v6761_v9  ;;  %v6909_v37 = vld [vmem:[#allocation7 + $0x40] sm:$0xff] }
 0x13f   :  { %v552_v8 = vpop.f32.mrf.mxu1  ;;  %1090 = vmatprep.subr.mxu0 %v11201_v39  ;;  %v6913_v39 = vld [vmem:[#allocation7 + $0x28] sm:$0xff] }
 0x140   :  { %v6763_v10 = vadd.f32 %v552_v8, %v461_v7  ;;  %1091 = vmatpush2.msra.mxu0 %v11203_v43  ;;  %v6856_v8 = vld [vmem:[#allocation7 + $0x178] sm:$0xff]  ;;  %v6917_v43 = vld [vmem:[#allocation7 + $0x10] sm:$0xff] }
 0x141   :  { %v554_v13 = vpop.f32.mrf.mxu1  ;;  %1170 = vmatprep.subr.mxu0 %v11204_v45  ;;  %v6923_v45 = vld [vmem:[#allocation5 + $0x2e8] sm:$0xff] }
 0x142   :  { %11189 = vst [vmem:[#allocation161_spill] sm:$0xff] %v6763_v10  ;;  %v6771_v18 = vadd.f32 %v554_v13, %v6761_v9  ;;  %v6859_v9 = vld [vmem:[#allocation7 + $0x160] sm:$0xff]  ;;  %v6865_v13 = vld [vmem:[#allocation7 + $0x148] sm:$0xff] }
 0x143   :  { %v11222_v10 = vld [vmem:[#allocation24_spill] sm:$0xff] }
 0x144   :  { %11190 = vst [vmem:[#allocation162_spill] sm:$0xff] %v6771_v18  ;;  %v4448_v20 = vpop.f32.mrf.mxu1  ;;  %v6998_v18 = vld [vmem:[#allocation5 + $0xa0] sm:$0xff] }
 0x145   :  { %v6777_v21 = vadd.f32 %v4448_v20, %v6767_v15  ;;  %v6873_v20 = vld [vmem:[#allocation7 + $0x118] sm:$0xff]  ;;  %11221 = vst [vmem:[#allocation169_spill] sm:$0xff] %v6998_v18 }
 0x146   :  { %v623_v40 = vpop.f32.mrf.mxu1 }
 0x147   :  { %11191 = vst [vmem:[#allocation163_spill] sm:$0xff] %v6777_v21  ;;  %v6851_v60 = vadd.f32 %v623_v40, %v6767_v15  ;;  %v6869_v15 = vld [vmem:[#allocation7 + $0x130] sm:$0xff]  ;;  %v6959_v40 = vld [vmem:[#allocation5 + $0x1c8] sm:$0xff] }
 0x148   :  { %11208 = vst [vmem:[#allocation39_spill] sm:$0xff] %v6959_v40  ;;  %v6995_v21 = vld [vmem:[#allocation5 + $0xa8] sm:$0xff] }
 0x149   :  { %11220 = vst [vmem:[#allocation168_spill] sm:$0xff] %v6995_v21 }
 0x174   :  { %v698_v47 = vpop.f32.mrf.mxu0 }
 0x175   :  { %v699_v53 = vadd.f32 %v698_v47, %v6826_v41  ;;  %v6926_v47 = vld [vmem:[#allocation5 + $0x2e0] sm:$0xff] }
 0x176   :  { %v700_v55 = vpop.f32.mrf.mxu0 }
 0x177   :  { %v845_v57 = vadd.f32 %v699_v53, %v6831_v49  ;;  %v701_v61 = vadd.f32 %v700_v55, %v6835_v51  ;;  %v6929_v53 = vld [vmem:[#allocation5 + $0x2b8] sm:$0xff]  ;;  %v6932_v55 = vld [vmem:[#allocation5 + $0x2b0] sm:$0xff] }
 0x179   :  { %v4215_v59 = vmul.f32 -1.442695, %v845_v57  ;;  %v846_v12 = vadd.f32 %v701_v61, %v6842_v63  ;;  %v6935_v57 = vld [vmem:[#allocation5 + $0x288] sm:$0xff]  ;;  %v6941_v61 = vld [vmem:[#allocation5 + $0x258] sm:$0xff] }
 0x17b   :  { %4852 = vpow2.f32 %v4215_v59  ;;  %v4216_v16 = vmul.f32 -1.442695, %v846_v12  ;;  %v6938_v59 = vld [vmem:[#allocation5 + $0x280] sm:$0xff]  ;;  %v6944_v12 = vld [vmem:[#allocation5 + $0x250] sm:$0xff] }
 0x17d   :  { %4854 = vpow2.f32 %v4216_v16  ;;  %v6947_v16 = vld [vmem:[#allocation5 + $0x228] sm:$0xff] }
 0x185   :  { %v769_v44 = vpop.f32.mrf.mxu1 }
 0x186   :  { %v770_v52 = vadd.f32 %v769_v44, %v6847_v32  ;;  %v6962_v44 = vld [vmem:[#allocation5 + $0x1c0] sm:$0xff] }
 0x187   :  { %11209 = vst [vmem:[#allocation41_spill] sm:$0xff] %v6962_v44 }
 0x188   :  { %v4853_v19 = vpop.eup %4852 }
 0x189   :  { %v853_v25 = vadd.f32 1.0, %v4853_v19  ;;  %v6950_v19 = vld [vmem:[#allocation5 + $0x220] sm:$0xff] }
 0x18a   :  { %v4855_v36 = vpop.eup %4854  ;;  %11205 = vst [vmem:[#allocation33_spill] sm:$0xff] %v6950_v19 }
 0x18b   :  { %4856 = vrcp.f32 %v853_v25  ;;  %v854_v48 = vadd.f32 1.0, %v4855_v36  ;;  %v6953_v25 = vld [vmem:[#allocation5 + $0x1f8] sm:$0xff]  ;;  %v6956_v36 = vld [vmem:[#allocation5 + $0x1f0] sm:$0xff] }
 0x18c   :  { %11206 = vst [vmem:[#allocation35_spill] sm:$0xff] %v6953_v25  ;;  %11207 = vst [vmem:[#allocation37_spill] sm:$0xff] %v6956_v36 }
 0x18d   :  { %4858 = vrcp.f32 %v854_v48  ;;  %v6965_v48 = vld [vmem:[#allocation5 + $0x198] sm:$0xff] }
 0x18e   :  { %11210 = vst [vmem:[#allocation43_spill] sm:$0xff] %v6965_v48 }
 0x198   :  { %v4857_v56 = vpop.eup %4856 }
 0x199   :  { %v859_v11 = vmul.f32 %v4857_v56, %v770_v52  ;;  %v6968_v52 = vld [vmem:[#allocation5 + $0x190] sm:$0xff]  ;;  %v6971_v56 = vld [vmem:[#allocation5 + $0x168] sm:$0xff] }
 0x19a   :  { %v4859_v29 = vpop.eup %4858  ;;  %11211 = vst [vmem:[#allocation45_spill] sm:$0xff] %v6968_v52  ;;  %11212 = vst [vmem:[#allocation47_spill] sm:$0xff] %v6971_v56 }
 0x19b   :  { %v860_v17 = vadd.f32 %v859_v11, %v6851_v60  ;;  %v862_v46 = vsub.f32 1.0, %v4859_v29  ;;  %v864_v5 = vmul.f32 0.0, %v4859_v29  ;;  %v6974_v11 = vld [vmem:[#allocation5 + $0x160] sm:$0xff]  ;;  %v6980_v29 = vld [vmem:[#allocation5 + $0x130] sm:$0xff] }
 0x19c   :  { %11213 = vst [vmem:[#allocation49_spill] sm:$0xff] %v6974_v11  ;;  %11215 = vst [vmem:[#allocation73_spill] sm:$0xff] %v6980_v29 }
 0x19d   :  { %4860 = vtanh.f32 %v860_v17  ;;  %v6977_v17 = vld [vmem:[#allocation5 + $0x138] sm:$0xff] }
 0x19e   :  { %11214 = vst [vmem:[#allocation51_spill] sm:$0xff] %v6977_v17 }
 0x1aa   :  { %v4861_v2 = vpop.eup %4860 }
 0x1ab   :  { %v863_v3 = vmul.f32 %v4861_v2, %v862_v46  ;;  %v6983_v46 = vld [vmem:[#allocation5 + $0x108] sm:$0xff]  ;;  %v6986_v2 = vld [vmem:[#allocation5 + $0x100] sm:$0xff] }
 0x1ac   :  { %11216 = vst [vmem:[#allocation164_spill] sm:$0xff] %v6983_v46  ;;  %11217 = vst [vmem:[#allocation165_spill] sm:$0xff] %v6986_v2 }
 0x1ad   :  { %v6854_v7 = vadd.f32 %v864_v5, %v863_v3  ;;  %v6989_v3 = vld [vmem:[#allocation5 + $0xd8] sm:$0xff]  ;;  %v6992_v5 = vld [vmem:[#allocation5 + $0xd0] sm:$0xff] }
 0x1ae   :  { %11218 = vst [vmem:[#allocation166_spill] sm:$0xff] %v6989_v3  ;;  %11219 = vst [vmem:[#allocation167_spill] sm:$0xff] %v6992_v5 }
 0x1af   :  { %931 = vmatmul.mubr.f32.vlgmr.msra.gmra.mxu1 %v6854_v7 }
 0x1b0   :  { %4450 = vmatpush3.msra.mxu1 %v6856_v8  ;;  %4481 = vmatprep.mubr.msk.f32.mxu1 %vm5986_vm1, %v11083_v62 }
 0x1b1   :  { %4451 = vmatprep.subr.mxu1 %v11083_v62 }
 0x1b2   :  { %4452 = vmatpush3.msra.mxu1 %v6859_v9 }
 0x1b3   :  { %4453 = vmatprep.subr.mxu1 %v11083_v62 }
 0x1b4   :  { %4454 = vmatpush3.msra.mxu1 %v6865_v13 }
 0x1b5   :  { %4455 = vmatprep.subr.mxu1 %v11083_v62 }
 0x1b6   :  { %4456 = vmatpush3.msra.mxu1 %v6869_v15 }
 0x1b7   :  { %4457 = vmatprep.subr.mxu1 %v11083_v62 }
 0x1b8   :  { %4458 = vmatpush3.msra.mxu1 %v6873_v20 }
 0x1b9   :  { %4459 = vmatprep.subr.mxu1 %v11083_v62 }
 0x1ba   :  { %4460 = vmatpush3.msra.mxu1 %v6877_v22 }
 0x1bb   :  { %4461 = vmatprep.subr.mxu1 %v11083_v62 }
 0x1bc   :  { %4462 = vmatpush3.msra.mxu1 %v6881_v24 }
 0x1bd   :  { %4463 = vmatprep.subr.mxu1 %v11083_v62 }
 0x1be   :  { %4464 = vmatpush3.msra.mxu1 %v6885_v26 }
 0x1bf   :  { %4465 = vmatprep.subr.mxu1 %v11083_v62 }
 0x1c0   :  { %4466 = vmatpush3.msra.mxu1 %v6889_v27 }
 0x1c1   :  { %4467 = vmatprep.subr.mxu1 %v11083_v62 }
 0x1c2   :  { %4468 = vmatpush3.msra.mxu1 %v6893_v28 }
 0x1c3   :  { %4469 = vmatprep.subr.mxu1 %v11083_v62 }
 0x1c4   :  { %4470 = vmatpush3.msra.mxu1 %v6897_v30 }
 0x1c5   :  { %4471 = vmatprep.subr.mxu1 %v11083_v62 }
 0x1c6   :  { %4472 = vmatpush3.msra.mxu1 %v6901_v31 }
 0x1c7   :  { %4473 = vmatprep.subr.mxu1 %v11083_v62 }
 0x1c8   :  { %4474 = vmatpush3.msra.mxu1 %v6905_v35 }
 0x1c9   :  { %4475 = vmatprep.subr.mxu1 %v11083_v62 }
 0x1ca   :  { %4476 = vmatpush3.msra.mxu1 %v6909_v37 }
 0x1cb   :  { %4477 = vmatprep.subr.mxu1 %v11083_v62 }
 0x1cc   :  { %4478 = vmatpush3.msra.mxu1 %v6913_v39 }
 0x1cd   :  { %4479 = vmatprep.subr.mxu1 %v11083_v62 }
 0x1ce   :  { %4480 = vmatpush3.msra.mxu1 %v6917_v43 }
 0x1cf   :  { %4482 = vmatmul.mubr.f32.vlgmr.msra.gmra.mxu1 %v6854_v7  ;;  %1099 = vmatprep.subr.mxu1 %v6923_v45 }
 0x1d0   :  { %1100 = vmatpush1.msra.mxu1 %v6926_v47 }
 0x1d1   :  { %1101 = vmatprep.subr.mxu1 %v6929_v53 }
 0x1d2   :  { %1102 = vmatpush1.msra.mxu1 %v6932_v55 }
 0x1d3   :  { %1103 = vmatprep.subr.mxu1 %v6935_v57 }
 0x1d4   :  { %1104 = vmatpush1.msra.mxu1 %v6938_v59 }
 0x1d5   :  { %1105 = vmatprep.subr.mxu1 %v6941_v61 }
 0x1d6   :  { %1106 = vmatpush1.msra.mxu1 %v6944_v12 }
 0x1d7   :  { %1107 = vmatprep.subr.mxu1 %v6947_v16 }
 0x1d8   :  { %1108 = vmatpush1.msra.mxu1 %v6950_v19 }
 0x1d9   :  { %1109 = vmatprep.subr.mxu1 %v6953_v25 }
 0x1da   :  { %1110 = vmatpush1.msra.mxu1 %v6956_v36 }
 0x1db   :  { %1111 = vmatprep.subr.mxu1 %v6959_v40 }
 0x1dc   :  { %1112 = vmatpush1.msra.mxu1 %v6962_v44 }
 0x1dd   :  { %1113 = vmatprep.subr.mxu1 %v6965_v48 }
 0x1de   :  { %1114 = vmatpush1.msra.mxu1 %v6968_v52  ;;  %v840_v52 = vpop.f32.mrf.mxu0 }
 0x1df   :  { %1115 = vmatprep.subr.mxu1 %v6971_v56  ;;  %v11231_v56 = vld [vmem:[#allocation36_spill] sm:$0xff] }
 0x1e0   :  { %1116 = vmatpush1.msra.mxu1 %v6974_v11  ;;  %v11229_v11 = vld [vmem:[#allocation32_spill] sm:$0xff] }
 0x1e1   :  { %1117 = vmatprep.subr.mxu1 %v6977_v17  ;;  %v11227_v17 = vld [vmem:[#allocation29_spill] sm:$0xff] }
 0x1e2   :  { %1118 = vmatpush1.msra.mxu1 %v6980_v29  ;;  %v11225_v29 = vld [vmem:[#allocation27_spill] sm:$0xff] }
 0x1e3   :  { %1119 = vmatprep.subr.mxu1 %v6983_v46  ;;  %v11223_v46 = vld [vmem:[#allocation25_spill] sm:$0xff] }
 0x1e4   :  { %1120 = vmatpush1.msra.mxu1 %v6986_v2  ;;  %v11224_v2 = vld [vmem:[#allocation26_spill] sm:$0xff] }
 0x1e5   :  { %1121 = vmatprep.subr.mxu1 %v6989_v3  ;;  %v11226_v3 = vld [vmem:[#allocation28_spill] sm:$0xff] }
 0x1e6   :  { %1122 = vmatpush1.msra.mxu1 %v6992_v5  ;;  %v11228_v5 = vld [vmem:[#allocation30_spill] sm:$0xff] }
 0x1e7   :  { %1123 = vmatprep.subr.mxu1 %v6995_v21  ;;  %v11230_v21 = vld [vmem:[#allocation34_spill] sm:$0xff] }
 0x1e8   :  { %1124 = vmatpush1.msra.mxu1 %v6998_v18  ;;  %v11232_v18 = vld [vmem:[#allocation38_spill] sm:$0xff] }
 0x1e9   :  { %1125 = vmatprep.subr.mxu1 %v11222_v10  ;;  %v11233_v10 = vld [vmem:[#allocation40_spill] sm:$0xff] }
 0x1ea   :  { %1126 = vmatpush1.msra.mxu1 %v11223_v46  ;;  %v11234_v46 = vld [vmem:[#allocation42_spill] sm:$0xff] }
 0x1eb   :  { %1127 = vmatprep.subr.mxu1 %v11224_v2  ;;  %v11235_v2 = vld [vmem:[#allocation44_spill] sm:$0xff] }
 0x1ec   :  { %1128 = vmatpush1.msra.mxu1 %v11225_v29  ;;  %v11236_v29 = vld [vmem:[#allocation46_spill] sm:$0xff] }
 0x1ed   :  { %1129 = vmatprep.subr.mxu1 %v11226_v3  ;;  %v11237_v3 = vld [vmem:[#allocation48_spill] sm:$0xff] }
 0x1ee   :  { %1130 = vmatpush1.msra.mxu1 %v11227_v17  ;;  %v11238_v17 = vld [vmem:[#allocation50_spill] sm:$0xff] }
 0x1ef   :  { %1131 = vmatprep.subr.mxu1 %v11228_v5  ;;  %v11239_v5 = vld [vmem:[#allocation52_spill] sm:$0xff] }
 0x1f0   :  { %1132 = vmatpush2.msra.mxu1 %v11229_v11  ;;  %v11240_v11 = vld [vmem:[#allocation53_spill] sm:$0xff] }
 0x1f1   :  { %1133 = vmatprep.subr.mxu1 %v11230_v21  ;;  %v11241_v21 = vld [vmem:[#allocation54_spill] sm:$0xff] }
 0x1f2   :  { %1134 = vmatpush2.msra.mxu1 %v11231_v56  ;;  %v11242_v56 = vld [vmem:[#allocation55_spill] sm:$0xff] }
 0x1f3   :  { %1135 = vmatprep.subr.mxu1 %v11232_v18  ;;  %v11243_v18 = vld [vmem:[#allocation56_spill] sm:$0xff] }
 0x1f4   :  { %1136 = vmatpush2.msra.mxu1 %v11233_v10  ;;  %v11244_v10 = vld [vmem:[#allocation57_spill] sm:$0xff] }
 0x1f5   :  { %1137 = vmatprep.subr.mxu1 %v11234_v46  ;;  %v11245_v46 = vld [vmem:[#allocation58_spill] sm:$0xff] }
 0x1f6   :  { %1138 = vmatpush2.msra.mxu1 %v11235_v2  ;;  %v11246_v2 = vld [vmem:[#allocation59_spill] sm:$0xff] }
 0x1f7   :  { %1139 = vmatprep.subr.mxu1 %v11236_v29  ;;  %v11247_v29 = vld [vmem:[#allocation60_spill] sm:$0xff] }
 0x1f8   :  { %1140 = vmatpush2.msra.mxu1 %v11237_v3  ;;  %v11248_v3 = vld [vmem:[#allocation61_spill] sm:$0xff] }
 0x1f9   :  { %1141 = vmatprep.subr.mxu1 %v11238_v17  ;;  %v11249_v17 = vld [vmem:[#allocation62_spill] sm:$0xff] }
 0x1fa   :  { %1142 = vmatpush2.msra.mxu1 %v11239_v5  ;;  %v11250_v5 = vld [vmem:[#allocation63_spill] sm:$0xff] }
 0x1fb   :  { %1143 = vmatprep.subr.mxu1 %v11240_v11  ;;  %v11251_v11 = vld [vmem:[#allocation64_spill] sm:$0xff] }
 0x1fc   :  { %1144 = vmatpush2.msra.mxu1 %v11241_v21  ;;  %v11252_v21 = vld [vmem:[#allocation65_spill] sm:$0xff] }
 0x1fd   :  { %1145 = vmatprep.subr.mxu1 %v11242_v56  ;;  %v11253_v56 = vld [vmem:[#allocation66_spill] sm:$0xff] }
 0x1fe   :  { %1146 = vmatpush2.msra.mxu1 %v11243_v18  ;;  %v11254_v18 = vld [vmem:[#allocation67_spill] sm:$0xff] }
 0x1ff   :  { %1147 = vmatprep.subr.mxu1 %v11244_v10  ;;  %v11255_v10 = vld [vmem:[#allocation68_spill] sm:$0xff] }
 0x200   :  { %1148 = vmatpush2.msra.mxu1 %v11245_v46  ;;  %v11256_v46 = vld [vmem:[#allocation69_spill] sm:$0xff] }
 0x201   :  { %1149 = vmatprep.subr.mxu1 %v11246_v2  ;;  %v11257_v2 = vld [vmem:[#allocation70_spill] sm:$0xff] }
 0x202   :  { %1150 = vmatpush2.msra.mxu1 %v11247_v29  ;;  %v11258_v29 = vld [vmem:[#allocation71_spill] sm:$0xff] }
 0x203   :  { %1151 = vmatprep.subr.mxu1 %v11248_v3  ;;  %v11259_v3 = vld [vmem:[#allocation72_spill] sm:$0xff] }
 0x204   :  { %1152 = vmatpush2.msra.mxu1 %v11249_v17  ;;  %v11260_v17 = vld [vmem:[#allocation103_spill] sm:$0xff] }
 0x205   :  { %1153 = vmatprep.subr.mxu1 %v11250_v5  ;;  %v421_v5 = vsub.s32 3, %v6734_v54 }
 0x206   :  { %1154 = vmatpush2.msra.mxu1 %v11251_v11  ;;  %v437_v11 = vld [vmem:[#allocation8] sm:$0x7] }
 0x207   :  { %1155 = vmatprep.subr.mxu1 %v11252_v21  ;;  %v7042_v21 = vrot.slane %v6819_v33, %v421_v5 }
 0x208   :  { %1156 = vmatpush2.msra.mxu1 %v11253_v56  ;;  %v425_v56 = vsub.s32 4, %v6734_v54 }
 0x209   :  { %1157 = vmatprep.subr.mxu1 %v11254_v18  ;;  %11261 = vst [vmem:[#allocation24_spill] sm:$0xff] %v7042_v21  ;;  %v7046_v18 = vrot.slane %v437_v11, %v6741_v1 }
 0x20a   :  { %1158 = vmatpush2.msra.mxu1 %v11255_v10  ;;  %v771_v10 = vpop.f32.mrf.mxu1 }
 0x20b   :  { %1159 = vmatprep.subr.mxu1 %v11256_v46  ;;  %11262 = vst [vmem:[#allocation25_spill] sm:$0xff] %v7046_v18 }
 0x20c   :  { %1160 = vmatpush2.msra.mxu1 %v11257_v2  ;;  %v7049_v2 = vrot.slane %v6819_v33, %v425_v56 }
 0x20d   :  { %1161 = vmatprep.subr.mxu1 %v11258_v29  ;;  %v7052_v29 = vrot.slane %v437_v11, %v6748_v4  ;;  %v429_v4 = vsub.s32 5, %v6734_v54 }
 0x20e   :  { %1162 = vmatpush2.msra.mxu1 %v11259_v3  ;;  %11263 = vst [vmem:[#allocation26_spill] sm:$0xff] %v7049_v2  ;;  %v772_v3 = vadd.f32 %v771_v10, %v7042_v21  ;;  %v841_v40 = vadd.f32 %v840_v52, %v7049_v2 }
 0x20f   :  { %1277 = vmatprep.subr.mxu1 %v11260_v17 }
 0x26f   :  { %v932_v46 = vpop.f32.mrf.mxu1 }
 0x270   :  { %v933_v17 = vadd.f32 %v932_v46, %v7046_v18  ;;  %v7060_v46 = vrot.slane %v6819_v33, %v429_v4  ;;  %v842_v18 = vpop.f32.mrf.mxu0 }
 0x271   :  { %v934_v5 = vpop.f32.mrf.mxu1 }
 0x272   :  { %v1007_v48 = vadd.f32 %v933_v17, %v772_v3  ;;  %v935_v1 = vadd.f32 %v934_v5, %v7052_v29 }
 0x274   :  { %v4217_v44 = vmul.f32 -1.442695, %v1007_v48  ;;  %v1008_v36 = vadd.f32 %v935_v1, %v841_v40  ;;  %v7063_v48 = vrot.slane %v437_v11, %v6754_v6  ;;  %v843_v40 = vadd.f32 %v842_v18, %v7060_v46  ;;  %v11264_v6 = vld [vmem:[#allocation74_spill] sm:$0xff]  ;;  %v11265_v11 = vld [vmem:[#allocation75_spill] sm:$0xff]  ;;  %v11266_v18 = vld [vmem:[#allocation76_spill] sm:$0xff] }
 0x276   :  { %4862 = vpow2.f32 %v4217_v44  ;;  %v4218_v25 = vmul.f32 -1.442695, %v1008_v36 }
 0x278   :  { %4864 = vpow2.f32 %v4218_v25 }
 0x283   :  { %v4863_v56 = vpop.eup %4862 }
 0x284   :  { %v1015_v19 = vadd.f32 1.0, %v4863_v56 }
 0x285   :  { %v4865_v10 = vpop.eup %4864 }
 0x286   :  { %4866 = vrcp.f32 %v1015_v19  ;;  %v1016_v52 = vadd.f32 1.0, %v4865_v10  ;;  %v11267_v10 = vld [vmem:[#allocation106_spill] sm:$0xff] }
 0x288   :  { %4868 = vrcp.f32 %v1016_v52  ;;  %v11269_v52 = vld [vmem:[#allocation78_spill] sm:$0xff] }
 0x28f   :  { %v1003_v3 = vpop.f32.mrf.mxu1 }
 0x290   :  { %v1004_v19 = vadd.f32 %v1003_v3, %v7063_v48  ;;  %v11268_v3 = vld [vmem:[#allocation77_spill] sm:$0xff] }
 0x291   :  { %v4483_v17 = vpop.f32.mrf.mxu1 }
 0x292   :  { %v11270_v17 = vld [vmem:[#allocation109_spill] sm:$0xff] }
 0x293   :  { %v4867_v36 = vpop.eup %4866 }
 0x294   :  { %v1021_v25 = vmul.f32 %v4867_v36, %v843_v40  ;;  %v11271_v40 = vld [vmem:[#allocation79_spill] sm:$0xff] }
 0x295   :  { %v4869_v54 = vpop.eup %4868  ;;  %v11272_v36 = vld [vmem:[#allocation111_spill] sm:$0xff] }
 0x296   :  { %v1022_v44 = vadd.f32 %v1021_v25, %v1004_v19  ;;  %v1024_v5 = vsub.f32 1.0, %v4869_v54  ;;  %v1026_v56 = vmul.f32 0.0, %v4869_v54  ;;  %v11273_v25 = vld [vmem:[#allocation80_spill] sm:$0xff]  ;;  %v11274_v19 = vld [vmem:[#allocation113_spill] sm:$0xff]  ;;  %v11277_v54 = vld [vmem:[#allocation82_spill] sm:$0xff] }
 0x298   :  { %4870 = vtanh.f32 %v1022_v44  ;;  %v11276_v44 = vld [vmem:[#allocation115_spill] sm:$0xff] }
 0x2a5   :  { %v4871_v33 = vpop.eup %4870 }
 0x2a6   :  { %v1025_v1 = vmul.f32 %v4871_v33, %v1024_v5  ;;  %v11278_v5 = vld [vmem:[#allocation117_spill] sm:$0xff]  ;;  %v11280_v33 = vld [vmem:[#allocation119_spill] sm:$0xff] }
 0x2a8   :  { %v7067_v4 = vadd.f32 %v1026_v56, %v1025_v1  ;;  %v11281_v1 = vld [vmem:[#allocation84_spill] sm:$0xff]  ;;  %v11282_v56 = vld [vmem:[#allocation121_spill] sm:$0xff] }
 0x2aa   :  { %1092 = vmatprep.mubr.f32.mxu0 %v7067_v4  ;;  %1163 = vmatprep.mubr.f32.mxu1 %v7067_v4 }
 0x2ab   :  { %1093 = vmatmul.mubr.f32.vlgmr.msra.gmra.mxu0 %v6854_v7  ;;  %1164 = vmatmul.mubr.f32.vlgmr.msra.gmra.mxu1 %v6854_v7 }
 0x2ac   :  { %1171 = vmatpush1.msra.mxu0 %v11264_v6  ;;  %1234 = vmatprep.mubr.f32.mxu0 %v7067_v4  ;;  %v11283_v6 = vld [vmem:[#allocation85_spill] sm:$0xff] }
 0x2ad   :  { %1172 = vmatprep.subr.mxu0 %v11265_v11  ;;  %1278 = vmatpush1.msra.mxu1 %v6531_v14  ;;  %v11275_v14 = vld [vmem:[#allocation81_spill] sm:$0xff]  ;;  %v11284_v11 = vld [vmem:[#allocation123_spill] sm:$0xff] }
 0x2ae   :  { %1173 = vmatpush1.msra.mxu0 %v11266_v18  ;;  %1279 = vmatprep.subr.mxu1 %v11267_v10  ;;  %v11285_v18 = vld [vmem:[#allocation86_spill] sm:$0xff]  ;;  %v11286_v10 = vld [vmem:[#allocation125_spill] sm:$0xff] }
 0x2af   :  { %1174 = vmatprep.subr.mxu0 %v11268_v3  ;;  %1280 = vmatpush1.msra.mxu1 %v6541_v50  ;;  %v11279_v50 = vld [vmem:[#allocation83_spill] sm:$0xff] }
 0x2b0   :  { %1175 = vmatpush1.msra.mxu0 %v11269_v52  ;;  %1281 = vmatprep.subr.mxu1 %v11270_v17  ;;  %v11287_v3 = vld [vmem:[#allocation87_spill] sm:$0xff]  ;;  %v11289_v17 = vld [vmem:[#allocation88_spill] sm:$0xff] }
 0x2b1   :  { %1176 = vmatprep.subr.mxu0 %v11271_v40  ;;  %1282 = vmatpush1.msra.mxu1 %v11272_v36  ;;  %v11288_v52 = vld [vmem:[#allocation127_spill] sm:$0xff]  ;;  %v11290_v40 = vld [vmem:[#allocation129_spill] sm:$0xff] }
 0x2b2   :  { %1177 = vmatpush1.msra.mxu0 %v11273_v25  ;;  %1283 = vmatprep.subr.mxu1 %v11274_v19  ;;  %v11291_v36 = vld [vmem:[#allocation89_spill] sm:$0xff]  ;;  %v11292_v25 = vld [vmem:[#allocation131_spill] sm:$0xff]  ;;  %v11293_v19 = vld [vmem:[#allocation90_spill] sm:$0xff] }
 0x2b3   :  { %1178 = vmatprep.subr.mxu0 %v11275_v14  ;;  %1284 = vmatpush1.msra.mxu1 %v11276_v44  ;;  %v11294_v14 = vld [vmem:[#allocation133_spill] sm:$0xff]  ;;  %v11295_v44 = vld [vmem:[#allocation91_spill] sm:$0xff] }
 0x2b4   :  { %1179 = vmatpush1.msra.mxu0 %v11277_v54  ;;  %1285 = vmatprep.subr.mxu1 %v11278_v5  ;;  %v11296_v54 = vld [vmem:[#allocation135_spill] sm:$0xff]  ;;  %v11297_v5 = vld [vmem:[#allocation92_spill] sm:$0xff] }
 0x2b5   :  { %1180 = vmatprep.subr.mxu0 %v11279_v50  ;;  %1286 = vmatpush1.msra.mxu1 %v11280_v33  ;;  %v11298_v50 = vld [vmem:[#allocation137_spill] sm:$0xff] }
 0x2b6   :  { %1181 = vmatpush1.msra.mxu0 %v11281_v1  ;;  %1287 = vmatprep.subr.mxu1 %v11282_v56  ;;  %v11299_v33 = vld [vmem:[#allocation93_spill] sm:$0xff]  ;;  %v11300_v1 = vld [vmem:[#allocation139_spill] sm:$0xff]  ;;  %v11301_v56 = vld [vmem:[#allocation94_spill] sm:$0xff] }
 0x2b7   :  { %1182 = vmatprep.subr.mxu0 %v11283_v6  ;;  %1288 = vmatpush1.msra.mxu1 %v11284_v11  ;;  %v11302_v6 = vld [vmem:[#allocation141_spill] sm:$0xff]  ;;  %v11303_v11 = vld [vmem:[#allocation95_spill] sm:$0xff] }
 0x2b8   :  { %1183 = vmatpush1.msra.mxu0 %v11285_v18  ;;  %1289 = vmatprep.subr.mxu1 %v11286_v10  ;;  %v11304_v18 = vld [vmem:[#allocation143_spill] sm:$0xff]  ;;  %v11305_v10 = vld [vmem:[#allocation96_spill] sm:$0xff] }
 0x2b9   :  { %1184 = vmatprep.subr.mxu0 %v11287_v3  ;;  %1290 = vmatpush1.msra.mxu1 %v11288_v52  ;;  %v11306_v3 = vld [vmem:[#allocation145_spill] sm:$0xff] }
 0x2ba   :  { %1185 = vmatpush1.msra.mxu0 %v11289_v17  ;;  %1291 = vmatprep.subr.mxu1 %v11290_v40  ;;  %v11307_v52 = vld [vmem:[#allocation97_spill] sm:$0xff]  ;;  %v11308_v17 = vld [vmem:[#allocation147_spill] sm:$0xff]  ;;  %v11309_v40 = vld [vmem:[#allocation98_spill] sm:$0xff] }
 0x2bb   :  { %1186 = vmatprep.subr.mxu0 %v11291_v36  ;;  %1292 = vmatpush1.msra.mxu1 %v11292_v25  ;;  %v11310_v36 = vld [vmem:[#allocation149_spill] sm:$0xff]  ;;  %v11311_v25 = vld [vmem:[#allocation99_spill] sm:$0xff] }
 0x2bc   :  { %1187 = vmatpush1.msra.mxu0 %v11293_v19  ;;  %1293 = vmatprep.subr.mxu1 %v11294_v14  ;;  %v11312_v19 = vld [vmem:[#allocation151_spill] sm:$0xff]  ;;  %v11313_v14 = vld [vmem:[#allocation100_spill] sm:$0xff] }
 0x2bd   :  { %1188 = vmatprep.subr.mxu0 %v11295_v44  ;;  %1294 = vmatpush1.msra.mxu1 %v11296_v54  ;;  %v11314_v44 = vld [vmem:[#allocation153_spill] sm:$0xff] }
 0x2be   :  { %1189 = vmatpush1.msra.mxu0 %v11297_v5  ;;  %1295 = vmatprep.subr.mxu1 %v11298_v50  ;;  %v11315_v54 = vld [vmem:[#allocation101_spill] sm:$0xff]  ;;  %v11316_v5 = vld [vmem:[#allocation155_spill] sm:$0xff]  ;;  %v11317_v50 = vld [vmem:[#allocation102_spill] sm:$0xff] }
 0x2bf   :  { %1190 = vmatprep.subr.mxu0 %v11299_v33  ;;  %1296 = vmatpush1.msra.mxu1 %v11300_v1  ;;  %v11318_v33 = vld [vmem:[#allocation157_spill] sm:$0xff]  ;;  %v11319_v1 = vld [vmem:[#allocation104_spill] sm:$0xff] }
 0x2c0   :  { %1191 = vmatpush1.msra.mxu0 %v11301_v56  ;;  %1297 = vmatprep.subr.mxu1 %v11302_v6  ;;  %v11320_v56 = vld [vmem:[#allocation105_spill] sm:$0xff]  ;;  %v11321_v6 = vld [vmem:[#allocation107_spill] sm:$0xff] }
 0x2c1   :  { %1192 = vmatprep.subr.mxu0 %v11303_v11  ;;  %1298 = vmatpush1.msra.mxu1 %v11304_v18  ;;  %v11322_v11 = vld [vmem:[#allocation108_spill] sm:$0xff]  ;;  %v11323_v18 = vld [vmem:[#allocation110_spill] sm:$0xff] }
 0x2c2   :  { %1193 = vmatpush1.msra.mxu0 %v11305_v10  ;;  %1299 = vmatprep.subr.mxu1 %v11306_v3  ;;  %v11324_v10 = vld [vmem:[#allocation112_spill] sm:$0xff]  ;;  %v11325_v3 = vld [vmem:[#allocation114_spill] sm:$0xff] }
 0x2c3   :  { %1194 = vmatprep.subr.mxu0 %v11307_v52  ;;  %1300 = vmatpush1.msra.mxu1 %v11308_v17  ;;  %v11327_v52 = vld [vmem:[#allocation118_spill] sm:$0xff] }
 0x2c4   :  { %1195 = vmatpush1.msra.mxu0 %v11309_v40  ;;  %1301 = vmatprep.subr.mxu1 %v11310_v36  ;;  %v11329_v17 = vld [vmem:[#allocation122_spill] sm:$0xff]  ;;  %v11332_v36 = vld [vmem:[#allocation128_spill] sm:$0xff] }
 0x2c5   :  { %1196 = vmatprep.subr.mxu0 %v11311_v25  ;;  %1302 = vmatpush1.msra.mxu1 %v11312_v19  ;;  %v11331_v40 = vld [vmem:[#allocation126_spill] sm:$0xff]  ;;  %v11334_v19 = vld [vmem:[#allocation132_spill] sm:$0xff] }
 0x2c6   :  { %1197 = vmatpush1.msra.mxu0 %v11313_v14  ;;  %1303 = vmatprep.subr.mxu1 %v11314_v44  ;;  %v11333_v25 = vld [vmem:[#allocation130_spill] sm:$0xff]  ;;  %v11336_v44 = vld [vmem:[#allocation136_spill] sm:$0xff] }
 0x2c7   :  { %1198 = vmatprep.subr.mxu0 %v11315_v54  ;;  %1304 = vmatpush1.msra.mxu1 %v11316_v5  ;;  %v11335_v14 = vld [vmem:[#allocation134_spill] sm:$0xff]  ;;  %v11338_v5 = vld [vmem:[#allocation140_spill] sm:$0xff] }
 0x2c8   :  { %1199 = vmatpush1.msra.mxu0 %v11317_v50  ;;  %1305 = vmatprep.subr.mxu1 %v11318_v33  ;;  %v11337_v54 = vld [vmem:[#allocation138_spill] sm:$0xff]  ;;  %v11340_v33 = vld [vmem:[#allocation144_spill] sm:$0xff] }
 0x2c9   :  { %1200 = vmatprep.subr.mxu0 %v11319_v1  ;;  %1306 = vmatpush1.msra.mxu1 %v6699_v23  ;;  %v11326_v23 = vld [vmem:[#allocation116_spill] sm:$0xff]  ;;  %v11339_v50 = vld [vmem:[#allocation142_spill] sm:$0xff] }
 0x2ca   :  { %1201 = vmatpush1.msra.mxu0 %v11320_v56  ;;  %1307 = vmatprep.subr.mxu1 %v6705_v38  ;;  %v11328_v38 = vld [vmem:[#allocation120_spill] sm:$0xff]  ;;  %v11341_v1 = vld [vmem:[#allocation146_spill] sm:$0xff] }
 0x2cb   :  { %1202 = vmatprep.subr.mxu0 %v11321_v6  ;;  %1308 = vmatpush1.msra.mxu1 %v6711_v34  ;;  %v11330_v34 = vld [vmem:[#allocation124_spill] sm:$0xff]  ;;  %v11343_v6 = vld [vmem:[#allocation150_spill] sm:$0xff] }
 0x2cc   :  { %1203 = vmatpush2.msra.mxu0 %v11322_v11  ;;  %1341 = vmatprep.mubr.f32.mxu1 %v11083_v62  ;;  %v11342_v56 = vld [vmem:[#allocation148_spill] sm:$0xff] }
 0x2cd   :  { %1204 = vmatprep.subr.mxu0 %v11323_v18  ;;  %4484 = vmatprep.subr.mxu1 %v11083_v62  ;;  %v11344_v11 = vld [vmem:[#allocation152_spill] sm:$0xff]  ;;  %v11345_v18 = vld [vmem:[#allocation154_spill] sm:$0xff] }
 0x2ce   :  { %1205 = vmatpush2.msra.mxu0 %v11324_v10  ;;  %v11346_v10 = vld [vmem:[#allocation156_spill] sm:$0xff] }
 0x2cf   :  { %1206 = vmatprep.subr.mxu0 %v11325_v3  ;;  %v11347_v3 = vld [vmem:[#allocation158_spill] sm:$0xff] }
 0x2d0   :  { %1207 = vmatpush2.msra.mxu0 %v11326_v23  ;;  %v11348_v23 = vld [vmem:[#allocation159_spill] sm:$0xff] }
 0x2d1   :  { %1208 = vmatprep.subr.mxu0 %v11327_v52  ;;  %v11349_v52 = vld [vmem:[#allocation160_spill] sm:$0xff] }
 0x2d2   :  { %1209 = vmatpush2.msra.mxu0 %v11328_v38  ;;  %v7171_v38 = vld [vmem:[#allocation5 + $0x2d8] sm:$0xff] }
 0x2d3   :  { %1210 = vmatprep.subr.mxu0 %v11329_v17  ;;  %v7174_v17 = vld [vmem:[#allocation5 + $0x2d0] sm:$0xff] }
 0x2d4   :  { %1211 = vmatpush2.msra.mxu0 %v11330_v34  ;;  %v7177_v34 = vld [vmem:[#allocation5 + $0x2a8] sm:$0xff] }
 0x2d5   :  { %1212 = vmatprep.subr.mxu0 %v11331_v40  ;;  %v7189_v40 = vld [vmem:[#allocation5 + $0x248] sm:$0xff] }
 0x2d6   :  { %1213 = vmatpush2.msra.mxu0 %v11332_v36  ;;  %v7192_v36 = vld [vmem:[#allocation5 + $0x240] sm:$0xff] }
 0x2d7   :  { %1214 = vmatprep.subr.mxu0 %v11333_v25  ;;  %v7195_v25 = vld [vmem:[#allocation5 + $0x218] sm:$0xff] }
 0x2d8   :  { %1215 = vmatpush2.msra.mxu0 %v11334_v19  ;;  %v7198_v19 = vld [vmem:[#allocation5 + $0x210] sm:$0xff] }
 0x2d9   :  { %1216 = vmatprep.subr.mxu0 %v11335_v14  ;;  %v7201_v14 = vld [vmem:[#allocation5 + $0x1e8] sm:$0xff] }
 0x2da   :  { %1217 = vmatpush2.msra.mxu0 %v11336_v44  ;;  %11350 = vst [vmem:[#allocation27_spill] sm:$0xff] %v7201_v14  ;;  %v7204_v44 = vld [vmem:[#allocation5 + $0x1e0] sm:$0xff] }
 0x2db   :  { %1218 = vmatprep.subr.mxu0 %v11337_v54  ;;  %11351 = vst [vmem:[#allocation28_spill] sm:$0xff] %v7204_v44  ;;  %v7207_v54 = vld [vmem:[#allocation5 + $0x1b8] sm:$0xff] }
 0x2dc   :  { %1219 = vmatpush2.msra.mxu0 %v11338_v5  ;;  %11352 = vst [vmem:[#allocation29_spill] sm:$0xff] %v7207_v54  ;;  %v7210_v5 = vld [vmem:[#allocation5 + $0x1b0] sm:$0xff] }
 0x2dd   :  { %1220 = vmatprep.subr.mxu0 %v11339_v50  ;;  %11353 = vst [vmem:[#allocation30_spill] sm:$0xff] %v7210_v5  ;;  %v7213_v50 = vld [vmem:[#allocation5 + $0x188] sm:$0xff] }
 0x2de   :  { %1221 = vmatpush2.msra.mxu0 %v11340_v33  ;;  %11354 = vst [vmem:[#allocation32_spill] sm:$0xff] %v7213_v50  ;;  %v7216_v33 = vld [vmem:[#allocation5 + $0x180] sm:$0xff] }
 0x2df   :  { %1222 = vmatprep.subr.mxu0 %v11341_v1  ;;  %11355 = vst [vmem:[#allocation34_spill] sm:$0xff] %v7216_v33  ;;  %v7219_v1 = vld [vmem:[#allocation5 + $0x158] sm:$0xff] }
 0x2e0   :  { %1223 = vmatpush2.msra.mxu0 %v11342_v56  ;;  %11356 = vst [vmem:[#allocation36_spill] sm:$0xff] %v7219_v1  ;;  %v7222_v56 = vld [vmem:[#allocation5 + $0x150] sm:$0xff] }
 0x2e1   :  { %1224 = vmatprep.subr.mxu0 %v11343_v6  ;;  %11357 = vst [vmem:[#allocation38_spill] sm:$0xff] %v7222_v56  ;;  %v7225_v6 = vld [vmem:[#allocation5 + $0x128] sm:$0xff] }
 0x2e2   :  { %1225 = vmatpush2.msra.mxu0 %v11344_v11  ;;  %11358 = vst [vmem:[#allocation40_spill] sm:$0xff] %v7225_v6  ;;  %v7228_v11 = vld [vmem:[#allocation5 + $0x120] sm:$0xff] }
 0x2e3   :  { %1226 = vmatprep.subr.mxu0 %v11345_v18  ;;  %11359 = vst [vmem:[#allocation42_spill] sm:$0xff] %v7228_v11  ;;  %v7231_v18 = vld [vmem:[#allocation5 + $0xf8] sm:$0xff] }
 0x2e4   :  { %1227 = vmatpush2.msra.mxu0 %v11346_v10  ;;  %11360 = vst [vmem:[#allocation44_spill] sm:$0xff] %v7231_v18  ;;  %v7234_v10 = vld [vmem:[#allocation5 + $0xf0] sm:$0xff] }
 0x2e5   :  { %1228 = vmatprep.subr.mxu0 %v11347_v3  ;;  %11361 = vst [vmem:[#allocation46_spill] sm:$0xff] %v7234_v10  ;;  %v7237_v3 = vld [vmem:[#allocation5 + $0xc8] sm:$0xff] }
 0x2e6   :  { %1229 = vmatpush2.msra.mxu0 %v6703_v42  ;;  %v7180_v42 = vld [vmem:[#allocation5 + $0x2a0] sm:$0xff]  ;;  %11362 = vst [vmem:[#allocation48_spill] sm:$0xff] %v7237_v3 }
 0x2e7   :  { %1230 = vmatprep.subr.mxu0 %v11348_v23  ;;  %v7240_v23 = vld [vmem:[#allocation5 + $0xc0] sm:$0xff] }
 0x2e8   :  { %1231 = vmatpush2.msra.mxu0 %v6713_v58  ;;  %v7186_v58 = vld [vmem:[#allocation5 + $0x270] sm:$0xff]  ;;  %11363 = vst [vmem:[#allocation50_spill] sm:$0xff] %v7240_v23 }
 0x2e9   :  { %1232 = vmatprep.subr.mxu0 %v6715_v0  ;;  %v7183_v0 = vld [vmem:[#allocation5 + $0x278] sm:$0xff] }
 0x2ea   :  { %1233 = vmatpush2.msra.mxu0 %v11349_v52  ;;  %v7243_v52 = vld [vmem:[#allocation5 + $0x98] sm:$0xff] }
 0x2eb   :  { %1235 = vmatmul.mubr.f32.vlgmr.msra.gmra.mxu0 %v6854_v7  ;;  %1443 = vmatprep.subr.mxu0 %v7171_v38  ;;  %11364 = vst [vmem:[#allocation52_spill] sm:$0xff] %v7243_v52 }
 0x2ec   :  { %1444 = vmatpush1.msra.mxu0 %v7174_v17 }
 0x2ed   :  { %1445 = vmatprep.subr.mxu0 %v7177_v34 }
 0x2ee   :  { %1446 = vmatpush1.msra.mxu0 %v7180_v42 }
 0x2ef   :  { %1447 = vmatprep.subr.mxu0 %v7183_v0 }
 0x2f0   :  { %1448 = vmatpush1.msra.mxu0 %v7186_v58 }
 0x2f1   :  { %1449 = vmatprep.subr.mxu0 %v7189_v40 }
 0x2f2   :  { %1450 = vmatpush1.msra.mxu0 %v7192_v36 }
 0x2f3   :  { %1451 = vmatprep.subr.mxu0 %v7195_v25 }
 0x2f4   :  { %1452 = vmatpush1.msra.mxu0 %v7198_v19 }
 0x2f5   :  { %1453 = vmatprep.subr.mxu0 %v7201_v14 }
 0x2f6   :  { %1454 = vmatpush1.msra.mxu0 %v7204_v44 }
 0x2f7   :  { %1455 = vmatprep.subr.mxu0 %v7207_v54 }
 0x2f8   :  { %1456 = vmatpush1.msra.mxu0 %v7210_v5 }
 0x2f9   :  { %1457 = vmatprep.subr.mxu0 %v7213_v50 }
 0x2fa   :  { %1458 = vmatpush1.msra.mxu0 %v7216_v33 }
 0x2fb   :  { %1459 = vmatprep.subr.mxu0 %v7219_v1 }
 0x2fc   :  { %1460 = vmatpush1.msra.mxu0 %v7222_v56 }
 0x2fd   :  { %1461 = vmatprep.subr.mxu0 %v7225_v6 }
 0x2fe   :  { %1462 = vmatpush1.msra.mxu0 %v7228_v11  ;;  %v7246_v11 = vld [vmem:[#allocation5 + $0x90] sm:$0xff] }
 0x2ff   :  { %1463 = vmatprep.subr.mxu0 %v7231_v18  ;;  %11365 = vst [vmem:[#allocation53_spill] sm:$0xff] %v7246_v11  ;;  %v7249_v18 = vld [vmem:[#allocation5 + $0x68] sm:$0xff] }
 0x300   :  { %1464 = vmatpush1.msra.mxu0 %v7234_v10  ;;  %11366 = vst [vmem:[#allocation54_spill] sm:$0xff] %v7249_v18  ;;  %v7252_v10 = vld [vmem:[#allocation5 + $0x60] sm:$0xff] }
 0x301   :  { %1465 = vmatprep.subr.mxu0 %v7237_v3  ;;  %11367 = vst [vmem:[#allocation55_spill] sm:$0xff] %v7252_v10  ;;  %v7255_v3 = vld [vmem:[#allocation5 + $0x38] sm:$0xff] }
 0x302   :  { %1466 = vmatpush1.msra.mxu0 %v7240_v23  ;;  %11368 = vst [vmem:[#allocation56_spill] sm:$0xff] %v7255_v3  ;;  %v7258_v23 = vld [vmem:[#allocation5 + $0x30] sm:$0xff] }
 0x303   :  { %1467 = vmatprep.subr.mxu0 %v7243_v52  ;;  %11369 = vst [vmem:[#allocation57_spill] sm:$0xff] %v7258_v23  ;;  %v7261_v52 = vld [vmem:[#allocation5 + $0x8] sm:$0xff] }
 0x304   :  { %1468 = vmatpush1.msra.mxu0 %v7246_v11  ;;  %11370 = vst [vmem:[#allocation58_spill] sm:$0xff] %v7261_v52  ;;  %v7264_v11 = vld [vmem:[#allocation5] sm:$0xff] }
 0x305   :  { %1469 = vmatprep.subr.mxu0 %v7249_v18  ;;  %11371 = vst [vmem:[#allocation59_spill] sm:$0xff] %v7264_v11  ;;  %v7267_v18 = vld [vmem:[#allocation5 + $0x5d8] sm:$0xff] }
 0x306   :  { %1470 = vmatpush1.msra.mxu0 %v7252_v10  ;;  %11372 = vst [vmem:[#allocation60_spill] sm:$0xff] %v7267_v18  ;;  %v7270_v10 = vld [vmem:[#allocation5 + $0x5d0] sm:$0xff] }
 0x307   :  { %1471 = vmatprep.subr.mxu0 %v7255_v3  ;;  %11373 = vst [vmem:[#allocation61_spill] sm:$0xff] %v7270_v10  ;;  %v7273_v3 = vld [vmem:[#allocation5 + $0x5a8] sm:$0xff] }
 0x308   :  { %1472 = vmatpush1.msra.mxu0 %v7258_v23  ;;  %11374 = vst [vmem:[#allocation62_spill] sm:$0xff] %v7273_v3  ;;  %v7276_v23 = vld [vmem:[#allocation5 + $0x5a0] sm:$0xff] }
 0x309   :  { %1473 = vmatprep.subr.mxu0 %v7261_v52  ;;  %11375 = vst [vmem:[#allocation63_spill] sm:$0xff] %v7276_v23  ;;  %v7279_v52 = vld [vmem:[#allocation5 + $0x578] sm:$0xff] }
 0x30a   :  { %1474 = vmatpush1.msra.mxu0 %v7264_v11  ;;  %11376 = vst [vmem:[#allocation64_spill] sm:$0xff] %v7279_v52  ;;  %v7282_v11 = vld [vmem:[#allocation5 + $0x570] sm:$0xff] }
 0x30b   :  { %1475 = vmatprep.subr.mxu0 %v7267_v18  ;;  %11377 = vst [vmem:[#allocation65_spill] sm:$0xff] %v7282_v11  ;;  %v7285_v18 = vld [vmem:[#allocation5 + $0x548] sm:$0xff] }
 0x30c   :  { %1476 = vmatpush2.msra.mxu0 %v7270_v10  ;;  %11378 = vst [vmem:[#allocation66_spill] sm:$0xff] %v7285_v18  ;;  %v7288_v10 = vld [vmem:[#allocation5 + $0x540] sm:$0xff] }
 0x30d   :  { %1477 = vmatprep.subr.mxu0 %v7273_v3  ;;  %11379 = vst [vmem:[#allocation67_spill] sm:$0xff] %v7288_v10  ;;  %v7291_v3 = vld [vmem:[#allocation5 + $0x518] sm:$0xff] }
 0x30e   :  { %1478 = vmatpush2.msra.mxu0 %v7276_v23  ;;  %11380 = vst [vmem:[#allocation68_spill] sm:$0xff] %v7291_v3  ;;  %v7294_v23 = vld [vmem:[#allocation5 + $0x510] sm:$0xff] }
 0x30f   :  { %1479 = vmatprep.subr.mxu0 %v7279_v52  ;;  %11381 = vst [vmem:[#allocation69_spill] sm:$0xff] %v7294_v23  ;;  %v7297_v52 = vld [vmem:[#allocation5 + $0x4e8] sm:$0xff] }
 0x310   :  { %1480 = vmatpush2.msra.mxu0 %v7282_v11  ;;  %11382 = vst [vmem:[#allocation70_spill] sm:$0xff] %v7297_v52  ;;  %v7300_v11 = vld [vmem:[#allocation5 + $0x4e0] sm:$0xff] }
 0x311   :  { %1481 = vmatprep.subr.mxu0 %v7285_v18  ;;  %11383 = vst [vmem:[#allocation71_spill] sm:$0xff] %v7300_v11  ;;  %v7303_v18 = vld [vmem:[#allocation5 + $0x4b8] sm:$0xff] }
 0x312   :  { %1482 = vmatpush2.msra.mxu0 %v7288_v10  ;;  %11384 = vst [vmem:[#allocation72_spill] sm:$0xff] %v7303_v18  ;;  %v7306_v10 = vld [vmem:[#allocation5 + $0x4b0] sm:$0xff] }
 0x313   :  { %1483 = vmatprep.subr.mxu0 %v7291_v3  ;;  %11385 = vst [vmem:[#allocation103_spill] sm:$0xff] %v7306_v10  ;;  %v7309_v3 = vld [vmem:[#allocation5 + $0x488] sm:$0xff] }
 0x314   :  { %1484 = vmatpush2.msra.mxu0 %v7294_v23  ;;  %11386 = vst [vmem:[#allocation74_spill] sm:$0xff] %v7309_v3  ;;  %v7312_v23 = vld [vmem:[#allocation5 + $0x480] sm:$0xff] }
 0x315   :  { %1485 = vmatprep.subr.mxu0 %v7297_v52  ;;  %11387 = vst [vmem:[#allocation75_spill] sm:$0xff] %v7312_v23  ;;  %v7315_v52 = vld [vmem:[#allocation5 + $0x458] sm:$0xff] }
 0x316   :  { %1486 = vmatpush2.msra.mxu0 %v7300_v11  ;;  %11388 = vst [vmem:[#allocation76_spill] sm:$0xff] %v7315_v52  ;;  %v7318_v11 = vld [vmem:[#allocation5 + $0x450] sm:$0xff] }
 0x317   :  { %1487 = vmatprep.subr.mxu0 %v7303_v18  ;;  %11389 = vst [vmem:[#allocation106_spill] sm:$0xff] %v7318_v11  ;;  %v7321_v18 = vld [vmem:[#allocation5 + $0x428] sm:$0xff] }
 0x318   :  { %1488 = vmatpush2.msra.mxu0 %v7306_v10  ;;  %11390 = vst [vmem:[#allocation77_spill] sm:$0xff] %v7321_v18  ;;  %v7324_v10 = vld [vmem:[#allocation5 + $0x420] sm:$0xff] }
 0x319   :  { %1489 = vmatprep.subr.mxu0 %v7309_v3  ;;  %11391 = vst [vmem:[#allocation78_spill] sm:$0xff] %v7324_v10  ;;  %v7327_v3 = vld [vmem:[#allocation5 + $0x3f8] sm:$0xff] }
 0x31a   :  { %1490 = vmatpush2.msra.mxu0 %v7312_v23  ;;  %11392 = vst [vmem:[#allocation109_spill] sm:$0xff] %v7327_v3  ;;  %v7330_v23 = vld [vmem:[#allocation5 + $0x3f0] sm:$0xff] }
 0x31b   :  { %1491 = vmatprep.subr.mxu0 %v7315_v52  ;;  %11393 = vst [vmem:[#allocation79_spill] sm:$0xff] %v7330_v23  ;;  %v7333_v52 = vld [vmem:[#allocation5 + $0x3c8] sm:$0xff] }
 0x31c   :  { %1492 = vmatpush2.msra.mxu0 %v7318_v11  ;;  %11394 = vst [vmem:[#allocation111_spill] sm:$0xff] %v7333_v52  ;;  %v7336_v11 = vld [vmem:[#allocation5 + $0x3c0] sm:$0xff] }
 0x31d   :  { %1493 = vmatprep.subr.mxu0 %v7321_v18  ;;  %11395 = vst [vmem:[#allocation80_spill] sm:$0xff] %v7336_v11  ;;  %v7339_v18 = vld [vmem:[#allocation5 + $0x398] sm:$0xff] }
 0x31e   :  { %1494 = vmatpush2.msra.mxu0 %v7324_v10  ;;  %11396 = vst [vmem:[#allocation113_spill] sm:$0xff] %v7339_v18  ;;  %v7342_v10 = vld [vmem:[#allocation5 + $0x390] sm:$0xff] }
 0x31f   :  { %1495 = vmatprep.subr.mxu0 %v7327_v3  ;;  %11397 = vst [vmem:[#allocation81_spill] sm:$0xff] %v7342_v10  ;;  %v7345_v3 = vld [vmem:[#allocation5 + $0x368] sm:$0xff] }
 0x320   :  { %1496 = vmatpush2.msra.mxu0 %v7330_v23  ;;  %11398 = vst [vmem:[#allocation115_spill] sm:$0xff] %v7345_v3  ;;  %v7348_v23 = vld [vmem:[#allocation5 + $0x360] sm:$0xff] }
 0x321   :  { %1497 = vmatprep.subr.mxu0 %v7333_v52  ;;  %11399 = vst [vmem:[#allocation82_spill] sm:$0xff] %v7348_v23  ;;  %v7351_v52 = vld [vmem:[#allocation5 + $0x338] sm:$0xff] }
 0x322   :  { %1498 = vmatpush2.msra.mxu0 %v7336_v11  ;;  %11400 = vst [vmem:[#allocation117_spill] sm:$0xff] %v7351_v52  ;;  %v7354_v11 = vld [vmem:[#allocation5 + $0x330] sm:$0xff] }
 0x323   :  { %1499 = vmatprep.subr.mxu0 %v7339_v18  ;;  %11401 = vst [vmem:[#allocation83_spill] sm:$0xff] %v7354_v11  ;;  %v7357_v18 = vld [vmem:[#allocation5 + $0x308] sm:$0xff] }
 0x324   :  { %1500 = vmatpush2.msra.mxu0 %v7342_v10  ;;  %11402 = vst [vmem:[#allocation119_spill] sm:$0xff] %v7357_v18  ;;  %v7360_v10 = vld [vmem:[#allocation5 + $0x300] sm:$0xff] }
 0x325   :  { %1501 = vmatprep.subr.mxu0 %v7345_v3  ;;  %11403 = vst [vmem:[#allocation84_spill] sm:$0xff] %v7360_v10  ;;  %v7363_v3 = vld [vmem:[#allocation5 + $0x2f8] sm:$0xff] }
 0x326   :  { %1502 = vmatpush2.msra.mxu0 %v7348_v23  ;;  %11404 = vst [vmem:[#allocation121_spill] sm:$0xff] %v7363_v3 }
 0x327   :  { %1503 = vmatprep.subr.mxu0 %v7351_v52 }
 0x328   :  { %1504 = vmatpush2.msra.mxu0 %v7354_v11 }
 0x329   :  { %1505 = vmatprep.subr.mxu0 %v7357_v18 }
 0x32a   :  { %1506 = vmatpush2.msra.mxu0 %v7360_v10 }
 0x32b   :  { %1585 = vmatprep.subr.mxu0 %v7363_v3 }
 0x36b   :  { %v1094_v23 = vpop.f32.mrf.mxu0  ;;  %v1165_v3 = vpop.f32.mrf.mxu1 }
 0x36c   :  { %v1095_v6 = vadd.f32 %v1094_v23, %v6826_v41  ;;  %v1166_v23 = vadd.f32 %v1165_v3, %v6847_v32  ;;  %v7475_v3 = vld [vmem:[#allocation5 + $0x558] sm:$0xff] }
 0x36d   :  { %v1096_v52 = vpop.f32.mrf.mxu0 }
 0x36e   :  { %v1243_v56 = vrot.slane %v1095_v6, 6  ;;  %v1097_v1 = vadd.f32 %v1096_v52, %v6835_v51  ;;  %v1262_v6 = vrot.slane %v1166_v23, 6  ;;  %v7478_v23 = vld [vmem:[#allocation5 + $0x550] sm:$0xff] }
 0x370   :  { %v1247_v11 = vadd.f32 %v1243_v56, %v6831_v49  ;;  %v1244_v50 = vrot.slane %v1097_v1, 6 }
 0x372   :  { %v4219_v33 = vmul.f32 -1.442695, %v1247_v11  ;;  %v1248_v18 = vadd.f32 %v1244_v50, %v6842_v63  ;;  %v1270_v50 = vrot.slane %v6854_v7, 6  ;;  %v11406_v7 = vld [vmem:[#allocation35_spill] sm:$0xff] }
 0x374   :  { %4872 = vpow2.f32 %v4219_v33  ;;  %v4220_v5 = vmul.f32 -1.442695, %v1248_v18 }
 0x376   :  { %4874 = vpow2.f32 %v4220_v5 }
 0x381   :  { %v4873_v10 = vpop.eup %4872 }
 0x382   :  { %v1255_v54 = vadd.f32 1.0, %v4873_v10 }
 0x383   :  { %v4875_v44 = vpop.eup %4874 }
 0x384   :  { %4876 = vrcp.f32 %v1255_v54  ;;  %v1256_v41 = vadd.f32 1.0, %v4875_v44  ;;  %v7472_v44 = vld [vmem:[#allocation5 + $0x580] sm:$0xff] }
 0x386   :  { %4878 = vrcp.f32 %v1256_v41  ;;  %v11405_v41 = vld [vmem:[#allocation33_spill] sm:$0xff] }
 0x391   :  { %v4877_v14 = vpop.eup %4876 }
 0x392   :  { %v1264_v52 = vmul.f32 %v4877_v14, %v1262_v6  ;;  %v7469_v14 = vld [vmem:[#allocation5 + $0x588] sm:$0xff] }
 0x393   :  { %v4879_v33 = vpop.eup %4878  ;;  %v7481_v6 = vld [vmem:[#allocation5 + $0x528] sm:$0xff] }
 0x394   :  { %v1265_v56 = vadd.f32 %v1264_v52, %v6851_v60  ;;  %v1267_v1 = vsub.f32 1.0, %v4879_v33  ;;  %v1272_v18 = vmul.f32 %v4879_v33, %v1270_v50  ;;  %v7484_v52 = vld [vmem:[#allocation5 + $0x520] sm:$0xff]  ;;  %v7490_v33 = vld [vmem:[#allocation5 + $0x4f0] sm:$0xff] }
 0x395   :  { %v7496_v50 = vld [vmem:[#allocation5 + $0x4c0] sm:$0xff] }
 0x396   :  { %4880 = vtanh.f32 %v1265_v56  ;;  %v7487_v56 = vld [vmem:[#allocation5 + $0x4f8] sm:$0xff] }
 0x3a3   :  { %v4881_v5 = vpop.eup %4880 }
 0x3a4   :  { %v1268_v11 = vmul.f32 %v4881_v5, %v1267_v1  ;;  %v7493_v1 = vld [vmem:[#allocation5 + $0x4c8] sm:$0xff]  ;;  %v7499_v5 = vld [vmem:[#allocation5 + $0x498] sm:$0xff] }
 0x3a6   :  { %v7373_v54 = vadd.f32 %v1272_v18, %v1268_v11  ;;  %v7502_v11 = vld [vmem:[#allocation5 + $0x490] sm:$0xff]  ;;  %v7505_v18 = vld [vmem:[#allocation5 + $0x468] sm:$0xff] }
 0x3a8   :  { %v7376_v10 = vrot.slane %v7373_v54, 2 }
 0x3aa   :  { %1342 = vmatmul.mubr.f32.vlgmr.msra.gmra.mxu1 %v7376_v10 }
 0x3ab   :  { %4485 = vmatpush3.msra.mxu1 %v6856_v8  ;;  %4516 = vmatprep.mubr.msk.f32.mxu1 %vm5986_vm1, %v11083_v62  ;;  %v11407_v8 = vld [vmem:[#allocation37_spill] sm:$0xff] }
 0x3ac   :  { %4486 = vmatprep.subr.mxu1 %v11083_v62 }
 0x3ad   :  { %4487 = vmatpush3.msra.mxu1 %v6859_v9  ;;  %v11408_v9 = vld [vmem:[#allocation39_spill] sm:$0xff] }
 0x3ae   :  { %4488 = vmatprep.subr.mxu1 %v11083_v62 }
 0x3af   :  { %4489 = vmatpush3.msra.mxu1 %v6865_v13  ;;  %v11409_v13 = vld [vmem:[#allocation41_spill] sm:$0xff] }
 0x3b0   :  { %4490 = vmatprep.subr.mxu1 %v11083_v62 }
 0x3b1   :  { %4491 = vmatpush3.msra.mxu1 %v6869_v15  ;;  %v11410_v15 = vld [vmem:[#allocation43_spill] sm:$0xff] }
 0x3b2   :  { %4492 = vmatprep.subr.mxu1 %v11083_v62 }
 0x3b3   :  { %4493 = vmatpush3.msra.mxu1 %v6873_v20  ;;  %v11411_v20 = vld [vmem:[#allocation45_spill] sm:$0xff] }
 0x3b4   :  { %4494 = vmatprep.subr.mxu1 %v11083_v62 }
 0x3b5   :  { %4495 = vmatpush3.msra.mxu1 %v6877_v22  ;;  %v11412_v22 = vld [vmem:[#allocation47_spill] sm:$0xff] }
 0x3b6   :  { %4496 = vmatprep.subr.mxu1 %v11083_v62 }
 0x3b7   :  { %4497 = vmatpush3.msra.mxu1 %v6881_v24  ;;  %v11413_v24 = vld [vmem:[#allocation49_spill] sm:$0xff] }
 0x3b8   :  { %4498 = vmatprep.subr.mxu1 %v11083_v62 }
 0x3b9   :  { %4499 = vmatpush3.msra.mxu1 %v6885_v26  ;;  %v11414_v26 = vld [vmem:[#allocation51_spill] sm:$0xff] }
 0x3ba   :  { %4500 = vmatprep.subr.mxu1 %v11083_v62 }
 0x3bb   :  { %4501 = vmatpush3.msra.mxu1 %v6889_v27  ;;  %v11415_v27 = vld [vmem:[#allocation73_spill] sm:$0xff] }
 0x3bc   :  { %4502 = vmatprep.subr.mxu1 %v11083_v62 }
 0x3bd   :  { %4503 = vmatpush3.msra.mxu1 %v6893_v28  ;;  %v11416_v28 = vld [vmem:[#allocation164_spill] sm:$0xff] }
 0x3be   :  { %4504 = vmatprep.subr.mxu1 %v11083_v62 }
 0x3bf   :  { %4505 = vmatpush3.msra.mxu1 %v6897_v30  ;;  %v11417_v30 = vld [vmem:[#allocation165_spill] sm:$0xff] }
 0x3c0   :  { %4506 = vmatprep.subr.mxu1 %v11083_v62 }
 0x3c1   :  { %4507 = vmatpush3.msra.mxu1 %v6901_v31  ;;  %v11418_v31 = vld [vmem:[#allocation166_spill] sm:$0xff] }
 0x3c2   :  { %4508 = vmatprep.subr.mxu1 %v11083_v62 }
 0x3c3   :  { %4509 = vmatpush3.msra.mxu1 %v6905_v35  ;;  %v11419_v35 = vld [vmem:[#allocation167_spill] sm:$0xff] }
 0x3c4   :  { %4510 = vmatprep.subr.mxu1 %v11083_v62 }
 0x3c5   :  { %4511 = vmatpush3.msra.mxu1 %v6909_v37  ;;  %v11420_v37 = vld [vmem:[#allocation168_spill] sm:$0xff] }
 0x3c6   :  { %4512 = vmatprep.subr.mxu1 %v11083_v62 }
 0x3c7   :  { %4513 = vmatpush3.msra.mxu1 %v6913_v39  ;;  %v11421_v39 = vld [vmem:[#allocation169_spill] sm:$0xff] }
 0x3c8   :  { %4514 = vmatprep.subr.mxu1 %v11083_v62 }
 0x3c9   :  { %4515 = vmatpush3.msra.mxu1 %v6917_v43  ;;  %v7439_v43 = vld [vmem:[#allocation5 + $0x78] sm:$0xff] }
 0x3ca   :  { %4517 = vmatmul.mubr.f32.vlgmr.msra.gmra.mxu1 %v7376_v10  ;;  %1514 = vmatprep.subr.mxu1 %v6923_v45  ;;  %v7442_v45 = vld [vmem:[#allocation5 + $0x70] sm:$0xff] }
 0x3cb   :  { %1515 = vmatpush1.msra.mxu1 %v6926_v47  ;;  %v7445_v47 = vld [vmem:[#allocation5 + $0x48] sm:$0xff] }
 0x3cc   :  { %1516 = vmatprep.subr.mxu1 %v6929_v53  ;;  %v7448_v53 = vld [vmem:[#allocation5 + $0x40] sm:$0xff] }
 0x3cd   :  { %1517 = vmatpush1.msra.mxu1 %v6932_v55  ;;  %v7451_v55 = vld [vmem:[#allocation5 + $0x18] sm:$0xff] }
 0x3ce   :  { %1518 = vmatprep.subr.mxu1 %v6935_v57  ;;  %v7454_v57 = vld [vmem:[#allocation5 + $0x10] sm:$0xff] }
 0x3cf   :  { %1519 = vmatpush1.msra.mxu1 %v6938_v59  ;;  %v7457_v59 = vld [vmem:[#allocation5 + $0x5e8] sm:$0xff] }
 0x3d0   :  { %1520 = vmatprep.subr.mxu1 %v6941_v61  ;;  %v7460_v61 = vld [vmem:[#allocation5 + $0x5e0] sm:$0xff] }
 0x3d1   :  { %1521 = vmatpush1.msra.mxu1 %v6944_v12  ;;  %v7463_v12 = vld [vmem:[#allocation5 + $0x5b8] sm:$0xff] }
 0x3d2   :  { %1522 = vmatprep.subr.mxu1 %v6947_v16  ;;  %v7466_v16 = vld [vmem:[#allocation5 + $0x5b0] sm:$0xff] }
 0x3d3   :  { %1523 = vmatpush1.msra.mxu1 %v11405_v41  ;;  %v7508_v41 = vld [vmem:[#allocation5 + $0x460] sm:$0xff] }
 0x3d4   :  { %1524 = vmatprep.subr.mxu1 %v11406_v7  ;;  %11422 = vst [vmem:[#allocation85_spill] sm:$0xff] %v7508_v41  ;;  %v7511_v7 = vld [vmem:[#allocation5 + $0x438] sm:$0xff] }
 0x3d5   :  { %1525 = vmatpush1.msra.mxu1 %v11407_v8  ;;  %11423 = vst [vmem:[#allocation123_spill] sm:$0xff] %v7511_v7  ;;  %v7514_v8 = vld [vmem:[#allocation5 + $0x430] sm:$0xff] }
 0x3d6   :  { %1526 = vmatprep.subr.mxu1 %v11408_v9  ;;  %11424 = vst [vmem:[#allocation86_spill] sm:$0xff] %v7514_v8  ;;  %v7517_v9 = vld [vmem:[#allocation5 + $0x408] sm:$0xff] }
 0x3d7   :  { %1527 = vmatpush1.msra.mxu1 %v11409_v13  ;;  %11425 = vst [vmem:[#allocation125_spill] sm:$0xff] %v7517_v9  ;;  %v7520_v13 = vld [vmem:[#allocation5 + $0x400] sm:$0xff] }
 0x3d8   :  { %1528 = vmatprep.subr.mxu1 %v11410_v15  ;;  %11426 = vst [vmem:[#allocation87_spill] sm:$0xff] %v7520_v13  ;;  %v7523_v15 = vld [vmem:[#allocation5 + $0x3d8] sm:$0xff] }
 0x3d9   :  { %1529 = vmatpush1.msra.mxu1 %v11411_v20  ;;  %11427 = vst [vmem:[#allocation127_spill] sm:$0xff] %v7523_v15  ;;  %v7526_v20 = vld [vmem:[#allocation5 + $0x3d0] sm:$0xff] }
 0x3da   :  { %1530 = vmatprep.subr.mxu1 %v11412_v22  ;;  %11428 = vst [vmem:[#allocation88_spill] sm:$0xff] %v7526_v20  ;;  %v7529_v22 = vld [vmem:[#allocation5 + $0x3a8] sm:$0xff] }
 0x3db   :  { %1531 = vmatpush1.msra.mxu1 %v11413_v24  ;;  %11429 = vst [vmem:[#allocation129_spill] sm:$0xff] %v7529_v22  ;;  %v7532_v24 = vld [vmem:[#allocation5 + $0x3a0] sm:$0xff] }
 0x3dc   :  { %1532 = vmatprep.subr.mxu1 %v11414_v26  ;;  %11430 = vst [vmem:[#allocation89_spill] sm:$0xff] %v7532_v24  ;;  %v7535_v26 = vld [vmem:[#allocation5 + $0x378] sm:$0xff] }
 0x3dd   :  { %1533 = vmatpush1.msra.mxu1 %v11415_v27  ;;  %11431 = vst [vmem:[#allocation131_spill] sm:$0xff] %v7535_v26  ;;  %v7538_v27 = vld [vmem:[#allocation5 + $0x370] sm:$0xff] }
 0x3de   :  { %1534 = vmatprep.subr.mxu1 %v11416_v28  ;;  %11432 = vst [vmem:[#allocation90_spill] sm:$0xff] %v7538_v27  ;;  %v7541_v28 = vld [vmem:[#allocation5 + $0x348] sm:$0xff] }
 0x3df   :  { %1535 = vmatpush1.msra.mxu1 %v11417_v30  ;;  %11433 = vst [vmem:[#allocation133_spill] sm:$0xff] %v7541_v28  ;;  %v7544_v30 = vld [vmem:[#allocation5 + $0x340] sm:$0xff] }
 0x3e0   :  { %1536 = vmatprep.subr.mxu1 %v11418_v31  ;;  %11434 = vst [vmem:[#allocation91_spill] sm:$0xff] %v7544_v30  ;;  %v7547_v31 = vld [vmem:[#allocation5 + $0x318] sm:$0xff] }
 0x3e1   :  { %1537 = vmatpush1.msra.mxu1 %v11419_v35  ;;  %11435 = vst [vmem:[#allocation135_spill] sm:$0xff] %v7547_v31  ;;  %v7550_v35 = vld [vmem:[#allocation5 + $0x310] sm:$0xff] }
 0x3e2   :  { %1538 = vmatprep.subr.mxu1 %v11420_v37  ;;  %11436 = vst [vmem:[#allocation92_spill] sm:$0xff] %v7550_v35  ;;  %v7553_v37 = vld [vmem:[#allocation7 + $0x170] sm:$0xff] }
 0x3e3   :  { %1539 = vmatpush1.msra.mxu1 %v11421_v39  ;;  %11437 = vst [vmem:[#allocation137_spill] sm:$0xff] %v7553_v37  ;;  %v1167_v39 = vpop.f32.mrf.mxu1 }
 0x3e4   :  { %1540 = vmatprep.subr.mxu1 %v7439_v43 }
 0x3e5   :  { %1541 = vmatpush1.msra.mxu1 %v7442_v45 }
 0x3e6   :  { %1542 = vmatprep.subr.mxu1 %v7445_v47 }
 0x3e7   :  { %1543 = vmatpush1.msra.mxu1 %v7448_v53 }
 0x3e8   :  { %1544 = vmatprep.subr.mxu1 %v7451_v55 }
 0x3e9   :  { %1545 = vmatpush1.msra.mxu1 %v7454_v57 }
 0x3ea   :  { %1546 = vmatprep.subr.mxu1 %v7457_v59 }
 0x3eb   :  { %1547 = vmatpush2.msra.mxu1 %v7460_v61 }
 0x3ec   :  { %1548 = vmatprep.subr.mxu1 %v7463_v12 }
 0x3ed   :  { %1549 = vmatpush2.msra.mxu1 %v7466_v16 }
 0x3ee   :  { %1550 = vmatprep.subr.mxu1 %v7469_v14 }
 0x3ef   :  { %1551 = vmatpush2.msra.mxu1 %v7472_v44 }
 0x3f0   :  { %1552 = vmatprep.subr.mxu1 %v7475_v3 }
 0x3f1   :  { %1553 = vmatpush2.msra.mxu1 %v7478_v23 }
 0x3f2   :  { %1554 = vmatprep.subr.mxu1 %v7481_v6 }
 0x3f3   :  { %1555 = vmatpush2.msra.mxu1 %v7484_v52 }
 0x3f4   :  { %1556 = vmatprep.subr.mxu1 %v7487_v56 }
 0x3f5   :  { %1557 = vmatpush2.msra.mxu1 %v7490_v33 }
 0x3f6   :  { %1558 = vmatprep.subr.mxu1 %v7493_v1 }
 0x3f7   :  { %1559 = vmatpush2.msra.mxu1 %v7496_v50 }
 0x3f8   :  { %1560 = vmatprep.subr.mxu1 %v7499_v5 }
 0x3f9   :  { %1561 = vmatpush2.msra.mxu1 %v7502_v11 }
 0x3fa   :  { %1562 = vmatprep.subr.mxu1 %v7505_v18 }
 0x3fb   :  { %1563 = vmatpush2.msra.mxu1 %v7508_v41 }
 0x3fc   :  { %1564 = vmatprep.subr.mxu1 %v7511_v7 }
 0x3fd   :  { %1565 = vmatpush2.msra.mxu1 %v7514_v8 }
 0x3fe   :  { %1566 = vmatprep.subr.mxu1 %v7517_v9 }
 0x3ff   :  { %1567 = vmatpush2.msra.mxu1 %v7520_v13 }
 0x400   :  { %1568 = vmatprep.subr.mxu1 %v7523_v15 }
 0x401   :  { %1569 = vmatpush2.msra.mxu1 %v7526_v20  ;;  %v1236_v20 = vpop.f32.mrf.mxu0 }
 0x402   :  { %1570 = vmatprep.subr.mxu1 %v7529_v22  ;;  %v1237_v13 = vadd.f32 %v1236_v20, %v7049_v2 }
 0x403   :  { %1571 = vmatpush2.msra.mxu1 %v7532_v24  ;;  %v1238_v41 = vpop.f32.mrf.mxu0 }
 0x404   :  { %1572 = vmatprep.subr.mxu1 %v7535_v26  ;;  %v11438_v26 = vld [vmem:[#allocation25_spill] sm:$0xff] }
 0x405   :  { %1573 = vmatpush2.msra.mxu1 %v7538_v27 }
 0x406   :  { %1574 = vmatprep.subr.mxu1 %v7541_v28  ;;  %v1168_v28 = vadd.f32 %v1167_v39, %v7042_v21 }
 0x407   :  { %1575 = vmatpush2.msra.mxu1 %v7544_v30 }
 0x408   :  { %1576 = vmatprep.subr.mxu1 %v7547_v31 }
 0x409   :  { %1577 = vmatpush2.msra.mxu1 %v7550_v35 }
 0x40a   :  { %1691 = vmatprep.subr.mxu1 %v7553_v37 }
 0x46a   :  { %v1343_v27 = vpop.f32.mrf.mxu1 }
 0x46b   :  { %v1344_v24 = vadd.f32 %v1343_v27, %v11438_v26 }
 0x46c   :  { %v1345_v22 = vpop.f32.mrf.mxu1 }
 0x46d   :  { %v1418_v30 = vadd.f32 %v1344_v24, %v1168_v28  ;;  %v1346_v31 = vadd.f32 %v1345_v22, %v7052_v29  ;;  %v1239_v24 = vadd.f32 %v1238_v41, %v7060_v46  ;;  %v7573_v41 = vld [vmem:[#allocation5 + $0x2c8] sm:$0xff] }
 0x46f   :  { %v4221_v15 = vmul.f32 -1.442695, %v1418_v30  ;;  %v1419_v35 = vadd.f32 %v1346_v31, %v1237_v13 }
 0x471   :  { %4882 = vpow2.f32 %v4221_v15  ;;  %v4222_v9 = vmul.f32 -1.442695, %v1419_v35 }
 0x473   :  { %4884 = vpow2.f32 %v4222_v9 }
 0x47e   :  { %v4883_v8 = vpop.eup %4882 }
 0x47f   :  { %v1426_v37 = vadd.f32 1.0, %v4883_v8 }
 0x480   :  { %v4885_v7 = vpop.eup %4884 }
 0x481   :  { %4886 = vrcp.f32 %v1426_v37  ;;  %v1427_v21 = vadd.f32 1.0, %v4885_v7  ;;  %v7579_v7 = vld [vmem:[#allocation5 + $0x2c0] sm:$0xff] }
 0x483   :  { %4888 = vrcp.f32 %v1427_v21  ;;  %v7569_v21 = vld [vmem:[#allocation5 + $0x2f0] sm:$0xff] }
 0x48a   :  { %v1414_v39 = vpop.f32.mrf.mxu1 }
 0x48b   :  { %v1415_v22 = vadd.f32 %v1414_v39, %v7063_v48  ;;  %v7582_v39 = vld [vmem:[#allocation7 + $0x158] sm:$0xff] }
 0x48c   :  { %v4518_v27 = vpop.f32.mrf.mxu1 }
 0x48d   :  { %v7585_v27 = vld [vmem:[#allocation5 + $0x298] sm:$0xff] }
 0x48e   :  { %v4887_v28 = vpop.eup %4886 }
 0x48f   :  { %v1432_v30 = vmul.f32 %v4887_v28, %v1239_v24  ;;  %v7588_v24 = vld [vmem:[#allocation7 + $0x150] sm:$0xff] }
 0x490   :  { %v4889_v13 = vpop.eup %4888  ;;  %v7591_v28 = vld [vmem:[#allocation5 + $0x290] sm:$0xff] }
 0x491   :  { %v1433_v20 = vadd.f32 %v1432_v30, %v1415_v22  ;;  %v1435_v15 = vsub.f32 1.0, %v4889_v13  ;;  %v1437_v8 = vmul.f32 %v4889_v13, %v7067_v4  ;;  %v7576_v4 = vld [vmem:[#allocation7 + $0x168] sm:$0xff]  ;;  %v7594_v22 = vld [vmem:[#allocation7 + $0x140] sm:$0xff] }
 0x492   :  { %v7597_v30 = vld [vmem:[#allocation5 + $0x268] sm:$0xff]  ;;  %v7603_v13 = vld [vmem:[#allocation5 + $0x260] sm:$0xff] }
 0x493   :  { %4890 = vtanh.f32 %v1433_v20  ;;  %v7600_v20 = vld [vmem:[#allocation7 + $0x138] sm:$0xff] }
 0x4a0   :  { %v4891_v9 = vpop.eup %4890 }
 0x4a1   :  { %v1436_v31 = vmul.f32 %v4891_v9, %v1435_v15  ;;  %v7606_v15 = vld [vmem:[#allocation7 + $0x128] sm:$0xff]  ;;  %v7609_v9 = vld [vmem:[#allocation5 + $0x238] sm:$0xff] }
 0x4a2   :  { %11439 = vst [vmem:[#allocation93_spill] sm:$0xff] %v7606_v15  ;;  %11440 = vst [vmem:[#allocation139_spill] sm:$0xff] %v7609_v9 }
 0x4a3   :  { %v1438_v35 = vadd.f32 %v1437_v8, %v1436_v31  ;;  %v7612_v31 = vld [vmem:[#allocation7 + $0x120] sm:$0xff]  ;;  %v7615_v8 = vld [vmem:[#allocation5 + $0x230] sm:$0xff] }
 0x4a4   :  { %11441 = vst [vmem:[#allocation94_spill] sm:$0xff] %v7612_v31  ;;  %11442 = vst [vmem:[#allocation141_spill] sm:$0xff] %v7615_v8 }
 0x4a5   :  { %v1440_v37 = vrot.slane %v1438_v35, 6  ;;  %v7618_v35 = vld [vmem:[#allocation7 + $0x110] sm:$0xff] }
 0x4a6   :  { %11443 = vst [vmem:[#allocation95_spill] sm:$0xff] %v7618_v35 }
 0x4a7   :  { %v7563_v2 = vrot.slane %v1440_v37, 2  ;;  %v7621_v37 = vld [vmem:[#allocation5 + $0x208] sm:$0xff] }
 0x4a8   :  { %11444 = vst [vmem:[#allocation143_spill] sm:$0xff] %v7621_v37 }
 0x4a9   :  { %1507 = vmatprep.mubr.f32.mxu0 %v7563_v2  ;;  %1578 = vmatprep.mubr.f32.mxu1 %v7563_v2 }
 0x4aa   :  { %1508 = vmatmul.mubr.f32.vlgmr.msra.gmra.mxu0 %v7376_v10  ;;  %1579 = vmatmul.mubr.f32.vlgmr.msra.gmra.mxu1 %v7376_v10 }
 0x4ab   :  { %1586 = vmatpush1.msra.mxu0 %v7569_v21  ;;  %1649 = vmatprep.mubr.f32.mxu0 %v7563_v2 }
 0x4ac   :  { %1587 = vmatprep.subr.mxu0 %v7573_v41  ;;  %1692 = vmatpush1.msra.mxu1 %v7576_v4 }
 0x4ad   :  { %1588 = vmatpush1.msra.mxu0 %v7579_v7  ;;  %1693 = vmatprep.subr.mxu1 %v7582_v39 }
 0x4ae   :  { %1589 = vmatprep.subr.mxu0 %v7585_v27  ;;  %1694 = vmatpush1.msra.mxu1 %v7588_v24 }
 0x4af   :  { %1590 = vmatpush1.msra.mxu0 %v7591_v28  ;;  %1695 = vmatprep.subr.mxu1 %v7594_v22 }
 0x4b0   :  { %1591 = vmatprep.subr.mxu0 %v7597_v30  ;;  %1696 = vmatpush1.msra.mxu1 %v7600_v20 }
 0x4b1   :  { %1592 = vmatpush1.msra.mxu0 %v7603_v13  ;;  %1697 = vmatprep.subr.mxu1 %v7606_v15  ;;  %v7624_v15 = vld [vmem:[#allocation7 + $0x108] sm:$0xff] }
 0x4b2   :  { %1593 = vmatprep.subr.mxu0 %v7609_v9  ;;  %1698 = vmatpush1.msra.mxu1 %v7612_v31  ;;  %11445 = vst [vmem:[#allocation96_spill] sm:$0xff] %v7624_v15  ;;  %v7627_v9 = vld [vmem:[#allocation5 + $0x200] sm:$0xff]  ;;  %v7630_v31 = vld [vmem:[#allocation7 + $0xf8] sm:$0xff] }
 0x4b3   :  { %1594 = vmatpush1.msra.mxu0 %v7615_v8  ;;  %1699 = vmatprep.subr.mxu1 %v7618_v35  ;;  %11446 = vst [vmem:[#allocation145_spill] sm:$0xff] %v7627_v9  ;;  %11447 = vst [vmem:[#allocation97_spill] sm:$0xff] %v7630_v31  ;;  %v7633_v8 = vld [vmem:[#allocation5 + $0x1d8] sm:$0xff]  ;;  %v7636_v35 = vld [vmem:[#allocation7 + $0xf0] sm:$0xff] }
 0x4b4   :  { %1595 = vmatprep.subr.mxu0 %v7621_v37  ;;  %1700 = vmatpush1.msra.mxu1 %v7624_v15  ;;  %11448 = vst [vmem:[#allocation147_spill] sm:$0xff] %v7633_v8  ;;  %11449 = vst [vmem:[#allocation98_spill] sm:$0xff] %v7636_v35  ;;  %v7639_v37 = vld [vmem:[#allocation5 + $0x1d0] sm:$0xff]  ;;  %v7642_v15 = vld [vmem:[#allocation7 + $0xe0] sm:$0xff] }
 0x4b5   :  { %1596 = vmatpush1.msra.mxu0 %v7627_v9  ;;  %1701 = vmatprep.subr.mxu1 %v7630_v31  ;;  %11450 = vst [vmem:[#allocation149_spill] sm:$0xff] %v7639_v37  ;;  %11451 = vst [vmem:[#allocation99_spill] sm:$0xff] %v7642_v15  ;;  %v7645_v9 = vld [vmem:[#allocation5 + $0x1a8] sm:$0xff]  ;;  %v7648_v31 = vld [vmem:[#allocation7 + $0xd8] sm:$0xff] }
 0x4b6   :  { %1597 = vmatprep.subr.mxu0 %v7633_v8  ;;  %1702 = vmatpush1.msra.mxu1 %v7636_v35  ;;  %11452 = vst [vmem:[#allocation151_spill] sm:$0xff] %v7645_v9  ;;  %11453 = vst [vmem:[#allocation100_spill] sm:$0xff] %v7648_v31  ;;  %v7651_v8 = vld [vmem:[#allocation5 + $0x1a0] sm:$0xff]  ;;  %v7654_v35 = vld [vmem:[#allocation7 + $0xc8] sm:$0xff] }
 0x4b7   :  { %1598 = vmatpush1.msra.mxu0 %v7639_v37  ;;  %1703 = vmatprep.subr.mxu1 %v7642_v15  ;;  %11454 = vst [vmem:[#allocation153_spill] sm:$0xff] %v7651_v8  ;;  %11455 = vst [vmem:[#allocation101_spill] sm:$0xff] %v7654_v35  ;;  %v7657_v37 = vld [vmem:[#allocation5 + $0x178] sm:$0xff]  ;;  %v7660_v15 = vld [vmem:[#allocation7 + $0xc0] sm:$0xff] }
 0x4b8   :  { %1599 = vmatprep.subr.mxu0 %v7645_v9  ;;  %1704 = vmatpush1.msra.mxu1 %v7648_v31  ;;  %11456 = vst [vmem:[#allocation155_spill] sm:$0xff] %v7657_v37  ;;  %11457 = vst [vmem:[#allocation102_spill] sm:$0xff] %v7660_v15  ;;  %v7663_v9 = vld [vmem:[#allocation5 + $0x170] sm:$0xff] }
 0x4b9   :  { %1600 = vmatpush1.msra.mxu0 %v7651_v8  ;;  %1705 = vmatprep.subr.mxu1 %v7654_v35  ;;  %11458 = vst [vmem:[#allocation157_spill] sm:$0xff] %v7663_v9  ;;  %v7666_v31 = vld [vmem:[#allocation7 + $0xb0] sm:$0xff]  ;;  %v7669_v8 = vld [vmem:[#allocation5 + $0x148] sm:$0xff] }
 0x4ba   :  { %1601 = vmatprep.subr.mxu0 %v7657_v37  ;;  %1706 = vmatpush1.msra.mxu1 %v7660_v15  ;;  %11459 = vst [vmem:[#allocation104_spill] sm:$0xff] %v7666_v31  ;;  %11460 = vst [vmem:[#allocation105_spill] sm:$0xff] %v7669_v8  ;;  %v7672_v35 = vld [vmem:[#allocation7 + $0xa8] sm:$0xff]  ;;  %v7675_v37 = vld [vmem:[#allocation5 + $0x140] sm:$0xff] }
 0x4bb   :  { %1602 = vmatpush1.msra.mxu0 %v7663_v9  ;;  %1707 = vmatprep.subr.mxu1 %v7666_v31  ;;  %11461 = vst [vmem:[#allocation107_spill] sm:$0xff] %v7672_v35  ;;  %11462 = vst [vmem:[#allocation108_spill] sm:$0xff] %v7675_v37  ;;  %v7678_v15 = vld [vmem:[#allocation7 + $0x98] sm:$0xff]  ;;  %v7684_v31 = vld [vmem:[#allocation7 + $0x90] sm:$0xff] }
 0x4bc   :  { %1603 = vmatprep.subr.mxu0 %v7669_v8  ;;  %1708 = vmatpush1.msra.mxu1 %v7672_v35  ;;  %11463 = vst [vmem:[#allocation110_spill] sm:$0xff] %v7678_v15  ;;  %v7681_v9 = vld [vmem:[#allocation5 + $0x118] sm:$0xff]  ;;  %11465 = vst [vmem:[#allocation114_spill] sm:$0xff] %v7684_v31  ;;  %v7687_v8 = vld [vmem:[#allocation5 + $0x110] sm:$0xff] }
 0x4bd   :  { %1604 = vmatpush1.msra.mxu0 %v7675_v37  ;;  %1709 = vmatprep.subr.mxu1 %v7678_v15  ;;  %11464 = vst [vmem:[#allocation112_spill] sm:$0xff] %v7681_v9  ;;  %11466 = vst [vmem:[#allocation116_spill] sm:$0xff] %v7687_v8  ;;  %v7690_v35 = vld [vmem:[#allocation7 + $0x80] sm:$0xff]  ;;  %v7693_v37 = vld [vmem:[#allocation5 + $0xe8] sm:$0xff] }
 0x4be   :  { %1605 = vmatprep.subr.mxu0 %v7681_v9  ;;  %1710 = vmatpush1.msra.mxu1 %v7684_v31  ;;  %11467 = vst [vmem:[#allocation118_spill] sm:$0xff] %v7690_v35  ;;  %11468 = vst [vmem:[#allocation120_spill] sm:$0xff] %v7693_v37  ;;  %v7696_v15 = vld [vmem:[#allocation7 + $0x78] sm:$0xff]  ;;  %v7699_v9 = vld [vmem:[#allocation5 + $0xe0] sm:$0xff] }
 0x4bf   :  { %1606 = vmatpush1.msra.mxu0 %v7687_v8  ;;  %1711 = vmatprep.subr.mxu1 %v7690_v35  ;;  %11469 = vst [vmem:[#allocation122_spill] sm:$0xff] %v7696_v15  ;;  %11470 = vst [vmem:[#allocation124_spill] sm:$0xff] %v7699_v9  ;;  %v7702_v31 = vld [vmem:[#allocation7 + $0x68] sm:$0xff]  ;;  %v7705_v8 = vld [vmem:[#allocation5 + $0xb8] sm:$0xff] }
 0x4c0   :  { %1607 = vmatprep.subr.mxu0 %v7693_v37  ;;  %1712 = vmatpush1.msra.mxu1 %v7696_v15  ;;  %11471 = vst [vmem:[#allocation126_spill] sm:$0xff] %v7702_v31  ;;  %11472 = vst [vmem:[#allocation128_spill] sm:$0xff] %v7705_v8  ;;  %v7708_v35 = vld [vmem:[#allocation7 + $0x60] sm:$0xff]  ;;  %v7711_v37 = vld [vmem:[#allocation5 + $0xb0] sm:$0xff] }
 0x4c1   :  { %1608 = vmatpush1.msra.mxu0 %v7699_v9  ;;  %1713 = vmatprep.subr.mxu1 %v7702_v31  ;;  %11473 = vst [vmem:[#allocation130_spill] sm:$0xff] %v7708_v35  ;;  %11474 = vst [vmem:[#allocation132_spill] sm:$0xff] %v7711_v37  ;;  %v7714_v15 = vld [vmem:[#allocation7 + $0x50] sm:$0xff]  ;;  %v7717_v9 = vld [vmem:[#allocation5 + $0x88] sm:$0xff] }
 0x4c2   :  { %1609 = vmatprep.subr.mxu0 %v7705_v8  ;;  %1714 = vmatpush1.msra.mxu1 %v7708_v35  ;;  %11475 = vst [vmem:[#allocation134_spill] sm:$0xff] %v7714_v15  ;;  %11476 = vst [vmem:[#allocation136_spill] sm:$0xff] %v7717_v9  ;;  %v7720_v31 = vld [vmem:[#allocation7 + $0x48] sm:$0xff]  ;;  %v7723_v8 = vld [vmem:[#allocation5 + $0x80] sm:$0xff] }
 0x4c3   :  { %1610 = vmatpush1.msra.mxu0 %v7711_v37  ;;  %1715 = vmatprep.subr.mxu1 %v7714_v15  ;;  %11477 = vst [vmem:[#allocation138_spill] sm:$0xff] %v7720_v31  ;;  %11478 = vst [vmem:[#allocation140_spill] sm:$0xff] %v7723_v8  ;;  %v7726_v35 = vld [vmem:[#allocation7 + $0x38] sm:$0xff]  ;;  %v7732_v15 = vld [vmem:[#allocation7 + $0x30] sm:$0xff] }
 0x4c4   :  { %1611 = vmatprep.subr.mxu0 %v7717_v9  ;;  %1716 = vmatpush1.msra.mxu1 %v7720_v31  ;;  %11479 = vst [vmem:[#allocation142_spill] sm:$0xff] %v7726_v35  ;;  %v7729_v37 = vld [vmem:[#allocation5 + $0x58] sm:$0xff]  ;;  %11481 = vst [vmem:[#allocation146_spill] sm:$0xff] %v7732_v15  ;;  %v7735_v9 = vld [vmem:[#allocation5 + $0x50] sm:$0xff] }
 0x4c5   :  { %1612 = vmatpush1.msra.mxu0 %v7723_v8  ;;  %1717 = vmatprep.subr.mxu1 %v7726_v35  ;;  %11480 = vst [vmem:[#allocation144_spill] sm:$0xff] %v7729_v37  ;;  %11482 = vst [vmem:[#allocation148_spill] sm:$0xff] %v7735_v9  ;;  %v7738_v31 = vld [vmem:[#allocation7 + $0x20] sm:$0xff]  ;;  %v7741_v8 = vld [vmem:[#allocation5 + $0x28] sm:$0xff] }
 0x4c6   :  { %1613 = vmatprep.subr.mxu0 %v7729_v37  ;;  %1718 = vmatpush1.msra.mxu1 %v7732_v15  ;;  %11483 = vst [vmem:[#allocation150_spill] sm:$0xff] %v7738_v31  ;;  %11484 = vst [vmem:[#allocation152_spill] sm:$0xff] %v7741_v8  ;;  %v7744_v35 = vld [vmem:[#allocation7 + $0x18] sm:$0xff]  ;;  %v7747_v37 = vld [vmem:[#allocation5 + $0x20] sm:$0xff] }
 0x4c7   :  { %1614 = vmatpush1.msra.mxu0 %v7735_v9  ;;  %1719 = vmatprep.subr.mxu1 %v7738_v31  ;;  %11485 = vst [vmem:[#allocation154_spill] sm:$0xff] %v7744_v35  ;;  %11486 = vst [vmem:[#allocation156_spill] sm:$0xff] %v7747_v37  ;;  %v7750_v15 = vld [vmem:[#allocation7 + $0x8] sm:$0xff]  ;;  %v7753_v9 = vld [vmem:[#allocation5 + $0x5f8] sm:$0xff] }
 0x4c8   :  { %1615 = vmatprep.subr.mxu0 %v7741_v8  ;;  %1720 = vmatpush1.msra.mxu1 %v7744_v35  ;;  %11487 = vst [vmem:[#allocation158_spill] sm:$0xff] %v7750_v15  ;;  %11488 = vst [vmem:[#allocation159_spill] sm:$0xff] %v7753_v9  ;;  %v7756_v31 = vld [vmem:[#allocation7] sm:$0xff]  ;;  %v7759_v8 = vld [vmem:[#allocation5 + $0x5f0] sm:$0xff] }
 0x4c9   :  { %1616 = vmatpush1.msra.mxu0 %v7747_v37  ;;  %1721 = vmatprep.subr.mxu1 %v7750_v15  ;;  %11489 = vst [vmem:[#allocation160_spill] sm:$0xff] %v7756_v31  ;;  %11490 = vst [vmem:[#allocation33_spill] sm:$0xff] %v7759_v8  ;;  %v7763_v35 = vld [vmem:[#allocation5 + $0x5c8] sm:$0xff]  ;;  %v7767_v15 = vld [vmem:[#allocation5 + $0x5c0] sm:$0xff] }
 0x4ca   :  { %1617 = vmatprep.subr.mxu0 %v7753_v9  ;;  %1722 = vmatpush1.msra.mxu1 %v7756_v31  ;;  %11491 = vst [vmem:[#allocation35_spill] sm:$0xff] %v7763_v35  ;;  %11492 = vst [vmem:[#allocation37_spill] sm:$0xff] %v7767_v15  ;;  %v7770_v9 = vld [vmem:[#allocation5 + $0x598] sm:$0xff]  ;;  %v7773_v31 = vld [vmem:[#allocation5 + $0x590] sm:$0xff] }
 0x4cb   :  { %1618 = vmatpush2.msra.mxu0 %v7759_v8  ;;  %1755 = vmatprep.mubr.f32.mxu1 %v11083_v62  ;;  %11493 = vst [vmem:[#allocation39_spill] sm:$0xff] %v7770_v9  ;;  %11494 = vst [vmem:[#allocation41_spill] sm:$0xff] %v7773_v31  ;;  %v7776_v8 = vld [vmem:[#allocation5 + $0x568] sm:$0xff]  ;;  %v7779_v37 = vld [vmem:[#allocation5 + $0x560] sm:$0xff] }
 0x4cc   :  { %1619 = vmatprep.subr.mxu0 %v7763_v35  ;;  %4519 = vmatprep.subr.mxu1 %v11083_v62  ;;  %11495 = vst [vmem:[#allocation43_spill] sm:$0xff] %v7776_v8  ;;  %11496 = vst [vmem:[#allocation45_spill] sm:$0xff] %v7779_v37  ;;  %v7782_v35 = vld [vmem:[#allocation5 + $0x538] sm:$0xff] }
 0x4cd   :  { %1620 = vmatpush2.msra.mxu0 %v7767_v15  ;;  %11497 = vst [vmem:[#allocation47_spill] sm:$0xff] %v7782_v35  ;;  %v7785_v15 = vld [vmem:[#allocation5 + $0x530] sm:$0xff] }
 0x4ce   :  { %1621 = vmatprep.subr.mxu0 %v7770_v9  ;;  %11498 = vst [vmem:[#allocation49_spill] sm:$0xff] %v7785_v15  ;;  %v7788_v9 = vld [vmem:[#allocation5 + $0x508] sm:$0xff] }
 0x4cf   :  { %1622 = vmatpush2.msra.mxu0 %v7773_v31  ;;  %11499 = vst [vmem:[#allocation51_spill] sm:$0xff] %v7788_v9  ;;  %v7791_v31 = vld [vmem:[#allocation5 + $0x500] sm:$0xff] }
 0x4d0   :  { %1623 = vmatprep.subr.mxu0 %v7776_v8  ;;  %11500 = vst [vmem:[#allocation73_spill] sm:$0xff] %v7791_v31  ;;  %v7794_v8 = vld [vmem:[#allocation5 + $0x4d8] sm:$0xff] }
 0x4d1   :  { %1624 = vmatpush2.msra.mxu0 %v7779_v37  ;;  %11501 = vst [vmem:[#allocation164_spill] sm:$0xff] %v7794_v8  ;;  %v7797_v37 = vld [vmem:[#allocation5 + $0x4d0] sm:$0xff] }
 0x4d2   :  { %1625 = vmatprep.subr.mxu0 %v7782_v35  ;;  %11502 = vst [vmem:[#allocation165_spill] sm:$0xff] %v7797_v37  ;;  %v7800_v35 = vld [vmem:[#allocation5 + $0x4a8] sm:$0xff] }
 0x4d3   :  { %1626 = vmatpush2.msra.mxu0 %v7785_v15  ;;  %11503 = vst [vmem:[#allocation166_spill] sm:$0xff] %v7800_v35  ;;  %v7803_v15 = vld [vmem:[#allocation5 + $0x4a0] sm:$0xff] }
 0x4d4   :  { %1627 = vmatprep.subr.mxu0 %v7788_v9  ;;  %11504 = vst [vmem:[#allocation167_spill] sm:$0xff] %v7803_v15  ;;  %v7806_v9 = vld [vmem:[#allocation5 + $0x478] sm:$0xff] }
 0x4d5   :  { %1628 = vmatpush2.msra.mxu0 %v7791_v31  ;;  %11505 = vst [vmem:[#allocation168_spill] sm:$0xff] %v7806_v9  ;;  %v7809_v31 = vld [vmem:[#allocation5 + $0x470] sm:$0xff] }
 0x4d6   :  { %1629 = vmatprep.subr.mxu0 %v7794_v8  ;;  %11506 = vst [vmem:[#allocation169_spill] sm:$0xff] %v7809_v31  ;;  %v7812_v8 = vld [vmem:[#allocation5 + $0x448] sm:$0xff] }
 0x4d7   :  { %1630 = vmatpush2.msra.mxu0 %v7797_v37  ;;  %11507 = vst [vmem:[#allocation25_spill] sm:$0xff] %v7812_v8  ;;  %v7815_v37 = vld [vmem:[#allocation5 + $0x440] sm:$0xff] }
 0x4d8   :  { %1631 = vmatprep.subr.mxu0 %v7800_v35  ;;  %11508 = vst [vmem:[#allocation170_spill] sm:$0xff] %v7815_v37  ;;  %v7818_v35 = vld [vmem:[#allocation5 + $0x418] sm:$0xff] }
 0x4d9   :  { %1632 = vmatpush2.msra.mxu0 %v7803_v15  ;;  %11509 = vst [vmem:[#allocation171_spill] sm:$0xff] %v7818_v35  ;;  %v7821_v15 = vld [vmem:[#allocation5 + $0x410] sm:$0xff] }
 0x4da   :  { %1633 = vmatprep.subr.mxu0 %v7806_v9  ;;  %11510 = vst [vmem:[#allocation172_spill] sm:$0xff] %v7821_v15  ;;  %v7824_v9 = vld [vmem:[#allocation5 + $0x3e8] sm:$0xff] }
 0x4db   :  { %1634 = vmatpush2.msra.mxu0 %v7809_v31  ;;  %11511 = vst [vmem:[#allocation173_spill] sm:$0xff] %v7824_v9  ;;  %v7827_v31 = vld [vmem:[#allocation5 + $0x3e0] sm:$0xff] }
 0x4dc   :  { %1635 = vmatprep.subr.mxu0 %v7812_v8  ;;  %11512 = vst [vmem:[#allocation174_spill] sm:$0xff] %v7827_v31  ;;  %v7830_v8 = vld [vmem:[#allocation5 + $0x3b8] sm:$0xff] }
 0x4dd   :  { %1636 = vmatpush2.msra.mxu0 %v7815_v37  ;;  %11513 = vst [vmem:[#allocation175_spill] sm:$0xff] %v7830_v8  ;;  %v7833_v37 = vld [vmem:[#allocation5 + $0x3b0] sm:$0xff] }
 0x4de   :  { %1637 = vmatprep.subr.mxu0 %v7818_v35  ;;  %11514 = vst [vmem:[#allocation176_spill] sm:$0xff] %v7833_v37  ;;  %v7836_v35 = vld [vmem:[#allocation5 + $0x388] sm:$0xff] }
 0x4df   :  { %1638 = vmatpush2.msra.mxu0 %v7821_v15  ;;  %v7839_v15 = vld [vmem:[#allocation5 + $0x380] sm:$0xff] }
 0x4e0   :  { %1639 = vmatprep.subr.mxu0 %v7824_v9  ;;  %11515 = vst [vmem:[#allocation177_spill] sm:$0xff] %v7839_v15  ;;  %v7842_v9 = vld [vmem:[#allocation5 + $0x358] sm:$0xff] }
 0x4e1   :  { %1640 = vmatpush2.msra.mxu0 %v7827_v31  ;;  %11516 = vst [vmem:[#allocation178_spill] sm:$0xff] %v7842_v9  ;;  %v7845_v31 = vld [vmem:[#allocation5 + $0x350] sm:$0xff] }
 0x4e2   :  { %1641 = vmatprep.subr.mxu0 %v7830_v8  ;;  %11517 = vst [vmem:[#allocation179_spill] sm:$0xff] %v7845_v31  ;;  %v7848_v8 = vld [vmem:[#allocation5 + $0x328] sm:$0xff] }
 0x4e3   :  { %1642 = vmatpush2.msra.mxu0 %v7833_v37  ;;  %11518 = vst [vmem:[#allocation180_spill] sm:$0xff] %v7848_v8  ;;  %v7851_v37 = vld [vmem:[#allocation5 + $0x320] sm:$0xff] }
 0x4e4   :  { %1643 = vmatprep.subr.mxu0 %v7836_v35  ;;  %11519 = vst [vmem:[#allocation181_spill] sm:$0xff] %v7851_v37 }
 0x4e5   :  { %1644 = vmatpush2.msra.mxu0 %v7839_v15 }
 0x4e6   :  { %1645 = vmatprep.subr.mxu0 %v7842_v9 }
 0x4e7   :  { %1646 = vmatpush2.msra.mxu0 %v7845_v31 }
 0x4e8   :  { %1647 = vmatprep.subr.mxu0 %v7848_v8 }
 0x4e9   :  { %1648 = vmatpush2.msra.mxu0 %v7851_v37 }
 0x4ea   :  { %1650 = vmatmul.mubr.f32.vlgmr.msra.gmra.mxu0 %v7376_v10  ;;  %1857 = vmatprep.subr.mxu0 %v7171_v38  ;;  %v11520_v10 = vld [vmem:[#allocation27_spill] sm:$0xff]  ;;  %v11521_v38 = vld [vmem:[#allocation28_spill] sm:$0xff] }
 0x4eb   :  { %1858 = vmatpush1.msra.mxu0 %v7174_v17  ;;  %v11522_v17 = vld [vmem:[#allocation29_spill] sm:$0xff] }
 0x4ec   :  { %1859 = vmatprep.subr.mxu0 %v7177_v34  ;;  %v11523_v34 = vld [vmem:[#allocation30_spill] sm:$0xff] }
 0x4ed   :  { %1860 = vmatpush1.msra.mxu0 %v7180_v42  ;;  %v11524_v42 = vld [vmem:[#allocation32_spill] sm:$0xff] }
 0x4ee   :  { %1861 = vmatprep.subr.mxu0 %v7183_v0  ;;  %v11525_v0 = vld [vmem:[#allocation34_spill] sm:$0xff] }
 0x4ef   :  { %1862 = vmatpush1.msra.mxu0 %v7186_v58  ;;  %v11526_v58 = vld [vmem:[#allocation36_spill] sm:$0xff] }
 0x4f0   :  { %1863 = vmatprep.subr.mxu0 %v7189_v40  ;;  %v11527_v40 = vld [vmem:[#allocation38_spill] sm:$0xff] }
 0x4f1   :  { %1864 = vmatpush1.msra.mxu0 %v7192_v36  ;;  %v11528_v36 = vld [vmem:[#allocation40_spill] sm:$0xff] }
 0x4f2   :  { %1865 = vmatprep.subr.mxu0 %v7195_v25  ;;  %v11529_v25 = vld [vmem:[#allocation42_spill] sm:$0xff] }
 0x4f3   :  { %1866 = vmatpush1.msra.mxu0 %v7198_v19  ;;  %v11530_v19 = vld [vmem:[#allocation44_spill] sm:$0xff] }
 0x4f4   :  { %1867 = vmatprep.subr.mxu0 %v11520_v10  ;;  %v11531_v10 = vld [vmem:[#allocation46_spill] sm:$0xff] }
 0x4f5   :  { %1868 = vmatpush1.msra.mxu0 %v11521_v38  ;;  %v11532_v38 = vld [vmem:[#allocation48_spill] sm:$0xff] }
 0x4f6   :  { %1869 = vmatprep.subr.mxu0 %v11522_v17  ;;  %v11533_v17 = vld [vmem:[#allocation50_spill] sm:$0xff] }
 0x4f7   :  { %1870 = vmatpush1.msra.mxu0 %v11523_v34  ;;  %v11534_v34 = vld [vmem:[#allocation52_spill] sm:$0xff] }
 0x4f8   :  { %1871 = vmatprep.subr.mxu0 %v11524_v42  ;;  %v11535_v42 = vld [vmem:[#allocation53_spill] sm:$0xff] }
 0x4f9   :  { %1872 = vmatpush1.msra.mxu0 %v11525_v0  ;;  %v11536_v0 = vld [vmem:[#allocation54_spill] sm:$0xff] }
 0x4fa   :  { %1873 = vmatprep.subr.mxu0 %v11526_v58  ;;  %v11537_v58 = vld [vmem:[#allocation55_spill] sm:$0xff] }
 0x4fb   :  { %1874 = vmatpush1.msra.mxu0 %v11527_v40  ;;  %v11538_v40 = vld [vmem:[#allocation56_spill] sm:$0xff] }
 0x4fc   :  { %1875 = vmatprep.subr.mxu0 %v11528_v36  ;;  %v11539_v36 = vld [vmem:[#allocation57_spill] sm:$0xff] }
 0x4fd   :  { %1876 = vmatpush1.msra.mxu0 %v11529_v25  ;;  %v11540_v25 = vld [vmem:[#allocation58_spill] sm:$0xff] }
 0x4fe   :  { %1877 = vmatprep.subr.mxu0 %v11530_v19  ;;  %v11541_v19 = vld [vmem:[#allocation59_spill] sm:$0xff] }
 0x4ff   :  { %1878 = vmatpush1.msra.mxu0 %v11531_v10  ;;  %v11542_v10 = vld [vmem:[#allocation60_spill] sm:$0xff] }
 0x500   :  { %1879 = vmatprep.subr.mxu0 %v11532_v38  ;;  %v11543_v38 = vld [vmem:[#allocation61_spill] sm:$0xff] }
 0x501   :  { %1880 = vmatpush1.msra.mxu0 %v11533_v17  ;;  %v11544_v17 = vld [vmem:[#allocation62_spill] sm:$0xff] }
 0x502   :  { %1881 = vmatprep.subr.mxu0 %v11534_v34  ;;  %v11545_v34 = vld [vmem:[#allocation63_spill] sm:$0xff] }
 0x503   :  { %1882 = vmatpush1.msra.mxu0 %v11535_v42  ;;  %v11546_v42 = vld [vmem:[#allocation64_spill] sm:$0xff] }
 0x504   :  { %1883 = vmatprep.subr.mxu0 %v11536_v0  ;;  %v11547_v0 = vld [vmem:[#allocation65_spill] sm:$0xff] }
 0x505   :  { %1884 = vmatpush1.msra.mxu0 %v11537_v58  ;;  %v11548_v58 = vld [vmem:[#allocation66_spill] sm:$0xff] }
 0x506   :  { %1885 = vmatprep.subr.mxu0 %v11538_v40  ;;  %v11549_v40 = vld [vmem:[#allocation67_spill] sm:$0xff] }
 0x507   :  { %1886 = vmatpush1.msra.mxu0 %v11539_v36  ;;  %v11550_v36 = vld [vmem:[#allocation68_spill] sm:$0xff] }
 0x508   :  { %1887 = vmatprep.subr.mxu0 %v11540_v25  ;;  %v11551_v25 = vld [vmem:[#allocation69_spill] sm:$0xff] }
 0x509   :  { %1888 = vmatpush1.msra.mxu0 %v11541_v19  ;;  %v11552_v19 = vld [vmem:[#allocation70_spill] sm:$0xff] }
 0x50a   :  { %1889 = vmatprep.subr.mxu0 %v11542_v10  ;;  %v11553_v10 = vld [vmem:[#allocation71_spill] sm:$0xff] }
 0x50b   :  { %1890 = vmatpush2.msra.mxu0 %v11543_v38  ;;  %v11554_v38 = vld [vmem:[#allocation72_spill] sm:$0xff] }
 0x50c   :  { %1891 = vmatprep.subr.mxu0 %v11544_v17  ;;  %v11555_v17 = vld [vmem:[#allocation103_spill] sm:$0xff] }
 0x50d   :  { %1892 = vmatpush2.msra.mxu0 %v11545_v34  ;;  %v11556_v34 = vld [vmem:[#allocation74_spill] sm:$0xff] }
 0x50e   :  { %1893 = vmatprep.subr.mxu0 %v11546_v42  ;;  %v11557_v42 = vld [vmem:[#allocation75_spill] sm:$0xff] }
 0x50f   :  { %1894 = vmatpush2.msra.mxu0 %v11547_v0  ;;  %v11558_v0 = vld [vmem:[#allocation76_spill] sm:$0xff] }
 0x510   :  { %1895 = vmatprep.subr.mxu0 %v11548_v58  ;;  %v11559_v58 = vld [vmem:[#allocation106_spill] sm:$0xff] }
 0x511   :  { %1896 = vmatpush2.msra.mxu0 %v11549_v40  ;;  %v11560_v40 = vld [vmem:[#allocation77_spill] sm:$0xff] }
 0x512   :  { %1897 = vmatprep.subr.mxu0 %v11550_v36  ;;  %v11561_v36 = vld [vmem:[#allocation78_spill] sm:$0xff] }
 0x513   :  { %1898 = vmatpush2.msra.mxu0 %v11551_v25  ;;  %v11562_v25 = vld [vmem:[#allocation109_spill] sm:$0xff] }
 0x514   :  { %1899 = vmatprep.subr.mxu0 %v11552_v19  ;;  %v11563_v19 = vld [vmem:[#allocation79_spill] sm:$0xff] }
 0x515   :  { %1900 = vmatpush2.msra.mxu0 %v11553_v10  ;;  %v11564_v10 = vld [vmem:[#allocation111_spill] sm:$0xff] }
 0x516   :  { %1901 = vmatprep.subr.mxu0 %v11554_v38  ;;  %v11565_v38 = vld [vmem:[#allocation80_spill] sm:$0xff] }
 0x517   :  { %1902 = vmatpush2.msra.mxu0 %v11555_v17  ;;  %v11566_v17 = vld [vmem:[#allocation113_spill] sm:$0xff] }
 0x518   :  { %1903 = vmatprep.subr.mxu0 %v11556_v34  ;;  %v11567_v34 = vld [vmem:[#allocation81_spill] sm:$0xff] }
 0x519   :  { %1904 = vmatpush2.msra.mxu0 %v11557_v42  ;;  %v11568_v42 = vld [vmem:[#allocation115_spill] sm:$0xff] }
 0x51a   :  { %1905 = vmatprep.subr.mxu0 %v11558_v0  ;;  %v11569_v0 = vld [vmem:[#allocation82_spill] sm:$0xff] }
 0x51b   :  { %1906 = vmatpush2.msra.mxu0 %v11559_v58  ;;  %v11570_v58 = vld [vmem:[#allocation117_spill] sm:$0xff] }
 0x51c   :  { %1907 = vmatprep.subr.mxu0 %v11560_v40  ;;  %v11571_v40 = vld [vmem:[#allocation83_spill] sm:$0xff] }
 0x51d   :  { %1908 = vmatpush2.msra.mxu0 %v11561_v36  ;;  %v11572_v36 = vld [vmem:[#allocation119_spill] sm:$0xff] }
 0x51e   :  { %1909 = vmatprep.subr.mxu0 %v11562_v25  ;;  %v11573_v25 = vld [vmem:[#allocation84_spill] sm:$0xff] }
 0x51f   :  { %1910 = vmatpush2.msra.mxu0 %v11563_v19  ;;  %v11574_v19 = vld [vmem:[#allocation121_spill] sm:$0xff] }
 0x520   :  { %1911 = vmatprep.subr.mxu0 %v11564_v10 }
 0x521   :  { %1912 = vmatpush2.msra.mxu0 %v11565_v38  ;;  %v11575_v38 = vld [vmem:[#allocation31_spill] sm:$0xff] }
 0x522   :  { %1913 = vmatprep.subr.mxu0 %v11566_v17 }
 0x523   :  { %1914 = vmatpush2.msra.mxu0 %v11567_v34 }
 0x524   :  { %1915 = vmatprep.subr.mxu0 %v11568_v42 }
 0x525   :  { %1916 = vmatpush2.msra.mxu0 %v11569_v0 }
 0x526   :  { %1917 = vmatprep.subr.mxu0 %v11570_v58 }
 0x527   :  { %1918 = vmatpush2.msra.mxu0 %v11571_v40 }
 0x528   :  { %1919 = vmatprep.subr.mxu0 %v11572_v36 }
 0x529   :  { %1920 = vmatpush2.msra.mxu0 %v11573_v25 }
 0x52a   :  { %1999 = vmatprep.subr.mxu0 %v11574_v19 }
 0x56a   :  { %v1509_v10 = vpop.f32.mrf.mxu0  ;;  %v1580_v19 = vpop.f32.mrf.mxu1 }
 0x56b   :  { %v1510_v37 = vadd.f32 %v1509_v10, %v11575_v38  ;;  %v1581_v10 = vadd.f32 %v1580_v19, %v6847_v32  ;;  %v7951_v19 = vld [vmem:[#allocation7 + $0x118] sm:$0xff] }
 0x56c   :  { %v1511_v17 = vpop.f32.mrf.mxu0 }
 0x56d   :  { %v1658_v8 = vrot.slane %v1510_v37, 4  ;;  %v1512_v34 = vadd.f32 %v1511_v17, %v6835_v51  ;;  %v1677_v37 = vrot.slane %v1581_v10, 4  ;;  %v7955_v10 = vld [vmem:[#allocation7 + $0x100] sm:$0xff] }
 0x56f   :  { %v1662_v42 = vadd.f32 %v1658_v8, %v6831_v49  ;;  %v1659_v31 = vrot.slane %v1512_v34, 4 }
 0x571   :  { %v4223_v0 = vmul.f32 -1.442695, %v1662_v42  ;;  %v1663_v58 = vadd.f32 %v1659_v31, %v6842_v63  ;;  %v1684_v31 = vrot.slane %v7373_v54, 6  ;;  %v7939_v54 = vld [vmem:[#allocation7 + $0x160] sm:$0xff] }
 0x573   :  { %4892 = vpow2.f32 %v4223_v0  ;;  %v4224_v40 = vmul.f32 -1.442695, %v1663_v58 }
 0x575   :  { %4894 = vpow2.f32 %v4224_v40 }
 0x580   :  { %v4893_v36 = vpop.eup %4892 }
 0x581   :  { %v1670_v25 = vadd.f32 1.0, %v4893_v36 }
 0x582   :  { %v4895_v9 = vpop.eup %4894 }
 0x583   :  { %4896 = vrcp.f32 %v1670_v25  ;;  %v1671_v38 = vadd.f32 1.0, %v4895_v9  ;;  %v7933_v9 = vld [vmem:[#allocation7 + $0x178] sm:$0xff] }
 0x585   :  { %4898 = vrcp.f32 %v1671_v38  ;;  %v7947_v38 = vld [vmem:[#allocation7 + $0x130] sm:$0xff] }
 0x590   :  { %v4897_v15 = vpop.eup %4896 }
 0x591   :  { %v1679_v17 = vmul.f32 %v4897_v15, %v1677_v37  ;;  %v7943_v15 = vld [vmem:[#allocation7 + $0x148] sm:$0xff] }
 0x592   :  { %v4899_v34 = vpop.eup %4898  ;;  %v7959_v37 = vld [vmem:[#allocation7 + $0xe8] sm:$0xff] }
 0x593   :  { %v1680_v8 = vadd.f32 %v1679_v17, %v6851_v60  ;;  %v1682_v42 = vsub.f32 1.0, %v4899_v34  ;;  %v1686_v40 = vmul.f32 %v4899_v34, %v1684_v31  ;;  %v7963_v17 = vld [vmem:[#allocation7 + $0xd0] sm:$0xff]  ;;  %v7971_v34 = vld [vmem:[#allocation7 + $0xa0] sm:$0xff]  ;;  %v7975_v31 = vld [vmem:[#allocation7 + $0x88] sm:$0xff] }
 0x594   :  { %11576 = vst [vmem:[#allocation27_spill] sm:$0xff] %v7971_v34  ;;  %11577 = vst [vmem:[#allocation28_spill] sm:$0xff] %v7975_v31 }
 0x595   :  { %4900 = vtanh.f32 %v1680_v8  ;;  %v7967_v8 = vld [vmem:[#allocation7 + $0xb8] sm:$0xff] }
 0x5a2   :  { %v4901_v0 = vpop.eup %4900 }
 0x5a3   :  { %v1683_v58 = vmul.f32 %v4901_v0, %v1682_v42  ;;  %v7979_v42 = vld [vmem:[#allocation7 + $0x70] sm:$0xff]  ;;  %v7983_v0 = vld [vmem:[#allocation7 + $0x58] sm:$0xff] }
 0x5a4   :  { %11578 = vst [vmem:[#allocation29_spill] sm:$0xff] %v7979_v42  ;;  %11579 = vst [vmem:[#allocation30_spill] sm:$0xff] %v7983_v0 }
 0x5a5   :  { %v7927_v36 = vadd.f32 %v1686_v40, %v1683_v58  ;;  %v7987_v58 = vld [vmem:[#allocation7 + $0x40] sm:$0xff]  ;;  %v7991_v40 = vld [vmem:[#allocation7 + $0x28] sm:$0xff] }
 0x5a6   :  { %11580 = vst [vmem:[#allocation32_spill] sm:$0xff] %v7987_v58  ;;  %11581 = vst [vmem:[#allocation34_spill] sm:$0xff] %v7991_v40 }
 0x5a7   :  { %v7930_v25 = vrot.slane %v7927_v36, 4 }
 0x5a9   :  { %1756 = vmatmul.mubr.f32.vlgmr.msra.gmra.mxu1 %v7930_v25 }
 0x5aa   :  { %4520 = vmatpush3.msra.mxu1 %v7933_v9  ;;  %4551 = vmatprep.mubr.msk.f32.mxu1 %vm5986_vm1, %v11083_v62 }
 0x5ab   :  { %4521 = vmatprep.subr.mxu1 %v11083_v62 }
 0x5ac   :  { %4522 = vmatpush3.msra.mxu1 %v7939_v54 }
 0x5ad   :  { %4523 = vmatprep.subr.mxu1 %v11083_v62 }
 0x5ae   :  { %4524 = vmatpush3.msra.mxu1 %v7943_v15 }
 0x5af   :  { %4525 = vmatprep.subr.mxu1 %v11083_v62 }
 0x5b0   :  { %4526 = vmatpush3.msra.mxu1 %v7947_v38 }
 0x5b1   :  { %4527 = vmatprep.subr.mxu1 %v11083_v62 }
 0x5b2   :  { %4528 = vmatpush3.msra.mxu1 %v7951_v19 }
 0x5b3   :  { %4529 = vmatprep.subr.mxu1 %v11083_v62 }
 0x5b4   :  { %4530 = vmatpush3.msra.mxu1 %v7955_v10 }
 0x5b5   :  { %4531 = vmatprep.subr.mxu1 %v11083_v62 }
 0x5b6   :  { %4532 = vmatpush3.msra.mxu1 %v7959_v37 }
 0x5b7   :  { %4533 = vmatprep.subr.mxu1 %v11083_v62 }
 0x5b8   :  { %4534 = vmatpush3.msra.mxu1 %v7963_v17 }
 0x5b9   :  { %4535 = vmatprep.subr.mxu1 %v11083_v62 }
 0x5ba   :  { %4536 = vmatpush3.msra.mxu1 %v7967_v8 }
 0x5bb   :  { %4537 = vmatprep.subr.mxu1 %v11083_v62 }
 0x5bc   :  { %4538 = vmatpush3.msra.mxu1 %v7971_v34  ;;  %v8011_v34 = vld [vmem:[#allocation5 + $0x288] sm:$0xff] }
 0x5bd   :  { %4539 = vmatprep.subr.mxu1 %v11083_v62  ;;  %11587 = vst [vmem:[#allocation46_spill] sm:$0xff] %v8011_v34 }
 0x5be   :  { %4540 = vmatpush3.msra.mxu1 %v7975_v31  ;;  %v8002_v31 = vld [vmem:[#allocation5 + $0x2e0] sm:$0xff] }
 0x5bf   :  { %4541 = vmatprep.subr.mxu1 %v11083_v62  ;;  %11584 = vst [vmem:[#allocation40_spill] sm:$0xff] %v8002_v31 }
 0x5c0   :  { %4542 = vmatpush3.msra.mxu1 %v7979_v42  ;;  %v7995_v42 = vld [vmem:[#allocation7 + $0x10] sm:$0xff] }
 0x5c1   :  { %4543 = vmatprep.subr.mxu1 %v11083_v62  ;;  %11582 = vst [vmem:[#allocation36_spill] sm:$0xff] %v7995_v42 }
 0x5c2   :  { %4544 = vmatpush3.msra.mxu1 %v7983_v0  ;;  %v7999_v0 = vld [vmem:[#allocation5 + $0x2e8] sm:$0xff] }
 0x5c3   :  { %4545 = vmatprep.subr.mxu1 %v11083_v62  ;;  %11583 = vst [vmem:[#allocation38_spill] sm:$0xff] %v7999_v0 }
 0x5c4   :  { %4546 = vmatpush3.msra.mxu1 %v7987_v58  ;;  %v8005_v58 = vld [vmem:[#allocation5 + $0x2b8] sm:$0xff] }
 0x5c5   :  { %4547 = vmatprep.subr.mxu1 %v11083_v62  ;;  %11585 = vst [vmem:[#allocation42_spill] sm:$0xff] %v8005_v58 }
 0x5c6   :  { %4548 = vmatpush3.msra.mxu1 %v7991_v40  ;;  %v8008_v40 = vld [vmem:[#allocation5 + $0x2b0] sm:$0xff] }
 0x5c7   :  { %4549 = vmatprep.subr.mxu1 %v11083_v62  ;;  %11586 = vst [vmem:[#allocation44_spill] sm:$0xff] %v8008_v40 }
 0x5c8   :  { %4550 = vmatpush3.msra.mxu1 %v7995_v42  ;;  %v8014_v42 = vld [vmem:[#allocation5 + $0x280] sm:$0xff] }
 0x5c9   :  { %4552 = vmatmul.mubr.f32.vlgmr.msra.gmra.mxu1 %v7930_v25  ;;  %1928 = vmatprep.subr.mxu1 %v7999_v0  ;;  %11588 = vst [vmem:[#allocation48_spill] sm:$0xff] %v8014_v42  ;;  %v8017_v0 = vld [vmem:[#allocation5 + $0x258] sm:$0xff] }
 0x5ca   :  { %1929 = vmatpush1.msra.mxu1 %v8002_v31  ;;  %11589 = vst [vmem:[#allocation50_spill] sm:$0xff] %v8017_v0  ;;  %v8020_v31 = vld [vmem:[#allocation5 + $0x250] sm:$0xff] }
 0x5cb   :  { %1930 = vmatprep.subr.mxu1 %v8005_v58  ;;  %11590 = vst [vmem:[#allocation52_spill] sm:$0xff] %v8020_v31  ;;  %v8023_v58 = vld [vmem:[#allocation5 + $0x228] sm:$0xff] }
 0x5cc   :  { %1931 = vmatpush1.msra.mxu1 %v8008_v40  ;;  %11591 = vst [vmem:[#allocation53_spill] sm:$0xff] %v8023_v58  ;;  %v8026_v40 = vld [vmem:[#allocation5 + $0x220] sm:$0xff] }
 0x5cd   :  { %1932 = vmatprep.subr.mxu1 %v8011_v34  ;;  %11592 = vst [vmem:[#allocation54_spill] sm:$0xff] %v8026_v40  ;;  %v8029_v34 = vld [vmem:[#allocation5 + $0x1f8] sm:$0xff] }
 0x5ce   :  { %1933 = vmatpush1.msra.mxu1 %v8014_v42  ;;  %11593 = vst [vmem:[#allocation55_spill] sm:$0xff] %v8029_v34  ;;  %v8032_v42 = vld [vmem:[#allocation5 + $0x1f0] sm:$0xff] }
 0x5cf   :  { %1934 = vmatprep.subr.mxu1 %v8017_v0  ;;  %11594 = vst [vmem:[#allocation56_spill] sm:$0xff] %v8032_v42  ;;  %v8035_v0 = vld [vmem:[#allocation5 + $0x1c8] sm:$0xff] }
 0x5d0   :  { %1935 = vmatpush1.msra.mxu1 %v8020_v31  ;;  %11595 = vst [vmem:[#allocation57_spill] sm:$0xff] %v8035_v0  ;;  %v8038_v31 = vld [vmem:[#allocation5 + $0x1c0] sm:$0xff] }
 0x5d1   :  { %1936 = vmatprep.subr.mxu1 %v8023_v58  ;;  %11596 = vst [vmem:[#allocation58_spill] sm:$0xff] %v8038_v31  ;;  %v8041_v58 = vld [vmem:[#allocation5 + $0x198] sm:$0xff] }
 0x5d2   :  { %1937 = vmatpush1.msra.mxu1 %v8026_v40  ;;  %11597 = vst [vmem:[#allocation59_spill] sm:$0xff] %v8041_v58  ;;  %v8044_v40 = vld [vmem:[#allocation5 + $0x190] sm:$0xff] }
 0x5d3   :  { %1938 = vmatprep.subr.mxu1 %v8029_v34  ;;  %11598 = vst [vmem:[#allocation60_spill] sm:$0xff] %v8044_v40  ;;  %v8047_v34 = vld [vmem:[#allocation5 + $0x168] sm:$0xff] }
 0x5d4   :  { %1939 = vmatpush1.msra.mxu1 %v8032_v42  ;;  %11599 = vst [vmem:[#allocation61_spill] sm:$0xff] %v8047_v34  ;;  %v8050_v42 = vld [vmem:[#allocation5 + $0x160] sm:$0xff] }
 0x5d5   :  { %1940 = vmatprep.subr.mxu1 %v8035_v0  ;;  %11600 = vst [vmem:[#allocation62_spill] sm:$0xff] %v8050_v42  ;;  %v8053_v0 = vld [vmem:[#allocation5 + $0x138] sm:$0xff] }
 0x5d6   :  { %1941 = vmatpush1.msra.mxu1 %v8038_v31  ;;  %11601 = vst [vmem:[#allocation63_spill] sm:$0xff] %v8053_v0  ;;  %v8056_v31 = vld [vmem:[#allocation5 + $0x130] sm:$0xff] }
 0x5d7   :  { %1942 = vmatprep.subr.mxu1 %v8041_v58  ;;  %11602 = vst [vmem:[#allocation64_spill] sm:$0xff] %v8056_v31  ;;  %v8059_v58 = vld [vmem:[#allocation5 + $0x108] sm:$0xff] }
 0x5d8   :  { %1943 = vmatpush1.msra.mxu1 %v8044_v40  ;;  %v8062_v40 = vld [vmem:[#allocation5 + $0x100] sm:$0xff] }
 0x5d9   :  { %1944 = vmatprep.subr.mxu1 %v8047_v34  ;;  %v8065_v34 = vld [vmem:[#allocation5 + $0xd8] sm:$0xff] }
 0x5da   :  { %1945 = vmatpush1.msra.mxu1 %v8050_v42  ;;  %v8068_v42 = vld [vmem:[#allocation5 + $0xd0] sm:$0xff] }
 0x5db   :  { %1946 = vmatprep.subr.mxu1 %v8053_v0  ;;  %v8071_v0 = vld [vmem:[#allocation5 + $0xa8] sm:$0xff] }
 0x5dc   :  { %1947 = vmatpush1.msra.mxu1 %v8056_v31  ;;  %v8074_v31 = vld [vmem:[#allocation5 + $0xa0] sm:$0xff] }
 0x5dd   :  { %1948 = vmatprep.subr.mxu1 %v8059_v58 }
 0x5de   :  { %1949 = vmatpush1.msra.mxu1 %v8062_v40 }
 0x5df   :  { %1950 = vmatprep.subr.mxu1 %v8065_v34 }
 0x5e0   :  { %1951 = vmatpush1.msra.mxu1 %v8068_v42 }
 0x5e1   :  { %1952 = vmatprep.subr.mxu1 %v8071_v0 }
 0x5e2   :  { %1953 = vmatpush1.msra.mxu1 %v8074_v31 }
 0x5e3   :  { %1954 = vmatprep.subr.mxu1 %v7439_v43  ;;  %v11603_v43 = vld [vmem:[#allocation85_spill] sm:$0xff] }
 0x5e4   :  { %1955 = vmatpush1.msra.mxu1 %v7442_v45  ;;  %v11604_v45 = vld [vmem:[#allocation123_spill] sm:$0xff] }
 0x5e5   :  { %1956 = vmatprep.subr.mxu1 %v7445_v47  ;;  %v11605_v47 = vld [vmem:[#allocation86_spill] sm:$0xff] }
 0x5e6   :  { %1957 = vmatpush1.msra.mxu1 %v7448_v53  ;;  %v11606_v53 = vld [vmem:[#allocation125_spill] sm:$0xff] }
 0x5e7   :  { %1958 = vmatprep.subr.mxu1 %v7451_v55  ;;  %v11607_v55 = vld [vmem:[#allocation87_spill] sm:$0xff] }
 0x5e8   :  { %1959 = vmatpush1.msra.mxu1 %v7454_v57  ;;  %v11608_v57 = vld [vmem:[#allocation127_spill] sm:$0xff] }
 0x5e9   :  { %1960 = vmatprep.subr.mxu1 %v7457_v59  ;;  %v11609_v59 = vld [vmem:[#allocation88_spill] sm:$0xff] }
 0x5ea   :  { %1961 = vmatpush2.msra.mxu1 %v7460_v61  ;;  %v11610_v61 = vld [vmem:[#allocation129_spill] sm:$0xff] }
 0x5eb   :  { %1962 = vmatprep.subr.mxu1 %v7463_v12  ;;  %v11611_v12 = vld [vmem:[#allocation89_spill] sm:$0xff] }
 0x5ec   :  { %1963 = vmatpush2.msra.mxu1 %v7466_v16  ;;  %v11612_v16 = vld [vmem:[#allocation131_spill] sm:$0xff] }
 0x5ed   :  { %1964 = vmatprep.subr.mxu1 %v7469_v14  ;;  %v11613_v14 = vld [vmem:[#allocation90_spill] sm:$0xff] }
 0x5ee   :  { %1965 = vmatpush2.msra.mxu1 %v7472_v44  ;;  %v11614_v44 = vld [vmem:[#allocation133_spill] sm:$0xff] }
 0x5ef   :  { %1966 = vmatprep.subr.mxu1 %v7475_v3  ;;  %v11615_v3 = vld [vmem:[#allocation91_spill] sm:$0xff] }
 0x5f0   :  { %1967 = vmatpush2.msra.mxu1 %v7478_v23  ;;  %v11616_v23 = vld [vmem:[#allocation135_spill] sm:$0xff] }
 0x5f1   :  { %1968 = vmatprep.subr.mxu1 %v7481_v6  ;;  %v11617_v6 = vld [vmem:[#allocation92_spill] sm:$0xff] }
 0x5f2   :  { %1969 = vmatpush2.msra.mxu1 %v7484_v52  ;;  %v11618_v52 = vld [vmem:[#allocation137_spill] sm:$0xff] }
 0x5f3   :  { %1970 = vmatprep.subr.mxu1 %v7487_v56  ;;  %v1582_v56 = vpop.f32.mrf.mxu1 }
 0x5f4   :  { %1971 = vmatpush2.msra.mxu1 %v7490_v33 }
 0x5f5   :  { %1972 = vmatprep.subr.mxu1 %v7493_v1  ;;  %v11619_v1 = vld [vmem:[#allocation24_spill] sm:$0xff] }
 0x5f6   :  { %1973 = vmatpush2.msra.mxu1 %v7496_v50  ;;  %v1583_v50 = vadd.f32 %v1582_v56, %v11619_v1 }
 0x5f7   :  { %1974 = vmatprep.subr.mxu1 %v7499_v5 }
 0x5f8   :  { %1975 = vmatpush2.msra.mxu1 %v7502_v11 }
 0x5f9   :  { %1976 = vmatprep.subr.mxu1 %v7505_v18 }
 0x5fa   :  { %1977 = vmatpush2.msra.mxu1 %v11603_v43  ;;  %v1651_v43 = vpop.f32.mrf.mxu0 }
 0x5fb   :  { %1978 = vmatprep.subr.mxu1 %v11604_v45 }
 0x5fc   :  { %1979 = vmatpush2.msra.mxu1 %v11605_v47 }
 0x5fd   :  { %1980 = vmatprep.subr.mxu1 %v11606_v53  ;;  %v11620_v53 = vld [vmem:[#allocation26_spill] sm:$0xff] }
 0x5fe   :  { %1981 = vmatpush2.msra.mxu1 %v11607_v55  ;;  %v1652_v55 = vadd.f32 %v1651_v43, %v11620_v53 }
 0x5ff   :  { %1982 = vmatprep.subr.mxu1 %v11608_v57 }
 0x600   :  { %1983 = vmatpush2.msra.mxu1 %v11609_v59 }
 0x601   :  { %1984 = vmatprep.subr.mxu1 %v11610_v61 }
 0x602   :  { %1985 = vmatpush2.msra.mxu1 %v11611_v12 }
 0x603   :  { %1986 = vmatprep.subr.mxu1 %v11612_v16 }
 0x604   :  { %1987 = vmatpush2.msra.mxu1 %v11613_v14  ;;  %v1653_v14 = vpop.f32.mrf.mxu0 }
 0x605   :  { %1988 = vmatprep.subr.mxu1 %v11614_v44 }
 0x606   :  { %1989 = vmatpush2.msra.mxu1 %v11615_v3 }
 0x607   :  { %1990 = vmatprep.subr.mxu1 %v11616_v23 }
 0x608   :  { %1991 = vmatpush2.msra.mxu1 %v11617_v6  ;;  %v1654_v6 = vadd.f32 %v1653_v14, %v7060_v46  ;;  %v11638_v14 = vld [vmem:[#allocation155_spill] sm:$0xff] }
 0x609   :  { %2105 = vmatprep.subr.mxu1 %v11618_v52 }
 0x669   :  { %v1757_v33 = vpop.f32.mrf.mxu1 }
 0x66a   :  { %v1758_v5 = vadd.f32 %v1757_v33, %v11438_v26 }
 0x66b   :  { %v1759_v11 = vpop.f32.mrf.mxu1 }
 0x66c   :  { %v1832_v18 = vadd.f32 %v1758_v5, %v1583_v50  ;;  %v1760_v47 = vadd.f32 %v1759_v11, %v7052_v29 }
 0x66e   :  { %v4225_v45 = vmul.f32 -1.442695, %v1832_v18  ;;  %v1833_v57 = vadd.f32 %v1760_v47, %v1652_v55 }
 0x670   :  { %4902 = vpow2.f32 %v4225_v45  ;;  %v4226_v59 = vmul.f32 -1.442695, %v1833_v57 }
 0x672   :  { %4904 = vpow2.f32 %v4226_v59  ;;  %v11634_v59 = vld [vmem:[#allocation151_spill] sm:$0xff] }
 0x67d   :  { %v4903_v61 = vpop.eup %4902 }
 0x67e   :  { %v1840_v12 = vadd.f32 1.0, %v4903_v61  ;;  %v11635_v61 = vld [vmem:[#allocation100_spill] sm:$0xff] }
 0x67f   :  { %v4905_v16 = vpop.eup %4904 }
 0x680   :  { %4906 = vrcp.f32 %v1840_v12  ;;  %v1841_v3 = vadd.f32 1.0, %v4905_v16  ;;  %v11636_v12 = vld [vmem:[#allocation153_spill] sm:$0xff] }
 0x681   :  { %v11637_v16 = vld [vmem:[#allocation101_spill] sm:$0xff] }
 0x682   :  { %4908 = vrcp.f32 %v1841_v3  ;;  %v11640_v3 = vld [vmem:[#allocation157_spill] sm:$0xff] }
 0x689   :  { %v1828_v44 = vpop.f32.mrf.mxu1 }
 0x68a   :  { %v1829_v56 = vadd.f32 %v1828_v44, %v7063_v48  ;;  %v11639_v44 = vld [vmem:[#allocation102_spill] sm:$0xff] }
 0x68b   :  { %v4553_v23 = vpop.f32.mrf.mxu1 }
 0x68c   :  { %v11641_v23 = vld [vmem:[#allocation104_spill] sm:$0xff] }
 0x68d   :  { %v4907_v52 = vpop.eup %4906 }
 0x68e   :  { %v1846_v33 = vmul.f32 %v4907_v52, %v1654_v6  ;;  %v11642_v6 = vld [vmem:[#allocation105_spill] sm:$0xff]  ;;  %v11643_v52 = vld [vmem:[#allocation107_spill] sm:$0xff] }
 0x68f   :  { %v4909_v5 = vpop.eup %4908 }
 0x690   :  { %v1847_v50 = vadd.f32 %v1846_v33, %v1829_v56  ;;  %v1849_v11 = vsub.f32 1.0, %v4909_v5  ;;  %v1851_v45 = vmul.f32 %v4909_v5, %v7563_v2  ;;  %v11621_v2 = vld [vmem:[#allocation93_spill] sm:$0xff]  ;;  %v11644_v56 = vld [vmem:[#allocation108_spill] sm:$0xff]  ;;  %v11645_v33 = vld [vmem:[#allocation110_spill] sm:$0xff] }
 0x691   :  { %v11647_v5 = vld [vmem:[#allocation114_spill] sm:$0xff] }
 0x692   :  { %4910 = vtanh.f32 %v1847_v50  ;;  %v11646_v50 = vld [vmem:[#allocation112_spill] sm:$0xff] }
 0x69f   :  { %v4911_v18 = vpop.eup %4910 }
 0x6a0   :  { %v1850_v43 = vmul.f32 %v4911_v18, %v1849_v11  ;;  %v11648_v11 = vld [vmem:[#allocation116_spill] sm:$0xff]  ;;  %v11649_v18 = vld [vmem:[#allocation118_spill] sm:$0xff] }
 0x6a2   :  { %v1852_v47 = vadd.f32 %v1851_v45, %v1850_v43  ;;  %v11650_v43 = vld [vmem:[#allocation120_spill] sm:$0xff]  ;;  %v11651_v45 = vld [vmem:[#allocation122_spill] sm:$0xff] }
 0x6a4   :  { %v1854_v55 = vrot.slane %v1852_v47, 4  ;;  %v11652_v47 = vld [vmem:[#allocation124_spill] sm:$0xff] }
 0x6a6   :  { %v8123_v57 = vrot.slane %v1854_v55, 4  ;;  %v11653_v55 = vld [vmem:[#allocation126_spill] sm:$0xff] }
 0x6a8   :  { %1921 = vmatprep.mubr.f32.mxu0 %v8123_v57  ;;  %1992 = vmatprep.mubr.f32.mxu1 %v8123_v57 }
 0x6a9   :  { %1922 = vmatmul.mubr.f32.vlgmr.msra.gmra.mxu0 %v7930_v25  ;;  %1993 = vmatmul.mubr.f32.vlgmr.msra.gmra.mxu1 %v7930_v25 }
 0x6aa   :  { %2000 = vmatpush1.msra.mxu0 %v7569_v21  ;;  %2063 = vmatprep.mubr.f32.mxu0 %v8123_v57  ;;  %v11622_v21 = vld [vmem:[#allocation139_spill] sm:$0xff] }
 0x6ab   :  { %2001 = vmatprep.subr.mxu0 %v7573_v41  ;;  %2106 = vmatpush1.msra.mxu1 %v7576_v4  ;;  %v11623_v41 = vld [vmem:[#allocation94_spill] sm:$0xff]  ;;  %v11624_v4 = vld [vmem:[#allocation141_spill] sm:$0xff] }
 0x6ac   :  { %2002 = vmatpush1.msra.mxu0 %v7579_v7  ;;  %2107 = vmatprep.subr.mxu1 %v7582_v39  ;;  %v11625_v7 = vld [vmem:[#allocation95_spill] sm:$0xff] }
 0x6ad   :  { %2003 = vmatprep.subr.mxu0 %v7585_v27  ;;  %2108 = vmatpush1.msra.mxu1 %v7588_v24  ;;  %v11626_v39 = vld [vmem:[#allocation143_spill] sm:$0xff]  ;;  %v11627_v27 = vld [vmem:[#allocation96_spill] sm:$0xff]  ;;  %v11628_v24 = vld [vmem:[#allocation145_spill] sm:$0xff] }
 0x6ae   :  { %2004 = vmatpush1.msra.mxu0 %v7591_v28  ;;  %2109 = vmatprep.subr.mxu1 %v7594_v22  ;;  %v11629_v28 = vld [vmem:[#allocation97_spill] sm:$0xff]  ;;  %v11630_v22 = vld [vmem:[#allocation147_spill] sm:$0xff] }
 0x6af   :  { %2005 = vmatprep.subr.mxu0 %v7597_v30  ;;  %2110 = vmatpush1.msra.mxu1 %v7600_v20  ;;  %v11631_v30 = vld [vmem:[#allocation98_spill] sm:$0xff]  ;;  %v11632_v20 = vld [vmem:[#allocation149_spill] sm:$0xff] }
 0x6b0   :  { %2006 = vmatpush1.msra.mxu0 %v7603_v13  ;;  %2111 = vmatprep.subr.mxu1 %v11621_v2  ;;  %v11633_v13 = vld [vmem:[#allocation99_spill] sm:$0xff]  ;;  %v11654_v2 = vld [vmem:[#allocation128_spill] sm:$0xff] }
 0x6b1   :  { %2007 = vmatprep.subr.mxu0 %v11622_v21  ;;  %2112 = vmatpush1.msra.mxu1 %v11623_v41  ;;  %v11655_v21 = vld [vmem:[#allocation130_spill] sm:$0xff]  ;;  %v11656_v41 = vld [vmem:[#allocation132_spill] sm:$0xff] }
 0x6b2   :  { %2008 = vmatpush1.msra.mxu0 %v11624_v4  ;;  %2113 = vmatprep.subr.mxu1 %v11625_v7  ;;  %v11657_v4 = vld [vmem:[#allocation134_spill] sm:$0xff]  ;;  %v11658_v7 = vld [vmem:[#allocation136_spill] sm:$0xff] }
 0x6b3   :  { %2009 = vmatprep.subr.mxu0 %v11626_v39  ;;  %2114 = vmatpush1.msra.mxu1 %v11627_v27  ;;  %v11659_v39 = vld [vmem:[#allocation138_spill] sm:$0xff]  ;;  %v11660_v27 = vld [vmem:[#allocation140_spill] sm:$0xff] }
 0x6b4   :  { %2010 = vmatpush1.msra.mxu0 %v11628_v24  ;;  %2115 = vmatprep.subr.mxu1 %v11629_v28  ;;  %v11661_v24 = vld [vmem:[#allocation142_spill] sm:$0xff]  ;;  %v11662_v28 = vld [vmem:[#allocation144_spill] sm:$0xff] }
 0x6b5   :  { %2011 = vmatprep.subr.mxu0 %v11630_v22  ;;  %2116 = vmatpush1.msra.mxu1 %v11631_v30  ;;  %v11663_v22 = vld [vmem:[#allocation146_spill] sm:$0xff]  ;;  %v11664_v30 = vld [vmem:[#allocation148_spill] sm:$0xff] }
 0x6b6   :  { %2012 = vmatpush1.msra.mxu0 %v11632_v20  ;;  %2117 = vmatprep.subr.mxu1 %v11633_v13  ;;  %v11665_v20 = vld [vmem:[#allocation150_spill] sm:$0xff]  ;;  %v11666_v13 = vld [vmem:[#allocation152_spill] sm:$0xff] }
 0x6b7   :  { %2013 = vmatprep.subr.mxu0 %v11634_v59  ;;  %2118 = vmatpush1.msra.mxu1 %v11635_v61  ;;  %v11667_v59 = vld [vmem:[#allocation154_spill] sm:$0xff]  ;;  %v11668_v61 = vld [vmem:[#allocation156_spill] sm:$0xff] }
 0x6b8   :  { %2014 = vmatpush1.msra.mxu0 %v11636_v12  ;;  %2119 = vmatprep.subr.mxu1 %v11637_v16  ;;  %v11669_v12 = vld [vmem:[#allocation158_spill] sm:$0xff]  ;;  %v11670_v16 = vld [vmem:[#allocation159_spill] sm:$0xff] }
 0x6b9   :  { %2015 = vmatprep.subr.mxu0 %v11638_v14  ;;  %2120 = vmatpush1.msra.mxu1 %v11639_v44  ;;  %v11671_v14 = vld [vmem:[#allocation160_spill] sm:$0xff]  ;;  %v11672_v44 = vld [vmem:[#allocation33_spill] sm:$0xff] }
 0x6ba   :  { %2016 = vmatpush1.msra.mxu0 %v11640_v3  ;;  %2121 = vmatprep.subr.mxu1 %v11641_v23  ;;  %v11673_v3 = vld [vmem:[#allocation35_spill] sm:$0xff]  ;;  %v11674_v23 = vld [vmem:[#allocation37_spill] sm:$0xff] }
 0x6bb   :  { %2017 = vmatprep.subr.mxu0 %v11642_v6  ;;  %2122 = vmatpush1.msra.mxu1 %v11643_v52  ;;  %v11675_v6 = vld [vmem:[#allocation39_spill] sm:$0xff]  ;;  %v11676_v52 = vld [vmem:[#allocation41_spill] sm:$0xff] }
 0x6bc   :  { %2018 = vmatpush1.msra.mxu0 %v11644_v56  ;;  %2123 = vmatprep.subr.mxu1 %v11645_v33  ;;  %v11677_v56 = vld [vmem:[#allocation43_spill] sm:$0xff]  ;;  %v11678_v33 = vld [vmem:[#allocation45_spill] sm:$0xff] }
 0x6bd   :  { %2019 = vmatprep.subr.mxu0 %v11646_v50  ;;  %2124 = vmatpush1.msra.mxu1 %v11647_v5  ;;  %v11679_v50 = vld [vmem:[#allocation47_spill] sm:$0xff]  ;;  %v11680_v5 = vld [vmem:[#allocation49_spill] sm:$0xff] }
 0x6be   :  { %2020 = vmatpush1.msra.mxu0 %v11648_v11  ;;  %2125 = vmatprep.subr.mxu1 %v11649_v18  ;;  %v11681_v11 = vld [vmem:[#allocation51_spill] sm:$0xff]  ;;  %v11682_v18 = vld [vmem:[#allocation73_spill] sm:$0xff] }
 0x6bf   :  { %2021 = vmatprep.subr.mxu0 %v11650_v43  ;;  %2126 = vmatpush1.msra.mxu1 %v11651_v45  ;;  %v11683_v43 = vld [vmem:[#allocation164_spill] sm:$0xff]  ;;  %v11684_v45 = vld [vmem:[#allocation165_spill] sm:$0xff] }
 0x6c0   :  { %2022 = vmatpush1.msra.mxu0 %v11652_v47  ;;  %2127 = vmatprep.subr.mxu1 %v11653_v55  ;;  %v11685_v47 = vld [vmem:[#allocation166_spill] sm:$0xff]  ;;  %v11686_v55 = vld [vmem:[#allocation167_spill] sm:$0xff] }
 0x6c1   :  { %2023 = vmatprep.subr.mxu0 %v11654_v2  ;;  %2128 = vmatpush1.msra.mxu1 %v11655_v21  ;;  %v11687_v2 = vld [vmem:[#allocation168_spill] sm:$0xff]  ;;  %v11688_v21 = vld [vmem:[#allocation169_spill] sm:$0xff] }
 0x6c2   :  { %2024 = vmatpush1.msra.mxu0 %v11656_v41  ;;  %2129 = vmatprep.subr.mxu1 %v11657_v4  ;;  %v11689_v41 = vld [vmem:[#allocation25_spill] sm:$0xff]  ;;  %v11690_v4 = vld [vmem:[#allocation170_spill] sm:$0xff] }
 0x6c3   :  { %2025 = vmatprep.subr.mxu0 %v11658_v7  ;;  %2130 = vmatpush1.msra.mxu1 %v11659_v39  ;;  %v11691_v7 = vld [vmem:[#allocation171_spill] sm:$0xff]  ;;  %v11692_v39 = vld [vmem:[#allocation172_spill] sm:$0xff] }
 0x6c4   :  { %2026 = vmatpush1.msra.mxu0 %v11660_v27  ;;  %2131 = vmatprep.subr.mxu1 %v11661_v24  ;;  %v11693_v27 = vld [vmem:[#allocation173_spill] sm:$0xff]  ;;  %v11694_v24 = vld [vmem:[#allocation174_spill] sm:$0xff] }
 0x6c5   :  { %2027 = vmatprep.subr.mxu0 %v11662_v28  ;;  %2132 = vmatpush1.msra.mxu1 %v11663_v22  ;;  %v11695_v28 = vld [vmem:[#allocation175_spill] sm:$0xff]  ;;  %v11696_v22 = vld [vmem:[#allocation176_spill] sm:$0xff] }
 0x6c6   :  { %2028 = vmatpush1.msra.mxu0 %v11664_v30  ;;  %2133 = vmatprep.subr.mxu1 %v11665_v20  ;;  %v11697_v30 = vld [vmem:[#allocation177_spill] sm:$0xff]  ;;  %v11698_v20 = vld [vmem:[#allocation178_spill] sm:$0xff] }
 0x6c7   :  { %2029 = vmatprep.subr.mxu0 %v11666_v13  ;;  %2134 = vmatpush1.msra.mxu1 %v11667_v59  ;;  %v11699_v13 = vld [vmem:[#allocation179_spill] sm:$0xff]  ;;  %v11700_v59 = vld [vmem:[#allocation180_spill] sm:$0xff] }
 0x6c8   :  { %2030 = vmatpush1.msra.mxu0 %v11668_v61  ;;  %2135 = vmatprep.subr.mxu1 %v11669_v12  ;;  %v11701_v61 = vld [vmem:[#allocation181_spill] sm:$0xff] }
 0x6c9   :  { %2031 = vmatprep.subr.mxu0 %v11670_v16  ;;  %2136 = vmatpush1.msra.mxu1 %v11671_v14  ;;  %v8227_v12 = vld [vmem:[#allocation5 + $0x2d8] sm:$0xff]  ;;  %v8230_v16 = vld [vmem:[#allocation5 + $0x2d0] sm:$0xff]  ;;  %v8236_v14 = vld [vmem:[#allocation5 + $0x2a0] sm:$0xff] }
 0x6ca   :  { %2032 = vmatpush2.msra.mxu0 %v11672_v44  ;;  %2169 = vmatprep.mubr.f32.mxu1 %v11083_v62  ;;  %v8239_v44 = vld [vmem:[#allocation5 + $0x278] sm:$0xff] }
 0x6cb   :  { %2033 = vmatprep.subr.mxu0 %v11673_v3  ;;  %4554 = vmatprep.subr.mxu1 %v11083_v62  ;;  %v8245_v3 = vld [vmem:[#allocation5 + $0x248] sm:$0xff] }
 0x6cc   :  { %2034 = vmatpush2.msra.mxu0 %v11674_v23  ;;  %v8248_v23 = vld [vmem:[#allocation5 + $0x240] sm:$0xff] }
 0x6cd   :  { %2035 = vmatprep.subr.mxu0 %v11675_v6  ;;  %v8251_v6 = vld [vmem:[#allocation5 + $0x218] sm:$0xff] }
 0x6ce   :  { %2036 = vmatpush2.msra.mxu0 %v11676_v52  ;;  %v8254_v52 = vld [vmem:[#allocation5 + $0x210] sm:$0xff] }
 0x6cf   :  { %2037 = vmatprep.subr.mxu0 %v11677_v56  ;;  %v8257_v56 = vld [vmem:[#allocation5 + $0x1e8] sm:$0xff] }
 0x6d0   :  { %2038 = vmatpush2.msra.mxu0 %v11678_v33  ;;  %v8260_v33 = vld [vmem:[#allocation5 + $0x1e0] sm:$0xff] }
 0x6d1   :  { %2039 = vmatprep.subr.mxu0 %v11679_v50  ;;  %v8263_v50 = vld [vmem:[#allocation5 + $0x1b8] sm:$0xff] }
 0x6d2   :  { %2040 = vmatpush2.msra.mxu0 %v11680_v5  ;;  %v8266_v5 = vld [vmem:[#allocation5 + $0x1b0] sm:$0xff] }
 0x6d3   :  { %2041 = vmatprep.subr.mxu0 %v11681_v11  ;;  %v8269_v11 = vld [vmem:[#allocation5 + $0x188] sm:$0xff] }
 0x6d4   :  { %2042 = vmatpush2.msra.mxu0 %v11682_v18  ;;  %v8272_v18 = vld [vmem:[#allocation5 + $0x180] sm:$0xff] }
 0x6d5   :  { %2043 = vmatprep.subr.mxu0 %v11683_v43  ;;  %v8275_v43 = vld [vmem:[#allocation5 + $0x158] sm:$0xff] }
 0x6d6   :  { %2044 = vmatpush2.msra.mxu0 %v11684_v45  ;;  %v8278_v45 = vld [vmem:[#allocation5 + $0x150] sm:$0xff] }
 0x6d7   :  { %2045 = vmatprep.subr.mxu0 %v11685_v47  ;;  %v8281_v47 = vld [vmem:[#allocation5 + $0x128] sm:$0xff] }
 0x6d8   :  { %2046 = vmatpush2.msra.mxu0 %v11686_v55  ;;  %v8284_v55 = vld [vmem:[#allocation5 + $0x120] sm:$0xff] }
 0x6d9   :  { %2047 = vmatprep.subr.mxu0 %v11687_v2  ;;  %11702 = vst [vmem:[#allocation65_spill] sm:$0xff] %v8284_v55  ;;  %v8287_v2 = vld [vmem:[#allocation5 + $0xf8] sm:$0xff] }
 0x6da   :  { %2048 = vmatpush2.msra.mxu0 %v11688_v21  ;;  %11703 = vst [vmem:[#allocation66_spill] sm:$0xff] %v8287_v2  ;;  %v8290_v21 = vld [vmem:[#allocation5 + $0xf0] sm:$0xff] }
 0x6db   :  { %2049 = vmatprep.subr.mxu0 %v11689_v41  ;;  %11704 = vst [vmem:[#allocation67_spill] sm:$0xff] %v8290_v21  ;;  %v8293_v41 = vld [vmem:[#allocation5 + $0xc8] sm:$0xff] }
 0x6dc   :  { %2050 = vmatpush2.msra.mxu0 %v11690_v4  ;;  %11705 = vst [vmem:[#allocation68_spill] sm:$0xff] %v8293_v41  ;;  %v8296_v4 = vld [vmem:[#allocation5 + $0xc0] sm:$0xff] }
 0x6dd   :  { %2051 = vmatprep.subr.mxu0 %v11691_v7  ;;  %11706 = vst [vmem:[#allocation69_spill] sm:$0xff] %v8296_v4  ;;  %v8299_v7 = vld [vmem:[#allocation5 + $0x98] sm:$0xff] }
 0x6de   :  { %2052 = vmatpush2.msra.mxu0 %v11692_v39  ;;  %11707 = vst [vmem:[#allocation70_spill] sm:$0xff] %v8299_v7  ;;  %v8302_v39 = vld [vmem:[#allocation5 + $0x90] sm:$0xff] }
 0x6df   :  { %2053 = vmatprep.subr.mxu0 %v11693_v27  ;;  %11708 = vst [vmem:[#allocation71_spill] sm:$0xff] %v8302_v39  ;;  %v8305_v27 = vld [vmem:[#allocation5 + $0x68] sm:$0xff] }
 0x6e0   :  { %2054 = vmatpush2.msra.mxu0 %v11694_v24  ;;  %11709 = vst [vmem:[#allocation72_spill] sm:$0xff] %v8305_v27  ;;  %v8308_v24 = vld [vmem:[#allocation5 + $0x60] sm:$0xff] }
 0x6e1   :  { %2055 = vmatprep.subr.mxu0 %v11695_v28  ;;  %11710 = vst [vmem:[#allocation103_spill] sm:$0xff] %v8308_v24  ;;  %v8311_v28 = vld [vmem:[#allocation5 + $0x38] sm:$0xff] }
 0x6e2   :  { %2056 = vmatpush2.msra.mxu0 %v11696_v22  ;;  %11711 = vst [vmem:[#allocation74_spill] sm:$0xff] %v8311_v28  ;;  %v8314_v22 = vld [vmem:[#allocation5 + $0x30] sm:$0xff] }
 0x6e3   :  { %2057 = vmatprep.subr.mxu0 %v7836_v35  ;;  %v8233_v35 = vld [vmem:[#allocation5 + $0x2a8] sm:$0xff]  ;;  %11712 = vst [vmem:[#allocation75_spill] sm:$0xff] %v8314_v22 }
 0x6e4   :  { %2058 = vmatpush2.msra.mxu0 %v11697_v30  ;;  %v8317_v30 = vld [vmem:[#allocation5 + $0x8] sm:$0xff] }
 0x6e5   :  { %2059 = vmatprep.subr.mxu0 %v11698_v20  ;;  %11713 = vst [vmem:[#allocation76_spill] sm:$0xff] %v8317_v30  ;;  %v8320_v20 = vld [vmem:[#allocation5] sm:$0xff] }
 0x6e6   :  { %2060 = vmatpush2.msra.mxu0 %v11699_v13  ;;  %11714 = vst [vmem:[#allocation106_spill] sm:$0xff] %v8320_v20  ;;  %v8323_v13 = vld [vmem:[#allocation5 + $0x5d8] sm:$0xff] }
 0x6e7   :  { %2061 = vmatprep.subr.mxu0 %v11700_v59  ;;  %11715 = vst [vmem:[#allocation77_spill] sm:$0xff] %v8323_v13  ;;  %v8326_v59 = vld [vmem:[#allocation5 + $0x5d0] sm:$0xff] }
 0x6e8   :  { %2062 = vmatpush2.msra.mxu0 %v11701_v61  ;;  %11716 = vst [vmem:[#allocation78_spill] sm:$0xff] %v8326_v59  ;;  %v8329_v61 = vld [vmem:[#allocation5 + $0x5a8] sm:$0xff] }
 0x6e9   :  { %2064 = vmatmul.mubr.f32.vlgmr.msra.gmra.mxu0 %v7930_v25  ;;  %2271 = vmatprep.subr.mxu0 %v8227_v12  ;;  %v8242_v25 = vld [vmem:[#allocation5 + $0x270] sm:$0xff]  ;;  %11717 = vst [vmem:[#allocation109_spill] sm:$0xff] %v8329_v61 }
 0x6ea   :  { %2272 = vmatpush1.msra.mxu0 %v8230_v16 }
 0x6eb   :  { %2273 = vmatprep.subr.mxu0 %v8233_v35 }
 0x6ec   :  { %2274 = vmatpush1.msra.mxu0 %v8236_v14 }
 0x6ed   :  { %2275 = vmatprep.subr.mxu0 %v8239_v44 }
 0x6ee   :  { %2276 = vmatpush1.msra.mxu0 %v8242_v25 }
 0x6ef   :  { %2277 = vmatprep.subr.mxu0 %v8245_v3 }
 0x6f0   :  { %2278 = vmatpush1.msra.mxu0 %v8248_v23 }
 0x6f1   :  { %2279 = vmatprep.subr.mxu0 %v8251_v6 }
 0x6f2   :  { %2280 = vmatpush1.msra.mxu0 %v8254_v52 }
 0x6f3   :  { %2281 = vmatprep.subr.mxu0 %v8257_v56 }
 0x6f4   :  { %2282 = vmatpush1.msra.mxu0 %v8260_v33 }
 0x6f5   :  { %2283 = vmatprep.subr.mxu0 %v8263_v50 }
 0x6f6   :  { %2284 = vmatpush1.msra.mxu0 %v8266_v5 }
 0x6f7   :  { %2285 = vmatprep.subr.mxu0 %v8269_v11 }
 0x6f8   :  { %2286 = vmatpush1.msra.mxu0 %v8272_v18 }
 0x6f9   :  { %2287 = vmatprep.subr.mxu0 %v8275_v43 }
 0x6fa   :  { %2288 = vmatpush1.msra.mxu0 %v8278_v45 }
 0x6fb   :  { %2289 = vmatprep.subr.mxu0 %v8281_v47 }
 0x6fc   :  { %2290 = vmatpush1.msra.mxu0 %v8284_v55 }
 0x6fd   :  { %2291 = vmatprep.subr.mxu0 %v8287_v2 }
 0x6fe   :  { %2292 = vmatpush1.msra.mxu0 %v8290_v21 }
 0x6ff   :  { %2293 = vmatprep.subr.mxu0 %v8293_v41 }
 0x700   :  { %2294 = vmatpush1.msra.mxu0 %v8296_v4 }
 0x701   :  { %2295 = vmatprep.subr.mxu0 %v8299_v7 }
 0x702   :  { %2296 = vmatpush1.msra.mxu0 %v8302_v39 }
 0x703   :  { %2297 = vmatprep.subr.mxu0 %v8305_v27 }
 0x704   :  { %2298 = vmatpush1.msra.mxu0 %v8308_v24 }
 0x705   :  { %2299 = vmatprep.subr.mxu0 %v8311_v28  ;;  %v11748_v28 = vld [vmem:[#allocation31_spill] sm:$0xff] }
 0x706   :  { %2300 = vmatpush1.msra.mxu0 %v8314_v22  ;;  %v8332_v22 = vld [vmem:[#allocation5 + $0x5a0] sm:$0xff] }
 0x707   :  { %2301 = vmatprep.subr.mxu0 %v8317_v30  ;;  %11718 = vst [vmem:[#allocation79_spill] sm:$0xff] %v8332_v22  ;;  %v8335_v30 = vld [vmem:[#allocation5 + $0x578] sm:$0xff] }
 0x708   :  { %2302 = vmatpush1.msra.mxu0 %v8320_v20  ;;  %11719 = vst [vmem:[#allocation111_spill] sm:$0xff] %v8335_v30  ;;  %v8338_v20 = vld [vmem:[#allocation5 + $0x570] sm:$0xff] }
 0x709   :  { %2303 = vmatprep.subr.mxu0 %v8323_v13  ;;  %11720 = vst [vmem:[#allocation80_spill] sm:$0xff] %v8338_v20  ;;  %v8341_v13 = vld [vmem:[#allocation5 + $0x548] sm:$0xff] }
 0x70a   :  { %2304 = vmatpush2.msra.mxu0 %v8326_v59  ;;  %11721 = vst [vmem:[#allocation113_spill] sm:$0xff] %v8341_v13  ;;  %v8344_v59 = vld [vmem:[#allocation5 + $0x540] sm:$0xff] }
 0x70b   :  { %2305 = vmatprep.subr.mxu0 %v8329_v61  ;;  %11722 = vst [vmem:[#allocation81_spill] sm:$0xff] %v8344_v59  ;;  %v8347_v61 = vld [vmem:[#allocation5 + $0x518] sm:$0xff] }
 0x70c   :  { %2306 = vmatpush2.msra.mxu0 %v8332_v22  ;;  %11723 = vst [vmem:[#allocation115_spill] sm:$0xff] %v8347_v61  ;;  %v8350_v22 = vld [vmem:[#allocation5 + $0x510] sm:$0xff] }
 0x70d   :  { %2307 = vmatprep.subr.mxu0 %v8335_v30  ;;  %11724 = vst [vmem:[#allocation82_spill] sm:$0xff] %v8350_v22  ;;  %v8353_v30 = vld [vmem:[#allocation5 + $0x4e8] sm:$0xff] }
 0x70e   :  { %2308 = vmatpush2.msra.mxu0 %v8338_v20  ;;  %11725 = vst [vmem:[#allocation117_spill] sm:$0xff] %v8353_v30  ;;  %v8356_v20 = vld [vmem:[#allocation5 + $0x4e0] sm:$0xff] }
 0x70f   :  { %2309 = vmatprep.subr.mxu0 %v8341_v13  ;;  %11726 = vst [vmem:[#allocation83_spill] sm:$0xff] %v8356_v20  ;;  %v8359_v13 = vld [vmem:[#allocation5 + $0x4b8] sm:$0xff] }
 0x710   :  { %2310 = vmatpush2.msra.mxu0 %v8344_v59  ;;  %11727 = vst [vmem:[#allocation119_spill] sm:$0xff] %v8359_v13  ;;  %v8362_v59 = vld [vmem:[#allocation5 + $0x4b0] sm:$0xff] }
 0x711   :  { %2311 = vmatprep.subr.mxu0 %v8347_v61  ;;  %11728 = vst [vmem:[#allocation84_spill] sm:$0xff] %v8362_v59  ;;  %v8365_v61 = vld [vmem:[#allocation5 + $0x488] sm:$0xff] }
 0x712   :  { %2312 = vmatpush2.msra.mxu0 %v8350_v22  ;;  %11729 = vst [vmem:[#allocation121_spill] sm:$0xff] %v8365_v61  ;;  %v8368_v22 = vld [vmem:[#allocation5 + $0x480] sm:$0xff] }
 0x713   :  { %2313 = vmatprep.subr.mxu0 %v8353_v30  ;;  %11730 = vst [vmem:[#allocation85_spill] sm:$0xff] %v8368_v22  ;;  %v8371_v30 = vld [vmem:[#allocation5 + $0x458] sm:$0xff] }
 0x714   :  { %2314 = vmatpush2.msra.mxu0 %v8356_v20  ;;  %11731 = vst [vmem:[#allocation123_spill] sm:$0xff] %v8371_v30  ;;  %v8374_v20 = vld [vmem:[#allocation5 + $0x450] sm:$0xff] }
 0x715   :  { %2315 = vmatprep.subr.mxu0 %v8359_v13  ;;  %11732 = vst [vmem:[#allocation86_spill] sm:$0xff] %v8374_v20  ;;  %v8377_v13 = vld [vmem:[#allocation5 + $0x428] sm:$0xff] }
 0x716   :  { %2316 = vmatpush2.msra.mxu0 %v8362_v59  ;;  %11733 = vst [vmem:[#allocation125_spill] sm:$0xff] %v8377_v13  ;;  %v8380_v59 = vld [vmem:[#allocation5 + $0x420] sm:$0xff] }
 0x717   :  { %2317 = vmatprep.subr.mxu0 %v8365_v61  ;;  %11734 = vst [vmem:[#allocation87_spill] sm:$0xff] %v8380_v59  ;;  %v8383_v61 = vld [vmem:[#allocation5 + $0x3f8] sm:$0xff] }
 0x718   :  { %2318 = vmatpush2.msra.mxu0 %v8368_v22  ;;  %11735 = vst [vmem:[#allocation127_spill] sm:$0xff] %v8383_v61  ;;  %v8386_v22 = vld [vmem:[#allocation5 + $0x3f0] sm:$0xff] }
 0x719   :  { %2319 = vmatprep.subr.mxu0 %v8371_v30  ;;  %11736 = vst [vmem:[#allocation88_spill] sm:$0xff] %v8386_v22  ;;  %v8389_v30 = vld [vmem:[#allocation5 + $0x3c8] sm:$0xff] }
 0x71a   :  { %2320 = vmatpush2.msra.mxu0 %v8374_v20  ;;  %11737 = vst [vmem:[#allocation129_spill] sm:$0xff] %v8389_v30  ;;  %v8392_v20 = vld [vmem:[#allocation5 + $0x3c0] sm:$0xff] }
 0x71b   :  { %2321 = vmatprep.subr.mxu0 %v8377_v13  ;;  %11738 = vst [vmem:[#allocation89_spill] sm:$0xff] %v8392_v20  ;;  %v8395_v13 = vld [vmem:[#allocation5 + $0x398] sm:$0xff] }
 0x71c   :  { %2322 = vmatpush2.msra.mxu0 %v8380_v59  ;;  %11739 = vst [vmem:[#allocation131_spill] sm:$0xff] %v8395_v13  ;;  %v8398_v59 = vld [vmem:[#allocation5 + $0x390] sm:$0xff] }
 0x71d   :  { %2323 = vmatprep.subr.mxu0 %v8383_v61  ;;  %11740 = vst [vmem:[#allocation90_spill] sm:$0xff] %v8398_v59  ;;  %v8401_v61 = vld [vmem:[#allocation5 + $0x368] sm:$0xff] }
 0x71e   :  { %2324 = vmatpush2.msra.mxu0 %v8386_v22  ;;  %11741 = vst [vmem:[#allocation133_spill] sm:$0xff] %v8401_v61  ;;  %v8404_v22 = vld [vmem:[#allocation5 + $0x360] sm:$0xff] }
 0x71f   :  { %2325 = vmatprep.subr.mxu0 %v8389_v30  ;;  %11742 = vst [vmem:[#allocation91_spill] sm:$0xff] %v8404_v22  ;;  %v8407_v30 = vld [vmem:[#allocation5 + $0x338] sm:$0xff] }
 0x720   :  { %2326 = vmatpush2.msra.mxu0 %v8392_v20  ;;  %11743 = vst [vmem:[#allocation135_spill] sm:$0xff] %v8407_v30  ;;  %v8410_v20 = vld [vmem:[#allocation5 + $0x330] sm:$0xff] }
 0x721   :  { %2327 = vmatprep.subr.mxu0 %v8395_v13  ;;  %11744 = vst [vmem:[#allocation92_spill] sm:$0xff] %v8410_v20  ;;  %v8413_v13 = vld [vmem:[#allocation5 + $0x308] sm:$0xff] }
 0x722   :  { %2328 = vmatpush2.msra.mxu0 %v8398_v59  ;;  %11745 = vst [vmem:[#allocation137_spill] sm:$0xff] %v8413_v13  ;;  %v8416_v59 = vld [vmem:[#allocation5 + $0x300] sm:$0xff] }
 0x723   :  { %2329 = vmatprep.subr.mxu0 %v8401_v61  ;;  %11746 = vst [vmem:[#allocation93_spill] sm:$0xff] %v8416_v59  ;;  %v8419_v61 = vld [vmem:[#allocation5 + $0x2f8] sm:$0xff] }
 0x724   :  { %2330 = vmatpush2.msra.mxu0 %v8404_v22  ;;  %11747 = vst [vmem:[#allocation139_spill] sm:$0xff] %v8419_v61 }
 0x725   :  { %2331 = vmatprep.subr.mxu0 %v8407_v30 }
 0x726   :  { %2332 = vmatpush2.msra.mxu0 %v8410_v20 }
 0x727   :  { %2333 = vmatprep.subr.mxu0 %v8413_v13 }
 0x728   :  { %2334 = vmatpush2.msra.mxu0 %v8416_v59 }
 0x729   :  { %2413 = vmatprep.subr.mxu0 %v8419_v61 }
 0x769   :  { %v1923_v22 = vpop.f32.mrf.mxu0  ;;  %v1994_v61 = vpop.f32.mrf.mxu1 }
 0x76a   :  { %v1924_v24 = vadd.f32 %v1923_v22, %v11748_v28  ;;  %v1995_v22 = vadd.f32 %v1994_v61, %v6847_v32  ;;  %v11765_v61 = vld [vmem:[#allocation54_spill] sm:$0xff] }
 0x76b   :  { %v1925_v30 = vpop.f32.mrf.mxu0 }
 0x76c   :  { %v2072_v27 = vrot.slane %v1924_v24, 2  ;;  %v1926_v39 = vadd.f32 %v1925_v30, %v6835_v51  ;;  %v2091_v24 = vrot.slane %v1995_v22, 2  ;;  %v11766_v22 = vld [vmem:[#allocation55_spill] sm:$0xff] }
 0x76e   :  { %v2076_v20 = vadd.f32 %v2072_v27, %v6831_v49  ;;  %v2073_v4 = vrot.slane %v1926_v39, 2 }
 0x770   :  { %v4227_v7 = vmul.f32 -1.442695, %v2076_v20  ;;  %v2077_v13 = vadd.f32 %v2073_v4, %v6842_v63  ;;  %v2098_v63 = vrot.slane %v7927_v36, 6  ;;  %v11750_v36 = vld [vmem:[#allocation28_spill] sm:$0xff] }
 0x772   :  { %4912 = vpow2.f32 %v4227_v7  ;;  %v4228_v41 = vmul.f32 -1.442695, %v2077_v13  ;;  %v11763_v13 = vld [vmem:[#allocation52_spill] sm:$0xff] }
 0x774   :  { %4914 = vpow2.f32 %v4228_v41 }
 0x77f   :  { %v4913_v59 = vpop.eup %4912 }
 0x780   :  { %v2084_v21 = vadd.f32 1.0, %v4913_v59  ;;  %v11764_v59 = vld [vmem:[#allocation53_spill] sm:$0xff] }
 0x781   :  { %v4915_v2 = vpop.eup %4914 }
 0x782   :  { %4916 = vrcp.f32 %v2084_v21  ;;  %v2085_v28 = vadd.f32 1.0, %v4915_v2  ;;  %v11761_v2 = vld [vmem:[#allocation48_spill] sm:$0xff] }
 0x784   :  { %4918 = vrcp.f32 %v2085_v28  ;;  %v11762_v28 = vld [vmem:[#allocation50_spill] sm:$0xff] }
 0x78f   :  { %v4917_v55 = vpop.eup %4916 }
 0x790   :  { %v2093_v30 = vmul.f32 %v4917_v55, %v2091_v24  ;;  %v11760_v55 = vld [vmem:[#allocation46_spill] sm:$0xff]  ;;  %v11767_v24 = vld [vmem:[#allocation56_spill] sm:$0xff] }
 0x791   :  { %v4919_v7 = vpop.eup %4918 }
 0x792   :  { %v2094_v49 = vadd.f32 %v2093_v30, %v6851_v60  ;;  %v2096_v4 = vsub.f32 1.0, %v4919_v7  ;;  %v2100_v27 = vmul.f32 %v4919_v7, %v2098_v63  ;;  %v11749_v60 = vld [vmem:[#allocation27_spill] sm:$0xff]  ;;  %v11768_v30 = vld [vmem:[#allocation57_spill] sm:$0xff]  ;;  %v11771_v63 = vld [vmem:[#allocation60_spill] sm:$0xff] }
 0x793   :  { %v11770_v7 = vld [vmem:[#allocation59_spill] sm:$0xff] }
 0x794   :  { %4920 = vtanh.f32 %v2094_v49  ;;  %v11769_v49 = vld [vmem:[#allocation58_spill] sm:$0xff] }
 0x7a1   :  { %v4921_v41 = vpop.eup %4920 }
 0x7a2   :  { %v2097_v39 = vmul.f32 %v4921_v41, %v2096_v4  ;;  %v11772_v4 = vld [vmem:[#allocation61_spill] sm:$0xff]  ;;  %v11773_v41 = vld [vmem:[#allocation62_spill] sm:$0xff] }
 0x7a4   :  { %v2101_v21 = vadd.f32 %v2100_v27, %v2097_v39  ;;  %v11774_v39 = vld [vmem:[#allocation63_spill] sm:$0xff]  ;;  %v11775_v27 = vld [vmem:[#allocation64_spill] sm:$0xff] }
 0x7a6   :  { %v8429_v20 = vrot.slane %v2101_v21, 6  ;;  %v8492_v21 = vld [vmem:[#allocation5 + $0x78] sm:$0xff] }
 0x7a8   :  { %2170 = vmatmul.mubr.f32.vlgmr.msra.gmra.mxu1 %v8429_v20 }
 0x7a9   :  { %4555 = vmatpush3.msra.mxu1 %v7933_v9  ;;  %4586 = vmatprep.mubr.msk.f32.mxu1 %vm5986_vm1, %v11083_v62  ;;  %v11751_v9 = vld [vmem:[#allocation29_spill] sm:$0xff] }
 0x7aa   :  { %4556 = vmatprep.subr.mxu1 %v11083_v62 }
 0x7ab   :  { %4557 = vmatpush3.msra.mxu1 %v7939_v54  ;;  %v11752_v54 = vld [vmem:[#allocation30_spill] sm:$0xff] }
 0x7ac   :  { %4558 = vmatprep.subr.mxu1 %v11083_v62 }
 0x7ad   :  { %4559 = vmatpush3.msra.mxu1 %v7943_v15  ;;  %v11753_v15 = vld [vmem:[#allocation32_spill] sm:$0xff] }
 0x7ae   :  { %4560 = vmatprep.subr.mxu1 %v11083_v62 }
 0x7af   :  { %4561 = vmatpush3.msra.mxu1 %v7947_v38  ;;  %v11754_v38 = vld [vmem:[#allocation34_spill] sm:$0xff] }
 0x7b0   :  { %4562 = vmatprep.subr.mxu1 %v11083_v62 }
 0x7b1   :  { %4563 = vmatpush3.msra.mxu1 %v7951_v19  ;;  %v11755_v19 = vld [vmem:[#allocation36_spill] sm:$0xff] }
 0x7b2   :  { %4564 = vmatprep.subr.mxu1 %v11083_v62 }
 0x7b3   :  { %4565 = vmatpush3.msra.mxu1 %v7955_v10  ;;  %v11756_v10 = vld [vmem:[#allocation38_spill] sm:$0xff] }
 0x7b4   :  { %4566 = vmatprep.subr.mxu1 %v11083_v62 }
 0x7b5   :  { %4567 = vmatpush3.msra.mxu1 %v7959_v37  ;;  %v11757_v37 = vld [vmem:[#allocation40_spill] sm:$0xff] }
 0x7b6   :  { %4568 = vmatprep.subr.mxu1 %v11083_v62 }
 0x7b7   :  { %4569 = vmatpush3.msra.mxu1 %v7963_v17  ;;  %v11758_v17 = vld [vmem:[#allocation42_spill] sm:$0xff] }
 0x7b8   :  { %4570 = vmatprep.subr.mxu1 %v11083_v62 }
 0x7b9   :  { %4571 = vmatpush3.msra.mxu1 %v7967_v8  ;;  %v11759_v8 = vld [vmem:[#allocation44_spill] sm:$0xff] }
 0x7ba   :  { %4572 = vmatprep.subr.mxu1 %v11083_v62 }
 0x7bb   :  { %4573 = vmatpush3.msra.mxu1 %v11749_v60  ;;  %v8495_v60 = vld [vmem:[#allocation5 + $0x70] sm:$0xff] }
 0x7bc   :  { %4574 = vmatprep.subr.mxu1 %v11083_v62 }
 0x7bd   :  { %4575 = vmatpush3.msra.mxu1 %v11750_v36  ;;  %v8498_v36 = vld [vmem:[#allocation5 + $0x48] sm:$0xff] }
 0x7be   :  { %4576 = vmatprep.subr.mxu1 %v11083_v62 }
 0x7bf   :  { %4577 = vmatpush3.msra.mxu1 %v11751_v9  ;;  %v8519_v9 = vld [vmem:[#allocation5 + $0x5b0] sm:$0xff] }
 0x7c0   :  { %4578 = vmatprep.subr.mxu1 %v11083_v62 }
 0x7c1   :  { %4579 = vmatpush3.msra.mxu1 %v11752_v54  ;;  %v8522_v54 = vld [vmem:[#allocation5 + $0x588] sm:$0xff] }
 0x7c2   :  { %4580 = vmatprep.subr.mxu1 %v11083_v62 }
 0x7c3   :  { %4581 = vmatpush3.msra.mxu1 %v11753_v15  ;;  %v8525_v15 = vld [vmem:[#allocation5 + $0x580] sm:$0xff] }
 0x7c4   :  { %4582 = vmatprep.subr.mxu1 %v11083_v62 }
 0x7c5   :  { %4583 = vmatpush3.msra.mxu1 %v11754_v38  ;;  %v8528_v38 = vld [vmem:[#allocation5 + $0x558] sm:$0xff] }
 0x7c6   :  { %4584 = vmatprep.subr.mxu1 %v11083_v62 }
 0x7c7   :  { %4585 = vmatpush3.msra.mxu1 %v11755_v19  ;;  %v8531_v19 = vld [vmem:[#allocation5 + $0x550] sm:$0xff] }
 0x7c8   :  { %4587 = vmatmul.mubr.f32.vlgmr.msra.gmra.mxu1 %v8429_v20  ;;  %2342 = vmatprep.subr.mxu1 %v11756_v10  ;;  %v8534_v10 = vld [vmem:[#allocation5 + $0x528] sm:$0xff] }
 0x7c9   :  { %2343 = vmatpush1.msra.mxu1 %v11757_v37  ;;  %v8537_v37 = vld [vmem:[#allocation5 + $0x520] sm:$0xff] }
 0x7ca   :  { %2344 = vmatprep.subr.mxu1 %v11758_v17  ;;  %v8540_v17 = vld [vmem:[#allocation5 + $0x4f8] sm:$0xff] }
 0x7cb   :  { %2345 = vmatpush1.msra.mxu1 %v11759_v8  ;;  %v8543_v8 = vld [vmem:[#allocation5 + $0x4f0] sm:$0xff] }
 0x7cc   :  { %2346 = vmatprep.subr.mxu1 %v11760_v55  ;;  %v8546_v55 = vld [vmem:[#allocation5 + $0x4c8] sm:$0xff] }
 0x7cd   :  { %2347 = vmatpush1.msra.mxu1 %v11761_v2  ;;  %11776 = vst [vmem:[#allocation94_spill] sm:$0xff] %v8546_v55  ;;  %v8549_v2 = vld [vmem:[#allocation5 + $0x4c0] sm:$0xff] }
 0x7ce   :  { %2348 = vmatprep.subr.mxu1 %v11762_v28  ;;  %11777 = vst [vmem:[#allocation141_spill] sm:$0xff] %v8549_v2  ;;  %v8552_v28 = vld [vmem:[#allocation5 + $0x498] sm:$0xff] }
 0x7cf   :  { %2349 = vmatpush1.msra.mxu1 %v11763_v13  ;;  %11778 = vst [vmem:[#allocation95_spill] sm:$0xff] %v8552_v28  ;;  %v8555_v13 = vld [vmem:[#allocation5 + $0x490] sm:$0xff] }
 0x7d0   :  { %2350 = vmatprep.subr.mxu1 %v11764_v59  ;;  %11779 = vst [vmem:[#allocation143_spill] sm:$0xff] %v8555_v13  ;;  %v8558_v59 = vld [vmem:[#allocation5 + $0x468] sm:$0xff] }
 0x7d1   :  { %2351 = vmatpush1.msra.mxu1 %v11765_v61  ;;  %11780 = vst [vmem:[#allocation96_spill] sm:$0xff] %v8558_v59  ;;  %v8561_v61 = vld [vmem:[#allocation5 + $0x460] sm:$0xff] }
 0x7d2   :  { %2352 = vmatprep.subr.mxu1 %v11766_v22  ;;  %11781 = vst [vmem:[#allocation145_spill] sm:$0xff] %v8561_v61  ;;  %v8564_v22 = vld [vmem:[#allocation5 + $0x438] sm:$0xff] }
 0x7d3   :  { %2353 = vmatpush1.msra.mxu1 %v11767_v24  ;;  %11782 = vst [vmem:[#allocation97_spill] sm:$0xff] %v8564_v22  ;;  %v8567_v24 = vld [vmem:[#allocation5 + $0x430] sm:$0xff] }
 0x7d4   :  { %2354 = vmatprep.subr.mxu1 %v11768_v30  ;;  %11783 = vst [vmem:[#allocation147_spill] sm:$0xff] %v8567_v24  ;;  %v8570_v30 = vld [vmem:[#allocation5 + $0x408] sm:$0xff] }
 0x7d5   :  { %2355 = vmatpush1.msra.mxu1 %v11769_v49  ;;  %11784 = vst [vmem:[#allocation98_spill] sm:$0xff] %v8570_v30  ;;  %v8573_v49 = vld [vmem:[#allocation5 + $0x400] sm:$0xff] }
 0x7d6   :  { %2356 = vmatprep.subr.mxu1 %v11770_v7  ;;  %11785 = vst [vmem:[#allocation149_spill] sm:$0xff] %v8573_v49  ;;  %v8576_v7 = vld [vmem:[#allocation5 + $0x3d8] sm:$0xff] }
 0x7d7   :  { %2357 = vmatpush1.msra.mxu1 %v11771_v63  ;;  %11786 = vst [vmem:[#allocation99_spill] sm:$0xff] %v8576_v7  ;;  %v8579_v63 = vld [vmem:[#allocation5 + $0x3d0] sm:$0xff] }
 0x7d8   :  { %2358 = vmatprep.subr.mxu1 %v11772_v4  ;;  %11787 = vst [vmem:[#allocation151_spill] sm:$0xff] %v8579_v63  ;;  %v8582_v4 = vld [vmem:[#allocation5 + $0x3a8] sm:$0xff] }
 0x7d9   :  { %2359 = vmatpush1.msra.mxu1 %v11773_v41  ;;  %11788 = vst [vmem:[#allocation100_spill] sm:$0xff] %v8582_v4  ;;  %v8585_v41 = vld [vmem:[#allocation5 + $0x3a0] sm:$0xff] }
 0x7da   :  { %2360 = vmatprep.subr.mxu1 %v11774_v39  ;;  %11789 = vst [vmem:[#allocation153_spill] sm:$0xff] %v8585_v41  ;;  %v8588_v39 = vld [vmem:[#allocation5 + $0x378] sm:$0xff] }
 0x7db   :  { %2361 = vmatpush1.msra.mxu1 %v11775_v27  ;;  %11790 = vst [vmem:[#allocation101_spill] sm:$0xff] %v8588_v39  ;;  %v8591_v27 = vld [vmem:[#allocation5 + $0x370] sm:$0xff] }
 0x7dc   :  { %2362 = vmatprep.subr.mxu1 %v8059_v58  ;;  %v8501_v58 = vld [vmem:[#allocation5 + $0x40] sm:$0xff]  ;;  %11791 = vst [vmem:[#allocation155_spill] sm:$0xff] %v8591_v27 }
 0x7dd   :  { %2363 = vmatpush1.msra.mxu1 %v8062_v40  ;;  %v8516_v40 = vld [vmem:[#allocation5 + $0x5b8] sm:$0xff] }
 0x7de   :  { %2364 = vmatprep.subr.mxu1 %v8065_v34  ;;  %v8504_v34 = vld [vmem:[#allocation5 + $0x18] sm:$0xff] }
 0x7df   :  { %2365 = vmatpush1.msra.mxu1 %v8068_v42  ;;  %v8510_v42 = vld [vmem:[#allocation5 + $0x5e8] sm:$0xff] }
 0x7e0   :  { %2366 = vmatprep.subr.mxu1 %v8071_v0  ;;  %v8513_v0 = vld [vmem:[#allocation5 + $0x5e0] sm:$0xff] }
 0x7e1   :  { %2367 = vmatpush1.msra.mxu1 %v8074_v31  ;;  %v8507_v31 = vld [vmem:[#allocation5 + $0x10] sm:$0xff] }
 0x7e2   :  { %2368 = vmatprep.subr.mxu1 %v8492_v21 }
 0x7e3   :  { %2369 = vmatpush1.msra.mxu1 %v8495_v60 }
 0x7e4   :  { %2370 = vmatprep.subr.mxu1 %v8498_v36 }
 0x7e5   :  { %2371 = vmatpush1.msra.mxu1 %v8501_v58 }
 0x7e6   :  { %2372 = vmatprep.subr.mxu1 %v8504_v34 }
 0x7e7   :  { %2373 = vmatpush1.msra.mxu1 %v8507_v31 }
 0x7e8   :  { %2374 = vmatprep.subr.mxu1 %v8510_v42 }
 0x7e9   :  { %2375 = vmatpush2.msra.mxu1 %v8513_v0 }
 0x7ea   :  { %2376 = vmatprep.subr.mxu1 %v8516_v40 }
 0x7eb   :  { %2377 = vmatpush2.msra.mxu1 %v8519_v9 }
 0x7ec   :  { %2378 = vmatprep.subr.mxu1 %v8522_v54 }
 0x7ed   :  { %2379 = vmatpush2.msra.mxu1 %v8525_v15 }
 0x7ee   :  { %2380 = vmatprep.subr.mxu1 %v8528_v38 }
 0x7ef   :  { %2381 = vmatpush2.msra.mxu1 %v8531_v19 }
 0x7f0   :  { %2382 = vmatprep.subr.mxu1 %v8534_v10 }
 0x7f1   :  { %2383 = vmatpush2.msra.mxu1 %v8537_v37 }
 0x7f2   :  { %2384 = vmatprep.subr.mxu1 %v8540_v17 }
 0x7f3   :  { %2385 = vmatpush2.msra.mxu1 %v8543_v8 }
 0x7f4   :  { %2386 = vmatprep.subr.mxu1 %v8546_v55 }
 0x7f5   :  { %2387 = vmatpush2.msra.mxu1 %v8549_v2 }
 0x7f6   :  { %2388 = vmatprep.subr.mxu1 %v8552_v28 }
 0x7f7   :  { %2389 = vmatpush2.msra.mxu1 %v8555_v13 }
 0x7f8   :  { %2390 = vmatprep.subr.mxu1 %v8558_v59 }
 0x7f9   :  { %2391 = vmatpush2.msra.mxu1 %v8561_v61 }
 0x7fa   :  { %2392 = vmatprep.subr.mxu1 %v8564_v22  ;;  %v2065_v22 = vpop.f32.mrf.mxu0 }
 0x7fb   :  { %2393 = vmatpush2.msra.mxu1 %v8567_v24  ;;  %v2066_v59 = vadd.f32 %v2065_v22, %v11620_v53 }
 0x7fc   :  { %2394 = vmatprep.subr.mxu1 %v8570_v30  ;;  %v2067_v55 = vpop.f32.mrf.mxu0 }
 0x7fd   :  { %2395 = vmatpush2.msra.mxu1 %v8573_v49 }
 0x7fe   :  { %2396 = vmatprep.subr.mxu1 %v8576_v7  ;;  %v8594_v7 = vld [vmem:[#allocation5 + $0x348] sm:$0xff] }
 0x7ff   :  { %2397 = vmatpush2.msra.mxu1 %v8579_v63  ;;  %11792 = vst [vmem:[#allocation102_spill] sm:$0xff] %v8594_v7  ;;  %v8597_v63 = vld [vmem:[#allocation5 + $0x340] sm:$0xff] }
 0x800   :  { %2398 = vmatprep.subr.mxu1 %v8582_v4  ;;  %11793 = vst [vmem:[#allocation157_spill] sm:$0xff] %v8597_v63  ;;  %v8600_v4 = vld [vmem:[#allocation5 + $0x318] sm:$0xff] }
 0x801   :  { %2399 = vmatpush2.msra.mxu1 %v8585_v41  ;;  %11794 = vst [vmem:[#allocation104_spill] sm:$0xff] %v8600_v4  ;;  %v8603_v41 = vld [vmem:[#allocation5 + $0x310] sm:$0xff] }
 0x802   :  { %2400 = vmatprep.subr.mxu1 %v8588_v39  ;;  %11795 = vst [vmem:[#allocation105_spill] sm:$0xff] %v8603_v41  ;;  %v8606_v39 = vld [vmem:[#allocation7 + $0x170] sm:$0xff] }
 0x803   :  { %2401 = vmatpush2.msra.mxu1 %v8591_v27  ;;  %11796 = vst [vmem:[#allocation107_spill] sm:$0xff] %v8606_v39  ;;  %v1996_v27 = vpop.f32.mrf.mxu1 }
 0x804   :  { %2402 = vmatprep.subr.mxu1 %v8594_v7  ;;  %v1997_v7 = vadd.f32 %v1996_v27, %v11619_v1 }
 0x805   :  { %2403 = vmatpush2.msra.mxu1 %v8597_v63 }
 0x806   :  { %2404 = vmatprep.subr.mxu1 %v8600_v4 }
 0x807   :  { %2405 = vmatpush2.msra.mxu1 %v8603_v41 }
 0x808   :  { %2505 = vmatprep.subr.mxu1 %v8606_v39 }
 0x868   :  { %v2171_v49 = vpop.f32.mrf.mxu1 }
 0x869   :  { %v2172_v30 = vadd.f32 %v2171_v49, %v11438_v26 }
 0x86a   :  { %v2173_v24 = vpop.f32.mrf.mxu1 }
 0x86b   :  { %v2246_v63 = vadd.f32 %v2172_v30, %v1997_v7  ;;  %v2174_v4 = vadd.f32 %v2173_v24, %v7052_v29  ;;  %v2068_v30 = vadd.f32 %v2067_v55, %v7060_v46  ;;  %v8626_v55 = vld [vmem:[#allocation5 + $0x2c8] sm:$0xff] }
 0x86d   :  { %v4229_v61 = vmul.f32 -1.442695, %v2246_v63  ;;  %v2247_v41 = vadd.f32 %v2174_v4, %v2066_v59 }
 0x86f   :  { %4922 = vpow2.f32 %v4229_v61  ;;  %v4230_v13 = vmul.f32 -1.442695, %v2247_v41 }
 0x871   :  { %4924 = vpow2.f32 %v4230_v13 }
 0x87c   :  { %v4923_v28 = vpop.eup %4922 }
 0x87d   :  { %v2254_v39 = vadd.f32 1.0, %v4923_v28 }
 0x87e   :  { %v4925_v2 = vpop.eup %4924 }
 0x87f   :  { %4926 = vrcp.f32 %v2254_v39  ;;  %v2255_v1 = vadd.f32 1.0, %v4925_v2  ;;  %v8632_v2 = vld [vmem:[#allocation5 + $0x2c0] sm:$0xff] }
 0x881   :  { %4928 = vrcp.f32 %v2255_v1  ;;  %v8622_v1 = vld [vmem:[#allocation5 + $0x2f0] sm:$0xff] }
 0x888   :  { %v2242_v27 = vpop.f32.mrf.mxu1 }
 0x889   :  { %v2243_v24 = vadd.f32 %v2242_v27, %v7063_v48  ;;  %v8635_v27 = vld [vmem:[#allocation7 + $0x158] sm:$0xff] }
 0x88a   :  { %v4588_v49 = vpop.f32.mrf.mxu1 }
 0x88b   :  { %v8638_v49 = vld [vmem:[#allocation5 + $0x298] sm:$0xff] }
 0x88c   :  { %v4927_v7 = vpop.eup %4926 }
 0x88d   :  { %v2260_v63 = vmul.f32 %v4927_v7, %v2068_v30  ;;  %v8641_v30 = vld [vmem:[#allocation7 + $0x150] sm:$0xff] }
 0x88e   :  { %v4929_v59 = vpop.eup %4928  ;;  %v8644_v7 = vld [vmem:[#allocation5 + $0x290] sm:$0xff] }
 0x88f   :  { %v2261_v22 = vadd.f32 %v2260_v63, %v2243_v24  ;;  %v2263_v61 = vsub.f32 1.0, %v4929_v59  ;;  %v2265_v28 = vmul.f32 %v4929_v59, %v8123_v57  ;;  %v8629_v57 = vld [vmem:[#allocation7 + $0x168] sm:$0xff]  ;;  %v8647_v24 = vld [vmem:[#allocation7 + $0x140] sm:$0xff] }
 0x890   :  { %v8650_v63 = vld [vmem:[#allocation5 + $0x268] sm:$0xff]  ;;  %v8656_v59 = vld [vmem:[#allocation5 + $0x260] sm:$0xff] }
 0x891   :  { %4930 = vtanh.f32 %v2261_v22  ;;  %v8653_v22 = vld [vmem:[#allocation7 + $0x138] sm:$0xff] }
 0x89e   :  { %v4931_v13 = vpop.eup %4930 }
 0x89f   :  { %v2264_v4 = vmul.f32 %v4931_v13, %v2263_v61  ;;  %v8659_v61 = vld [vmem:[#allocation7 + $0x128] sm:$0xff]  ;;  %v8662_v13 = vld [vmem:[#allocation5 + $0x238] sm:$0xff] }
 0x8a0   :  { %11797 = vst [vmem:[#allocation108_spill] sm:$0xff] %v8659_v61  ;;  %11798 = vst [vmem:[#allocation110_spill] sm:$0xff] %v8662_v13 }
 0x8a1   :  { %v2266_v41 = vadd.f32 %v2265_v28, %v2264_v4  ;;  %v8665_v4 = vld [vmem:[#allocation7 + $0x120] sm:$0xff]  ;;  %v8668_v28 = vld [vmem:[#allocation5 + $0x230] sm:$0xff] }
 0x8a2   :  { %11799 = vst [vmem:[#allocation112_spill] sm:$0xff] %v8665_v4  ;;  %11800 = vst [vmem:[#allocation114_spill] sm:$0xff] %v8668_v28 }
 0x8a3   :  { %v2268_v39 = vrot.slane %v2266_v41, 2  ;;  %v8671_v41 = vld [vmem:[#allocation7 + $0x110] sm:$0xff] }
 0x8a4   :  { %11801 = vst [vmem:[#allocation116_spill] sm:$0xff] %v8671_v41 }
 0x8a5   :  { %v8616_v53 = vrot.slane %v2268_v39, 6  ;;  %v8674_v39 = vld [vmem:[#allocation5 + $0x208] sm:$0xff] }
 0x8a6   :  { %11802 = vst [vmem:[#allocation118_spill] sm:$0xff] %v8674_v39 }
 0x8a7   :  { %2335 = vmatprep.mubr.f32.mxu0 %v8616_v53  ;;  %2406 = vmatprep.mubr.f32.mxu1 %v8616_v53 }
 0x8a8   :  { %2336 = vmatmul.mubr.f32.vlgmr.msra.gmra.mxu0 %v8429_v20  ;;  %2407 = vmatmul.mubr.f32.vlgmr.msra.gmra.mxu1 %v8429_v20 }
 0x8a9   :  { %2414 = vmatpush1.msra.mxu0 %v8622_v1  ;;  %2477 = vmatprep.mubr.f32.mxu0 %v8616_v53 }
 0x8aa   :  { %2415 = vmatprep.subr.mxu0 %v8626_v55  ;;  %2506 = vmatpush1.msra.mxu1 %v8629_v57 }
 0x8ab   :  { %2416 = vmatpush1.msra.mxu0 %v8632_v2  ;;  %2507 = vmatprep.subr.mxu1 %v8635_v27 }
 0x8ac   :  { %2417 = vmatprep.subr.mxu0 %v8638_v49  ;;  %2508 = vmatpush1.msra.mxu1 %v8641_v30 }
 0x8ad   :  { %2418 = vmatpush1.msra.mxu0 %v8644_v7  ;;  %2509 = vmatprep.subr.mxu1 %v8647_v24 }
 0x8ae   :  { %2419 = vmatprep.subr.mxu0 %v8650_v63  ;;  %2510 = vmatpush1.msra.mxu1 %v8653_v22 }
 0x8af   :  { %2420 = vmatpush1.msra.mxu0 %v8656_v59  ;;  %2511 = vmatprep.subr.mxu1 %v8659_v61  ;;  %v8677_v61 = vld [vmem:[#allocation7 + $0x108] sm:$0xff] }
 0x8b0   :  { %2421 = vmatprep.subr.mxu0 %v8662_v13  ;;  %2512 = vmatpush1.msra.mxu1 %v8665_v4  ;;  %11803 = vst [vmem:[#allocation120_spill] sm:$0xff] %v8677_v61  ;;  %v8680_v13 = vld [vmem:[#allocation5 + $0x200] sm:$0xff]  ;;  %v8683_v4 = vld [vmem:[#allocation7 + $0xf8] sm:$0xff] }
 0x8b1   :  { %2422 = vmatpush1.msra.mxu0 %v8668_v28  ;;  %2513 = vmatprep.subr.mxu1 %v8671_v41  ;;  %11804 = vst [vmem:[#allocation122_spill] sm:$0xff] %v8680_v13  ;;  %11805 = vst [vmem:[#allocation124_spill] sm:$0xff] %v8683_v4  ;;  %v8686_v28 = vld [vmem:[#allocation5 + $0x1d8] sm:$0xff]  ;;  %v8689_v41 = vld [vmem:[#allocation7 + $0xf0] sm:$0xff] }
 0x8b2   :  { %2423 = vmatprep.subr.mxu0 %v8674_v39  ;;  %2514 = vmatpush1.msra.mxu1 %v8677_v61  ;;  %11806 = vst [vmem:[#allocation126_spill] sm:$0xff] %v8686_v28  ;;  %11807 = vst [vmem:[#allocation128_spill] sm:$0xff] %v8689_v41  ;;  %v8692_v39 = vld [vmem:[#allocation5 + $0x1d0] sm:$0xff]  ;;  %v8695_v61 = vld [vmem:[#allocation7 + $0xe0] sm:$0xff] }
 0x8b3   :  { %2424 = vmatpush1.msra.mxu0 %v8680_v13  ;;  %2515 = vmatprep.subr.mxu1 %v8683_v4  ;;  %11808 = vst [vmem:[#allocation130_spill] sm:$0xff] %v8692_v39  ;;  %11809 = vst [vmem:[#allocation132_spill] sm:$0xff] %v8695_v61  ;;  %v8698_v13 = vld [vmem:[#allocation5 + $0x1a8] sm:$0xff]  ;;  %v8701_v4 = vld [vmem:[#allocation7 + $0xd8] sm:$0xff] }
 0x8b4   :  { %2425 = vmatprep.subr.mxu0 %v8686_v28  ;;  %2516 = vmatpush1.msra.mxu1 %v8689_v41  ;;  %11810 = vst [vmem:[#allocation134_spill] sm:$0xff] %v8698_v13  ;;  %11811 = vst [vmem:[#allocation136_spill] sm:$0xff] %v8701_v4  ;;  %v8704_v28 = vld [vmem:[#allocation5 + $0x1a0] sm:$0xff]  ;;  %v8707_v41 = vld [vmem:[#allocation7 + $0xc8] sm:$0xff] }
 0x8b5   :  { %2426 = vmatpush1.msra.mxu0 %v8692_v39  ;;  %2517 = vmatprep.subr.mxu1 %v8695_v61  ;;  %11812 = vst [vmem:[#allocation138_spill] sm:$0xff] %v8704_v28  ;;  %11813 = vst [vmem:[#allocation140_spill] sm:$0xff] %v8707_v41  ;;  %v8710_v39 = vld [vmem:[#allocation5 + $0x178] sm:$0xff]  ;;  %v8713_v61 = vld [vmem:[#allocation7 + $0xc0] sm:$0xff] }
 0x8b6   :  { %2427 = vmatprep.subr.mxu0 %v8698_v13  ;;  %2518 = vmatpush1.msra.mxu1 %v8701_v4  ;;  %11814 = vst [vmem:[#allocation142_spill] sm:$0xff] %v8710_v39  ;;  %11815 = vst [vmem:[#allocation144_spill] sm:$0xff] %v8713_v61  ;;  %v8716_v13 = vld [vmem:[#allocation5 + $0x170] sm:$0xff] }
 0x8b7   :  { %2428 = vmatpush1.msra.mxu0 %v8704_v28  ;;  %2519 = vmatprep.subr.mxu1 %v8707_v41  ;;  %11816 = vst [vmem:[#allocation146_spill] sm:$0xff] %v8716_v13  ;;  %v8719_v4 = vld [vmem:[#allocation7 + $0xb0] sm:$0xff]  ;;  %v8722_v28 = vld [vmem:[#allocation5 + $0x148] sm:$0xff] }
 0x8b8   :  { %2429 = vmatprep.subr.mxu0 %v8710_v39  ;;  %2520 = vmatpush1.msra.mxu1 %v8713_v61  ;;  %11817 = vst [vmem:[#allocation148_spill] sm:$0xff] %v8719_v4  ;;  %11818 = vst [vmem:[#allocation150_spill] sm:$0xff] %v8722_v28  ;;  %v8725_v41 = vld [vmem:[#allocation7 + $0xa8] sm:$0xff]  ;;  %v8728_v39 = vld [vmem:[#allocation5 + $0x140] sm:$0xff] }
 0x8b9   :  { %2430 = vmatpush1.msra.mxu0 %v8716_v13  ;;  %2521 = vmatprep.subr.mxu1 %v8719_v4  ;;  %11819 = vst [vmem:[#allocation152_spill] sm:$0xff] %v8725_v41  ;;  %11820 = vst [vmem:[#allocation154_spill] sm:$0xff] %v8728_v39  ;;  %v8731_v61 = vld [vmem:[#allocation7 + $0x98] sm:$0xff]  ;;  %v8737_v4 = vld [vmem:[#allocation7 + $0x90] sm:$0xff] }
 0x8ba   :  { %2431 = vmatprep.subr.mxu0 %v8722_v28  ;;  %2522 = vmatpush1.msra.mxu1 %v8725_v41  ;;  %11821 = vst [vmem:[#allocation156_spill] sm:$0xff] %v8731_v61  ;;  %v8734_v13 = vld [vmem:[#allocation5 + $0x118] sm:$0xff]  ;;  %11823 = vst [vmem:[#allocation159_spill] sm:$0xff] %v8737_v4  ;;  %v8740_v28 = vld [vmem:[#allocation5 + $0x110] sm:$0xff] }
 0x8bb   :  { %2432 = vmatpush1.msra.mxu0 %v8728_v39  ;;  %2523 = vmatprep.subr.mxu1 %v8731_v61  ;;  %11822 = vst [vmem:[#allocation158_spill] sm:$0xff] %v8734_v13  ;;  %11824 = vst [vmem:[#allocation160_spill] sm:$0xff] %v8740_v28  ;;  %v8743_v41 = vld [vmem:[#allocation7 + $0x80] sm:$0xff]  ;;  %v8746_v39 = vld [vmem:[#allocation5 + $0xe8] sm:$0xff] }
 0x8bc   :  { %2433 = vmatprep.subr.mxu0 %v8734_v13  ;;  %2524 = vmatpush1.msra.mxu1 %v8737_v4  ;;  %11825 = vst [vmem:[#allocation33_spill] sm:$0xff] %v8743_v41  ;;  %11826 = vst [vmem:[#allocation35_spill] sm:$0xff] %v8746_v39  ;;  %v8749_v61 = vld [vmem:[#allocation7 + $0x78] sm:$0xff]  ;;  %v8752_v13 = vld [vmem:[#allocation5 + $0xe0] sm:$0xff] }
 0x8bd   :  { %2434 = vmatpush1.msra.mxu0 %v8740_v28  ;;  %2525 = vmatprep.subr.mxu1 %v8743_v41  ;;  %11827 = vst [vmem:[#allocation37_spill] sm:$0xff] %v8749_v61  ;;  %11828 = vst [vmem:[#allocation39_spill] sm:$0xff] %v8752_v13  ;;  %v8755_v4 = vld [vmem:[#allocation7 + $0x68] sm:$0xff]  ;;  %v8758_v28 = vld [vmem:[#allocation5 + $0xb8] sm:$0xff] }
 0x8be   :  { %2435 = vmatprep.subr.mxu0 %v8746_v39  ;;  %2526 = vmatpush1.msra.mxu1 %v8749_v61  ;;  %11829 = vst [vmem:[#allocation41_spill] sm:$0xff] %v8755_v4  ;;  %11830 = vst [vmem:[#allocation43_spill] sm:$0xff] %v8758_v28  ;;  %v8761_v41 = vld [vmem:[#allocation7 + $0x60] sm:$0xff]  ;;  %v8764_v39 = vld [vmem:[#allocation5 + $0xb0] sm:$0xff] }
 0x8bf   :  { %2436 = vmatpush1.msra.mxu0 %v8752_v13  ;;  %2527 = vmatprep.subr.mxu1 %v8755_v4  ;;  %11831 = vst [vmem:[#allocation45_spill] sm:$0xff] %v8761_v41  ;;  %11832 = vst [vmem:[#allocation47_spill] sm:$0xff] %v8764_v39  ;;  %v8767_v61 = vld [vmem:[#allocation7 + $0x50] sm:$0xff]  ;;  %v8770_v13 = vld [vmem:[#allocation5 + $0x88] sm:$0xff] }
 0x8c0   :  { %2437 = vmatprep.subr.mxu0 %v8758_v28  ;;  %2528 = vmatpush1.msra.mxu1 %v8761_v41  ;;  %11833 = vst [vmem:[#allocation49_spill] sm:$0xff] %v8767_v61  ;;  %11834 = vst [vmem:[#allocation51_spill] sm:$0xff] %v8770_v13  ;;  %v8773_v4 = vld [vmem:[#allocation7 + $0x48] sm:$0xff]  ;;  %v8776_v28 = vld [vmem:[#allocation5 + $0x80] sm:$0xff] }
 0x8c1   :  { %2438 = vmatpush1.msra.mxu0 %v8764_v39  ;;  %2529 = vmatprep.subr.mxu1 %v8767_v61  ;;  %11835 = vst [vmem:[#allocation73_spill] sm:$0xff] %v8773_v4  ;;  %11836 = vst [vmem:[#allocation164_spill] sm:$0xff] %v8776_v28  ;;  %v8779_v41 = vld [vmem:[#allocation7 + $0x38] sm:$0xff]  ;;  %v8785_v61 = vld [vmem:[#allocation7 + $0x30] sm:$0xff] }
 0x8c2   :  { %2439 = vmatprep.subr.mxu0 %v8770_v13  ;;  %2530 = vmatpush1.msra.mxu1 %v8773_v4  ;;  %11837 = vst [vmem:[#allocation165_spill] sm:$0xff] %v8779_v41  ;;  %v8782_v39 = vld [vmem:[#allocation5 + $0x58] sm:$0xff]  ;;  %11839 = vst [vmem:[#allocation167_spill] sm:$0xff] %v8785_v61  ;;  %v8788_v13 = vld [vmem:[#allocation5 + $0x50] sm:$0xff] }
 0x8c3   :  { %2440 = vmatpush1.msra.mxu0 %v8776_v28  ;;  %2531 = vmatprep.subr.mxu1 %v8779_v41  ;;  %11838 = vst [vmem:[#allocation166_spill] sm:$0xff] %v8782_v39  ;;  %11840 = vst [vmem:[#allocation168_spill] sm:$0xff] %v8788_v13  ;;  %v8791_v4 = vld [vmem:[#allocation7 + $0x20] sm:$0xff]  ;;  %v8794_v28 = vld [vmem:[#allocation5 + $0x28] sm:$0xff] }
 0x8c4   :  { %2441 = vmatprep.subr.mxu0 %v8782_v39  ;;  %2532 = vmatpush1.msra.mxu1 %v8785_v61  ;;  %11841 = vst [vmem:[#allocation169_spill] sm:$0xff] %v8791_v4  ;;  %11842 = vst [vmem:[#allocation25_spill] sm:$0xff] %v8794_v28  ;;  %v8797_v41 = vld [vmem:[#allocation7 + $0x18] sm:$0xff]  ;;  %v8800_v39 = vld [vmem:[#allocation5 + $0x20] sm:$0xff] }
 0x8c5   :  { %2442 = vmatpush1.msra.mxu0 %v8788_v13  ;;  %2533 = vmatprep.subr.mxu1 %v8791_v4  ;;  %11843 = vst [vmem:[#allocation170_spill] sm:$0xff] %v8797_v41  ;;  %11844 = vst [vmem:[#allocation171_spill] sm:$0xff] %v8800_v39  ;;  %v8803_v61 = vld [vmem:[#allocation7 + $0x8] sm:$0xff]  ;;  %v8806_v13 = vld [vmem:[#allocation5 + $0x5f8] sm:$0xff] }
 0x8c6   :  { %2443 = vmatprep.subr.mxu0 %v8794_v28  ;;  %2534 = vmatpush1.msra.mxu1 %v8797_v41  ;;  %11845 = vst [vmem:[#allocation172_spill] sm:$0xff] %v8803_v61  ;;  %11846 = vst [vmem:[#allocation173_spill] sm:$0xff] %v8806_v13  ;;  %v8809_v4 = vld [vmem:[#allocation7] sm:$0xff]  ;;  %v8812_v28 = vld [vmem:[#allocation5 + $0x5f0] sm:$0xff] }
 0x8c7   :  { %2444 = vmatpush1.msra.mxu0 %v8800_v39  ;;  %2535 = vmatprep.subr.mxu1 %v8803_v61  ;;  %11847 = vst [vmem:[#allocation174_spill] sm:$0xff] %v8809_v4  ;;  %11848 = vst [vmem:[#allocation175_spill] sm:$0xff] %v8812_v28  ;;  %v8816_v41 = vld [vmem:[#allocation5 + $0x5c8] sm:$0xff]  ;;  %v8820_v61 = vld [vmem:[#allocation5 + $0x5c0] sm:$0xff] }
 0x8c8   :  { %2445 = vmatprep.subr.mxu0 %v8806_v13  ;;  %2536 = vmatpush1.msra.mxu1 %v8809_v4  ;;  %11849 = vst [vmem:[#allocation176_spill] sm:$0xff] %v8816_v41  ;;  %11850 = vst [vmem:[#allocation177_spill] sm:$0xff] %v8820_v61  ;;  %v8823_v13 = vld [vmem:[#allocation5 + $0x598] sm:$0xff]  ;;  %v8826_v4 = vld [vmem:[#allocation5 + $0x590] sm:$0xff] }
 0x8c9   :  { %2446 = vmatpush2.msra.mxu0 %v8812_v28  ;;  %2569 = vmatprep.mubr.f32.mxu1 %v11083_v62  ;;  %11851 = vst [vmem:[#allocation178_spill] sm:$0xff] %v8823_v13  ;;  %11852 = vst [vmem:[#allocation179_spill] sm:$0xff] %v8826_v4  ;;  %v8829_v28 = vld [vmem:[#allocation5 + $0x568] sm:$0xff]  ;;  %v8832_v39 = vld [vmem:[#allocation5 + $0x560] sm:$0xff] }
 0x8ca   :  { %2447 = vmatprep.subr.mxu0 %v8816_v41  ;;  %4589 = vmatprep.subr.mxu1 %v11083_v62  ;;  %11853 = vst [vmem:[#allocation180_spill] sm:$0xff] %v8829_v28  ;;  %11854 = vst [vmem:[#allocation181_spill] sm:$0xff] %v8832_v39  ;;  %v8835_v41 = vld [vmem:[#allocation5 + $0x538] sm:$0xff] }
 0x8cb   :  { %2448 = vmatpush2.msra.mxu0 %v8820_v61  ;;  %11855 = vst [vmem:[#allocation27_spill] sm:$0xff] %v8835_v41  ;;  %v8838_v61 = vld [vmem:[#allocation5 + $0x530] sm:$0xff] }
 0x8cc   :  { %2449 = vmatprep.subr.mxu0 %v8823_v13  ;;  %11856 = vst [vmem:[#allocation28_spill] sm:$0xff] %v8838_v61  ;;  %v8841_v13 = vld [vmem:[#allocation5 + $0x508] sm:$0xff] }
 0x8cd   :  { %2450 = vmatpush2.msra.mxu0 %v8826_v4  ;;  %11857 = vst [vmem:[#allocation29_spill] sm:$0xff] %v8841_v13  ;;  %v8844_v4 = vld [vmem:[#allocation5 + $0x500] sm:$0xff] }
 0x8ce   :  { %2451 = vmatprep.subr.mxu0 %v8829_v28  ;;  %11858 = vst [vmem:[#allocation30_spill] sm:$0xff] %v8844_v4  ;;  %v8847_v28 = vld [vmem:[#allocation5 + $0x4d8] sm:$0xff] }
 0x8cf   :  { %2452 = vmatpush2.msra.mxu0 %v8832_v39  ;;  %11859 = vst [vmem:[#allocation32_spill] sm:$0xff] %v8847_v28  ;;  %v8850_v39 = vld [vmem:[#allocation5 + $0x4d0] sm:$0xff] }
 0x8d0   :  { %2453 = vmatprep.subr.mxu0 %v8835_v41  ;;  %11860 = vst [vmem:[#allocation34_spill] sm:$0xff] %v8850_v39  ;;  %v8853_v41 = vld [vmem:[#allocation5 + $0x4a8] sm:$0xff] }
 0x8d1   :  { %2454 = vmatpush2.msra.mxu0 %v8838_v61  ;;  %11861 = vst [vmem:[#allocation36_spill] sm:$0xff] %v8853_v41  ;;  %v8856_v61 = vld [vmem:[#allocation5 + $0x4a0] sm:$0xff] }
 0x8d2   :  { %2455 = vmatprep.subr.mxu0 %v8841_v13  ;;  %11862 = vst [vmem:[#allocation38_spill] sm:$0xff] %v8856_v61  ;;  %v8859_v13 = vld [vmem:[#allocation5 + $0x478] sm:$0xff] }
 0x8d3   :  { %2456 = vmatpush2.msra.mxu0 %v8844_v4  ;;  %11863 = vst [vmem:[#allocation40_spill] sm:$0xff] %v8859_v13  ;;  %v8862_v4 = vld [vmem:[#allocation5 + $0x470] sm:$0xff] }
 0x8d4   :  { %2457 = vmatprep.subr.mxu0 %v8847_v28  ;;  %11864 = vst [vmem:[#allocation42_spill] sm:$0xff] %v8862_v4  ;;  %v8865_v28 = vld [vmem:[#allocation5 + $0x448] sm:$0xff] }
 0x8d5   :  { %2458 = vmatpush2.msra.mxu0 %v8850_v39  ;;  %11865 = vst [vmem:[#allocation44_spill] sm:$0xff] %v8865_v28  ;;  %v8868_v39 = vld [vmem:[#allocation5 + $0x440] sm:$0xff] }
 0x8d6   :  { %2459 = vmatprep.subr.mxu0 %v8853_v41  ;;  %11866 = vst [vmem:[#allocation46_spill] sm:$0xff] %v8868_v39  ;;  %v8871_v41 = vld [vmem:[#allocation5 + $0x418] sm:$0xff] }
 0x8d7   :  { %2460 = vmatpush2.msra.mxu0 %v8856_v61  ;;  %11867 = vst [vmem:[#allocation48_spill] sm:$0xff] %v8871_v41  ;;  %v8874_v61 = vld [vmem:[#allocation5 + $0x410] sm:$0xff] }
 0x8d8   :  { %2461 = vmatprep.subr.mxu0 %v8859_v13  ;;  %11868 = vst [vmem:[#allocation50_spill] sm:$0xff] %v8874_v61  ;;  %v8877_v13 = vld [vmem:[#allocation5 + $0x3e8] sm:$0xff] }
 0x8d9   :  { %2462 = vmatpush2.msra.mxu0 %v8862_v4  ;;  %11869 = vst [vmem:[#allocation52_spill] sm:$0xff] %v8877_v13  ;;  %v8880_v4 = vld [vmem:[#allocation5 + $0x3e0] sm:$0xff] }
 0x8da   :  { %2463 = vmatprep.subr.mxu0 %v8865_v28  ;;  %11870 = vst [vmem:[#allocation53_spill] sm:$0xff] %v8880_v4  ;;  %v8883_v28 = vld [vmem:[#allocation5 + $0x3b8] sm:$0xff] }
 0x8db   :  { %2464 = vmatpush2.msra.mxu0 %v8868_v39  ;;  %11871 = vst [vmem:[#allocation54_spill] sm:$0xff] %v8883_v28  ;;  %v8886_v39 = vld [vmem:[#allocation5 + $0x3b0] sm:$0xff] }
 0x8dc   :  { %2465 = vmatprep.subr.mxu0 %v8871_v41  ;;  %11872 = vst [vmem:[#allocation55_spill] sm:$0xff] %v8886_v39  ;;  %v8889_v41 = vld [vmem:[#allocation5 + $0x388] sm:$0xff] }
 0x8dd   :  { %2466 = vmatpush2.msra.mxu0 %v8874_v61  ;;  %v8892_v61 = vld [vmem:[#allocation5 + $0x380] sm:$0xff] }
 0x8de   :  { %2467 = vmatprep.subr.mxu0 %v8877_v13  ;;  %v8895_v13 = vld [vmem:[#allocation5 + $0x358] sm:$0xff] }
 0x8df   :  { %2468 = vmatpush2.msra.mxu0 %v8880_v4  ;;  %v8898_v4 = vld [vmem:[#allocation5 + $0x350] sm:$0xff] }
 0x8e0   :  { %2469 = vmatprep.subr.mxu0 %v8883_v28  ;;  %v8901_v28 = vld [vmem:[#allocation5 + $0x328] sm:$0xff] }
 0x8e1   :  { %2470 = vmatpush2.msra.mxu0 %v8886_v39  ;;  %v8904_v39 = vld [vmem:[#allocation5 + $0x320] sm:$0xff] }
 0x8e2   :  { %2471 = vmatprep.subr.mxu0 %v8889_v41 }
 0x8e3   :  { %2472 = vmatpush2.msra.mxu0 %v8892_v61 }
 0x8e4   :  { %2473 = vmatprep.subr.mxu0 %v8895_v13 }
 0x8e5   :  { %2474 = vmatpush2.msra.mxu0 %v8898_v4 }
 0x8e6   :  { %2475 = vmatprep.subr.mxu0 %v8901_v28 }
 0x8e7   :  { %2476 = vmatpush2.msra.mxu0 %v8904_v39 }
 0x8e8   :  { %2478 = vmatmul.mubr.f32.vlgmr.msra.gmra.mxu0 %v8429_v20  ;;  %2667 = vmatprep.subr.mxu0 %v8227_v12  ;;  %v11873_v12 = vld [vmem:[#allocation65_spill] sm:$0xff] }
 0x8e9   :  { %2668 = vmatpush1.msra.mxu0 %v8230_v16  ;;  %v11874_v16 = vld [vmem:[#allocation66_spill] sm:$0xff] }
 0x8ea   :  { %2669 = vmatprep.subr.mxu0 %v8233_v35  ;;  %v11875_v35 = vld [vmem:[#allocation67_spill] sm:$0xff] }
 0x8eb   :  { %2670 = vmatpush1.msra.mxu0 %v8236_v14  ;;  %v11876_v14 = vld [vmem:[#allocation68_spill] sm:$0xff] }
 0x8ec   :  { %2671 = vmatprep.subr.mxu0 %v8239_v44  ;;  %v11877_v44 = vld [vmem:[#allocation69_spill] sm:$0xff] }
 0x8ed   :  { %2672 = vmatpush1.msra.mxu0 %v8242_v25  ;;  %v11878_v25 = vld [vmem:[#allocation70_spill] sm:$0xff] }
 0x8ee   :  { %2673 = vmatprep.subr.mxu0 %v8245_v3  ;;  %v11879_v3 = vld [vmem:[#allocation71_spill] sm:$0xff] }
 0x8ef   :  { %2674 = vmatpush1.msra.mxu0 %v8248_v23  ;;  %v11880_v23 = vld [vmem:[#allocation72_spill] sm:$0xff] }
 0x8f0   :  { %2675 = vmatprep.subr.mxu0 %v8251_v6  ;;  %v11881_v6 = vld [vmem:[#allocation103_spill] sm:$0xff] }
 0x8f1   :  { %2676 = vmatpush1.msra.mxu0 %v8254_v52  ;;  %v11882_v52 = vld [vmem:[#allocation74_spill] sm:$0xff] }
 0x8f2   :  { %2677 = vmatprep.subr.mxu0 %v8257_v56  ;;  %v11883_v56 = vld [vmem:[#allocation75_spill] sm:$0xff] }
 0x8f3   :  { %2678 = vmatpush1.msra.mxu0 %v8260_v33  ;;  %v11884_v33 = vld [vmem:[#allocation76_spill] sm:$0xff] }
 0x8f4   :  { %2679 = vmatprep.subr.mxu0 %v8263_v50  ;;  %v11885_v50 = vld [vmem:[#allocation106_spill] sm:$0xff] }
 0x8f5   :  { %2680 = vmatpush1.msra.mxu0 %v8266_v5  ;;  %v11886_v5 = vld [vmem:[#allocation77_spill] sm:$0xff] }
 0x8f6   :  { %2681 = vmatprep.subr.mxu0 %v8269_v11  ;;  %v11887_v11 = vld [vmem:[#allocation78_spill] sm:$0xff] }
 0x8f7   :  { %2682 = vmatpush1.msra.mxu0 %v8272_v18  ;;  %v11888_v18 = vld [vmem:[#allocation109_spill] sm:$0xff] }
 0x8f8   :  { %2683 = vmatprep.subr.mxu0 %v8275_v43  ;;  %v11889_v43 = vld [vmem:[#allocation79_spill] sm:$0xff] }
 0x8f9   :  { %2684 = vmatpush1.msra.mxu0 %v8278_v45  ;;  %v11890_v45 = vld [vmem:[#allocation111_spill] sm:$0xff] }
 0x8fa   :  { %2685 = vmatprep.subr.mxu0 %v8281_v47  ;;  %v11891_v47 = vld [vmem:[#allocation80_spill] sm:$0xff] }
 0x8fb   :  { %2686 = vmatpush1.msra.mxu0 %v11873_v12  ;;  %v11892_v12 = vld [vmem:[#allocation113_spill] sm:$0xff] }
 0x8fc   :  { %2687 = vmatprep.subr.mxu0 %v11874_v16  ;;  %v11893_v16 = vld [vmem:[#allocation81_spill] sm:$0xff] }
 0x8fd   :  { %2688 = vmatpush1.msra.mxu0 %v11875_v35  ;;  %v11894_v35 = vld [vmem:[#allocation115_spill] sm:$0xff] }
 0x8fe   :  { %2689 = vmatprep.subr.mxu0 %v11876_v14  ;;  %v11895_v14 = vld [vmem:[#allocation82_spill] sm:$0xff] }
 0x8ff   :  { %2690 = vmatpush1.msra.mxu0 %v11877_v44  ;;  %v11896_v44 = vld [vmem:[#allocation117_spill] sm:$0xff] }
 0x900   :  { %2691 = vmatprep.subr.mxu0 %v11878_v25  ;;  %v11897_v25 = vld [vmem:[#allocation83_spill] sm:$0xff] }
 0x901   :  { %2692 = vmatpush1.msra.mxu0 %v11879_v3  ;;  %v11898_v3 = vld [vmem:[#allocation119_spill] sm:$0xff] }
 0x902   :  { %2693 = vmatprep.subr.mxu0 %v11880_v23  ;;  %v11899_v23 = vld [vmem:[#allocation84_spill] sm:$0xff] }
 0x903   :  { %2694 = vmatpush1.msra.mxu0 %v11881_v6  ;;  %v11900_v6 = vld [vmem:[#allocation121_spill] sm:$0xff] }
 0x904   :  { %2695 = vmatprep.subr.mxu0 %v11882_v52  ;;  %v11901_v52 = vld [vmem:[#allocation85_spill] sm:$0xff] }
 0x905   :  { %2696 = vmatpush1.msra.mxu0 %v11883_v56  ;;  %v11902_v56 = vld [vmem:[#allocation123_spill] sm:$0xff] }
 0x906   :  { %2697 = vmatprep.subr.mxu0 %v11884_v33  ;;  %v11903_v33 = vld [vmem:[#allocation86_spill] sm:$0xff] }
 0x907   :  { %2698 = vmatpush1.msra.mxu0 %v11885_v50  ;;  %v11904_v50 = vld [vmem:[#allocation125_spill] sm:$0xff] }
 0x908   :  { %2699 = vmatprep.subr.mxu0 %v11886_v5  ;;  %v11905_v5 = vld [vmem:[#allocation87_spill] sm:$0xff] }
 0x909   :  { %2700 = vmatpush2.msra.mxu0 %v11887_v11  ;;  %v11906_v11 = vld [vmem:[#allocation127_spill] sm:$0xff] }
 0x90a   :  { %2701 = vmatprep.subr.mxu0 %v11888_v18  ;;  %v11907_v18 = vld [vmem:[#allocation88_spill] sm:$0xff] }
 0x90b   :  { %2702 = vmatpush2.msra.mxu0 %v11889_v43  ;;  %v11908_v43 = vld [vmem:[#allocation129_spill] sm:$0xff] }
 0x90c   :  { %2703 = vmatprep.subr.mxu0 %v11890_v45  ;;  %v11909_v45 = vld [vmem:[#allocation89_spill] sm:$0xff] }
 0x90d   :  { %2704 = vmatpush2.msra.mxu0 %v11891_v47  ;;  %v11910_v47 = vld [vmem:[#allocation131_spill] sm:$0xff] }
 0x90e   :  { %2705 = vmatprep.subr.mxu0 %v11892_v12  ;;  %v11911_v12 = vld [vmem:[#allocation90_spill] sm:$0xff] }
 0x90f   :  { %2706 = vmatpush2.msra.mxu0 %v11893_v16  ;;  %v11912_v16 = vld [vmem:[#allocation133_spill] sm:$0xff] }
 0x910   :  { %2707 = vmatprep.subr.mxu0 %v11894_v35  ;;  %v11913_v35 = vld [vmem:[#allocation91_spill] sm:$0xff] }
 0x911   :  { %2708 = vmatpush2.msra.mxu0 %v11895_v14  ;;  %v11914_v14 = vld [vmem:[#allocation135_spill] sm:$0xff] }
 0x912   :  { %2709 = vmatprep.subr.mxu0 %v11896_v44  ;;  %v11915_v44 = vld [vmem:[#allocation92_spill] sm:$0xff] }
 0x913   :  { %2710 = vmatpush2.msra.mxu0 %v11897_v25  ;;  %v11916_v25 = vld [vmem:[#allocation137_spill] sm:$0xff] }
 0x914   :  { %2711 = vmatprep.subr.mxu0 %v11898_v3  ;;  %v11917_v3 = vld [vmem:[#allocation93_spill] sm:$0xff] }
 0x915   :  { %2712 = vmatpush2.msra.mxu0 %v11899_v23  ;;  %v11918_v23 = vld [vmem:[#allocation139_spill] sm:$0xff] }
 0x916   :  { %2713 = vmatprep.subr.mxu0 %v11900_v6 }
 0x917   :  { %2714 = vmatpush2.msra.mxu0 %v11901_v52  ;;  %v11919_v52 = vld [vmem:[#allocation31_spill] sm:$0xff] }
 0x918   :  { %2715 = vmatprep.subr.mxu0 %v11902_v56 }
 0x919   :  { %2716 = vmatpush2.msra.mxu0 %v11903_v33 }
 0x91a   :  { %2717 = vmatprep.subr.mxu0 %v11904_v50  ;;  %v11920_v50 = vld [vmem:[#allocation161_spill] sm:$0xff] }
 0x91b   :  { %2718 = vmatpush2.msra.mxu0 %v11905_v5 }
 0x91c   :  { %2719 = vmatprep.subr.mxu0 %v11906_v11 }
 0x91d   :  { %2720 = vmatpush2.msra.mxu0 %v11907_v18 }
 0x91e   :  { %2721 = vmatprep.subr.mxu0 %v11908_v43  ;;  %v11921_v43 = vld [vmem:[#allocation162_spill] sm:$0xff] }
 0x91f   :  { %2722 = vmatpush2.msra.mxu0 %v11909_v45 }
 0x920   :  { %2723 = vmatprep.subr.mxu0 %v11910_v47 }
 0x921   :  { %2724 = vmatpush2.msra.mxu0 %v11911_v12 }
 0x922   :  { %2725 = vmatprep.subr.mxu0 %v11912_v16 }
 0x923   :  { %2726 = vmatpush2.msra.mxu0 %v11913_v35 }
 0x924   :  { %2727 = vmatprep.subr.mxu0 %v11914_v14 }
 0x925   :  { %2728 = vmatpush2.msra.mxu0 %v11915_v44 }
 0x926   :  { %2729 = vmatprep.subr.mxu0 %v11916_v25 }
 0x927   :  { %2730 = vmatpush2.msra.mxu0 %v11917_v3 }
 0x928   :  { %2809 = vmatprep.subr.mxu0 %v11918_v23 }
 0x968   :  { %v2337_v6 = vpop.f32.mrf.mxu0  ;;  %v2408_v14 = vpop.f32.mrf.mxu1 }
 0x969   :  { %v2338_v56 = vadd.f32 %v2337_v6, %v11919_v52  ;;  %v2409_v25 = vadd.f32 %v2408_v14, %v6847_v32  ;;  %v11922_v6 = vld [vmem:[#allocation163_spill] sm:$0xff]  ;;  %v9001_v14 = vld [vmem:[#allocation7 + $0x118] sm:$0xff] }
 0x96a   :  { %v2339_v33 = vpop.f32.mrf.mxu0 }
 0x96b   :  { %v2484_v5 = vadd.f32 %v2338_v56, %v11920_v50  ;;  %v2340_v18 = vadd.f32 %v2339_v33, %v6835_v51 }
 0x96d   :  { %v4231_v11 = vmul.f32 -1.442695, %v2484_v5  ;;  %v2485_v45 = vadd.f32 %v2340_v18, %v11921_v43 }
 0x96f   :  { %4932 = vpow2.f32 %v4231_v11  ;;  %v4232_v47 = vmul.f32 -1.442695, %v2485_v45 }
 0x971   :  { %4934 = vpow2.f32 %v4232_v47 }
 0x97c   :  { %v4933_v12 = vpop.eup %4932 }
 0x97d   :  { %v2492_v16 = vadd.f32 1.0, %v4933_v12  ;;  %v8983_v12 = vld [vmem:[#allocation7 + $0x178] sm:$0xff] }
 0x97e   :  { %v4935_v35 = vpop.eup %4934 }
 0x97f   :  { %4936 = vrcp.f32 %v2492_v16  ;;  %v2493_v44 = vadd.f32 1.0, %v4935_v35  ;;  %v8989_v16 = vld [vmem:[#allocation7 + $0x160] sm:$0xff]  ;;  %v8997_v35 = vld [vmem:[#allocation7 + $0x130] sm:$0xff] }
 0x981   :  { %4938 = vrcp.f32 %v2493_v44  ;;  %v9005_v44 = vld [vmem:[#allocation7 + $0x100] sm:$0xff] }
 0x98c   :  { %v4937_v3 = vpop.eup %4936 }
 0x98d   :  { %v2498_v23 = vmul.f32 %v4937_v3, %v2409_v25  ;;  %v9009_v25 = vld [vmem:[#allocation7 + $0xe8] sm:$0xff]  ;;  %v9013_v3 = vld [vmem:[#allocation7 + $0xd0] sm:$0xff] }
 0x98e   :  { %v4939_v33 = vpop.eup %4938 }
 0x98f   :  { %v2499_v56 = vadd.f32 %v2498_v23, %v11922_v6  ;;  %v2501_v5 = vsub.f32 1.0, %v4939_v33  ;;  %v2503_v45 = vmul.f32 %v4939_v33, %v8429_v20  ;;  %v8993_v20 = vld [vmem:[#allocation7 + $0x148] sm:$0xff]  ;;  %v9017_v23 = vld [vmem:[#allocation7 + $0xb8] sm:$0xff] }
 0x990   :  { %v9025_v33 = vld [vmem:[#allocation7 + $0x88] sm:$0xff] }
 0x991   :  { %4940 = vtanh.f32 %v2499_v56  ;;  %v9021_v56 = vld [vmem:[#allocation7 + $0xa0] sm:$0xff]  ;;  %11924 = vst [vmem:[#allocation57_spill] sm:$0xff] %v9025_v33 }
 0x992   :  { %11923 = vst [vmem:[#allocation56_spill] sm:$0xff] %v9021_v56 }
 0x99e   :  { %v4941_v11 = vpop.eup %4940 }
 0x99f   :  { %v2502_v18 = vmul.f32 %v4941_v11, %v2501_v5  ;;  %v9029_v5 = vld [vmem:[#allocation7 + $0x70] sm:$0xff]  ;;  %v9033_v11 = vld [vmem:[#allocation7 + $0x58] sm:$0xff] }
 0x9a0   :  { %11925 = vst [vmem:[#allocation58_spill] sm:$0xff] %v9029_v5  ;;  %11926 = vst [vmem:[#allocation59_spill] sm:$0xff] %v9033_v11 }
 0x9a1   :  { %v8980_v47 = vadd.f32 %v2503_v45, %v2502_v18  ;;  %v9037_v18 = vld [vmem:[#allocation7 + $0x40] sm:$0xff]  ;;  %v9041_v45 = vld [vmem:[#allocation7 + $0x28] sm:$0xff] }
 0x9a2   :  { %11927 = vst [vmem:[#allocation60_spill] sm:$0xff] %v9037_v18  ;;  %11928 = vst [vmem:[#allocation61_spill] sm:$0xff] %v9041_v45 }
 0x9a3   :  { %2570 = vmatmul.mubr.f32.vlgmr.msra.gmra.mxu1 %v8980_v47 }
 0x9a4   :  { %4590 = vmatpush3.msra.mxu1 %v8983_v12  ;;  %4621 = vmatprep.mubr.msk.f32.mxu1 %vm5986_vm1, %v11083_v62 }
 0x9a5   :  { %4591 = vmatprep.subr.mxu1 %v11083_v62 }
 0x9a6   :  { %4592 = vmatpush3.msra.mxu1 %v8989_v16 }
 0x9a7   :  { %4593 = vmatprep.subr.mxu1 %v11083_v62 }
 0x9a8   :  { %4594 = vmatpush3.msra.mxu1 %v8993_v20 }
 0x9a9   :  { %4595 = vmatprep.subr.mxu1 %v11083_v62 }
 0x9aa   :  { %4596 = vmatpush3.msra.mxu1 %v8997_v35 }
 0x9ab   :  { %4597 = vmatprep.subr.mxu1 %v11083_v62 }
 0x9ac   :  { %4598 = vmatpush3.msra.mxu1 %v9001_v14 }
 0x9ad   :  { %4599 = vmatprep.subr.mxu1 %v11083_v62 }
 0x9ae   :  { %4600 = vmatpush3.msra.mxu1 %v9005_v44 }
 0x9af   :  { %4601 = vmatprep.subr.mxu1 %v11083_v62 }
 0x9b0   :  { %4602 = vmatpush3.msra.mxu1 %v9009_v25 }
 0x9b1   :  { %4603 = vmatprep.subr.mxu1 %v11083_v62 }
 0x9b2   :  { %4604 = vmatpush3.msra.mxu1 %v9013_v3 }
 0x9b3   :  { %4605 = vmatprep.subr.mxu1 %v11083_v62 }
 0x9b4   :  { %4606 = vmatpush3.msra.mxu1 %v9017_v23 }
 0x9b5   :  { %4607 = vmatprep.subr.mxu1 %v11083_v62 }
 0x9b6   :  { %4608 = vmatpush3.msra.mxu1 %v9021_v56  ;;  %v9061_v56 = vld [vmem:[#allocation5 + $0x288] sm:$0xff] }
 0x9b7   :  { %4609 = vmatprep.subr.mxu1 %v11083_v62  ;;  %11934 = vst [vmem:[#allocation67_spill] sm:$0xff] %v9061_v56 }
 0x9b8   :  { %4610 = vmatpush3.msra.mxu1 %v9025_v33  ;;  %v9052_v33 = vld [vmem:[#allocation5 + $0x2e0] sm:$0xff] }
 0x9b9   :  { %4611 = vmatprep.subr.mxu1 %v11083_v62  ;;  %11931 = vst [vmem:[#allocation64_spill] sm:$0xff] %v9052_v33 }
 0x9ba   :  { %4612 = vmatpush3.msra.mxu1 %v9029_v5  ;;  %v9045_v5 = vld [vmem:[#allocation7 + $0x10] sm:$0xff] }
 0x9bb   :  { %4613 = vmatprep.subr.mxu1 %v11083_v62  ;;  %11929 = vst [vmem:[#allocation62_spill] sm:$0xff] %v9045_v5 }
 0x9bc   :  { %4614 = vmatpush3.msra.mxu1 %v9033_v11  ;;  %v9049_v11 = vld [vmem:[#allocation5 + $0x2e8] sm:$0xff] }
 0x9bd   :  { %4615 = vmatprep.subr.mxu1 %v11083_v62  ;;  %11930 = vst [vmem:[#allocation63_spill] sm:$0xff] %v9049_v11 }
 0x9be   :  { %4616 = vmatpush3.msra.mxu1 %v9037_v18  ;;  %v9055_v18 = vld [vmem:[#allocation5 + $0x2b8] sm:$0xff] }
 0x9bf   :  { %4617 = vmatprep.subr.mxu1 %v11083_v62  ;;  %11932 = vst [vmem:[#allocation65_spill] sm:$0xff] %v9055_v18 }
 0x9c0   :  { %4618 = vmatpush3.msra.mxu1 %v9041_v45  ;;  %v9058_v45 = vld [vmem:[#allocation5 + $0x2b0] sm:$0xff] }
 0x9c1   :  { %4619 = vmatprep.subr.mxu1 %v11083_v62  ;;  %11933 = vst [vmem:[#allocation66_spill] sm:$0xff] %v9058_v45 }
 0x9c2   :  { %4620 = vmatpush3.msra.mxu1 %v9045_v5  ;;  %v9064_v5 = vld [vmem:[#allocation5 + $0x280] sm:$0xff] }
 0x9c3   :  { %4622 = vmatmul.mubr.f32.vlgmr.msra.gmra.mxu1 %v8980_v47  ;;  %2738 = vmatprep.subr.mxu1 %v9049_v11  ;;  %11935 = vst [vmem:[#allocation68_spill] sm:$0xff] %v9064_v5  ;;  %v9067_v11 = vld [vmem:[#allocation5 + $0x258] sm:$0xff] }
 0x9c4   :  { %2739 = vmatpush1.msra.mxu1 %v9052_v33  ;;  %11936 = vst [vmem:[#allocation69_spill] sm:$0xff] %v9067_v11  ;;  %v9070_v33 = vld [vmem:[#allocation5 + $0x250] sm:$0xff] }
 0x9c5   :  { %2740 = vmatprep.subr.mxu1 %v9055_v18  ;;  %11937 = vst [vmem:[#allocation70_spill] sm:$0xff] %v9070_v33  ;;  %v9073_v18 = vld [vmem:[#allocation5 + $0x228] sm:$0xff] }
 0x9c6   :  { %2741 = vmatpush1.msra.mxu1 %v9058_v45  ;;  %11938 = vst [vmem:[#allocation71_spill] sm:$0xff] %v9073_v18  ;;  %v9076_v45 = vld [vmem:[#allocation5 + $0x220] sm:$0xff] }
 0x9c7   :  { %2742 = vmatprep.subr.mxu1 %v9061_v56  ;;  %11939 = vst [vmem:[#allocation72_spill] sm:$0xff] %v9076_v45  ;;  %v9079_v56 = vld [vmem:[#allocation5 + $0x1f8] sm:$0xff] }
 0x9c8   :  { %2743 = vmatpush1.msra.mxu1 %v9064_v5  ;;  %11940 = vst [vmem:[#allocation103_spill] sm:$0xff] %v9079_v56  ;;  %v9082_v5 = vld [vmem:[#allocation5 + $0x1f0] sm:$0xff] }
 0x9c9   :  { %2744 = vmatprep.subr.mxu1 %v9067_v11  ;;  %11941 = vst [vmem:[#allocation74_spill] sm:$0xff] %v9082_v5  ;;  %v9085_v11 = vld [vmem:[#allocation5 + $0x1c8] sm:$0xff] }
 0x9ca   :  { %2745 = vmatpush1.msra.mxu1 %v9070_v33  ;;  %11942 = vst [vmem:[#allocation75_spill] sm:$0xff] %v9085_v11  ;;  %v9088_v33 = vld [vmem:[#allocation5 + $0x1c0] sm:$0xff] }
 0x9cb   :  { %2746 = vmatprep.subr.mxu1 %v9073_v18  ;;  %11943 = vst [vmem:[#allocation76_spill] sm:$0xff] %v9088_v33  ;;  %v9091_v18 = vld [vmem:[#allocation5 + $0x198] sm:$0xff] }
 0x9cc   :  { %2747 = vmatpush1.msra.mxu1 %v9076_v45  ;;  %11944 = vst [vmem:[#allocation106_spill] sm:$0xff] %v9091_v18  ;;  %v9094_v45 = vld [vmem:[#allocation5 + $0x190] sm:$0xff] }
 0x9cd   :  { %2748 = vmatprep.subr.mxu1 %v9079_v56  ;;  %11945 = vst [vmem:[#allocation77_spill] sm:$0xff] %v9094_v45  ;;  %v9097_v56 = vld [vmem:[#allocation5 + $0x168] sm:$0xff] }
 0x9ce   :  { %2749 = vmatpush1.msra.mxu1 %v9082_v5  ;;  %11946 = vst [vmem:[#allocation78_spill] sm:$0xff] %v9097_v56  ;;  %v9100_v5 = vld [vmem:[#allocation5 + $0x160] sm:$0xff] }
 0x9cf   :  { %2750 = vmatprep.subr.mxu1 %v9085_v11  ;;  %11947 = vst [vmem:[#allocation109_spill] sm:$0xff] %v9100_v5  ;;  %v9103_v11 = vld [vmem:[#allocation5 + $0x138] sm:$0xff] }
 0x9d0   :  { %2751 = vmatpush1.msra.mxu1 %v9088_v33  ;;  %11948 = vst [vmem:[#allocation79_spill] sm:$0xff] %v9103_v11  ;;  %v9106_v33 = vld [vmem:[#allocation5 + $0x130] sm:$0xff] }
 0x9d1   :  { %2752 = vmatprep.subr.mxu1 %v9091_v18  ;;  %11949 = vst [vmem:[#allocation111_spill] sm:$0xff] %v9106_v33  ;;  %v9109_v18 = vld [vmem:[#allocation5 + $0x108] sm:$0xff] }
 0x9d2   :  { %2753 = vmatpush1.msra.mxu1 %v9094_v45  ;;  %v9112_v45 = vld [vmem:[#allocation5 + $0x100] sm:$0xff] }
 0x9d3   :  { %2754 = vmatprep.subr.mxu1 %v9097_v56  ;;  %v9115_v56 = vld [vmem:[#allocation5 + $0xd8] sm:$0xff] }
 0x9d4   :  { %2755 = vmatpush1.msra.mxu1 %v9100_v5  ;;  %v9118_v5 = vld [vmem:[#allocation5 + $0xd0] sm:$0xff] }
 0x9d5   :  { %2756 = vmatprep.subr.mxu1 %v9103_v11  ;;  %v9121_v11 = vld [vmem:[#allocation5 + $0xa8] sm:$0xff] }
 0x9d6   :  { %2757 = vmatpush1.msra.mxu1 %v9106_v33  ;;  %v9124_v33 = vld [vmem:[#allocation5 + $0xa0] sm:$0xff] }
 0x9d7   :  { %2758 = vmatprep.subr.mxu1 %v9109_v18 }
 0x9d8   :  { %2759 = vmatpush1.msra.mxu1 %v9112_v45 }
 0x9d9   :  { %2760 = vmatprep.subr.mxu1 %v9115_v56 }
 0x9da   :  { %2761 = vmatpush1.msra.mxu1 %v9118_v5 }
 0x9db   :  { %2762 = vmatprep.subr.mxu1 %v9121_v11 }
 0x9dc   :  { %2763 = vmatpush1.msra.mxu1 %v9124_v33 }
 0x9dd   :  { %2764 = vmatprep.subr.mxu1 %v8492_v21  ;;  %v11950_v21 = vld [vmem:[#allocation94_spill] sm:$0xff] }
 0x9de   :  { %2765 = vmatpush1.msra.mxu1 %v8495_v60  ;;  %v11951_v60 = vld [vmem:[#allocation141_spill] sm:$0xff] }
 0x9df   :  { %2766 = vmatprep.subr.mxu1 %v8498_v36  ;;  %v11952_v36 = vld [vmem:[#allocation95_spill] sm:$0xff] }
 0x9e0   :  { %2767 = vmatpush1.msra.mxu1 %v8501_v58  ;;  %v11953_v58 = vld [vmem:[#allocation143_spill] sm:$0xff] }
 0x9e1   :  { %2768 = vmatprep.subr.mxu1 %v8504_v34  ;;  %v11954_v34 = vld [vmem:[#allocation96_spill] sm:$0xff] }
 0x9e2   :  { %2769 = vmatpush1.msra.mxu1 %v8507_v31  ;;  %v11955_v31 = vld [vmem:[#allocation145_spill] sm:$0xff] }
 0x9e3   :  { %2770 = vmatprep.subr.mxu1 %v8510_v42  ;;  %v11956_v42 = vld [vmem:[#allocation97_spill] sm:$0xff] }
 0x9e4   :  { %2771 = vmatpush2.msra.mxu1 %v8513_v0  ;;  %v11957_v0 = vld [vmem:[#allocation147_spill] sm:$0xff] }
 0x9e5   :  { %2772 = vmatprep.subr.mxu1 %v8516_v40  ;;  %v11958_v40 = vld [vmem:[#allocation98_spill] sm:$0xff] }
 0x9e6   :  { %2773 = vmatpush2.msra.mxu1 %v8519_v9  ;;  %v11959_v9 = vld [vmem:[#allocation149_spill] sm:$0xff] }
 0x9e7   :  { %2774 = vmatprep.subr.mxu1 %v8522_v54  ;;  %v11960_v54 = vld [vmem:[#allocation99_spill] sm:$0xff] }
 0x9e8   :  { %2775 = vmatpush2.msra.mxu1 %v8525_v15  ;;  %v11961_v15 = vld [vmem:[#allocation151_spill] sm:$0xff] }
 0x9e9   :  { %2776 = vmatprep.subr.mxu1 %v8528_v38  ;;  %v11962_v38 = vld [vmem:[#allocation100_spill] sm:$0xff] }
 0x9ea   :  { %2777 = vmatpush2.msra.mxu1 %v8531_v19  ;;  %v11963_v19 = vld [vmem:[#allocation153_spill] sm:$0xff] }
 0x9eb   :  { %2778 = vmatprep.subr.mxu1 %v8534_v10  ;;  %v11964_v10 = vld [vmem:[#allocation101_spill] sm:$0xff] }
 0x9ec   :  { %2779 = vmatpush2.msra.mxu1 %v8537_v37  ;;  %v11965_v37 = vld [vmem:[#allocation155_spill] sm:$0xff] }
 0x9ed   :  { %2780 = vmatprep.subr.mxu1 %v8540_v17  ;;  %v11966_v17 = vld [vmem:[#allocation102_spill] sm:$0xff] }
 0x9ee   :  { %2781 = vmatpush2.msra.mxu1 %v8543_v8  ;;  %v11967_v8 = vld [vmem:[#allocation157_spill] sm:$0xff] }
 0x9ef   :  { %2782 = vmatprep.subr.mxu1 %v11950_v21  ;;  %v11968_v21 = vld [vmem:[#allocation104_spill] sm:$0xff] }
 0x9f0   :  { %2783 = vmatpush2.msra.mxu1 %v11951_v60  ;;  %v11969_v60 = vld [vmem:[#allocation105_spill] sm:$0xff] }
 0x9f1   :  { %2784 = vmatprep.subr.mxu1 %v11952_v36  ;;  %v11970_v36 = vld [vmem:[#allocation107_spill] sm:$0xff] }
 0x9f2   :  { %2785 = vmatpush2.msra.mxu1 %v11953_v58  ;;  %v2410_v58 = vpop.f32.mrf.mxu1 }
 0x9f3   :  { %2786 = vmatprep.subr.mxu1 %v11954_v34 }
 0x9f4   :  { %2787 = vmatpush2.msra.mxu1 %v11955_v31  ;;  %v11971_v31 = vld [vmem:[#allocation24_spill] sm:$0xff] }
 0x9f5   :  { %2788 = vmatprep.subr.mxu1 %v11956_v42  ;;  %v2411_v42 = vadd.f32 %v2410_v58, %v11971_v31 }
 0x9f6   :  { %2789 = vmatpush2.msra.mxu1 %v11957_v0 }
 0x9f7   :  { %2790 = vmatprep.subr.mxu1 %v11958_v40 }
 0x9f8   :  { %2791 = vmatpush2.msra.mxu1 %v11959_v9 }
 0x9f9   :  { %2792 = vmatprep.subr.mxu1 %v11960_v54  ;;  %v2479_v54 = vpop.f32.mrf.mxu0 }
 0x9fa   :  { %2793 = vmatpush2.msra.mxu1 %v11961_v15 }
 0x9fb   :  { %2794 = vmatprep.subr.mxu1 %v11962_v38 }
 0x9fc   :  { %2795 = vmatpush2.msra.mxu1 %v11963_v19  ;;  %v11972_v19 = vld [vmem:[#allocation26_spill] sm:$0xff] }
 0x9fd   :  { %2796 = vmatprep.subr.mxu1 %v11964_v10  ;;  %v2480_v10 = vadd.f32 %v2479_v54, %v11972_v19 }
 0x9fe   :  { %2797 = vmatpush2.msra.mxu1 %v11965_v37 }
 0x9ff   :  { %2798 = vmatprep.subr.mxu1 %v11966_v17 }
 0xa00   :  { %2799 = vmatpush2.msra.mxu1 %v11967_v8 }
 0xa01   :  { %2800 = vmatprep.subr.mxu1 %v11968_v21 }
 0xa02   :  { %2801 = vmatpush2.msra.mxu1 %v11969_v60 }
 0xa03   :  { %2916 = vmatprep.subr.mxu1 %v11970_v36  ;;  %v2481_v36 = vpop.f32.mrf.mxu0 }
 0xa63   :  { %v2571_v34 = vpop.f32.mrf.mxu1 }
 0xa64   :  { %v2572_v0 = vadd.f32 %v2571_v34, %v11438_v26 }
 0xa65   :  { %v2573_v40 = vpop.f32.mrf.mxu1 }
 0xa66   :  { %v2646_v9 = vadd.f32 %v2572_v0, %v2411_v42  ;;  %v2574_v38 = vadd.f32 %v2573_v40, %v7052_v29  ;;  %v2482_v42 = vadd.f32 %v2481_v36, %v7060_v46  ;;  %v11989_v36 = vld [vmem:[#allocation140_spill] sm:$0xff] }
 0xa68   :  { %v4233_v15 = vmul.f32 -1.442695, %v2646_v9  ;;  %v2647_v37 = vadd.f32 %v2574_v38, %v2480_v10 }
 0xa6a   :  { %4942 = vpow2.f32 %v4233_v15  ;;  %v4234_v17 = vmul.f32 -1.442695, %v2647_v37 }
 0xa6c   :  { %4944 = vpow2.f32 %v4234_v17 }
 0xa77   :  { %v4943_v8 = vpop.eup %4942 }
 0xa78   :  { %v2654_v21 = vadd.f32 1.0, %v4943_v8 }
 0xa79   :  { %v4945_v60 = vpop.eup %4944 }
 0xa7a   :  { %4946 = vrcp.f32 %v2654_v21  ;;  %v2655_v31 = vadd.f32 1.0, %v4945_v60  ;;  %v11987_v21 = vld [vmem:[#allocation136_spill] sm:$0xff]  ;;  %v11988_v60 = vld [vmem:[#allocation138_spill] sm:$0xff] }
 0xa7c   :  { %4948 = vrcp.f32 %v2655_v31  ;;  %v11986_v31 = vld [vmem:[#allocation134_spill] sm:$0xff] }
 0xa83   :  { %v2642_v58 = vpop.f32.mrf.mxu1 }
 0xa84   :  { %v2643_v40 = vadd.f32 %v2642_v58, %v7063_v48  ;;  %v11990_v58 = vld [vmem:[#allocation142_spill] sm:$0xff] }
 0xa85   :  { %v4623_v34 = vpop.f32.mrf.mxu1 }
 0xa86   :  { %v11991_v34 = vld [vmem:[#allocation144_spill] sm:$0xff] }
 0xa87   :  { %v4947_v0 = vpop.eup %4946 }
 0xa88   :  { %v2660_v9 = vmul.f32 %v4947_v0, %v2482_v42  ;;  %v11992_v42 = vld [vmem:[#allocation146_spill] sm:$0xff]  ;;  %v11993_v0 = vld [vmem:[#allocation148_spill] sm:$0xff] }
 0xa89   :  { %v4949_v15 = vpop.eup %4948 }
 0xa8a   :  { %v2661_v54 = vadd.f32 %v2660_v9, %v2643_v40  ;;  %v2663_v38 = vsub.f32 1.0, %v4949_v15  ;;  %v2665_v17 = vmul.f32 %v4949_v15, %v8616_v53  ;;  %v11973_v53 = vld [vmem:[#allocation108_spill] sm:$0xff]  ;;  %v11994_v40 = vld [vmem:[#allocation150_spill] sm:$0xff] }
 0xa8b   :  { %v11995_v9 = vld [vmem:[#allocation152_spill] sm:$0xff] }
 0xa8c   :  { %4950 = vtanh.f32 %v2661_v54  ;;  %v11996_v54 = vld [vmem:[#allocation154_spill] sm:$0xff]  ;;  %v11997_v15 = vld [vmem:[#allocation156_spill] sm:$0xff] }
 0xa99   :  { %v4951_v10 = vpop.eup %4950 }
 0xa9a   :  { %v2664_v37 = vmul.f32 %v4951_v10, %v2663_v38  ;;  %v11998_v38 = vld [vmem:[#allocation158_spill] sm:$0xff]  ;;  %v11999_v10 = vld [vmem:[#allocation159_spill] sm:$0xff] }
 0xa9c   :  { %v9173_v8 = vadd.f32 %v2665_v17, %v2664_v37  ;;  %v12000_v37 = vld [vmem:[#allocation160_spill] sm:$0xff]  ;;  %v12001_v17 = vld [vmem:[#allocation33_spill] sm:$0xff] }
 0xa9e   :  { %2731 = vmatprep.mubr.f32.mxu0 %v9173_v8  ;;  %2802 = vmatprep.mubr.f32.mxu1 %v9173_v8 }
 0xa9f   :  { %2732 = vmatmul.mubr.f32.vlgmr.msra.gmra.mxu0 %v8980_v47  ;;  %2803 = vmatmul.mubr.f32.vlgmr.msra.gmra.mxu1 %v8980_v47 }
 0xaa0   :  { %2810 = vmatpush1.msra.mxu0 %v8622_v1  ;;  %2873 = vmatprep.mubr.f32.mxu0 %v9173_v8  ;;  %v11974_v1 = vld [vmem:[#allocation110_spill] sm:$0xff] }
 0xaa1   :  { %2811 = vmatprep.subr.mxu0 %v8626_v55  ;;  %2917 = vmatpush1.msra.mxu1 %v8629_v57  ;;  %v11975_v55 = vld [vmem:[#allocation112_spill] sm:$0xff]  ;;  %v11976_v57 = vld [vmem:[#allocation114_spill] sm:$0xff] }
 0xaa2   :  { %2812 = vmatpush1.msra.mxu0 %v8632_v2  ;;  %2918 = vmatprep.subr.mxu1 %v8635_v27  ;;  %v11977_v2 = vld [vmem:[#allocation116_spill] sm:$0xff]  ;;  %v11978_v27 = vld [vmem:[#allocation118_spill] sm:$0xff] }
 0xaa3   :  { %2813 = vmatprep.subr.mxu0 %v8638_v49  ;;  %2919 = vmatpush1.msra.mxu1 %v8641_v30  ;;  %v11979_v49 = vld [vmem:[#allocation120_spill] sm:$0xff]  ;;  %v11980_v30 = vld [vmem:[#allocation122_spill] sm:$0xff] }
 0xaa4   :  { %2814 = vmatpush1.msra.mxu0 %v8644_v7  ;;  %2920 = vmatprep.subr.mxu1 %v8647_v24  ;;  %v11981_v7 = vld [vmem:[#allocation124_spill] sm:$0xff]  ;;  %v11982_v24 = vld [vmem:[#allocation126_spill] sm:$0xff] }
 0xaa5   :  { %2815 = vmatprep.subr.mxu0 %v8650_v63  ;;  %2921 = vmatpush1.msra.mxu1 %v8653_v22  ;;  %v11983_v63 = vld [vmem:[#allocation128_spill] sm:$0xff]  ;;  %v11984_v22 = vld [vmem:[#allocation130_spill] sm:$0xff] }
 0xaa6   :  { %2816 = vmatpush1.msra.mxu0 %v8656_v59  ;;  %2922 = vmatprep.subr.mxu1 %v11973_v53  ;;  %v11985_v59 = vld [vmem:[#allocation132_spill] sm:$0xff]  ;;  %v12002_v53 = vld [vmem:[#allocation35_spill] sm:$0xff] }
 0xaa7   :  { %2817 = vmatprep.subr.mxu0 %v11974_v1  ;;  %2923 = vmatpush1.msra.mxu1 %v11975_v55  ;;  %v12003_v1 = vld [vmem:[#allocation37_spill] sm:$0xff]  ;;  %v12004_v55 = vld [vmem:[#allocation39_spill] sm:$0xff] }
 0xaa8   :  { %2818 = vmatpush1.msra.mxu0 %v11976_v57  ;;  %2924 = vmatprep.subr.mxu1 %v11977_v2  ;;  %v12005_v57 = vld [vmem:[#allocation41_spill] sm:$0xff]  ;;  %v12006_v2 = vld [vmem:[#allocation43_spill] sm:$0xff] }
 0xaa9   :  { %2819 = vmatprep.subr.mxu0 %v11978_v27  ;;  %2925 = vmatpush1.msra.mxu1 %v11979_v49  ;;  %v12007_v27 = vld [vmem:[#allocation45_spill] sm:$0xff]  ;;  %v12008_v49 = vld [vmem:[#allocation47_spill] sm:$0xff] }
 0xaaa   :  { %2820 = vmatpush1.msra.mxu0 %v11980_v30  ;;  %2926 = vmatprep.subr.mxu1 %v11981_v7  ;;  %v12009_v30 = vld [vmem:[#allocation49_spill] sm:$0xff]  ;;  %v12010_v7 = vld [vmem:[#allocation51_spill] sm:$0xff] }
 0xaab   :  { %2821 = vmatprep.subr.mxu0 %v11982_v24  ;;  %2927 = vmatpush1.msra.mxu1 %v11983_v63  ;;  %v12011_v24 = vld [vmem:[#allocation73_spill] sm:$0xff]  ;;  %v12012_v63 = vld [vmem:[#allocation164_spill] sm:$0xff] }
 0xaac   :  { %2822 = vmatpush1.msra.mxu0 %v11984_v22  ;;  %2928 = vmatprep.subr.mxu1 %v11985_v59  ;;  %v12013_v22 = vld [vmem:[#allocation165_spill] sm:$0xff]  ;;  %v12014_v59 = vld [vmem:[#allocation166_spill] sm:$0xff] }
 0xaad   :  { %2823 = vmatprep.subr.mxu0 %v11986_v31  ;;  %2929 = vmatpush1.msra.mxu1 %v11987_v21  ;;  %v12015_v31 = vld [vmem:[#allocation167_spill] sm:$0xff]  ;;  %v12016_v21 = vld [vmem:[#allocation168_spill] sm:$0xff] }
 0xaae   :  { %2824 = vmatpush1.msra.mxu0 %v11988_v60  ;;  %2930 = vmatprep.subr.mxu1 %v11989_v36  ;;  %v12017_v60 = vld [vmem:[#allocation169_spill] sm:$0xff] }
 0xaaf   :  { %2825 = vmatprep.subr.mxu0 %v11990_v58  ;;  %2931 = vmatpush1.msra.mxu1 %v11991_v34  ;;  %v12018_v36 = vld [vmem:[#allocation25_spill] sm:$0xff]  ;;  %v12019_v58 = vld [vmem:[#allocation170_spill] sm:$0xff]  ;;  %v12020_v34 = vld [vmem:[#allocation171_spill] sm:$0xff] }
 0xab0   :  { %2826 = vmatpush1.msra.mxu0 %v11992_v42  ;;  %2932 = vmatprep.subr.mxu1 %v11993_v0  ;;  %v12021_v42 = vld [vmem:[#allocation172_spill] sm:$0xff]  ;;  %v12022_v0 = vld [vmem:[#allocation173_spill] sm:$0xff] }
 0xab1   :  { %2827 = vmatprep.subr.mxu0 %v11994_v40  ;;  %2933 = vmatpush1.msra.mxu1 %v11995_v9  ;;  %v12023_v40 = vld [vmem:[#allocation174_spill] sm:$0xff]  ;;  %v12024_v9 = vld [vmem:[#allocation175_spill] sm:$0xff] }
 0xab2   :  { %2828 = vmatpush1.msra.mxu0 %v11996_v54  ;;  %2934 = vmatprep.subr.mxu1 %v11997_v15  ;;  %v12025_v54 = vld [vmem:[#allocation176_spill] sm:$0xff]  ;;  %v12026_v15 = vld [vmem:[#allocation177_spill] sm:$0xff] }
 0xab3   :  { %2829 = vmatprep.subr.mxu0 %v11998_v38  ;;  %2935 = vmatpush1.msra.mxu1 %v11999_v10  ;;  %v12027_v38 = vld [vmem:[#allocation178_spill] sm:$0xff]  ;;  %v12028_v10 = vld [vmem:[#allocation179_spill] sm:$0xff] }
 0xab4   :  { %2830 = vmatpush1.msra.mxu0 %v12000_v37  ;;  %2936 = vmatprep.subr.mxu1 %v12001_v17  ;;  %v12029_v37 = vld [vmem:[#allocation180_spill] sm:$0xff]  ;;  %v12030_v17 = vld [vmem:[#allocation181_spill] sm:$0xff] }
 0xab5   :  { %2831 = vmatprep.subr.mxu0 %v12002_v53  ;;  %2937 = vmatpush1.msra.mxu1 %v12003_v1  ;;  %v12031_v53 = vld [vmem:[#allocation27_spill] sm:$0xff]  ;;  %v12032_v1 = vld [vmem:[#allocation28_spill] sm:$0xff] }
 0xab6   :  { %2832 = vmatpush1.msra.mxu0 %v12004_v55  ;;  %2938 = vmatprep.subr.mxu1 %v12005_v57  ;;  %v12033_v55 = vld [vmem:[#allocation29_spill] sm:$0xff]  ;;  %v12034_v57 = vld [vmem:[#allocation30_spill] sm:$0xff] }
 0xab7   :  { %2833 = vmatprep.subr.mxu0 %v12006_v2  ;;  %2939 = vmatpush1.msra.mxu1 %v12007_v27  ;;  %v12035_v2 = vld [vmem:[#allocation32_spill] sm:$0xff]  ;;  %v12036_v27 = vld [vmem:[#allocation34_spill] sm:$0xff] }
 0xab8   :  { %2834 = vmatpush1.msra.mxu0 %v12008_v49  ;;  %2940 = vmatprep.subr.mxu1 %v12009_v30  ;;  %v12037_v49 = vld [vmem:[#allocation36_spill] sm:$0xff]  ;;  %v12038_v30 = vld [vmem:[#allocation38_spill] sm:$0xff] }
 0xab9   :  { %2835 = vmatprep.subr.mxu0 %v12010_v7  ;;  %2941 = vmatpush1.msra.mxu1 %v12011_v24  ;;  %v12039_v7 = vld [vmem:[#allocation40_spill] sm:$0xff]  ;;  %v12040_v24 = vld [vmem:[#allocation42_spill] sm:$0xff] }
 0xaba   :  { %2836 = vmatpush1.msra.mxu0 %v12012_v63  ;;  %2942 = vmatprep.subr.mxu1 %v12013_v22  ;;  %v12041_v63 = vld [vmem:[#allocation44_spill] sm:$0xff]  ;;  %v12042_v22 = vld [vmem:[#allocation46_spill] sm:$0xff] }
 0xabb   :  { %2837 = vmatprep.subr.mxu0 %v12014_v59  ;;  %2943 = vmatpush1.msra.mxu1 %v12015_v31  ;;  %v12043_v59 = vld [vmem:[#allocation48_spill] sm:$0xff]  ;;  %v12044_v31 = vld [vmem:[#allocation50_spill] sm:$0xff] }
 0xabc   :  { %2838 = vmatpush1.msra.mxu0 %v12016_v21  ;;  %2944 = vmatprep.subr.mxu1 %v12017_v60  ;;  %v12045_v21 = vld [vmem:[#allocation52_spill] sm:$0xff]  ;;  %v12046_v60 = vld [vmem:[#allocation53_spill] sm:$0xff] }
 0xabd   :  { %2839 = vmatprep.subr.mxu0 %v12018_v36  ;;  %2945 = vmatpush1.msra.mxu1 %v12019_v58  ;;  %v12047_v36 = vld [vmem:[#allocation54_spill] sm:$0xff]  ;;  %v12048_v58 = vld [vmem:[#allocation55_spill] sm:$0xff] }
 0xabe   :  { %2840 = vmatpush1.msra.mxu0 %v12020_v34  ;;  %2946 = vmatprep.subr.mxu1 %v12021_v42  ;;  %v9277_v34 = vld [vmem:[#allocation5 + $0x2d8] sm:$0xff]  ;;  %v9280_v42 = vld [vmem:[#allocation5 + $0x2d0] sm:$0xff] }
 0xabf   :  { %2841 = vmatprep.subr.mxu0 %v12022_v0  ;;  %2947 = vmatpush1.msra.mxu1 %v12023_v40  ;;  %v9301_v0 = vld [vmem:[#allocation5 + $0x218] sm:$0xff]  ;;  %v9304_v40 = vld [vmem:[#allocation5 + $0x210] sm:$0xff] }
 0xac0   :  { %2842 = vmatpush2.msra.mxu0 %v12024_v9  ;;  %2980 = vmatprep.mubr.f32.mxu1 %v11083_v62  ;;  %v9307_v9 = vld [vmem:[#allocation5 + $0x1e8] sm:$0xff] }
 0xac1   :  { %2843 = vmatprep.subr.mxu0 %v12025_v54  ;;  %4624 = vmatprep.subr.mxu1 %v11083_v62  ;;  %v9310_v54 = vld [vmem:[#allocation5 + $0x1e0] sm:$0xff] }
 0xac2   :  { %2844 = vmatpush2.msra.mxu0 %v12026_v15  ;;  %v9313_v15 = vld [vmem:[#allocation5 + $0x1b8] sm:$0xff] }
 0xac3   :  { %2845 = vmatprep.subr.mxu0 %v12027_v38  ;;  %v9316_v38 = vld [vmem:[#allocation5 + $0x1b0] sm:$0xff] }
 0xac4   :  { %2846 = vmatpush2.msra.mxu0 %v12028_v10  ;;  %v9319_v10 = vld [vmem:[#allocation5 + $0x188] sm:$0xff] }
 0xac5   :  { %2847 = vmatprep.subr.mxu0 %v12029_v37  ;;  %v9322_v37 = vld [vmem:[#allocation5 + $0x180] sm:$0xff] }
 0xac6   :  { %2848 = vmatpush2.msra.mxu0 %v12030_v17  ;;  %v9325_v17 = vld [vmem:[#allocation5 + $0x158] sm:$0xff] }
 0xac7   :  { %2849 = vmatprep.subr.mxu0 %v12031_v53  ;;  %v9328_v53 = vld [vmem:[#allocation5 + $0x150] sm:$0xff] }
 0xac8   :  { %2850 = vmatpush2.msra.mxu0 %v12032_v1  ;;  %v9331_v1 = vld [vmem:[#allocation5 + $0x128] sm:$0xff] }
 0xac9   :  { %2851 = vmatprep.subr.mxu0 %v12033_v55  ;;  %v9334_v55 = vld [vmem:[#allocation5 + $0x120] sm:$0xff] }
 0xaca   :  { %2852 = vmatpush2.msra.mxu0 %v12034_v57  ;;  %v9337_v57 = vld [vmem:[#allocation5 + $0xf8] sm:$0xff] }
 0xacb   :  { %2853 = vmatprep.subr.mxu0 %v12035_v2  ;;  %12049 = vst [vmem:[#allocation80_spill] sm:$0xff] %v9337_v57  ;;  %v9340_v2 = vld [vmem:[#allocation5 + $0xf0] sm:$0xff] }
 0xacc   :  { %2854 = vmatpush2.msra.mxu0 %v12036_v27  ;;  %12050 = vst [vmem:[#allocation113_spill] sm:$0xff] %v9340_v2  ;;  %v9343_v27 = vld [vmem:[#allocation5 + $0xc8] sm:$0xff] }
 0xacd   :  { %2855 = vmatprep.subr.mxu0 %v12037_v49  ;;  %12051 = vst [vmem:[#allocation81_spill] sm:$0xff] %v9343_v27  ;;  %v9346_v49 = vld [vmem:[#allocation5 + $0xc0] sm:$0xff] }
 0xace   :  { %2856 = vmatpush2.msra.mxu0 %v12038_v30  ;;  %12052 = vst [vmem:[#allocation115_spill] sm:$0xff] %v9346_v49  ;;  %v9349_v30 = vld [vmem:[#allocation5 + $0x98] sm:$0xff] }
 0xacf   :  { %2857 = vmatprep.subr.mxu0 %v12039_v7  ;;  %12053 = vst [vmem:[#allocation82_spill] sm:$0xff] %v9349_v30  ;;  %v9352_v7 = vld [vmem:[#allocation5 + $0x90] sm:$0xff] }
 0xad0   :  { %2858 = vmatpush2.msra.mxu0 %v12040_v24  ;;  %12054 = vst [vmem:[#allocation117_spill] sm:$0xff] %v9352_v7  ;;  %v9355_v24 = vld [vmem:[#allocation5 + $0x68] sm:$0xff] }
 0xad1   :  { %2859 = vmatprep.subr.mxu0 %v12041_v63  ;;  %12055 = vst [vmem:[#allocation83_spill] sm:$0xff] %v9355_v24  ;;  %v9358_v63 = vld [vmem:[#allocation5 + $0x60] sm:$0xff] }
 0xad2   :  { %2860 = vmatpush2.msra.mxu0 %v12042_v22  ;;  %12056 = vst [vmem:[#allocation119_spill] sm:$0xff] %v9358_v63  ;;  %v9361_v22 = vld [vmem:[#allocation5 + $0x38] sm:$0xff] }
 0xad3   :  { %2861 = vmatprep.subr.mxu0 %v12043_v59  ;;  %12057 = vst [vmem:[#allocation84_spill] sm:$0xff] %v9361_v22  ;;  %v9364_v59 = vld [vmem:[#allocation5 + $0x30] sm:$0xff] }
 0xad4   :  { %2862 = vmatpush2.msra.mxu0 %v12044_v31  ;;  %12058 = vst [vmem:[#allocation121_spill] sm:$0xff] %v9364_v59  ;;  %v9367_v31 = vld [vmem:[#allocation5 + $0x8] sm:$0xff] }
 0xad5   :  { %2863 = vmatprep.subr.mxu0 %v12045_v21  ;;  %12059 = vst [vmem:[#allocation85_spill] sm:$0xff] %v9367_v31  ;;  %v9370_v21 = vld [vmem:[#allocation5] sm:$0xff] }
 0xad6   :  { %2864 = vmatpush2.msra.mxu0 %v12046_v60  ;;  %12060 = vst [vmem:[#allocation123_spill] sm:$0xff] %v9370_v21  ;;  %v9373_v60 = vld [vmem:[#allocation5 + $0x5d8] sm:$0xff] }
 0xad7   :  { %2865 = vmatprep.subr.mxu0 %v12047_v36  ;;  %12061 = vst [vmem:[#allocation86_spill] sm:$0xff] %v9373_v60  ;;  %v9376_v36 = vld [vmem:[#allocation5 + $0x5d0] sm:$0xff] }
 0xad8   :  { %2866 = vmatpush2.msra.mxu0 %v12048_v58  ;;  %12062 = vst [vmem:[#allocation125_spill] sm:$0xff] %v9376_v36  ;;  %v9379_v58 = vld [vmem:[#allocation5 + $0x5a8] sm:$0xff] }
 0xad9   :  { %2867 = vmatprep.subr.mxu0 %v8889_v41  ;;  %v9283_v41 = vld [vmem:[#allocation5 + $0x2a8] sm:$0xff]  ;;  %12063 = vst [vmem:[#allocation87_spill] sm:$0xff] %v9379_v58 }
 0xada   :  { %2868 = vmatpush2.msra.mxu0 %v8892_v61  ;;  %v9286_v61 = vld [vmem:[#allocation5 + $0x2a0] sm:$0xff] }
 0xadb   :  { %2869 = vmatprep.subr.mxu0 %v8895_v13  ;;  %v9289_v13 = vld [vmem:[#allocation5 + $0x278] sm:$0xff] }
 0xadc   :  { %2870 = vmatpush2.msra.mxu0 %v8898_v4  ;;  %v9292_v4 = vld [vmem:[#allocation5 + $0x270] sm:$0xff] }
 0xadd   :  { %2871 = vmatprep.subr.mxu0 %v8901_v28  ;;  %v9295_v28 = vld [vmem:[#allocation5 + $0x248] sm:$0xff] }
 0xade   :  { %2872 = vmatpush2.msra.mxu0 %v8904_v39  ;;  %v9298_v39 = vld [vmem:[#allocation5 + $0x240] sm:$0xff] }
 0xadf   :  { %2874 = vmatmul.mubr.f32.vlgmr.msra.gmra.mxu0 %v8980_v47  ;;  %3082 = vmatprep.subr.mxu0 %v9277_v34 }
 0xae0   :  { %3083 = vmatpush1.msra.mxu0 %v9280_v42 }
 0xae1   :  { %3084 = vmatprep.subr.mxu0 %v9283_v41 }
 0xae2   :  { %3085 = vmatpush1.msra.mxu0 %v9286_v61 }
 0xae3   :  { %3086 = vmatprep.subr.mxu0 %v9289_v13 }
 0xae4   :  { %3087 = vmatpush1.msra.mxu0 %v9292_v4 }
 0xae5   :  { %3088 = vmatprep.subr.mxu0 %v9295_v28 }
 0xae6   :  { %3089 = vmatpush1.msra.mxu0 %v9298_v39 }
 0xae7   :  { %3090 = vmatprep.subr.mxu0 %v9301_v0 }
 0xae8   :  { %3091 = vmatpush1.msra.mxu0 %v9304_v40 }
 0xae9   :  { %3092 = vmatprep.subr.mxu0 %v9307_v9 }
 0xaea   :  { %3093 = vmatpush1.msra.mxu0 %v9310_v54 }
 0xaeb   :  { %3094 = vmatprep.subr.mxu0 %v9313_v15 }
 0xaec   :  { %3095 = vmatpush1.msra.mxu0 %v9316_v38 }
 0xaed   :  { %3096 = vmatprep.subr.mxu0 %v9319_v10 }
 0xaee   :  { %3097 = vmatpush1.msra.mxu0 %v9322_v37 }
 0xaef   :  { %3098 = vmatprep.subr.mxu0 %v9325_v17 }
 0xaf0   :  { %3099 = vmatpush1.msra.mxu0 %v9328_v53 }
 0xaf1   :  { %3100 = vmatprep.subr.mxu0 %v9331_v1 }
 0xaf2   :  { %3101 = vmatpush1.msra.mxu0 %v9334_v55 }
 0xaf3   :  { %3102 = vmatprep.subr.mxu0 %v9337_v57 }
 0xaf4   :  { %3103 = vmatpush1.msra.mxu0 %v9340_v2 }
 0xaf5   :  { %3104 = vmatprep.subr.mxu0 %v9343_v27 }
 0xaf6   :  { %3105 = vmatpush1.msra.mxu0 %v9346_v49 }
 0xaf7   :  { %3106 = vmatprep.subr.mxu0 %v9349_v30 }
 0xaf8   :  { %3107 = vmatpush1.msra.mxu0 %v9352_v7 }
 0xaf9   :  { %3108 = vmatprep.subr.mxu0 %v9355_v24 }
 0xafa   :  { %3109 = vmatpush1.msra.mxu0 %v9358_v63 }
 0xafb   :  { %3110 = vmatprep.subr.mxu0 %v9361_v22 }
 0xafc   :  { %3111 = vmatpush1.msra.mxu0 %v9364_v59  ;;  %v9382_v59 = vld [vmem:[#allocation5 + $0x5a0] sm:$0xff] }
 0xafd   :  { %3112 = vmatprep.subr.mxu0 %v9367_v31  ;;  %12064 = vst [vmem:[#allocation127_spill] sm:$0xff] %v9382_v59  ;;  %v9385_v31 = vld [vmem:[#allocation5 + $0x578] sm:$0xff] }
 0xafe   :  { %3113 = vmatpush1.msra.mxu0 %v9370_v21  ;;  %12065 = vst [vmem:[#allocation88_spill] sm:$0xff] %v9385_v31  ;;  %v9388_v21 = vld [vmem:[#allocation5 + $0x570] sm:$0xff] }
 0xaff   :  { %3114 = vmatprep.subr.mxu0 %v9373_v60  ;;  %12066 = vst [vmem:[#allocation129_spill] sm:$0xff] %v9388_v21  ;;  %v9391_v60 = vld [vmem:[#allocation5 + $0x548] sm:$0xff] }
 0xb00   :  { %3115 = vmatpush2.msra.mxu0 %v9376_v36  ;;  %12067 = vst [vmem:[#allocation89_spill] sm:$0xff] %v9391_v60  ;;  %v9394_v36 = vld [vmem:[#allocation5 + $0x540] sm:$0xff] }
 0xb01   :  { %3116 = vmatprep.subr.mxu0 %v9379_v58  ;;  %12068 = vst [vmem:[#allocation131_spill] sm:$0xff] %v9394_v36  ;;  %v9397_v58 = vld [vmem:[#allocation5 + $0x518] sm:$0xff] }
 0xb02   :  { %3117 = vmatpush2.msra.mxu0 %v9382_v59  ;;  %12069 = vst [vmem:[#allocation90_spill] sm:$0xff] %v9397_v58  ;;  %v9400_v59 = vld [vmem:[#allocation5 + $0x510] sm:$0xff] }
 0xb03   :  { %3118 = vmatprep.subr.mxu0 %v9385_v31  ;;  %12070 = vst [vmem:[#allocation133_spill] sm:$0xff] %v9400_v59  ;;  %v9403_v31 = vld [vmem:[#allocation5 + $0x4e8] sm:$0xff] }
 0xb04   :  { %3119 = vmatpush2.msra.mxu0 %v9388_v21  ;;  %12071 = vst [vmem:[#allocation91_spill] sm:$0xff] %v9403_v31  ;;  %v9406_v21 = vld [vmem:[#allocation5 + $0x4e0] sm:$0xff] }
 0xb05   :  { %3120 = vmatprep.subr.mxu0 %v9391_v60  ;;  %12072 = vst [vmem:[#allocation135_spill] sm:$0xff] %v9406_v21  ;;  %v9409_v60 = vld [vmem:[#allocation5 + $0x4b8] sm:$0xff] }
 0xb06   :  { %3121 = vmatpush2.msra.mxu0 %v9394_v36  ;;  %12073 = vst [vmem:[#allocation92_spill] sm:$0xff] %v9409_v60  ;;  %v9412_v36 = vld [vmem:[#allocation5 + $0x4b0] sm:$0xff] }
 0xb07   :  { %3122 = vmatprep.subr.mxu0 %v9397_v58  ;;  %12074 = vst [vmem:[#allocation137_spill] sm:$0xff] %v9412_v36  ;;  %v9415_v58 = vld [vmem:[#allocation5 + $0x488] sm:$0xff] }
 0xb08   :  { %3123 = vmatpush2.msra.mxu0 %v9400_v59  ;;  %12075 = vst [vmem:[#allocation93_spill] sm:$0xff] %v9415_v58  ;;  %v9418_v59 = vld [vmem:[#allocation5 + $0x480] sm:$0xff] }
 0xb09   :  { %3124 = vmatprep.subr.mxu0 %v9403_v31  ;;  %12076 = vst [vmem:[#allocation139_spill] sm:$0xff] %v9418_v59  ;;  %v9421_v31 = vld [vmem:[#allocation5 + $0x458] sm:$0xff] }
 0xb0a   :  { %3125 = vmatpush2.msra.mxu0 %v9406_v21  ;;  %12077 = vst [vmem:[#allocation161_spill] sm:$0xff] %v9421_v31  ;;  %v9424_v21 = vld [vmem:[#allocation5 + $0x450] sm:$0xff] }
 0xb0b   :  { %3126 = vmatprep.subr.mxu0 %v9409_v60  ;;  %12078 = vst [vmem:[#allocation162_spill] sm:$0xff] %v9424_v21  ;;  %v9427_v60 = vld [vmem:[#allocation5 + $0x428] sm:$0xff] }
 0xb0c   :  { %3127 = vmatpush2.msra.mxu0 %v9412_v36  ;;  %12079 = vst [vmem:[#allocation163_spill] sm:$0xff] %v9427_v60  ;;  %v9430_v36 = vld [vmem:[#allocation5 + $0x420] sm:$0xff] }
 0xb0d   :  { %3128 = vmatprep.subr.mxu0 %v9415_v58  ;;  %12080 = vst [vmem:[#allocation94_spill] sm:$0xff] %v9430_v36  ;;  %v9433_v58 = vld [vmem:[#allocation5 + $0x3f8] sm:$0xff] }
 0xb0e   :  { %3129 = vmatpush2.msra.mxu0 %v9418_v59  ;;  %12081 = vst [vmem:[#allocation141_spill] sm:$0xff] %v9433_v58  ;;  %v9436_v59 = vld [vmem:[#allocation5 + $0x3f0] sm:$0xff] }
 0xb0f   :  { %3130 = vmatprep.subr.mxu0 %v9421_v31  ;;  %12082 = vst [vmem:[#allocation95_spill] sm:$0xff] %v9436_v59  ;;  %v9439_v31 = vld [vmem:[#allocation5 + $0x3c8] sm:$0xff] }
 0xb10   :  { %3131 = vmatpush2.msra.mxu0 %v9424_v21  ;;  %12083 = vst [vmem:[#allocation143_spill] sm:$0xff] %v9439_v31  ;;  %v9442_v21 = vld [vmem:[#allocation5 + $0x3c0] sm:$0xff] }
 0xb11   :  { %3132 = vmatprep.subr.mxu0 %v9427_v60  ;;  %12084 = vst [vmem:[#allocation96_spill] sm:$0xff] %v9442_v21  ;;  %v9445_v60 = vld [vmem:[#allocation5 + $0x398] sm:$0xff] }
 0xb12   :  { %3133 = vmatpush2.msra.mxu0 %v9430_v36  ;;  %12085 = vst [vmem:[#allocation145_spill] sm:$0xff] %v9445_v60  ;;  %v9448_v36 = vld [vmem:[#allocation5 + $0x390] sm:$0xff] }
 0xb13   :  { %3134 = vmatprep.subr.mxu0 %v9433_v58  ;;  %12086 = vst [vmem:[#allocation97_spill] sm:$0xff] %v9448_v36  ;;  %v9451_v58 = vld [vmem:[#allocation5 + $0x368] sm:$0xff] }
 0xb14   :  { %3135 = vmatpush2.msra.mxu0 %v9436_v59  ;;  %12087 = vst [vmem:[#allocation147_spill] sm:$0xff] %v9451_v58  ;;  %v9454_v59 = vld [vmem:[#allocation5 + $0x360] sm:$0xff] }
 0xb15   :  { %3136 = vmatprep.subr.mxu0 %v9439_v31  ;;  %12088 = vst [vmem:[#allocation98_spill] sm:$0xff] %v9454_v59  ;;  %v9457_v31 = vld [vmem:[#allocation5 + $0x338] sm:$0xff] }
 0xb16   :  { %3137 = vmatpush2.msra.mxu0 %v9442_v21  ;;  %12089 = vst [vmem:[#allocation149_spill] sm:$0xff] %v9457_v31  ;;  %v9460_v21 = vld [vmem:[#allocation5 + $0x330] sm:$0xff] }
 0xb17   :  { %3138 = vmatprep.subr.mxu0 %v9445_v60  ;;  %12090 = vst [vmem:[#allocation99_spill] sm:$0xff] %v9460_v21  ;;  %v9463_v60 = vld [vmem:[#allocation5 + $0x308] sm:$0xff] }
 0xb18   :  { %3139 = vmatpush2.msra.mxu0 %v9448_v36  ;;  %12091 = vst [vmem:[#allocation151_spill] sm:$0xff] %v9463_v60  ;;  %v9466_v36 = vld [vmem:[#allocation5 + $0x300] sm:$0xff] }
 0xb19   :  { %3140 = vmatprep.subr.mxu0 %v9451_v58  ;;  %12092 = vst [vmem:[#allocation100_spill] sm:$0xff] %v9466_v36  ;;  %v9469_v58 = vld [vmem:[#allocation5 + $0x2f8] sm:$0xff] }
 0xb1a   :  { %3141 = vmatpush2.msra.mxu0 %v9454_v59  ;;  %12093 = vst [vmem:[#allocation153_spill] sm:$0xff] %v9469_v58 }
 0xb1b   :  { %3142 = vmatprep.subr.mxu0 %v9457_v31 }
 0xb1c   :  { %3143 = vmatpush2.msra.mxu0 %v9460_v21 }
 0xb1d   :  { %3144 = vmatprep.subr.mxu0 %v9463_v60 }
 0xb1e   :  { %3145 = vmatpush2.msra.mxu0 %v9466_v36 }
 0xb1f   :  { %3224 = vmatprep.subr.mxu0 %v9469_v58 }
 0xb5f   :  { %v2733_v59 = vpop.f32.mrf.mxu0  ;;  %v2804_v58 = vpop.f32.mrf.mxu1 }
 0xb60   :  { %v2734_v22 = vadd.f32 %v2733_v59, %v11919_v52  ;;  %v2805_v59 = vadd.f32 %v2804_v58, %v6847_v32  ;;  %v12107_v58 = vld [vmem:[#allocation69_spill] sm:$0xff] }
 0xb61   :  { %v2735_v31 = vpop.f32.mrf.mxu0 }
 0xb62   :  { %v2882_v63 = vrot.slane %v2734_v22, 6  ;;  %v2736_v24 = vadd.f32 %v2735_v31, %v6835_v51  ;;  %v2901_v22 = vrot.slane %v2805_v59, 6  ;;  %v12108_v59 = vld [vmem:[#allocation70_spill] sm:$0xff] }
 0xb64   :  { %v2886_v21 = vadd.f32 %v2882_v63, %v11920_v50  ;;  %v2883_v30 = vrot.slane %v2736_v24, 6 }
 0xb66   :  { %v4235_v7 = vmul.f32 -1.442695, %v2886_v21  ;;  %v2887_v60 = vadd.f32 %v2883_v30, %v11921_v43  ;;  %v2909_v30 = vrot.slane %v8980_v47, 6  ;;  %v12095_v47 = vld [vmem:[#allocation57_spill] sm:$0xff] }
 0xb68   :  { %4952 = vpow2.f32 %v4235_v7  ;;  %v4236_v49 = vmul.f32 -1.442695, %v2887_v60 }
 0xb6a   :  { %4954 = vpow2.f32 %v4236_v49 }
 0xb75   :  { %v4953_v36 = vpop.eup %4952 }
 0xb76   :  { %v2894_v27 = vadd.f32 1.0, %v4953_v36 }
 0xb77   :  { %v4955_v2 = vpop.eup %4954 }
 0xb78   :  { %4956 = vrcp.f32 %v2894_v27  ;;  %v2895_v52 = vadd.f32 1.0, %v4955_v2  ;;  %v12106_v2 = vld [vmem:[#allocation68_spill] sm:$0xff] }
 0xb7a   :  { %4958 = vrcp.f32 %v2895_v52  ;;  %v12094_v52 = vld [vmem:[#allocation56_spill] sm:$0xff] }
 0xb85   :  { %v4957_v57 = vpop.eup %4956 }
 0xb86   :  { %v2903_v31 = vmul.f32 %v4957_v57, %v2901_v22  ;;  %v12105_v57 = vld [vmem:[#allocation67_spill] sm:$0xff] }
 0xb87   :  { %v4959_v7 = vpop.eup %4958  ;;  %v12109_v22 = vld [vmem:[#allocation71_spill] sm:$0xff] }
 0xb88   :  { %v2904_v63 = vadd.f32 %v2903_v31, %v11922_v6  ;;  %v2906_v24 = vsub.f32 1.0, %v4959_v7  ;;  %v2911_v60 = vmul.f32 %v4959_v7, %v2909_v30  ;;  %v12110_v31 = vld [vmem:[#allocation72_spill] sm:$0xff]  ;;  %v12112_v7 = vld [vmem:[#allocation74_spill] sm:$0xff] }
 0xb89   :  { %v12114_v30 = vld [vmem:[#allocation76_spill] sm:$0xff] }
 0xb8a   :  { %4960 = vtanh.f32 %v2904_v63  ;;  %v12111_v63 = vld [vmem:[#allocation103_spill] sm:$0xff] }
 0xb97   :  { %v4961_v49 = vpop.eup %4960 }
 0xb98   :  { %v2907_v21 = vmul.f32 %v4961_v49, %v2906_v24  ;;  %v12113_v24 = vld [vmem:[#allocation75_spill] sm:$0xff]  ;;  %v12115_v49 = vld [vmem:[#allocation106_spill] sm:$0xff] }
 0xb9a   :  { %v9479_v27 = vadd.f32 %v2911_v60, %v2907_v21  ;;  %v12116_v21 = vld [vmem:[#allocation77_spill] sm:$0xff]  ;;  %v12117_v60 = vld [vmem:[#allocation78_spill] sm:$0xff] }
 0xb9c   :  { %v9482_v36 = vrot.slane %v9479_v27, 2 }
 0xb9e   :  { %2981 = vmatmul.mubr.f32.vlgmr.msra.gmra.mxu1 %v9482_v36 }
 0xb9f   :  { %4625 = vmatpush3.msra.mxu1 %v8983_v12  ;;  %4656 = vmatprep.mubr.msk.f32.mxu1 %vm5986_vm1, %v11083_v62  ;;  %v12096_v12 = vld [vmem:[#allocation58_spill] sm:$0xff] }
 0xba0   :  { %4626 = vmatprep.subr.mxu1 %v11083_v62 }
 0xba1   :  { %4627 = vmatpush3.msra.mxu1 %v8989_v16  ;;  %v12097_v16 = vld [vmem:[#allocation59_spill] sm:$0xff] }
 0xba2   :  { %4628 = vmatprep.subr.mxu1 %v11083_v62 }
 0xba3   :  { %4629 = vmatpush3.msra.mxu1 %v8993_v20  ;;  %v12098_v20 = vld [vmem:[#allocation60_spill] sm:$0xff] }
 0xba4   :  { %4630 = vmatprep.subr.mxu1 %v11083_v62 }
 0xba5   :  { %4631 = vmatpush3.msra.mxu1 %v8997_v35  ;;  %v12099_v35 = vld [vmem:[#allocation61_spill] sm:$0xff] }
 0xba6   :  { %4632 = vmatprep.subr.mxu1 %v11083_v62 }
 0xba7   :  { %4633 = vmatpush3.msra.mxu1 %v9001_v14  ;;  %v12100_v14 = vld [vmem:[#allocation62_spill] sm:$0xff] }
 0xba8   :  { %4634 = vmatprep.subr.mxu1 %v11083_v62 }
 0xba9   :  { %4635 = vmatpush3.msra.mxu1 %v9005_v44  ;;  %v12101_v44 = vld [vmem:[#allocation63_spill] sm:$0xff] }
 0xbaa   :  { %4636 = vmatprep.subr.mxu1 %v11083_v62 }
 0xbab   :  { %4637 = vmatpush3.msra.mxu1 %v9009_v25  ;;  %v12102_v25 = vld [vmem:[#allocation64_spill] sm:$0xff] }
 0xbac   :  { %4638 = vmatprep.subr.mxu1 %v11083_v62 }
 0xbad   :  { %4639 = vmatpush3.msra.mxu1 %v9013_v3  ;;  %v12103_v3 = vld [vmem:[#allocation65_spill] sm:$0xff] }
 0xbae   :  { %4640 = vmatprep.subr.mxu1 %v11083_v62 }
 0xbaf   :  { %4641 = vmatpush3.msra.mxu1 %v9017_v23  ;;  %v12104_v23 = vld [vmem:[#allocation66_spill] sm:$0xff] }
 0xbb0   :  { %4642 = vmatprep.subr.mxu1 %v11083_v62 }
 0xbb1   :  { %4643 = vmatpush3.msra.mxu1 %v12094_v52  ;;  %v12118_v52 = vld [vmem:[#allocation109_spill] sm:$0xff] }
 0xbb2   :  { %4644 = vmatprep.subr.mxu1 %v11083_v62 }
 0xbb3   :  { %4645 = vmatpush3.msra.mxu1 %v12095_v47  ;;  %v12119_v47 = vld [vmem:[#allocation79_spill] sm:$0xff] }
 0xbb4   :  { %4646 = vmatprep.subr.mxu1 %v11083_v62 }
 0xbb5   :  { %4647 = vmatpush3.msra.mxu1 %v12096_v12  ;;  %v12120_v12 = vld [vmem:[#allocation111_spill] sm:$0xff] }
 0xbb6   :  { %4648 = vmatprep.subr.mxu1 %v11083_v62 }
 0xbb7   :  { %4649 = vmatpush3.msra.mxu1 %v12097_v16  ;;  %v9545_v16 = vld [vmem:[#allocation5 + $0x78] sm:$0xff] }
 0xbb8   :  { %4650 = vmatprep.subr.mxu1 %v11083_v62 }
 0xbb9   :  { %4651 = vmatpush3.msra.mxu1 %v12098_v20  ;;  %v9548_v20 = vld [vmem:[#allocation5 + $0x70] sm:$0xff] }
 0xbba   :  { %4652 = vmatprep.subr.mxu1 %v11083_v62 }
 0xbbb   :  { %4653 = vmatpush3.msra.mxu1 %v12099_v35  ;;  %v9551_v35 = vld [vmem:[#allocation5 + $0x48] sm:$0xff] }
 0xbbc   :  { %4654 = vmatprep.subr.mxu1 %v11083_v62 }
 0xbbd   :  { %4655 = vmatpush3.msra.mxu1 %v12100_v14  ;;  %v9572_v14 = vld [vmem:[#allocation5 + $0x5b0] sm:$0xff] }
 0xbbe   :  { %4657 = vmatmul.mubr.f32.vlgmr.msra.gmra.mxu1 %v9482_v36  ;;  %3153 = vmatprep.subr.mxu1 %v12101_v44  ;;  %v9575_v44 = vld [vmem:[#allocation5 + $0x588] sm:$0xff] }
 0xbbf   :  { %3154 = vmatpush1.msra.mxu1 %v12102_v25  ;;  %v9578_v25 = vld [vmem:[#allocation5 + $0x580] sm:$0xff] }
 0xbc0   :  { %3155 = vmatprep.subr.mxu1 %v12103_v3  ;;  %v9581_v3 = vld [vmem:[#allocation5 + $0x558] sm:$0xff] }
 0xbc1   :  { %3156 = vmatpush1.msra.mxu1 %v12104_v23  ;;  %v9584_v23 = vld [vmem:[#allocation5 + $0x550] sm:$0xff] }
 0xbc2   :  { %3157 = vmatprep.subr.mxu1 %v12105_v57  ;;  %12121 = vst [vmem:[#allocation101_spill] sm:$0xff] %v9584_v23  ;;  %v9587_v57 = vld [vmem:[#allocation5 + $0x528] sm:$0xff] }
 0xbc3   :  { %3158 = vmatpush1.msra.mxu1 %v12106_v2  ;;  %12122 = vst [vmem:[#allocation155_spill] sm:$0xff] %v9587_v57  ;;  %v9590_v2 = vld [vmem:[#allocation5 + $0x520] sm:$0xff] }
 0xbc4   :  { %3159 = vmatprep.subr.mxu1 %v12107_v58  ;;  %12123 = vst [vmem:[#allocation102_spill] sm:$0xff] %v9590_v2  ;;  %v9593_v58 = vld [vmem:[#allocation5 + $0x4f8] sm:$0xff] }
 0xbc5   :  { %3160 = vmatpush1.msra.mxu1 %v12108_v59  ;;  %12124 = vst [vmem:[#allocation157_spill] sm:$0xff] %v9593_v58  ;;  %v9596_v59 = vld [vmem:[#allocation5 + $0x4f0] sm:$0xff] }
 0xbc6   :  { %3161 = vmatprep.subr.mxu1 %v12109_v22  ;;  %12125 = vst [vmem:[#allocation104_spill] sm:$0xff] %v9596_v59  ;;  %v9599_v22 = vld [vmem:[#allocation5 + $0x4c8] sm:$0xff] }
 0xbc7   :  { %3162 = vmatpush1.msra.mxu1 %v12110_v31  ;;  %12126 = vst [vmem:[#allocation105_spill] sm:$0xff] %v9599_v22  ;;  %v9602_v31 = vld [vmem:[#allocation5 + $0x4c0] sm:$0xff] }
 0xbc8   :  { %3163 = vmatprep.subr.mxu1 %v12111_v63  ;;  %12127 = vst [vmem:[#allocation107_spill] sm:$0xff] %v9602_v31  ;;  %v9605_v63 = vld [vmem:[#allocation5 + $0x498] sm:$0xff] }
 0xbc9   :  { %3164 = vmatpush1.msra.mxu1 %v12112_v7  ;;  %12128 = vst [vmem:[#allocation108_spill] sm:$0xff] %v9605_v63  ;;  %v9608_v7 = vld [vmem:[#allocation5 + $0x490] sm:$0xff] }
 0xbca   :  { %3165 = vmatprep.subr.mxu1 %v12113_v24  ;;  %12129 = vst [vmem:[#allocation110_spill] sm:$0xff] %v9608_v7  ;;  %v9611_v24 = vld [vmem:[#allocation5 + $0x468] sm:$0xff] }
 0xbcb   :  { %3166 = vmatpush1.msra.mxu1 %v12114_v30  ;;  %12130 = vst [vmem:[#allocation112_spill] sm:$0xff] %v9611_v24  ;;  %v9614_v30 = vld [vmem:[#allocation5 + $0x460] sm:$0xff] }
 0xbcc   :  { %3167 = vmatprep.subr.mxu1 %v12115_v49  ;;  %12131 = vst [vmem:[#allocation114_spill] sm:$0xff] %v9614_v30  ;;  %v9617_v49 = vld [vmem:[#allocation5 + $0x438] sm:$0xff] }
 0xbcd   :  { %3168 = vmatpush1.msra.mxu1 %v12116_v21  ;;  %12132 = vst [vmem:[#allocation116_spill] sm:$0xff] %v9617_v49  ;;  %v9620_v21 = vld [vmem:[#allocation5 + $0x430] sm:$0xff] }
 0xbce   :  { %3169 = vmatprep.subr.mxu1 %v12117_v60  ;;  %12133 = vst [vmem:[#allocation118_spill] sm:$0xff] %v9620_v21  ;;  %v9623_v60 = vld [vmem:[#allocation5 + $0x408] sm:$0xff] }
 0xbcf   :  { %3170 = vmatpush1.msra.mxu1 %v12118_v52  ;;  %12134 = vst [vmem:[#allocation120_spill] sm:$0xff] %v9623_v60  ;;  %v9626_v52 = vld [vmem:[#allocation5 + $0x400] sm:$0xff] }
 0xbd0   :  { %3171 = vmatprep.subr.mxu1 %v12119_v47  ;;  %12135 = vst [vmem:[#allocation122_spill] sm:$0xff] %v9626_v52  ;;  %v9629_v47 = vld [vmem:[#allocation5 + $0x3d8] sm:$0xff] }
 0xbd1   :  { %3172 = vmatpush1.msra.mxu1 %v12120_v12  ;;  %12136 = vst [vmem:[#allocation124_spill] sm:$0xff] %v9629_v47  ;;  %v9632_v12 = vld [vmem:[#allocation5 + $0x3d0] sm:$0xff] }
 0xbd2   :  { %3173 = vmatprep.subr.mxu1 %v9109_v18  ;;  %v9554_v18 = vld [vmem:[#allocation5 + $0x40] sm:$0xff]  ;;  %12137 = vst [vmem:[#allocation126_spill] sm:$0xff] %v9632_v12 }
 0xbd3   :  { %3174 = vmatpush1.msra.mxu1 %v9112_v45  ;;  %v9569_v45 = vld [vmem:[#allocation5 + $0x5b8] sm:$0xff] }
 0xbd4   :  { %3175 = vmatprep.subr.mxu1 %v9115_v56  ;;  %v9557_v56 = vld [vmem:[#allocation5 + $0x18] sm:$0xff] }
 0xbd5   :  { %3176 = vmatpush1.msra.mxu1 %v9118_v5  ;;  %v9563_v5 = vld [vmem:[#allocation5 + $0x5e8] sm:$0xff] }
 0xbd6   :  { %3177 = vmatprep.subr.mxu1 %v9121_v11  ;;  %v9566_v11 = vld [vmem:[#allocation5 + $0x5e0] sm:$0xff] }
 0xbd7   :  { %3178 = vmatpush1.msra.mxu1 %v9124_v33  ;;  %v9560_v33 = vld [vmem:[#allocation5 + $0x10] sm:$0xff] }
 0xbd8   :  { %3179 = vmatprep.subr.mxu1 %v9545_v16 }
 0xbd9   :  { %3180 = vmatpush1.msra.mxu1 %v9548_v20 }
 0xbda   :  { %3181 = vmatprep.subr.mxu1 %v9551_v35 }
 0xbdb   :  { %3182 = vmatpush1.msra.mxu1 %v9554_v18 }
 0xbdc   :  { %3183 = vmatprep.subr.mxu1 %v9557_v56 }
 0xbdd   :  { %3184 = vmatpush1.msra.mxu1 %v9560_v33 }
 0xbde   :  { %3185 = vmatprep.subr.mxu1 %v9563_v5 }
 0xbdf   :  { %3186 = vmatpush2.msra.mxu1 %v9566_v11 }
 0xbe0   :  { %3187 = vmatprep.subr.mxu1 %v9569_v45 }
 0xbe1   :  { %3188 = vmatpush2.msra.mxu1 %v9572_v14 }
 0xbe2   :  { %3189 = vmatprep.subr.mxu1 %v9575_v44 }
 0xbe3   :  { %3190 = vmatpush2.msra.mxu1 %v9578_v25 }
 0xbe4   :  { %3191 = vmatprep.subr.mxu1 %v9581_v3 }
 0xbe5   :  { %3192 = vmatpush2.msra.mxu1 %v9584_v23 }
 0xbe6   :  { %3193 = vmatprep.subr.mxu1 %v9587_v57 }
 0xbe7   :  { %3194 = vmatpush2.msra.mxu1 %v9590_v2 }
 0xbe8   :  { %3195 = vmatprep.subr.mxu1 %v9593_v58 }
 0xbe9   :  { %3196 = vmatpush2.msra.mxu1 %v9596_v59 }
 0xbea   :  { %3197 = vmatprep.subr.mxu1 %v9599_v22 }
 0xbeb   :  { %3198 = vmatpush2.msra.mxu1 %v9602_v31  ;;  %v2875_v31 = vpop.f32.mrf.mxu0 }
 0xbec   :  { %3199 = vmatprep.subr.mxu1 %v9605_v63  ;;  %v2876_v59 = vadd.f32 %v2875_v31, %v11972_v19 }
 0xbed   :  { %3200 = vmatpush2.msra.mxu1 %v9608_v7  ;;  %v2877_v23 = vpop.f32.mrf.mxu0 }
 0xbee   :  { %3201 = vmatprep.subr.mxu1 %v9611_v24  ;;  %v12147_v24 = vld [vmem:[#allocation24_spill] sm:$0xff] }
 0xbef   :  { %3202 = vmatpush2.msra.mxu1 %v9614_v30 }
 0xbf0   :  { %3203 = vmatprep.subr.mxu1 %v9617_v49  ;;  %v9635_v49 = vld [vmem:[#allocation5 + $0x3a8] sm:$0xff] }
 0xbf1   :  { %3204 = vmatpush2.msra.mxu1 %v9620_v21  ;;  %12138 = vst [vmem:[#allocation128_spill] sm:$0xff] %v9635_v49  ;;  %v9638_v21 = vld [vmem:[#allocation5 + $0x3a0] sm:$0xff] }
 0xbf2   :  { %3205 = vmatprep.subr.mxu1 %v9623_v60  ;;  %12139 = vst [vmem:[#allocation130_spill] sm:$0xff] %v9638_v21  ;;  %v9641_v60 = vld [vmem:[#allocation5 + $0x378] sm:$0xff] }
 0xbf3   :  { %3206 = vmatpush2.msra.mxu1 %v9626_v52  ;;  %12140 = vst [vmem:[#allocation132_spill] sm:$0xff] %v9641_v60  ;;  %v9644_v52 = vld [vmem:[#allocation5 + $0x370] sm:$0xff] }
 0xbf4   :  { %3207 = vmatprep.subr.mxu1 %v9629_v47  ;;  %12141 = vst [vmem:[#allocation134_spill] sm:$0xff] %v9644_v52  ;;  %v9647_v47 = vld [vmem:[#allocation5 + $0x348] sm:$0xff] }
 0xbf5   :  { %3208 = vmatpush2.msra.mxu1 %v9632_v12  ;;  %12142 = vst [vmem:[#allocation136_spill] sm:$0xff] %v9647_v47  ;;  %v9650_v12 = vld [vmem:[#allocation5 + $0x340] sm:$0xff] }
 0xbf6   :  { %3209 = vmatprep.subr.mxu1 %v9635_v49  ;;  %12143 = vst [vmem:[#allocation138_spill] sm:$0xff] %v9650_v12  ;;  %v9653_v49 = vld [vmem:[#allocation5 + $0x318] sm:$0xff] }
 0xbf7   :  { %3210 = vmatpush2.msra.mxu1 %v9638_v21  ;;  %12144 = vst [vmem:[#allocation140_spill] sm:$0xff] %v9653_v49  ;;  %v9656_v21 = vld [vmem:[#allocation5 + $0x310] sm:$0xff] }
 0xbf8   :  { %3211 = vmatprep.subr.mxu1 %v9641_v60  ;;  %12145 = vst [vmem:[#allocation142_spill] sm:$0xff] %v9656_v21  ;;  %v9659_v60 = vld [vmem:[#allocation7 + $0x170] sm:$0xff] }
 0xbf9   :  { %3212 = vmatpush2.msra.mxu1 %v9644_v52  ;;  %12146 = vst [vmem:[#allocation144_spill] sm:$0xff] %v9659_v60  ;;  %v2806_v52 = vpop.f32.mrf.mxu1 }
 0xbfa   :  { %3213 = vmatprep.subr.mxu1 %v9647_v47  ;;  %v2807_v47 = vadd.f32 %v2806_v52, %v12147_v24 }
 0xbfb   :  { %3214 = vmatpush2.msra.mxu1 %v9650_v12 }
 0xbfc   :  { %3215 = vmatprep.subr.mxu1 %v9653_v49 }
 0xbfd   :  { %3216 = vmatpush2.msra.mxu1 %v9656_v21 }
 0xbfe   :  { %3330 = vmatprep.subr.mxu1 %v9659_v60 }
 0xc5e   :  { %v2982_v30 = vpop.f32.mrf.mxu1 }
 0xc5f   :  { %v2983_v7 = vadd.f32 %v2982_v30, %v11438_v26 }
 0xc60   :  { %v2984_v63 = vpop.f32.mrf.mxu1 }
 0xc61   :  { %v3057_v12 = vadd.f32 %v2983_v7, %v2807_v47  ;;  %v2985_v49 = vadd.f32 %v2984_v63, %v7052_v29  ;;  %v2878_v7 = vadd.f32 %v2877_v23, %v7060_v46  ;;  %v9675_v23 = vld [vmem:[#allocation5 + $0x2f0] sm:$0xff] }
 0xc63   :  { %v4237_v22 = vmul.f32 -1.442695, %v3057_v12  ;;  %v3058_v21 = vadd.f32 %v2985_v49, %v2876_v59 }
 0xc65   :  { %4962 = vpow2.f32 %v4237_v22  ;;  %v4238_v58 = vmul.f32 -1.442695, %v3058_v21 }
 0xc67   :  { %4964 = vpow2.f32 %v4238_v58 }
 0xc72   :  { %v4963_v2 = vpop.eup %4962 }
 0xc73   :  { %v3065_v60 = vadd.f32 1.0, %v4963_v2 }
 0xc74   :  { %v4965_v57 = vpop.eup %4964 }
 0xc75   :  { %4966 = vrcp.f32 %v3065_v60  ;;  %v3066_v24 = vadd.f32 1.0, %v4965_v57  ;;  %v9679_v57 = vld [vmem:[#allocation5 + $0x2c8] sm:$0xff] }
 0xc77   :  { %4968 = vrcp.f32 %v3066_v24  ;;  %v9685_v24 = vld [vmem:[#allocation5 + $0x2c0] sm:$0xff] }
 0xc7e   :  { %v3053_v52 = vpop.f32.mrf.mxu1 }
 0xc7f   :  { %v3054_v63 = vadd.f32 %v3053_v52, %v7063_v48  ;;  %v9688_v52 = vld [vmem:[#allocation7 + $0x158] sm:$0xff] }
 0xc80   :  { %v4658_v30 = vpop.f32.mrf.mxu1 }
 0xc81   :  { %v9691_v30 = vld [vmem:[#allocation5 + $0x298] sm:$0xff] }
 0xc82   :  { %v4967_v47 = vpop.eup %4966 }
 0xc83   :  { %v3071_v12 = vmul.f32 %v4967_v47, %v2878_v7  ;;  %v9694_v7 = vld [vmem:[#allocation7 + $0x150] sm:$0xff] }
 0xc84   :  { %v4969_v59 = vpop.eup %4968  ;;  %v9697_v47 = vld [vmem:[#allocation5 + $0x290] sm:$0xff] }
 0xc85   :  { %v3072_v31 = vadd.f32 %v3071_v12, %v3054_v63  ;;  %v3074_v22 = vsub.f32 1.0, %v4969_v59  ;;  %v3076_v2 = vmul.f32 %v4969_v59, %v9173_v8  ;;  %v9682_v8 = vld [vmem:[#allocation7 + $0x168] sm:$0xff]  ;;  %v9700_v63 = vld [vmem:[#allocation7 + $0x140] sm:$0xff] }
 0xc86   :  { %v9703_v12 = vld [vmem:[#allocation5 + $0x268] sm:$0xff]  ;;  %v9709_v59 = vld [vmem:[#allocation5 + $0x260] sm:$0xff] }
 0xc87   :  { %4970 = vtanh.f32 %v3072_v31  ;;  %v9706_v31 = vld [vmem:[#allocation7 + $0x138] sm:$0xff] }
 0xc94   :  { %v4971_v58 = vpop.eup %4970 }
 0xc95   :  { %v3075_v49 = vmul.f32 %v4971_v58, %v3074_v22  ;;  %v9712_v22 = vld [vmem:[#allocation7 + $0x128] sm:$0xff]  ;;  %v9715_v58 = vld [vmem:[#allocation5 + $0x238] sm:$0xff] }
 0xc96   :  { %12148 = vst [vmem:[#allocation146_spill] sm:$0xff] %v9712_v22  ;;  %12149 = vst [vmem:[#allocation148_spill] sm:$0xff] %v9715_v58 }
 0xc97   :  { %v3077_v21 = vadd.f32 %v3076_v2, %v3075_v49  ;;  %v9718_v49 = vld [vmem:[#allocation7 + $0x120] sm:$0xff]  ;;  %v9721_v2 = vld [vmem:[#allocation5 + $0x230] sm:$0xff] }
 0xc98   :  { %12150 = vst [vmem:[#allocation150_spill] sm:$0xff] %v9718_v49  ;;  %12151 = vst [vmem:[#allocation152_spill] sm:$0xff] %v9721_v2 }
 0xc99   :  { %v3079_v60 = vrot.slane %v3077_v21, 6  ;;  %v9724_v21 = vld [vmem:[#allocation7 + $0x110] sm:$0xff] }
 0xc9a   :  { %12152 = vst [vmem:[#allocation154_spill] sm:$0xff] %v9724_v21 }
 0xc9b   :  { %v9669_v19 = vrot.slane %v3079_v60, 2  ;;  %v9727_v60 = vld [vmem:[#allocation5 + $0x208] sm:$0xff] }
 0xc9c   :  { %12153 = vst [vmem:[#allocation156_spill] sm:$0xff] %v9727_v60 }
 0xc9d   :  { %3146 = vmatprep.mubr.f32.mxu0 %v9669_v19  ;;  %3217 = vmatprep.mubr.f32.mxu1 %v9669_v19 }
 0xc9e   :  { %3147 = vmatmul.mubr.f32.vlgmr.msra.gmra.mxu0 %v9482_v36  ;;  %3218 = vmatmul.mubr.f32.vlgmr.msra.gmra.mxu1 %v9482_v36 }
 0xc9f   :  { %3225 = vmatpush1.msra.mxu0 %v9675_v23  ;;  %3288 = vmatprep.mubr.f32.mxu0 %v9669_v19 }
 0xca0   :  { %3226 = vmatprep.subr.mxu0 %v9679_v57  ;;  %3331 = vmatpush1.msra.mxu1 %v9682_v8 }
 0xca1   :  { %3227 = vmatpush1.msra.mxu0 %v9685_v24  ;;  %3332 = vmatprep.subr.mxu1 %v9688_v52 }
 0xca2   :  { %3228 = vmatprep.subr.mxu0 %v9691_v30  ;;  %3333 = vmatpush1.msra.mxu1 %v9694_v7 }
 0xca3   :  { %3229 = vmatpush1.msra.mxu0 %v9697_v47  ;;  %3334 = vmatprep.subr.mxu1 %v9700_v63 }
 0xca4   :  { %3230 = vmatprep.subr.mxu0 %v9703_v12  ;;  %3335 = vmatpush1.msra.mxu1 %v9706_v31 }
 0xca5   :  { %3231 = vmatpush1.msra.mxu0 %v9709_v59  ;;  %3336 = vmatprep.subr.mxu1 %v9712_v22  ;;  %v9730_v22 = vld [vmem:[#allocation7 + $0x108] sm:$0xff] }
 0xca6   :  { %3232 = vmatprep.subr.mxu0 %v9715_v58  ;;  %3337 = vmatpush1.msra.mxu1 %v9718_v49  ;;  %12154 = vst [vmem:[#allocation158_spill] sm:$0xff] %v9730_v22  ;;  %v9733_v58 = vld [vmem:[#allocation5 + $0x200] sm:$0xff]  ;;  %v9736_v49 = vld [vmem:[#allocation7 + $0xf8] sm:$0xff] }
 0xca7   :  { %3233 = vmatpush1.msra.mxu0 %v9721_v2  ;;  %3338 = vmatprep.subr.mxu1 %v9724_v21  ;;  %12155 = vst [vmem:[#allocation159_spill] sm:$0xff] %v9733_v58  ;;  %12156 = vst [vmem:[#allocation160_spill] sm:$0xff] %v9736_v49  ;;  %v9739_v2 = vld [vmem:[#allocation5 + $0x1d8] sm:$0xff]  ;;  %v9742_v21 = vld [vmem:[#allocation7 + $0xf0] sm:$0xff] }
 0xca8   :  { %3234 = vmatprep.subr.mxu0 %v9727_v60  ;;  %3339 = vmatpush1.msra.mxu1 %v9730_v22  ;;  %12157 = vst [vmem:[#allocation33_spill] sm:$0xff] %v9739_v2  ;;  %12158 = vst [vmem:[#allocation35_spill] sm:$0xff] %v9742_v21  ;;  %v9745_v60 = vld [vmem:[#allocation5 + $0x1d0] sm:$0xff]  ;;  %v9748_v22 = vld [vmem:[#allocation7 + $0xe0] sm:$0xff] }
 0xca9   :  { %3235 = vmatpush1.msra.mxu0 %v9733_v58  ;;  %3340 = vmatprep.subr.mxu1 %v9736_v49  ;;  %12159 = vst [vmem:[#allocation37_spill] sm:$0xff] %v9745_v60  ;;  %12160 = vst [vmem:[#allocation39_spill] sm:$0xff] %v9748_v22  ;;  %v9751_v58 = vld [vmem:[#allocation5 + $0x1a8] sm:$0xff]  ;;  %v9754_v49 = vld [vmem:[#allocation7 + $0xd8] sm:$0xff] }
 0xcaa   :  { %3236 = vmatprep.subr.mxu0 %v9739_v2  ;;  %3341 = vmatpush1.msra.mxu1 %v9742_v21  ;;  %12161 = vst [vmem:[#allocation41_spill] sm:$0xff] %v9751_v58  ;;  %12162 = vst [vmem:[#allocation43_spill] sm:$0xff] %v9754_v49  ;;  %v9757_v2 = vld [vmem:[#allocation5 + $0x1a0] sm:$0xff]  ;;  %v9760_v21 = vld [vmem:[#allocation7 + $0xc8] sm:$0xff] }
 0xcab   :  { %3237 = vmatpush1.msra.mxu0 %v9745_v60  ;;  %3342 = vmatprep.subr.mxu1 %v9748_v22  ;;  %12163 = vst [vmem:[#allocation45_spill] sm:$0xff] %v9757_v2  ;;  %12164 = vst [vmem:[#allocation47_spill] sm:$0xff] %v9760_v21  ;;  %v9763_v60 = vld [vmem:[#allocation5 + $0x178] sm:$0xff]  ;;  %v9766_v22 = vld [vmem:[#allocation7 + $0xc0] sm:$0xff] }
 0xcac   :  { %3238 = vmatprep.subr.mxu0 %v9751_v58  ;;  %3343 = vmatpush1.msra.mxu1 %v9754_v49  ;;  %12165 = vst [vmem:[#allocation49_spill] sm:$0xff] %v9763_v60  ;;  %12166 = vst [vmem:[#allocation51_spill] sm:$0xff] %v9766_v22  ;;  %v9769_v58 = vld [vmem:[#allocation5 + $0x170] sm:$0xff] }
 0xcad   :  { %3239 = vmatpush1.msra.mxu0 %v9757_v2  ;;  %3344 = vmatprep.subr.mxu1 %v9760_v21  ;;  %12167 = vst [vmem:[#allocation73_spill] sm:$0xff] %v9769_v58  ;;  %v9772_v49 = vld [vmem:[#allocation7 + $0xb0] sm:$0xff]  ;;  %v9775_v2 = vld [vmem:[#allocation5 + $0x148] sm:$0xff] }
 0xcae   :  { %3240 = vmatprep.subr.mxu0 %v9763_v60  ;;  %3345 = vmatpush1.msra.mxu1 %v9766_v22  ;;  %12168 = vst [vmem:[#allocation164_spill] sm:$0xff] %v9772_v49  ;;  %12169 = vst [vmem:[#allocation165_spill] sm:$0xff] %v9775_v2  ;;  %v9778_v21 = vld [vmem:[#allocation7 + $0xa8] sm:$0xff]  ;;  %v9781_v60 = vld [vmem:[#allocation5 + $0x140] sm:$0xff] }
 0xcaf   :  { %3241 = vmatpush1.msra.mxu0 %v9769_v58  ;;  %3346 = vmatprep.subr.mxu1 %v9772_v49  ;;  %12170 = vst [vmem:[#allocation166_spill] sm:$0xff] %v9778_v21  ;;  %12171 = vst [vmem:[#allocation167_spill] sm:$0xff] %v9781_v60  ;;  %v9784_v22 = vld [vmem:[#allocation7 + $0x98] sm:$0xff]  ;;  %v9790_v49 = vld [vmem:[#allocation7 + $0x90] sm:$0xff] }
 0xcb0   :  { %3242 = vmatprep.subr.mxu0 %v9775_v2  ;;  %3347 = vmatpush1.msra.mxu1 %v9778_v21  ;;  %12172 = vst [vmem:[#allocation168_spill] sm:$0xff] %v9784_v22  ;;  %v9787_v58 = vld [vmem:[#allocation5 + $0x118] sm:$0xff]  ;;  %12174 = vst [vmem:[#allocation25_spill] sm:$0xff] %v9790_v49  ;;  %v9793_v2 = vld [vmem:[#allocation5 + $0x110] sm:$0xff] }
 0xcb1   :  { %3243 = vmatpush1.msra.mxu0 %v9781_v60  ;;  %3348 = vmatprep.subr.mxu1 %v9784_v22  ;;  %12173 = vst [vmem:[#allocation169_spill] sm:$0xff] %v9787_v58  ;;  %12175 = vst [vmem:[#allocation170_spill] sm:$0xff] %v9793_v2  ;;  %v9796_v21 = vld [vmem:[#allocation7 + $0x80] sm:$0xff]  ;;  %v9799_v60 = vld [vmem:[#allocation5 + $0xe8] sm:$0xff] }
 0xcb2   :  { %3244 = vmatprep.subr.mxu0 %v9787_v58  ;;  %3349 = vmatpush1.msra.mxu1 %v9790_v49  ;;  %12176 = vst [vmem:[#allocation171_spill] sm:$0xff] %v9796_v21  ;;  %12177 = vst [vmem:[#allocation172_spill] sm:$0xff] %v9799_v60  ;;  %v9802_v22 = vld [vmem:[#allocation7 + $0x78] sm:$0xff]  ;;  %v9805_v58 = vld [vmem:[#allocation5 + $0xe0] sm:$0xff] }
 0xcb3   :  { %3245 = vmatpush1.msra.mxu0 %v9793_v2  ;;  %3350 = vmatprep.subr.mxu1 %v9796_v21  ;;  %12178 = vst [vmem:[#allocation173_spill] sm:$0xff] %v9802_v22  ;;  %12179 = vst [vmem:[#allocation174_spill] sm:$0xff] %v9805_v58  ;;  %v9808_v49 = vld [vmem:[#allocation7 + $0x68] sm:$0xff]  ;;  %v9811_v2 = vld [vmem:[#allocation5 + $0xb8] sm:$0xff] }
 0xcb4   :  { %3246 = vmatprep.subr.mxu0 %v9799_v60  ;;  %3351 = vmatpush1.msra.mxu1 %v9802_v22  ;;  %12180 = vst [vmem:[#allocation175_spill] sm:$0xff] %v9808_v49  ;;  %12181 = vst [vmem:[#allocation176_spill] sm:$0xff] %v9811_v2  ;;  %v9814_v21 = vld [vmem:[#allocation7 + $0x60] sm:$0xff]  ;;  %v9817_v60 = vld [vmem:[#allocation5 + $0xb0] sm:$0xff] }
 0xcb5   :  { %3247 = vmatpush1.msra.mxu0 %v9805_v58  ;;  %3352 = vmatprep.subr.mxu1 %v9808_v49  ;;  %12182 = vst [vmem:[#allocation177_spill] sm:$0xff] %v9814_v21  ;;  %12183 = vst [vmem:[#allocation178_spill] sm:$0xff] %v9817_v60  ;;  %v9820_v22 = vld [vmem:[#allocation7 + $0x50] sm:$0xff]  ;;  %v9823_v58 = vld [vmem:[#allocation5 + $0x88] sm:$0xff] }
 0xcb6   :  { %3248 = vmatprep.subr.mxu0 %v9811_v2  ;;  %3353 = vmatpush1.msra.mxu1 %v9814_v21  ;;  %12184 = vst [vmem:[#allocation179_spill] sm:$0xff] %v9820_v22  ;;  %12185 = vst [vmem:[#allocation180_spill] sm:$0xff] %v9823_v58  ;;  %v9826_v49 = vld [vmem:[#allocation7 + $0x48] sm:$0xff]  ;;  %v9829_v2 = vld [vmem:[#allocation5 + $0x80] sm:$0xff] }
 0xcb7   :  { %3249 = vmatpush1.msra.mxu0 %v9817_v60  ;;  %3354 = vmatprep.subr.mxu1 %v9820_v22  ;;  %12186 = vst [vmem:[#allocation181_spill] sm:$0xff] %v9826_v49  ;;  %12187 = vst [vmem:[#allocation27_spill] sm:$0xff] %v9829_v2  ;;  %v9832_v21 = vld [vmem:[#allocation7 + $0x38] sm:$0xff]  ;;  %v9838_v22 = vld [vmem:[#allocation7 + $0x30] sm:$0xff] }
 0xcb8   :  { %3250 = vmatprep.subr.mxu0 %v9823_v58  ;;  %3355 = vmatpush1.msra.mxu1 %v9826_v49  ;;  %12188 = vst [vmem:[#allocation28_spill] sm:$0xff] %v9832_v21  ;;  %v9835_v60 = vld [vmem:[#allocation5 + $0x58] sm:$0xff]  ;;  %12190 = vst [vmem:[#allocation30_spill] sm:$0xff] %v9838_v22  ;;  %v9841_v58 = vld [vmem:[#allocation5 + $0x50] sm:$0xff] }
 0xcb9   :  { %3251 = vmatpush1.msra.mxu0 %v9829_v2  ;;  %3356 = vmatprep.subr.mxu1 %v9832_v21  ;;  %12189 = vst [vmem:[#allocation29_spill] sm:$0xff] %v9835_v60  ;;  %12191 = vst [vmem:[#allocation32_spill] sm:$0xff] %v9841_v58  ;;  %v9844_v49 = vld [vmem:[#allocation7 + $0x20] sm:$0xff]  ;;  %v9847_v2 = vld [vmem:[#allocation5 + $0x28] sm:$0xff] }
 0xcba   :  { %3252 = vmatprep.subr.mxu0 %v9835_v60  ;;  %3357 = vmatpush1.msra.mxu1 %v9838_v22  ;;  %12192 = vst [vmem:[#allocation34_spill] sm:$0xff] %v9844_v49  ;;  %12193 = vst [vmem:[#allocation36_spill] sm:$0xff] %v9847_v2  ;;  %v9850_v21 = vld [vmem:[#allocation7 + $0x18] sm:$0xff]  ;;  %v9853_v60 = vld [vmem:[#allocation5 + $0x20] sm:$0xff] }
 0xcbb   :  { %3253 = vmatpush1.msra.mxu0 %v9841_v58  ;;  %3358 = vmatprep.subr.mxu1 %v9844_v49  ;;  %12194 = vst [vmem:[#allocation38_spill] sm:$0xff] %v9850_v21  ;;  %12195 = vst [vmem:[#allocation40_spill] sm:$0xff] %v9853_v60  ;;  %v9856_v22 = vld [vmem:[#allocation7 + $0x8] sm:$0xff]  ;;  %v9859_v58 = vld [vmem:[#allocation5 + $0x5f8] sm:$0xff] }
 0xcbc   :  { %3254 = vmatprep.subr.mxu0 %v9847_v2  ;;  %3359 = vmatpush1.msra.mxu1 %v9850_v21  ;;  %12196 = vst [vmem:[#allocation42_spill] sm:$0xff] %v9856_v22  ;;  %12197 = vst [vmem:[#allocation44_spill] sm:$0xff] %v9859_v58  ;;  %v9862_v49 = vld [vmem:[#allocation7] sm:$0xff]  ;;  %v9865_v2 = vld [vmem:[#allocation5 + $0x5f0] sm:$0xff] }
 0xcbd   :  { %3255 = vmatpush1.msra.mxu0 %v9853_v60  ;;  %3360 = vmatprep.subr.mxu1 %v9856_v22  ;;  %12198 = vst [vmem:[#allocation46_spill] sm:$0xff] %v9862_v49  ;;  %12199 = vst [vmem:[#allocation48_spill] sm:$0xff] %v9865_v2  ;;  %v9869_v21 = vld [vmem:[#allocation5 + $0x5c8] sm:$0xff]  ;;  %v9873_v22 = vld [vmem:[#allocation5 + $0x5c0] sm:$0xff] }
 0xcbe   :  { %3256 = vmatprep.subr.mxu0 %v9859_v58  ;;  %3361 = vmatpush1.msra.mxu1 %v9862_v49  ;;  %12200 = vst [vmem:[#allocation50_spill] sm:$0xff] %v9869_v21  ;;  %12201 = vst [vmem:[#allocation52_spill] sm:$0xff] %v9873_v22  ;;  %v9876_v58 = vld [vmem:[#allocation5 + $0x598] sm:$0xff]  ;;  %v9879_v49 = vld [vmem:[#allocation5 + $0x590] sm:$0xff] }
 0xcbf   :  { %3257 = vmatpush2.msra.mxu0 %v9865_v2  ;;  %3394 = vmatprep.mubr.f32.mxu1 %v11083_v62  ;;  %12202 = vst [vmem:[#allocation53_spill] sm:$0xff] %v9876_v58  ;;  %12203 = vst [vmem:[#allocation54_spill] sm:$0xff] %v9879_v49  ;;  %v9882_v2 = vld [vmem:[#allocation5 + $0x568] sm:$0xff]  ;;  %v9885_v60 = vld [vmem:[#allocation5 + $0x560] sm:$0xff] }
 0xcc0   :  { %3258 = vmatprep.subr.mxu0 %v9869_v21  ;;  %4659 = vmatprep.subr.mxu1 %v11083_v62  ;;  %12204 = vst [vmem:[#allocation55_spill] sm:$0xff] %v9882_v2  ;;  %12205 = vst [vmem:[#allocation56_spill] sm:$0xff] %v9885_v60  ;;  %v9888_v21 = vld [vmem:[#allocation5 + $0x538] sm:$0xff] }
 0xcc1   :  { %3259 = vmatpush2.msra.mxu0 %v9873_v22  ;;  %12206 = vst [vmem:[#allocation57_spill] sm:$0xff] %v9888_v21  ;;  %v9891_v22 = vld [vmem:[#allocation5 + $0x530] sm:$0xff] }
 0xcc2   :  { %3260 = vmatprep.subr.mxu0 %v9876_v58  ;;  %12207 = vst [vmem:[#allocation58_spill] sm:$0xff] %v9891_v22  ;;  %v9894_v58 = vld [vmem:[#allocation5 + $0x508] sm:$0xff] }
 0xcc3   :  { %3261 = vmatpush2.msra.mxu0 %v9879_v49  ;;  %12208 = vst [vmem:[#allocation59_spill] sm:$0xff] %v9894_v58  ;;  %v9897_v49 = vld [vmem:[#allocation5 + $0x500] sm:$0xff] }
 0xcc4   :  { %3262 = vmatprep.subr.mxu0 %v9882_v2  ;;  %12209 = vst [vmem:[#allocation60_spill] sm:$0xff] %v9897_v49  ;;  %v9900_v2 = vld [vmem:[#allocation5 + $0x4d8] sm:$0xff] }
 0xcc5   :  { %3263 = vmatpush2.msra.mxu0 %v9885_v60  ;;  %12210 = vst [vmem:[#allocation61_spill] sm:$0xff] %v9900_v2  ;;  %v9903_v60 = vld [vmem:[#allocation5 + $0x4d0] sm:$0xff] }
 0xcc6   :  { %3264 = vmatprep.subr.mxu0 %v9888_v21  ;;  %12211 = vst [vmem:[#allocation62_spill] sm:$0xff] %v9903_v60  ;;  %v9906_v21 = vld [vmem:[#allocation5 + $0x4a8] sm:$0xff] }
 0xcc7   :  { %3265 = vmatpush2.msra.mxu0 %v9891_v22  ;;  %12212 = vst [vmem:[#allocation63_spill] sm:$0xff] %v9906_v21  ;;  %v9909_v22 = vld [vmem:[#allocation5 + $0x4a0] sm:$0xff] }
 0xcc8   :  { %3266 = vmatprep.subr.mxu0 %v9894_v58  ;;  %12213 = vst [vmem:[#allocation64_spill] sm:$0xff] %v9909_v22  ;;  %v9912_v58 = vld [vmem:[#allocation5 + $0x478] sm:$0xff] }
 0xcc9   :  { %3267 = vmatpush2.msra.mxu0 %v9897_v49  ;;  %12214 = vst [vmem:[#allocation65_spill] sm:$0xff] %v9912_v58  ;;  %v9915_v49 = vld [vmem:[#allocation5 + $0x470] sm:$0xff] }
 0xcca   :  { %3268 = vmatprep.subr.mxu0 %v9900_v2  ;;  %12215 = vst [vmem:[#allocation66_spill] sm:$0xff] %v9915_v49  ;;  %v9918_v2 = vld [vmem:[#allocation5 + $0x448] sm:$0xff] }
 0xccb   :  { %3269 = vmatpush2.msra.mxu0 %v9903_v60  ;;  %12216 = vst [vmem:[#allocation67_spill] sm:$0xff] %v9918_v2  ;;  %v9921_v60 = vld [vmem:[#allocation5 + $0x440] sm:$0xff] }
 0xccc   :  { %3270 = vmatprep.subr.mxu0 %v9906_v21  ;;  %12217 = vst [vmem:[#allocation68_spill] sm:$0xff] %v9921_v60  ;;  %v9924_v21 = vld [vmem:[#allocation5 + $0x418] sm:$0xff] }
 0xccd   :  { %3271 = vmatpush2.msra.mxu0 %v9909_v22  ;;  %12218 = vst [vmem:[#allocation69_spill] sm:$0xff] %v9924_v21  ;;  %v9927_v22 = vld [vmem:[#allocation5 + $0x410] sm:$0xff] }
 0xcce   :  { %3272 = vmatprep.subr.mxu0 %v9912_v58  ;;  %12219 = vst [vmem:[#allocation70_spill] sm:$0xff] %v9927_v22  ;;  %v9930_v58 = vld [vmem:[#allocation5 + $0x3e8] sm:$0xff] }
 0xccf   :  { %3273 = vmatpush2.msra.mxu0 %v9915_v49  ;;  %12220 = vst [vmem:[#allocation71_spill] sm:$0xff] %v9930_v58  ;;  %v9933_v49 = vld [vmem:[#allocation5 + $0x3e0] sm:$0xff] }
 0xcd0   :  { %3274 = vmatprep.subr.mxu0 %v9918_v2  ;;  %12221 = vst [vmem:[#allocation72_spill] sm:$0xff] %v9933_v49  ;;  %v9936_v2 = vld [vmem:[#allocation5 + $0x3b8] sm:$0xff] }
 0xcd1   :  { %3275 = vmatpush2.msra.mxu0 %v9921_v60  ;;  %12222 = vst [vmem:[#allocation103_spill] sm:$0xff] %v9936_v2  ;;  %v9939_v60 = vld [vmem:[#allocation5 + $0x3b0] sm:$0xff] }
 0xcd2   :  { %3276 = vmatprep.subr.mxu0 %v9924_v21  ;;  %12223 = vst [vmem:[#allocation74_spill] sm:$0xff] %v9939_v60  ;;  %v9942_v21 = vld [vmem:[#allocation5 + $0x388] sm:$0xff] }
 0xcd3   :  { %3277 = vmatpush2.msra.mxu0 %v9927_v22  ;;  %v9945_v22 = vld [vmem:[#allocation5 + $0x380] sm:$0xff] }
 0xcd4   :  { %3278 = vmatprep.subr.mxu0 %v9930_v58  ;;  %v9948_v58 = vld [vmem:[#allocation5 + $0x358] sm:$0xff] }
 0xcd5   :  { %3279 = vmatpush2.msra.mxu0 %v9933_v49  ;;  %v9951_v49 = vld [vmem:[#allocation5 + $0x350] sm:$0xff] }
 0xcd6   :  { %3280 = vmatprep.subr.mxu0 %v9936_v2  ;;  %v9954_v2 = vld [vmem:[#allocation5 + $0x328] sm:$0xff] }
 0xcd7   :  { %3281 = vmatpush2.msra.mxu0 %v9939_v60  ;;  %v9957_v60 = vld [vmem:[#allocation5 + $0x320] sm:$0xff] }
 0xcd8   :  { %3282 = vmatprep.subr.mxu0 %v9942_v21 }
 0xcd9   :  { %3283 = vmatpush2.msra.mxu0 %v9945_v22 }
 0xcda   :  { %3284 = vmatprep.subr.mxu0 %v9948_v58 }
 0xcdb   :  { %3285 = vmatpush2.msra.mxu0 %v9951_v49 }
 0xcdc   :  { %3286 = vmatprep.subr.mxu0 %v9954_v2 }
 0xcdd   :  { %3287 = vmatpush2.msra.mxu0 %v9957_v60 }
 0xcde   :  { %3289 = vmatmul.mubr.f32.vlgmr.msra.gmra.mxu0 %v9482_v36  ;;  %3496 = vmatprep.subr.mxu0 %v9277_v34  ;;  %v12224_v34 = vld [vmem:[#allocation80_spill] sm:$0xff]  ;;  %v12244_v36 = vld [vmem:[#allocation90_spill] sm:$0xff] }
 0xcdf   :  { %3497 = vmatpush1.msra.mxu0 %v9280_v42  ;;  %v12225_v42 = vld [vmem:[#allocation113_spill] sm:$0xff] }
 0xce0   :  { %3498 = vmatprep.subr.mxu0 %v9283_v41  ;;  %v12226_v41 = vld [vmem:[#allocation81_spill] sm:$0xff] }
 0xce1   :  { %3499 = vmatpush1.msra.mxu0 %v9286_v61  ;;  %v12227_v61 = vld [vmem:[#allocation115_spill] sm:$0xff] }
 0xce2   :  { %3500 = vmatprep.subr.mxu0 %v9289_v13  ;;  %v12228_v13 = vld [vmem:[#allocation82_spill] sm:$0xff] }
 0xce3   :  { %3501 = vmatpush1.msra.mxu0 %v9292_v4  ;;  %v12229_v4 = vld [vmem:[#allocation117_spill] sm:$0xff] }
 0xce4   :  { %3502 = vmatprep.subr.mxu0 %v9295_v28  ;;  %v12230_v28 = vld [vmem:[#allocation83_spill] sm:$0xff] }
 0xce5   :  { %3503 = vmatpush1.msra.mxu0 %v9298_v39  ;;  %v12231_v39 = vld [vmem:[#allocation119_spill] sm:$0xff] }
 0xce6   :  { %3504 = vmatprep.subr.mxu0 %v9301_v0  ;;  %v12232_v0 = vld [vmem:[#allocation84_spill] sm:$0xff] }
 0xce7   :  { %3505 = vmatpush1.msra.mxu0 %v9304_v40  ;;  %v12233_v40 = vld [vmem:[#allocation121_spill] sm:$0xff] }
 0xce8   :  { %3506 = vmatprep.subr.mxu0 %v9307_v9  ;;  %v12234_v9 = vld [vmem:[#allocation85_spill] sm:$0xff] }
 0xce9   :  { %3507 = vmatpush1.msra.mxu0 %v9310_v54  ;;  %v12235_v54 = vld [vmem:[#allocation123_spill] sm:$0xff] }
 0xcea   :  { %3508 = vmatprep.subr.mxu0 %v9313_v15  ;;  %v12236_v15 = vld [vmem:[#allocation86_spill] sm:$0xff] }
 0xceb   :  { %3509 = vmatpush1.msra.mxu0 %v9316_v38  ;;  %v12237_v38 = vld [vmem:[#allocation125_spill] sm:$0xff] }
 0xcec   :  { %3510 = vmatprep.subr.mxu0 %v9319_v10  ;;  %v12238_v10 = vld [vmem:[#allocation87_spill] sm:$0xff] }
 0xced   :  { %3511 = vmatpush1.msra.mxu0 %v9322_v37  ;;  %v12239_v37 = vld [vmem:[#allocation127_spill] sm:$0xff] }
 0xcee   :  { %3512 = vmatprep.subr.mxu0 %v9325_v17  ;;  %v12240_v17 = vld [vmem:[#allocation88_spill] sm:$0xff] }
 0xcef   :  { %3513 = vmatpush1.msra.mxu0 %v9328_v53  ;;  %v12241_v53 = vld [vmem:[#allocation129_spill] sm:$0xff] }
 0xcf0   :  { %3514 = vmatprep.subr.mxu0 %v9331_v1  ;;  %v12242_v1 = vld [vmem:[#allocation89_spill] sm:$0xff] }
 0xcf1   :  { %3515 = vmatpush1.msra.mxu0 %v9334_v55  ;;  %v12243_v55 = vld [vmem:[#allocation131_spill] sm:$0xff] }
 0xcf2   :  { %3516 = vmatprep.subr.mxu0 %v12224_v34  ;;  %v12245_v34 = vld [vmem:[#allocation133_spill] sm:$0xff] }
 0xcf3   :  { %3517 = vmatpush1.msra.mxu0 %v12225_v42  ;;  %v12246_v42 = vld [vmem:[#allocation91_spill] sm:$0xff] }
 0xcf4   :  { %3518 = vmatprep.subr.mxu0 %v12226_v41  ;;  %v12247_v41 = vld [vmem:[#allocation135_spill] sm:$0xff] }
 0xcf5   :  { %3519 = vmatpush1.msra.mxu0 %v12227_v61  ;;  %v12248_v61 = vld [vmem:[#allocation92_spill] sm:$0xff] }
 0xcf6   :  { %3520 = vmatprep.subr.mxu0 %v12228_v13  ;;  %v12249_v13 = vld [vmem:[#allocation137_spill] sm:$0xff] }
 0xcf7   :  { %3521 = vmatpush1.msra.mxu0 %v12229_v4  ;;  %v12250_v4 = vld [vmem:[#allocation93_spill] sm:$0xff] }
 0xcf8   :  { %3522 = vmatprep.subr.mxu0 %v12230_v28  ;;  %v12251_v28 = vld [vmem:[#allocation139_spill] sm:$0xff] }
 0xcf9   :  { %3523 = vmatpush1.msra.mxu0 %v12231_v39  ;;  %v12252_v39 = vld [vmem:[#allocation161_spill] sm:$0xff] }
 0xcfa   :  { %3524 = vmatprep.subr.mxu0 %v12232_v0  ;;  %v12253_v0 = vld [vmem:[#allocation162_spill] sm:$0xff] }
 0xcfb   :  { %3525 = vmatpush1.msra.mxu0 %v12233_v40  ;;  %v12254_v40 = vld [vmem:[#allocation163_spill] sm:$0xff] }
 0xcfc   :  { %3526 = vmatprep.subr.mxu0 %v12234_v9  ;;  %v12255_v9 = vld [vmem:[#allocation94_spill] sm:$0xff] }
 0xcfd   :  { %3527 = vmatpush1.msra.mxu0 %v12235_v54  ;;  %v12256_v54 = vld [vmem:[#allocation141_spill] sm:$0xff] }
 0xcfe   :  { %3528 = vmatprep.subr.mxu0 %v12236_v15  ;;  %v12257_v15 = vld [vmem:[#allocation95_spill] sm:$0xff] }
 0xcff   :  { %3529 = vmatpush2.msra.mxu0 %v12237_v38  ;;  %v12258_v38 = vld [vmem:[#allocation143_spill] sm:$0xff] }
 0xd00   :  { %3530 = vmatprep.subr.mxu0 %v12238_v10  ;;  %v12259_v10 = vld [vmem:[#allocation96_spill] sm:$0xff] }
 0xd01   :  { %3531 = vmatpush2.msra.mxu0 %v12239_v37  ;;  %v12260_v37 = vld [vmem:[#allocation145_spill] sm:$0xff] }
 0xd02   :  { %3532 = vmatprep.subr.mxu0 %v12240_v17  ;;  %v12261_v17 = vld [vmem:[#allocation97_spill] sm:$0xff] }
 0xd03   :  { %3533 = vmatpush2.msra.mxu0 %v12241_v53  ;;  %v12262_v53 = vld [vmem:[#allocation147_spill] sm:$0xff] }
 0xd04   :  { %3534 = vmatprep.subr.mxu0 %v12242_v1  ;;  %v12263_v1 = vld [vmem:[#allocation98_spill] sm:$0xff] }
 0xd05   :  { %3535 = vmatpush2.msra.mxu0 %v12243_v55  ;;  %v12264_v55 = vld [vmem:[#allocation149_spill] sm:$0xff] }
 0xd06   :  { %3536 = vmatprep.subr.mxu0 %v12244_v36  ;;  %v12265_v36 = vld [vmem:[#allocation99_spill] sm:$0xff] }
 0xd07   :  { %3537 = vmatpush2.msra.mxu0 %v12245_v34  ;;  %v12266_v34 = vld [vmem:[#allocation151_spill] sm:$0xff] }
 0xd08   :  { %3538 = vmatprep.subr.mxu0 %v12246_v42  ;;  %v12267_v42 = vld [vmem:[#allocation100_spill] sm:$0xff] }
 0xd09   :  { %3539 = vmatpush2.msra.mxu0 %v12247_v41  ;;  %v12268_v41 = vld [vmem:[#allocation153_spill] sm:$0xff] }
 0xd0a   :  { %3540 = vmatprep.subr.mxu0 %v12248_v61 }
 0xd0b   :  { %3541 = vmatpush2.msra.mxu0 %v12249_v13  ;;  %v12269_v13 = vld [vmem:[#allocation31_spill] sm:$0xff] }
 0xd0c   :  { %3542 = vmatprep.subr.mxu0 %v12250_v4 }
 0xd0d   :  { %3543 = vmatpush2.msra.mxu0 %v12251_v28 }
 0xd0e   :  { %3544 = vmatprep.subr.mxu0 %v12252_v39 }
 0xd0f   :  { %3545 = vmatpush2.msra.mxu0 %v12253_v0 }
 0xd10   :  { %3546 = vmatprep.subr.mxu0 %v12254_v40 }
 0xd11   :  { %3547 = vmatpush2.msra.mxu0 %v12255_v9 }
 0xd12   :  { %3548 = vmatprep.subr.mxu0 %v12256_v54 }
 0xd13   :  { %3549 = vmatpush2.msra.mxu0 %v12257_v15 }
 0xd14   :  { %3550 = vmatprep.subr.mxu0 %v12258_v38 }
 0xd15   :  { %3551 = vmatpush2.msra.mxu0 %v12259_v10 }
 0xd16   :  { %3552 = vmatprep.subr.mxu0 %v12260_v37 }
 0xd17   :  { %3553 = vmatpush2.msra.mxu0 %v12261_v17 }
 0xd18   :  { %3554 = vmatprep.subr.mxu0 %v12262_v53 }
 0xd19   :  { %3555 = vmatpush2.msra.mxu0 %v12263_v1 }
 0xd1a   :  { %3556 = vmatprep.subr.mxu0 %v12264_v55 }
 0xd1b   :  { %3557 = vmatpush2.msra.mxu0 %v12265_v36 }
 0xd1c   :  { %3558 = vmatprep.subr.mxu0 %v12266_v34 }
 0xd1d   :  { %3559 = vmatpush2.msra.mxu0 %v12267_v42 }
 0xd1e   :  { %3638 = vmatprep.subr.mxu0 %v12268_v41 }
 0xd5e   :  { %v3148_v61 = vpop.f32.mrf.mxu0  ;;  %v3219_v17 = vpop.f32.mrf.mxu1 }
 0xd5f   :  { %v3149_v4 = vadd.f32 %v3148_v61, %v12269_v13  ;;  %v3220_v1 = vadd.f32 %v3219_v17, %v6847_v32  ;;  %v10061_v17 = vld [vmem:[#allocation7 + $0x100] sm:$0xff] }
 0xd60   :  { %v3150_v28 = vpop.f32.mrf.mxu0 }
 0xd61   :  { %v3297_v39 = vrot.slane %v3149_v4, 4  ;;  %v3151_v0 = vadd.f32 %v3150_v28, %v6835_v51  ;;  %v3316_v36 = vrot.slane %v3220_v1, 4  ;;  %v3323_v4 = vrot.slane %v9479_v27, 6  ;;  %v10045_v27 = vld [vmem:[#allocation7 + $0x160] sm:$0xff]  ;;  %v10069_v1 = vld [vmem:[#allocation7 + $0xd0] sm:$0xff] }
 0xd63   :  { %v3301_v40 = vadd.f32 %v3297_v39, %v11920_v50  ;;  %v3298_v54 = vrot.slane %v3151_v0, 4 }
 0xd65   :  { %v4239_v9 = vmul.f32 -1.442695, %v3301_v40  ;;  %v3302_v15 = vadd.f32 %v3298_v54, %v11921_v43 }
 0xd67   :  { %4972 = vpow2.f32 %v4239_v9  ;;  %v4240_v38 = vmul.f32 -1.442695, %v3302_v15  ;;  %v10039_v15 = vld [vmem:[#allocation7 + $0x178] sm:$0xff] }
 0xd69   :  { %4974 = vpow2.f32 %v4240_v38  ;;  %v10049_v38 = vld [vmem:[#allocation7 + $0x148] sm:$0xff] }
 0xd74   :  { %v4973_v10 = vpop.eup %4972 }
 0xd75   :  { %v3309_v37 = vadd.f32 1.0, %v4973_v10  ;;  %v10053_v10 = vld [vmem:[#allocation7 + $0x130] sm:$0xff] }
 0xd76   :  { %v4975_v53 = vpop.eup %4974 }
 0xd77   :  { %4976 = vrcp.f32 %v3309_v37  ;;  %v3310_v55 = vadd.f32 1.0, %v4975_v53  ;;  %v10057_v37 = vld [vmem:[#allocation7 + $0x118] sm:$0xff]  ;;  %v10065_v53 = vld [vmem:[#allocation7 + $0xe8] sm:$0xff] }
 0xd79   :  { %4978 = vrcp.f32 %v3310_v55  ;;  %v10073_v55 = vld [vmem:[#allocation7 + $0xb8] sm:$0xff] }
 0xd7a   :  { %12270 = vst [vmem:[#allocation75_spill] sm:$0xff] %v10073_v55 }
 0xd84   :  { %v4977_v34 = vpop.eup %4976 }
 0xd85   :  { %v3318_v42 = vmul.f32 %v4977_v34, %v3316_v36  ;;  %v10077_v36 = vld [vmem:[#allocation7 + $0xa0] sm:$0xff]  ;;  %v10081_v34 = vld [vmem:[#allocation7 + $0x88] sm:$0xff] }
 0xd86   :  { %v4979_v61 = vpop.eup %4978  ;;  %12271 = vst [vmem:[#allocation76_spill] sm:$0xff] %v10077_v36  ;;  %12272 = vst [vmem:[#allocation106_spill] sm:$0xff] %v10081_v34 }
 0xd87   :  { %v3319_v41 = vadd.f32 %v3318_v42, %v11922_v6  ;;  %v3321_v28 = vsub.f32 1.0, %v4979_v61  ;;  %v3325_v40 = vmul.f32 %v4979_v61, %v3323_v4  ;;  %v10085_v42 = vld [vmem:[#allocation7 + $0x70] sm:$0xff]  ;;  %v10093_v61 = vld [vmem:[#allocation7 + $0x40] sm:$0xff]  ;;  %v10097_v4 = vld [vmem:[#allocation7 + $0x28] sm:$0xff] }
 0xd88   :  { %12273 = vst [vmem:[#allocation77_spill] sm:$0xff] %v10085_v42  ;;  %12275 = vst [vmem:[#allocation109_spill] sm:$0xff] %v10093_v61 }
 0xd89   :  { %4980 = vtanh.f32 %v3319_v41  ;;  %v10089_v41 = vld [vmem:[#allocation7 + $0x58] sm:$0xff]  ;;  %12276 = vst [vmem:[#allocation79_spill] sm:$0xff] %v10097_v4 }
 0xd8a   :  { %12274 = vst [vmem:[#allocation78_spill] sm:$0xff] %v10089_v41 }
 0xd96   :  { %v4981_v39 = vpop.eup %4980 }
 0xd97   :  { %v3322_v0 = vmul.f32 %v4981_v39, %v3321_v28  ;;  %v10101_v28 = vld [vmem:[#allocation7 + $0x10] sm:$0xff]  ;;  %v5732_v39 = vld [vmem:[#allocation5 + $0x2e8] sm:$0xff] }
 0xd98   :  { %12277 = vst [vmem:[#allocation111_spill] sm:$0xff] %v10101_v28 }
 0xd99   :  { %v10033_v9 = vadd.f32 %v3325_v40, %v3322_v0  ;;  %v5733_v0 = vld [vmem:[#allocation5 + $0x2e0] sm:$0xff]  ;;  %v5734_v40 = vld [vmem:[#allocation5 + $0x2b8] sm:$0xff] }
 0xd9b   :  { %v10036_v54 = vrot.slane %v10033_v9, 4 }
 0xd9d   :  { %3395 = vmatmul.mubr.f32.vlgmr.msra.gmra.mxu1 %v10036_v54 }
 0xd9e   :  { %4660 = vmatpush3.msra.mxu1 %v10039_v15  ;;  %4691 = vmatprep.mubr.msk.f32.mxu1 %vm5986_vm1, %v11083_v62 }
 0xd9f   :  { %4661 = vmatprep.subr.mxu1 %v11083_v62 }
 0xda0   :  { %4662 = vmatpush3.msra.mxu1 %v10045_v27 }
 0xda1   :  { %4663 = vmatprep.subr.mxu1 %v11083_v62 }
 0xda2   :  { %4664 = vmatpush3.msra.mxu1 %v10049_v38 }
 0xda3   :  { %4665 = vmatprep.subr.mxu1 %v11083_v62 }
 0xda4   :  { %4666 = vmatpush3.msra.mxu1 %v10053_v10 }
 0xda5   :  { %4667 = vmatprep.subr.mxu1 %v11083_v62 }
 0xda6   :  { %4668 = vmatpush3.msra.mxu1 %v10057_v37 }
 0xda7   :  { %4669 = vmatprep.subr.mxu1 %v11083_v62 }
 0xda8   :  { %4670 = vmatpush3.msra.mxu1 %v10061_v17 }
 0xda9   :  { %4671 = vmatprep.subr.mxu1 %v11083_v62 }
 0xdaa   :  { %4672 = vmatpush3.msra.mxu1 %v10065_v53 }
 0xdab   :  { %4673 = vmatprep.subr.mxu1 %v11083_v62 }
 0xdac   :  { %4674 = vmatpush3.msra.mxu1 %v10069_v1 }
 0xdad   :  { %4675 = vmatprep.subr.mxu1 %v11083_v62 }
 0xdae   :  { %4676 = vmatpush3.msra.mxu1 %v10073_v55  ;;  %v5742_v55 = vld [vmem:[#allocation5 + $0x1f8] sm:$0xff] }
 0xdaf   :  { %4677 = vmatprep.subr.mxu1 %v11083_v62 }
 0xdb0   :  { %4678 = vmatpush3.msra.mxu1 %v10077_v36  ;;  %v5740_v36 = vld [vmem:[#allocation5 + $0x228] sm:$0xff] }
 0xdb1   :  { %4679 = vmatprep.subr.mxu1 %v11083_v62 }
 0xdb2   :  { %4680 = vmatpush3.msra.mxu1 %v10081_v34  ;;  %v5739_v34 = vld [vmem:[#allocation5 + $0x250] sm:$0xff] }
 0xdb3   :  { %4681 = vmatprep.subr.mxu1 %v11083_v62 }
 0xdb4   :  { %4682 = vmatpush3.msra.mxu1 %v10085_v42  ;;  %v5737_v42 = vld [vmem:[#allocation5 + $0x280] sm:$0xff] }
 0xdb5   :  { %4683 = vmatprep.subr.mxu1 %v11083_v62 }
 0xdb6   :  { %4684 = vmatpush3.msra.mxu1 %v10089_v41  ;;  %v5736_v41 = vld [vmem:[#allocation5 + $0x288] sm:$0xff] }
 0xdb7   :  { %4685 = vmatprep.subr.mxu1 %v11083_v62 }
 0xdb8   :  { %4686 = vmatpush3.msra.mxu1 %v10093_v61  ;;  %v5735_v61 = vld [vmem:[#allocation5 + $0x2b0] sm:$0xff] }
 0xdb9   :  { %4687 = vmatprep.subr.mxu1 %v11083_v62 }
 0xdba   :  { %4688 = vmatpush3.msra.mxu1 %v10097_v4  ;;  %v5738_v4 = vld [vmem:[#allocation5 + $0x258] sm:$0xff] }
 0xdbb   :  { %4689 = vmatprep.subr.mxu1 %v11083_v62 }
 0xdbc   :  { %4690 = vmatpush3.msra.mxu1 %v10101_v28  ;;  %v5741_v28 = vld [vmem:[#allocation5 + $0x220] sm:$0xff] }
 0xdbd   :  { %4692 = vmatmul.mubr.f32.vlgmr.msra.gmra.mxu1 %v10036_v54  ;;  %3567 = vmatprep.subr.mxu1 %v5732_v39  ;;  %v5743_v39 = vld [vmem:[#allocation5 + $0x1f0] sm:$0xff] }
 0xdbe   :  { %3568 = vmatpush1.msra.mxu1 %v5733_v0  ;;  %v5744_v0 = vld [vmem:[#allocation5 + $0x1c8] sm:$0xff] }
 0xdbf   :  { %3569 = vmatprep.subr.mxu1 %v5734_v40  ;;  %v5745_v40 = vld [vmem:[#allocation5 + $0x1c0] sm:$0xff] }
 0xdc0   :  { %3570 = vmatpush1.msra.mxu1 %v5735_v61  ;;  %v5746_v61 = vld [vmem:[#allocation5 + $0x198] sm:$0xff] }
 0xdc1   :  { %3571 = vmatprep.subr.mxu1 %v5736_v41  ;;  %v5747_v41 = vld [vmem:[#allocation5 + $0x190] sm:$0xff] }
 0xdc2   :  { %3572 = vmatpush1.msra.mxu1 %v5737_v42  ;;  %v5748_v42 = vld [vmem:[#allocation5 + $0x168] sm:$0xff] }
 0xdc3   :  { %3573 = vmatprep.subr.mxu1 %v5738_v4  ;;  %v5749_v4 = vld [vmem:[#allocation5 + $0x160] sm:$0xff] }
 0xdc4   :  { %3574 = vmatpush1.msra.mxu1 %v5739_v34  ;;  %v5750_v34 = vld [vmem:[#allocation5 + $0x138] sm:$0xff] }
 0xdc5   :  { %3575 = vmatprep.subr.mxu1 %v5740_v36  ;;  %v5751_v36 = vld [vmem:[#allocation5 + $0x130] sm:$0xff] }
 0xdc6   :  { %3576 = vmatpush1.msra.mxu1 %v5741_v28  ;;  %v5752_v28 = vld [vmem:[#allocation5 + $0x108] sm:$0xff] }
 0xdc7   :  { %3577 = vmatprep.subr.mxu1 %v5742_v55  ;;  %v5753_v55 = vld [vmem:[#allocation5 + $0x100] sm:$0xff] }
 0xdc8   :  { %3578 = vmatpush1.msra.mxu1 %v5743_v39  ;;  %v5754_v39 = vld [vmem:[#allocation5 + $0xd8] sm:$0xff] }
 0xdc9   :  { %3579 = vmatprep.subr.mxu1 %v5744_v0  ;;  %v5755_v0 = vld [vmem:[#allocation5 + $0xd0] sm:$0xff] }
 0xdca   :  { %3580 = vmatpush1.msra.mxu1 %v5745_v40  ;;  %v5756_v40 = vld [vmem:[#allocation5 + $0xa8] sm:$0xff] }
 0xdcb   :  { %3581 = vmatprep.subr.mxu1 %v5746_v61  ;;  %v5757_v61 = vld [vmem:[#allocation5 + $0xa0] sm:$0xff] }
 0xdcc   :  { %3582 = vmatpush1.msra.mxu1 %v5747_v41  ;;  %v12291_v41 = vld [vmem:[#allocation120_spill] sm:$0xff] }
 0xdcd   :  { %3583 = vmatprep.subr.mxu1 %v5748_v42  ;;  %v12292_v42 = vld [vmem:[#allocation122_spill] sm:$0xff] }
 0xdce   :  { %3584 = vmatpush1.msra.mxu1 %v5749_v4  ;;  %v12293_v4 = vld [vmem:[#allocation124_spill] sm:$0xff] }
 0xdcf   :  { %3585 = vmatprep.subr.mxu1 %v5750_v34  ;;  %v12294_v34 = vld [vmem:[#allocation126_spill] sm:$0xff] }
 0xdd0   :  { %3586 = vmatpush1.msra.mxu1 %v5751_v36  ;;  %v12295_v36 = vld [vmem:[#allocation128_spill] sm:$0xff] }
 0xdd1   :  { %3587 = vmatprep.subr.mxu1 %v5752_v28  ;;  %v12296_v28 = vld [vmem:[#allocation130_spill] sm:$0xff] }
 0xdd2   :  { %3588 = vmatpush1.msra.mxu1 %v5753_v55  ;;  %v12297_v55 = vld [vmem:[#allocation132_spill] sm:$0xff] }
 0xdd3   :  { %3589 = vmatprep.subr.mxu1 %v5754_v39  ;;  %v12298_v39 = vld [vmem:[#allocation134_spill] sm:$0xff] }
 0xdd4   :  { %3590 = vmatpush1.msra.mxu1 %v5755_v0  ;;  %v12299_v0 = vld [vmem:[#allocation136_spill] sm:$0xff] }
 0xdd5   :  { %3591 = vmatprep.subr.mxu1 %v5756_v40  ;;  %v12300_v40 = vld [vmem:[#allocation138_spill] sm:$0xff] }
 0xdd6   :  { %3592 = vmatpush1.msra.mxu1 %v5757_v61  ;;  %v12301_v61 = vld [vmem:[#allocation140_spill] sm:$0xff] }
 0xdd7   :  { %3593 = vmatprep.subr.mxu1 %v9545_v16  ;;  %v12278_v16 = vld [vmem:[#allocation101_spill] sm:$0xff] }
 0xdd8   :  { %3594 = vmatpush1.msra.mxu1 %v9548_v20  ;;  %v12279_v20 = vld [vmem:[#allocation155_spill] sm:$0xff] }
 0xdd9   :  { %3595 = vmatprep.subr.mxu1 %v9551_v35  ;;  %v12280_v35 = vld [vmem:[#allocation102_spill] sm:$0xff] }
 0xdda   :  { %3596 = vmatpush1.msra.mxu1 %v9554_v18  ;;  %v12281_v18 = vld [vmem:[#allocation157_spill] sm:$0xff] }
 0xddb   :  { %3597 = vmatprep.subr.mxu1 %v9557_v56  ;;  %v12282_v56 = vld [vmem:[#allocation104_spill] sm:$0xff] }
 0xddc   :  { %3598 = vmatpush1.msra.mxu1 %v9560_v33  ;;  %v12283_v33 = vld [vmem:[#allocation105_spill] sm:$0xff] }
 0xddd   :  { %3599 = vmatprep.subr.mxu1 %v9563_v5  ;;  %v12284_v5 = vld [vmem:[#allocation107_spill] sm:$0xff] }
 0xdde   :  { %3600 = vmatpush2.msra.mxu1 %v9566_v11  ;;  %v12285_v11 = vld [vmem:[#allocation108_spill] sm:$0xff] }
 0xddf   :  { %3601 = vmatprep.subr.mxu1 %v9569_v45  ;;  %v12286_v45 = vld [vmem:[#allocation110_spill] sm:$0xff] }
 0xde0   :  { %3602 = vmatpush2.msra.mxu1 %v9572_v14  ;;  %v12287_v14 = vld [vmem:[#allocation112_spill] sm:$0xff] }
 0xde1   :  { %3603 = vmatprep.subr.mxu1 %v9575_v44  ;;  %v12288_v44 = vld [vmem:[#allocation114_spill] sm:$0xff] }
 0xde2   :  { %3604 = vmatpush2.msra.mxu1 %v9578_v25  ;;  %v12289_v25 = vld [vmem:[#allocation116_spill] sm:$0xff] }
 0xde3   :  { %3605 = vmatprep.subr.mxu1 %v9581_v3  ;;  %v12290_v3 = vld [vmem:[#allocation118_spill] sm:$0xff] }
 0xde4   :  { %3606 = vmatpush2.msra.mxu1 %v12278_v16  ;;  %v12302_v16 = vld [vmem:[#allocation142_spill] sm:$0xff] }
 0xde5   :  { %3607 = vmatprep.subr.mxu1 %v12279_v20  ;;  %v12303_v20 = vld [vmem:[#allocation144_spill] sm:$0xff] }
 0xde6   :  { %3608 = vmatpush2.msra.mxu1 %v12280_v35  ;;  %v3221_v35 = vpop.f32.mrf.mxu1 }
 0xde7   :  { %3609 = vmatprep.subr.mxu1 %v12281_v18 }
 0xde8   :  { %3610 = vmatpush2.msra.mxu1 %v12282_v56  ;;  %v12304_v56 = vld [vmem:[#allocation24_spill] sm:$0xff] }
 0xde9   :  { %3611 = vmatprep.subr.mxu1 %v12283_v33  ;;  %v3222_v33 = vadd.f32 %v3221_v35, %v12304_v56 }
 0xdea   :  { %3612 = vmatpush2.msra.mxu1 %v12284_v5 }
 0xdeb   :  { %3613 = vmatprep.subr.mxu1 %v12285_v11 }
 0xdec   :  { %3614 = vmatpush2.msra.mxu1 %v12286_v45 }
 0xded   :  { %3615 = vmatprep.subr.mxu1 %v12287_v14  ;;  %v3290_v14 = vpop.f32.mrf.mxu0 }
 0xdee   :  { %3616 = vmatpush2.msra.mxu1 %v12288_v44 }
 0xdef   :  { %3617 = vmatprep.subr.mxu1 %v12289_v25 }
 0xdf0   :  { %3618 = vmatpush2.msra.mxu1 %v12290_v3  ;;  %v12305_v3 = vld [vmem:[#allocation26_spill] sm:$0xff] }
 0xdf1   :  { %3619 = vmatprep.subr.mxu1 %v12291_v41  ;;  %v3291_v41 = vadd.f32 %v3290_v14, %v12305_v3 }
 0xdf2   :  { %3620 = vmatpush2.msra.mxu1 %v12292_v42 }
 0xdf3   :  { %3621 = vmatprep.subr.mxu1 %v12293_v4 }
 0xdf4   :  { %3622 = vmatpush2.msra.mxu1 %v12294_v34 }
 0xdf5   :  { %3623 = vmatprep.subr.mxu1 %v12295_v36 }
 0xdf6   :  { %3624 = vmatpush2.msra.mxu1 %v12296_v28 }
 0xdf7   :  { %3625 = vmatprep.subr.mxu1 %v12297_v55  ;;  %v3292_v55 = vpop.f32.mrf.mxu0 }
 0xdf8   :  { %3626 = vmatpush2.msra.mxu1 %v12298_v39 }
 0xdf9   :  { %3627 = vmatprep.subr.mxu1 %v12299_v0 }
 0xdfa   :  { %3628 = vmatpush2.msra.mxu1 %v12300_v40 }
 0xdfb   :  { %3629 = vmatprep.subr.mxu1 %v12301_v61  ;;  %v3293_v61 = vadd.f32 %v3292_v55, %v7060_v46  ;;  %v12324_v55 = vld [vmem:[#allocation51_spill] sm:$0xff] }
 0xdfc   :  { %3630 = vmatpush2.msra.mxu1 %v12302_v16 }
 0xdfd   :  { %3744 = vmatprep.subr.mxu1 %v12303_v20 }
 0xe5d   :  { %v3396_v18 = vpop.f32.mrf.mxu1 }
 0xe5e   :  { %v3397_v5 = vadd.f32 %v3396_v18, %v11438_v26 }
 0xe5f   :  { %v3398_v11 = vpop.f32.mrf.mxu1 }
 0xe60   :  { %v3471_v45 = vadd.f32 %v3397_v5, %v3222_v33  ;;  %v3399_v25 = vadd.f32 %v3398_v11, %v7052_v29 }
 0xe62   :  { %v4241_v44 = vmul.f32 -1.442695, %v3471_v45  ;;  %v3472_v42 = vadd.f32 %v3399_v25, %v3291_v41 }
 0xe64   :  { %4982 = vpow2.f32 %v4241_v44  ;;  %v4242_v4 = vmul.f32 -1.442695, %v3472_v42  ;;  %v12319_v42 = vld [vmem:[#allocation41_spill] sm:$0xff] }
 0xe66   :  { %4984 = vpow2.f32 %v4242_v4  ;;  %v12320_v4 = vld [vmem:[#allocation43_spill] sm:$0xff] }
 0xe71   :  { %v4983_v34 = vpop.eup %4982 }
 0xe72   :  { %v3479_v36 = vadd.f32 1.0, %v4983_v34  ;;  %v12321_v34 = vld [vmem:[#allocation45_spill] sm:$0xff] }
 0xe73   :  { %v4985_v28 = vpop.eup %4984 }
 0xe74   :  { %4986 = vrcp.f32 %v3479_v36  ;;  %v3480_v0 = vadd.f32 1.0, %v4985_v28  ;;  %v12322_v36 = vld [vmem:[#allocation47_spill] sm:$0xff]  ;;  %v12323_v28 = vld [vmem:[#allocation49_spill] sm:$0xff] }
 0xe76   :  { %4988 = vrcp.f32 %v3480_v0  ;;  %v12326_v0 = vld [vmem:[#allocation164_spill] sm:$0xff] }
 0xe7d   :  { %v3467_v39 = vpop.f32.mrf.mxu1 }
 0xe7e   :  { %v3468_v20 = vadd.f32 %v3467_v39, %v7063_v48  ;;  %v12325_v39 = vld [vmem:[#allocation73_spill] sm:$0xff] }
 0xe7f   :  { %v4693_v40 = vpop.f32.mrf.mxu1 }
 0xe80   :  { %v12327_v40 = vld [vmem:[#allocation165_spill] sm:$0xff] }
 0xe81   :  { %v4987_v16 = vpop.eup %4986 }
 0xe82   :  { %v3485_v35 = vmul.f32 %v4987_v16, %v3293_v61  ;;  %v12328_v61 = vld [vmem:[#allocation166_spill] sm:$0xff]  ;;  %v12329_v16 = vld [vmem:[#allocation167_spill] sm:$0xff] }
 0xe83   :  { %v4989_v33 = vpop.eup %4988 }
 0xe84   :  { %v3486_v18 = vadd.f32 %v3485_v35, %v3468_v20  ;;  %v3488_v5 = vsub.f32 1.0, %v4989_v33  ;;  %v3490_v14 = vmul.f32 %v4989_v33, %v9669_v19  ;;  %v12306_v19 = vld [vmem:[#allocation146_spill] sm:$0xff]  ;;  %v12330_v20 = vld [vmem:[#allocation168_spill] sm:$0xff]  ;;  %v12331_v35 = vld [vmem:[#allocation169_spill] sm:$0xff] }
 0xe85   :  { %v12333_v33 = vld [vmem:[#allocation170_spill] sm:$0xff] }
 0xe86   :  { %4990 = vtanh.f32 %v3486_v18  ;;  %v12332_v18 = vld [vmem:[#allocation25_spill] sm:$0xff] }
 0xe93   :  { %v4991_v11 = vpop.eup %4990 }
 0xe94   :  { %v3489_v45 = vmul.f32 %v4991_v11, %v3488_v5  ;;  %v12334_v5 = vld [vmem:[#allocation171_spill] sm:$0xff]  ;;  %v12335_v11 = vld [vmem:[#allocation172_spill] sm:$0xff] }
 0xe96   :  { %v3491_v44 = vadd.f32 %v3490_v14, %v3489_v45  ;;  %v12336_v45 = vld [vmem:[#allocation173_spill] sm:$0xff]  ;;  %v12337_v14 = vld [vmem:[#allocation174_spill] sm:$0xff] }
 0xe98   :  { %v3493_v25 = vrot.slane %v3491_v44, 4  ;;  %v12338_v44 = vld [vmem:[#allocation175_spill] sm:$0xff] }
 0xe9a   :  { %v10151_v41 = vrot.slane %v3493_v25, 4  ;;  %v12339_v25 = vld [vmem:[#allocation176_spill] sm:$0xff] }
 0xe9c   :  { %3560 = vmatprep.mubr.f32.mxu0 %v10151_v41  ;;  %3631 = vmatprep.mubr.f32.mxu1 %v10151_v41 }
 0xe9d   :  { %3561 = vmatmul.mubr.f32.vlgmr.msra.gmra.mxu0 %v10036_v54  ;;  %3632 = vmatmul.mubr.f32.vlgmr.msra.gmra.mxu1 %v10036_v54 }
 0xe9e   :  { %3639 = vmatpush1.msra.mxu0 %v9675_v23  ;;  %3702 = vmatprep.mubr.f32.mxu0 %v10151_v41  ;;  %v12307_v23 = vld [vmem:[#allocation148_spill] sm:$0xff] }
 0xe9f   :  { %3640 = vmatprep.subr.mxu0 %v9679_v57  ;;  %3745 = vmatpush1.msra.mxu1 %v9682_v8  ;;  %v12308_v57 = vld [vmem:[#allocation150_spill] sm:$0xff]  ;;  %v12309_v8 = vld [vmem:[#allocation152_spill] sm:$0xff] }
 0xea0   :  { %3641 = vmatpush1.msra.mxu0 %v9685_v24  ;;  %3746 = vmatprep.subr.mxu1 %v9688_v52  ;;  %v12310_v24 = vld [vmem:[#allocation154_spill] sm:$0xff]  ;;  %v12311_v52 = vld [vmem:[#allocation156_spill] sm:$0xff] }
 0xea1   :  { %3642 = vmatprep.subr.mxu0 %v9691_v30  ;;  %3747 = vmatpush1.msra.mxu1 %v9694_v7  ;;  %v12312_v30 = vld [vmem:[#allocation158_spill] sm:$0xff]  ;;  %v12313_v7 = vld [vmem:[#allocation159_spill] sm:$0xff] }
 0xea2   :  { %3643 = vmatpush1.msra.mxu0 %v9697_v47  ;;  %3748 = vmatprep.subr.mxu1 %v9700_v63  ;;  %v12314_v47 = vld [vmem:[#allocation160_spill] sm:$0xff]  ;;  %v12315_v63 = vld [vmem:[#allocation33_spill] sm:$0xff] }
 0xea3   :  { %3644 = vmatprep.subr.mxu0 %v9703_v12  ;;  %3749 = vmatpush1.msra.mxu1 %v9706_v31  ;;  %v12316_v12 = vld [vmem:[#allocation35_spill] sm:$0xff]  ;;  %v12317_v31 = vld [vmem:[#allocation37_spill] sm:$0xff] }
 0xea4   :  { %3645 = vmatpush1.msra.mxu0 %v9709_v59  ;;  %3750 = vmatprep.subr.mxu1 %v12306_v19  ;;  %v12318_v59 = vld [vmem:[#allocation39_spill] sm:$0xff]  ;;  %v12340_v19 = vld [vmem:[#allocation177_spill] sm:$0xff] }
 0xea5   :  { %3646 = vmatprep.subr.mxu0 %v12307_v23  ;;  %3751 = vmatpush1.msra.mxu1 %v12308_v57  ;;  %v12341_v23 = vld [vmem:[#allocation178_spill] sm:$0xff]  ;;  %v12342_v57 = vld [vmem:[#allocation179_spill] sm:$0xff] }
 0xea6   :  { %3647 = vmatpush1.msra.mxu0 %v12309_v8  ;;  %3752 = vmatprep.subr.mxu1 %v12310_v24  ;;  %v12343_v8 = vld [vmem:[#allocation180_spill] sm:$0xff]  ;;  %v12344_v24 = vld [vmem:[#allocation181_spill] sm:$0xff] }
 0xea7   :  { %3648 = vmatprep.subr.mxu0 %v12311_v52  ;;  %3753 = vmatpush1.msra.mxu1 %v12312_v30  ;;  %v12345_v52 = vld [vmem:[#allocation27_spill] sm:$0xff]  ;;  %v12346_v30 = vld [vmem:[#allocation28_spill] sm:$0xff] }
 0xea8   :  { %3649 = vmatpush1.msra.mxu0 %v12313_v7  ;;  %3754 = vmatprep.subr.mxu1 %v12314_v47  ;;  %v12347_v7 = vld [vmem:[#allocation29_spill] sm:$0xff]  ;;  %v12348_v47 = vld [vmem:[#allocation30_spill] sm:$0xff] }
 0xea9   :  { %3650 = vmatprep.subr.mxu0 %v12315_v63  ;;  %3755 = vmatpush1.msra.mxu1 %v12316_v12  ;;  %v12349_v63 = vld [vmem:[#allocation32_spill] sm:$0xff]  ;;  %v12350_v12 = vld [vmem:[#allocation34_spill] sm:$0xff] }
 0xeaa   :  { %3651 = vmatpush1.msra.mxu0 %v12317_v31  ;;  %3756 = vmatprep.subr.mxu1 %v12318_v59  ;;  %v12351_v31 = vld [vmem:[#allocation36_spill] sm:$0xff]  ;;  %v12352_v59 = vld [vmem:[#allocation38_spill] sm:$0xff] }
 0xeab   :  { %3652 = vmatprep.subr.mxu0 %v12319_v42  ;;  %3757 = vmatpush1.msra.mxu1 %v12320_v4  ;;  %v12353_v42 = vld [vmem:[#allocation40_spill] sm:$0xff]  ;;  %v12354_v4 = vld [vmem:[#allocation42_spill] sm:$0xff] }
 0xeac   :  { %3653 = vmatpush1.msra.mxu0 %v12321_v34  ;;  %3758 = vmatprep.subr.mxu1 %v12322_v36  ;;  %v12355_v34 = vld [vmem:[#allocation44_spill] sm:$0xff]  ;;  %v12356_v36 = vld [vmem:[#allocation46_spill] sm:$0xff] }
 0xead   :  { %3654 = vmatprep.subr.mxu0 %v12323_v28  ;;  %3759 = vmatpush1.msra.mxu1 %v12324_v55  ;;  %v12357_v28 = vld [vmem:[#allocation48_spill] sm:$0xff]  ;;  %v12358_v55 = vld [vmem:[#allocation50_spill] sm:$0xff] }
 0xeae   :  { %3655 = vmatpush1.msra.mxu0 %v12325_v39  ;;  %3760 = vmatprep.subr.mxu1 %v12326_v0  ;;  %v12359_v39 = vld [vmem:[#allocation52_spill] sm:$0xff]  ;;  %v12360_v0 = vld [vmem:[#allocation53_spill] sm:$0xff] }
 0xeaf   :  { %3656 = vmatprep.subr.mxu0 %v12327_v40  ;;  %3761 = vmatpush1.msra.mxu1 %v12328_v61  ;;  %v12361_v40 = vld [vmem:[#allocation54_spill] sm:$0xff]  ;;  %v12362_v61 = vld [vmem:[#allocation55_spill] sm:$0xff] }
 0xeb0   :  { %3657 = vmatpush1.msra.mxu0 %v12329_v16  ;;  %3762 = vmatprep.subr.mxu1 %v12330_v20  ;;  %v12363_v16 = vld [vmem:[#allocation56_spill] sm:$0xff]  ;;  %v12364_v20 = vld [vmem:[#allocation57_spill] sm:$0xff] }
 0xeb1   :  { %3658 = vmatprep.subr.mxu0 %v12331_v35  ;;  %3763 = vmatpush1.msra.mxu1 %v12332_v18  ;;  %v12365_v35 = vld [vmem:[#allocation58_spill] sm:$0xff]  ;;  %v12366_v18 = vld [vmem:[#allocation59_spill] sm:$0xff] }
 0xeb2   :  { %3659 = vmatpush1.msra.mxu0 %v12333_v33  ;;  %3764 = vmatprep.subr.mxu1 %v12334_v5  ;;  %v12367_v33 = vld [vmem:[#allocation60_spill] sm:$0xff]  ;;  %v12368_v5 = vld [vmem:[#allocation61_spill] sm:$0xff] }
 0xeb3   :  { %3660 = vmatprep.subr.mxu0 %v12335_v11  ;;  %3765 = vmatpush1.msra.mxu1 %v12336_v45  ;;  %v12369_v11 = vld [vmem:[#allocation62_spill] sm:$0xff]  ;;  %v12370_v45 = vld [vmem:[#allocation63_spill] sm:$0xff] }
 0xeb4   :  { %3661 = vmatpush1.msra.mxu0 %v12337_v14  ;;  %3766 = vmatprep.subr.mxu1 %v12338_v44  ;;  %v12371_v14 = vld [vmem:[#allocation64_spill] sm:$0xff]  ;;  %v12372_v44 = vld [vmem:[#allocation65_spill] sm:$0xff] }
 0xeb5   :  { %3662 = vmatprep.subr.mxu0 %v12339_v25  ;;  %3767 = vmatpush1.msra.mxu1 %v12340_v19  ;;  %v12373_v25 = vld [vmem:[#allocation66_spill] sm:$0xff]  ;;  %v12374_v19 = vld [vmem:[#allocation67_spill] sm:$0xff] }
 0xeb6   :  { %3663 = vmatpush1.msra.mxu0 %v12341_v23  ;;  %3768 = vmatprep.subr.mxu1 %v12342_v57  ;;  %v12375_v23 = vld [vmem:[#allocation68_spill] sm:$0xff]  ;;  %v12376_v57 = vld [vmem:[#allocation69_spill] sm:$0xff] }
 0xeb7   :  { %3664 = vmatprep.subr.mxu0 %v12343_v8  ;;  %3769 = vmatpush1.msra.mxu1 %v12344_v24  ;;  %v12377_v8 = vld [vmem:[#allocation70_spill] sm:$0xff]  ;;  %v12378_v24 = vld [vmem:[#allocation71_spill] sm:$0xff] }
 0xeb8   :  { %3665 = vmatpush1.msra.mxu0 %v12345_v52  ;;  %3770 = vmatprep.subr.mxu1 %v12346_v30  ;;  %v12379_v52 = vld [vmem:[#allocation72_spill] sm:$0xff]  ;;  %v12380_v30 = vld [vmem:[#allocation103_spill] sm:$0xff] }
 0xeb9   :  { %3666 = vmatprep.subr.mxu0 %v12347_v7  ;;  %3771 = vmatpush1.msra.mxu1 %v12348_v47  ;;  %v12381_v7 = vld [vmem:[#allocation74_spill] sm:$0xff] }
 0xeba   :  { %3667 = vmatpush1.msra.mxu0 %v12349_v63  ;;  %3772 = vmatprep.subr.mxu1 %v12350_v12 }
 0xebb   :  { %3668 = vmatprep.subr.mxu0 %v12351_v31  ;;  %3773 = vmatpush1.msra.mxu1 %v12352_v59 }
 0xebc   :  { %3669 = vmatpush1.msra.mxu0 %v12353_v42  ;;  %3774 = vmatprep.subr.mxu1 %v12354_v4 }
 0xebd   :  { %3670 = vmatprep.subr.mxu0 %v12355_v34  ;;  %3775 = vmatpush1.msra.mxu1 %v12356_v36 }
 0xebe   :  { %3671 = vmatpush2.msra.mxu0 %v12357_v28  ;;  %3808 = vmatprep.mubr.f32.mxu1 %v11083_v62 }
 0xebf   :  { %3672 = vmatprep.subr.mxu0 %v12358_v55  ;;  %4694 = vmatprep.subr.mxu1 %v11083_v62 }
 0xec0   :  { %3673 = vmatpush2.msra.mxu0 %v12359_v39 }
 0xec1   :  { %3674 = vmatprep.subr.mxu0 %v12360_v0 }
 0xec2   :  { %3675 = vmatpush2.msra.mxu0 %v12361_v40 }
 0xec3   :  { %3676 = vmatprep.subr.mxu0 %v12362_v61 }
 0xec4   :  { %3677 = vmatpush2.msra.mxu0 %v12363_v16 }
 0xec5   :  { %3678 = vmatprep.subr.mxu0 %v12364_v20 }
 0xec6   :  { %3679 = vmatpush2.msra.mxu0 %v12365_v35  ;;  %v3920_v35 = vld [vmem:[#allocation10 + $0x60] sm:$0xff] }
 0xec7   :  { %3680 = vmatprep.subr.mxu0 %v12366_v18  ;;  %v3919_v18 = vld [vmem:[#allocation10 + $0x58] sm:$0xff] }
 0xec8   :  { %3681 = vmatpush2.msra.mxu0 %v12367_v33  ;;  %v3918_v33 = vld [vmem:[#allocation10 + $0x50] sm:$0xff] }
 0xec9   :  { %3682 = vmatprep.subr.mxu0 %v12368_v5  ;;  %v3917_v5 = vld [vmem:[#allocation10 + $0x48] sm:$0xff] }
 0xeca   :  { %3683 = vmatpush2.msra.mxu0 %v12369_v11  ;;  %v3916_v11 = vld [vmem:[#allocation10 + $0x40] sm:$0xff] }
 0xecb   :  { %3684 = vmatprep.subr.mxu0 %v12370_v45  ;;  %v3915_v45 = vld [vmem:[#allocation10 + $0x38] sm:$0xff] }
 0xecc   :  { %3685 = vmatpush2.msra.mxu0 %v12371_v14  ;;  %v3914_v14 = vld [vmem:[#allocation10 + $0x30] sm:$0xff] }
 0xecd   :  { %3686 = vmatprep.subr.mxu0 %v12372_v44  ;;  %v3913_v44 = vld [vmem:[#allocation10 + $0x28] sm:$0xff] }
 0xece   :  { %3687 = vmatpush2.msra.mxu0 %v12373_v25  ;;  %v3912_v25 = vld [vmem:[#allocation10 + $0x20] sm:$0xff] }
 0xecf   :  { %3688 = vmatprep.subr.mxu0 %v12374_v19  ;;  %v3911_v19 = vld [vmem:[#allocation10 + $0x18] sm:$0xff] }
 0xed0   :  { %3689 = vmatpush2.msra.mxu0 %v12375_v23  ;;  %v3910_v23 = vld [vmem:[#allocation10 + $0x10] sm:$0xff] }
 0xed1   :  { %3690 = vmatprep.subr.mxu0 %v12376_v57  ;;  %v3909_v57 = vld [vmem:[#allocation10 + $0x8] sm:$0xff] }
 0xed2   :  { %3691 = vmatpush2.msra.mxu0 %v12377_v8  ;;  %v3908_v8 = vld [vmem:[#allocation10] sm:$0xff] }
 0xed3   :  { %3692 = vmatprep.subr.mxu0 %v12378_v24  ;;  %v4019_v24 = vld [vmem:[#allocation11 + $0x78] sm:$0xff] }
 0xed4   :  { %3693 = vmatpush2.msra.mxu0 %v12379_v52  ;;  %v4018_v52 = vld [vmem:[#allocation11 + $0x70] sm:$0xff] }
 0xed5   :  { %3694 = vmatprep.subr.mxu0 %v12380_v30  ;;  %v4017_v30 = vld [vmem:[#allocation11 + $0x68] sm:$0xff] }
 0xed6   :  { %3695 = vmatpush2.msra.mxu0 %v12381_v7  ;;  %v4016_v7 = vld [vmem:[#allocation11 + $0x60] sm:$0xff] }
 0xed7   :  { %3696 = vmatprep.subr.mxu0 %v9942_v21 }
 0xed8   :  { %3697 = vmatpush2.msra.mxu0 %v9945_v22 }
 0xed9   :  { %3698 = vmatprep.subr.mxu0 %v9948_v58 }
 0xeda   :  { %3699 = vmatpush2.msra.mxu0 %v9951_v49 }
 0xedb   :  { %3700 = vmatprep.subr.mxu0 %v9954_v2 }
 0xedc   :  { %3701 = vmatpush2.msra.mxu0 %v9957_v60 }
 0xedd   :  { %3703 = vmatmul.mubr.f32.vlgmr.msra.gmra.mxu0 %v10036_v54  ;;  %4729 = vmatprep.subr.mxu0 %v11083_v62 }
 0xede   :  { %4761 = vmatprep.mubr.msk.f32.mxu0 %vm5986_vm1, %v11083_v62 }
 0xf5d   :  { %v3562_v47 = vpop.f32.mrf.mxu0  ;;  %v3633_v42 = vpop.f32.mrf.mxu1 }
 0xf5e   :  { %v3563_v21 = vadd.f32 %v3562_v47, %v12269_v13  ;;  %v3634_v13 = vadd.f32 %v3633_v42, %v6847_v32  ;;  %v12382_v32 = vld [vmem:[#allocation75_spill] sm:$0xff] }
 0xf5f   :  { %v3564_v63 = vpop.f32.mrf.mxu0  ;;  %v4015_v47 = vld [vmem:[#allocation11 + $0x58] sm:$0xff] }
 0xf60   :  { %v3711_v22 = vrot.slane %v3563_v21, 2  ;;  %v3565_v58 = vadd.f32 %v3564_v63, %v6835_v51  ;;  %v3730_v36 = vrot.slane %v3634_v13, 2  ;;  %v4014_v21 = vld [vmem:[#allocation11 + $0x50] sm:$0xff]  ;;  %v4013_v63 = vld [vmem:[#allocation11 + $0x48] sm:$0xff] }
 0xf62   :  { %v3715_v49 = vadd.f32 %v3711_v22, %v11920_v50  ;;  %v3712_v2 = vrot.slane %v3565_v58, 2  ;;  %v4012_v22 = vld [vmem:[#allocation11 + $0x40] sm:$0xff]  ;;  %v4011_v58 = vld [vmem:[#allocation11 + $0x38] sm:$0xff] }
 0xf64   :  { %v4243_v12 = vmul.f32 -1.442695, %v3715_v49  ;;  %v3716_v60 = vadd.f32 %v3712_v2, %v11921_v43  ;;  %v3737_v43 = vrot.slane %v10033_v9, 6  ;;  %v12384_v9 = vld [vmem:[#allocation106_spill] sm:$0xff]  ;;  %v4008_v2 = vld [vmem:[#allocation11 + $0x20] sm:$0xff] }
 0xf65   :  { %v4010_v49 = vld [vmem:[#allocation11 + $0x30] sm:$0xff] }
 0xf66   :  { %4992 = vpow2.f32 %v4243_v12  ;;  %v4244_v54 = vmul.f32 -1.442695, %v3716_v60  ;;  %v4009_v12 = vld [vmem:[#allocation11 + $0x28] sm:$0xff]  ;;  %v4007_v60 = vld [vmem:[#allocation11 + $0x18] sm:$0xff] }
 0xf68   :  { %4994 = vpow2.f32 %v4244_v54  ;;  %v3635_v54 = vpop.f32.mrf.mxu1 }
 0xf73   :  { %v4993_v31 = vpop.eup %4992 }
 0xf74   :  { %v3723_v59 = vadd.f32 1.0, %v4993_v31 }
 0xf75   :  { %v4995_v4 = vpop.eup %4994 }
 0xf76   :  { %4996 = vrcp.f32 %v3723_v59  ;;  %v3724_v34 = vadd.f32 1.0, %v4995_v4  ;;  %v3636_v59 = vadd.f32 %v3635_v54, %v12304_v56 }
 0xf78   :  { %4998 = vrcp.f32 %v3724_v34 }
 0xf83   :  { %v4997_v28 = vpop.eup %4996 }
 0xf84   :  { %v3732_v51 = vmul.f32 %v4997_v28, %v3730_v36 }
 0xf85   :  { %v4999_v55 = vpop.eup %4998 }
 0xf86   :  { %v3733_v50 = vadd.f32 %v3732_v51, %v11922_v6  ;;  %v3735_v39 = vsub.f32 1.0, %v4999_v55  ;;  %v3739_v61 = vmul.f32 %v4999_v55, %v3737_v43  ;;  %v12383_v6 = vld [vmem:[#allocation76_spill] sm:$0xff] }
 0xf88   :  { %5000 = vtanh.f32 %v3733_v50 }
 0xf95   :  { %v5001_v0 = vpop.eup %5000 }
 0xf96   :  { %v3736_v40 = vmul.f32 %v5001_v0, %v3735_v39 }
 0xf98   :  { %v3740_v16 = vadd.f32 %v3739_v61, %v3736_v40 }
 0xf9a   :  { %v3742_v20 = vrot.slane %v3740_v16, 6 }
 0xf9c   :  { %3809 = vmatmul.mubr.f32.vlgmr.msra.gmra.mxu1 %v3742_v20 }
 0xf9d   :  { %4695 = vmatpush3.msra.mxu1 %v10039_v15  ;;  %4726 = vmatprep.mubr.msk.f32.mxu1 %vm5986_vm1, %v11083_v62  ;;  %v12385_v15 = vld [vmem:[#allocation77_spill] sm:$0xff]  ;;  %v3704_v34 = vpop.f32.mrf.mxu0 }
 0xf9e   :  { %4696 = vmatprep.subr.mxu1 %v11083_v62  ;;  %v3705_v51 = vadd.f32 %v3704_v34, %v12305_v3 }
 0xf9f   :  { %4697 = vmatpush3.msra.mxu1 %v10045_v27  ;;  %v12386_v27 = vld [vmem:[#allocation78_spill] sm:$0xff]  ;;  %v3706_v40 = vpop.f32.mrf.mxu0 }
 0xfa0   :  { %4698 = vmatprep.subr.mxu1 %v11083_v62  ;;  %v3707_v16 = vadd.f32 %v3706_v40, %v7060_v46  ;;  %v4005_v46 = vld [vmem:[#allocation11 + $0x8] sm:$0xff] }
 0xfa1   :  { %4699 = vmatpush3.msra.mxu1 %v10049_v38  ;;  %v12387_v38 = vld [vmem:[#allocation109_spill] sm:$0xff] }
 0xfa2   :  { %4700 = vmatprep.subr.mxu1 %v11083_v62 }
 0xfa3   :  { %4701 = vmatpush3.msra.mxu1 %v10053_v10  ;;  %v12388_v10 = vld [vmem:[#allocation79_spill] sm:$0xff] }
 0xfa4   :  { %4702 = vmatprep.subr.mxu1 %v11083_v62 }
 0xfa5   :  { %4703 = vmatpush3.msra.mxu1 %v10057_v37  ;;  %v12389_v37 = vld [vmem:[#allocation111_spill] sm:$0xff] }
 0xfa6   :  { %4704 = vmatprep.subr.mxu1 %v11083_v62 }
 0xfa7   :  { %4705 = vmatpush3.msra.mxu1 %v10061_v17  ;;  %v3923_v17 = vld [vmem:[#allocation10 + $0x78] sm:$0xff] }
 0xfa8   :  { %4706 = vmatprep.subr.mxu1 %v11083_v62  ;;  %4730 = vmatpush3.msra.mxu0 %v3923_v17  ;;  %v4113_v17 = vld [vmem:[#allocation14 + $0x78] sm:$0xff] }
 0xfa9   :  { %4707 = vmatpush3.msra.mxu1 %v10065_v53  ;;  %v3922_v53 = vld [vmem:[#allocation10 + $0x70] sm:$0xff]  ;;  %4731 = vmatprep.subr.mxu0 %v11083_v62 }
 0xfaa   :  { %4708 = vmatprep.subr.mxu1 %v11083_v62  ;;  %4732 = vmatpush3.msra.mxu0 %v3922_v53  ;;  %v4112_v53 = vld [vmem:[#allocation14 + $0x70] sm:$0xff] }
 0xfab   :  { %4709 = vmatpush3.msra.mxu1 %v10069_v1  ;;  %4733 = vmatprep.subr.mxu0 %v11083_v62  ;;  %v3921_v1 = vld [vmem:[#allocation10 + $0x68] sm:$0xff] }
 0xfac   :  { %4710 = vmatprep.subr.mxu1 %v11083_v62  ;;  %4734 = vmatpush3.msra.mxu0 %v3921_v1  ;;  %v4110_v1 = vld [vmem:[#allocation14 + $0x60] sm:$0xff] }
 0xfad   :  { %4711 = vmatpush3.msra.mxu1 %v12382_v32  ;;  %4735 = vmatprep.subr.mxu0 %v11083_v62 }
 0xfae   :  { %4712 = vmatprep.subr.mxu1 %v11083_v62  ;;  %4736 = vmatpush3.msra.mxu0 %v3920_v35  ;;  %v4109_v35 = vld [vmem:[#allocation14 + $0x58] sm:$0xff] }
 0xfaf   :  { %4713 = vmatpush3.msra.mxu1 %v12383_v6  ;;  %4737 = vmatprep.subr.mxu0 %v11083_v62 }
 0xfb0   :  { %4714 = vmatprep.subr.mxu1 %v11083_v62  ;;  %4738 = vmatpush3.msra.mxu0 %v3919_v18  ;;  %v4108_v18 = vld [vmem:[#allocation14 + $0x50] sm:$0xff] }
 0xfb1   :  { %4715 = vmatpush3.msra.mxu1 %v12384_v9  ;;  %4739 = vmatprep.subr.mxu0 %v11083_v62 }
 0xfb2   :  { %4716 = vmatprep.subr.mxu1 %v11083_v62  ;;  %4740 = vmatpush3.msra.mxu0 %v3918_v33  ;;  %v4107_v33 = vld [vmem:[#allocation14 + $0x48] sm:$0xff] }
 0xfb3   :  { %4717 = vmatpush3.msra.mxu1 %v12385_v15  ;;  %4741 = vmatprep.subr.mxu0 %v11083_v62 }
 0xfb4   :  { %4718 = vmatprep.subr.mxu1 %v11083_v62  ;;  %4742 = vmatpush3.msra.mxu0 %v3917_v5  ;;  %v4106_v5 = vld [vmem:[#allocation14 + $0x40] sm:$0xff] }
 0xfb5   :  { %4719 = vmatpush3.msra.mxu1 %v12386_v27  ;;  %4743 = vmatprep.subr.mxu0 %v11083_v62 }
 0xfb6   :  { %4720 = vmatprep.subr.mxu1 %v11083_v62  ;;  %4744 = vmatpush3.msra.mxu0 %v3916_v11  ;;  %v4105_v11 = vld [vmem:[#allocation14 + $0x38] sm:$0xff] }
 0xfb7   :  { %4721 = vmatpush3.msra.mxu1 %v12387_v38  ;;  %4745 = vmatprep.subr.mxu0 %v11083_v62 }
 0xfb8   :  { %4722 = vmatprep.subr.mxu1 %v11083_v62  ;;  %4746 = vmatpush3.msra.mxu0 %v3915_v45  ;;  %v4104_v45 = vld [vmem:[#allocation14 + $0x30] sm:$0xff] }
 0xfb9   :  { %4723 = vmatpush3.msra.mxu1 %v12388_v10  ;;  %4747 = vmatprep.subr.mxu0 %v11083_v62 }
 0xfba   :  { %4724 = vmatprep.subr.mxu1 %v11083_v62  ;;  %4748 = vmatpush3.msra.mxu0 %v3914_v14  ;;  %v4103_v14 = vld [vmem:[#allocation14 + $0x28] sm:$0xff] }
 0xfbb   :  { %4725 = vmatpush3.msra.mxu1 %v12389_v37  ;;  %4749 = vmatprep.subr.mxu0 %v11083_v62  ;;  %v4006_v37 = vld [vmem:[#allocation11 + $0x10] sm:$0xff] }
 0xfbc   :  { %4727 = vmatmul.mubr.f32.vlgmr.msra.gmra.mxu1 %v3742_v20  ;;  %4764 = vmatprep.subr.mxu1 %v11083_v62 }
 0xfbd   :  { %4796 = vmatprep.mubr.msk.f32.mxu1 %vm5986_vm1, %v11083_v62  ;;  %4750 = vmatpush3.msra.mxu0 %v3913_v44  ;;  %v4102_v44 = vld [vmem:[#allocation14 + $0x20] sm:$0xff] }
 0xfbe   :  { %4751 = vmatprep.subr.mxu0 %v11083_v62  ;;  %4765 = vmatpush3.msra.mxu1 %v4019_v24 }
 0xfbf   :  { %4752 = vmatpush3.msra.mxu0 %v3912_v25  ;;  %4766 = vmatprep.subr.mxu1 %v11083_v62  ;;  %v4101_v25 = vld [vmem:[#allocation14 + $0x18] sm:$0xff] }
 0xfc0   :  { %4753 = vmatprep.subr.mxu0 %v11083_v62  ;;  %4767 = vmatpush3.msra.mxu1 %v4018_v52  ;;  %v4100_v52 = vld [vmem:[#allocation14 + $0x10] sm:$0xff] }
 0xfc1   :  { %4754 = vmatpush3.msra.mxu0 %v3911_v19  ;;  %4768 = vmatprep.subr.mxu1 %v11083_v62  ;;  %v4247_v19 = vld [vmem:[%s10370_s8] ss:$0 sm:$0xff]  ;;  %s5987_s8 = smov [#allocation17]  }
 0xfc2   :  { %4755 = vmatprep.subr.mxu0 %v11083_v62  ;;  %4769 = vmatpush3.msra.mxu1 %v4017_v30  ;;  %v4099_v30 = vld [vmem:[#allocation14 + $0x8] sm:$0xff]  ;;  %s4198_s14 = sshll.u32 %s5987_s8, 4  ;;  %s4199_s14 = int_to_ptr.vmem [resolvable:$true] %s4198_s14 }
 0xfc3   :  { %4756 = vmatpush3.msra.mxu0 %v3910_v23  ;;  %4770 = vmatprep.subr.mxu1 %v11083_v62  ;;  %s5938_s15 = scalar_lea.vmem %s4199_s14, 32  ;;  %p5943_p4 = scmp.lt.s32.totalorder %s4199_s14, %s4199_s14 }
 0xfc4   :  { %4757 = vmatprep.subr.mxu0 %v11083_v62  ;;  %4771 = vmatpush3.msra.mxu1 %v4016_v7  ;;  %v4098_v7 = vld [vmem:[#allocation14] sm:$0xff]  ;;  %p5939_p3 = scmp.ne.s32.totalorder %s4199_s14, %s5938_s15  ;;  %p5944_p5 = scmp.lt.s32.totalorder %s5938_s15, %s5938_s15 }
 0xfc5   :  { %4758 = vmatpush3.msra.mxu0 %v3909_v57  ;;  %4772 = vmatprep.subr.mxu1 %v11083_v62 }
 0xfc6   :  { %4759 = vmatprep.subr.mxu0 %v11083_v62  ;;  %4773 = vmatpush3.msra.mxu1 %v4015_v47  ;;  %v4249_v47 = vld [vmem:[#allocation13] ss:$0 sm:$0xff]  ;;  %p5945_p6 = por %p5944_p5, %p5943_p4 }
 0xfc7   :  { %4760 = vmatpush3.msra.mxu0 %v3908_v8  ;;  %4774 = vmatprep.subr.mxu1 %v11083_v62 }
 0xfc8   :  { %4799 = vmatprep.subr.mxu0 %v11083_v62  ;;  %4775 = vmatpush3.msra.mxu1 %v4014_v21  ;;  %p5946_p7 = pnand %p5945_p6, %p5939_p3 }
 0xfc9   :  { %4776 = vmatprep.subr.mxu1 %v11083_v62 }
 0xfca   :  { %4777 = vmatpush3.msra.mxu1 %v4013_v63 }
 0xfcb   :  { %4778 = vmatprep.subr.mxu1 %v11083_v62 }
 0xfcc   :  { %4779 = vmatpush3.msra.mxu1 %v4012_v22 }
 0xfcd   :  { %4780 = vmatprep.subr.mxu1 %v11083_v62 }
 0xfce   :  { %4781 = vmatpush3.msra.mxu1 %v4011_v58 }
 0xfcf   :  { %4782 = vmatprep.subr.mxu1 %v11083_v62 }
 0xfd0   :  { %4783 = vmatpush3.msra.mxu1 %v4010_v49  ;;  %v4250_v49 = vld [vmem:[#allocation16] ss:$0 sm:$0xff] }
 0xfd1   :  { %4784 = vmatprep.subr.mxu1 %v11083_v62 }
 0xfd2   :  { %4785 = vmatpush3.msra.mxu1 %v4009_v12 }
 0xfd3   :  { %4786 = vmatprep.subr.mxu1 %v11083_v62 }
 0xfd4   :  { %4787 = vmatpush3.msra.mxu1 %v4008_v2 }
 0xfd5   :  { %4788 = vmatprep.subr.mxu1 %v11083_v62 }
 0xfd6   :  { %4789 = vmatpush3.msra.mxu1 %v4007_v60 }
 0xfd7   :  { %4790 = vmatprep.subr.mxu1 %v11083_v62 }
 0xfd8   :  { %4791 = vmatpush3.msra.mxu1 %v4006_v37 }
 0xfd9   :  { %4792 = vmatprep.subr.mxu1 %v11083_v62 }
 0xfda   :  { %4793 = vmatpush3.msra.mxu1 %v4005_v46 }
 0xfdb   :  { %4794 = vmatprep.subr.mxu1 %v11083_v62 }
0x105c   :  { %v3810_v31 = vpop.f32.mrf.mxu1 }
0x105d   :  { %v3811_v42 = vadd.f32 %v3810_v31, %v11438_v26 }
0x105e   :  { %v3812_v4 = vpop.f32.mrf.mxu1 }
0x105f   :  { %v3885_v13 = vadd.f32 %v3811_v42, %v3636_v59  ;;  %v3813_v28 = vadd.f32 %v3812_v4, %v7052_v29 }
0x1061   :  { %v4245_v36 = vmul.f32 -1.442695, %v3885_v13  ;;  %v3886_v50 = vadd.f32 %v3813_v28, %v3705_v51 }
0x1063   :  { %5002 = vpow2.f32 %v4245_v36  ;;  %v4246_v55 = vmul.f32 -1.442695, %v3886_v50 }
0x1065   :  { %5004 = vpow2.f32 %v4246_v55 }
0x1070   :  { %v5003_v39 = vpop.eup %5002 }
0x1071   :  { %v3893_v43 = vadd.f32 1.0, %v5003_v39 }
0x1072   :  { %v5005_v0 = vpop.eup %5004 }
0x1073   :  { %5006 = vrcp.f32 %v3893_v43  ;;  %v3894_v61 = vadd.f32 1.0, %v5005_v0 }
0x1075   :  { %5008 = vrcp.f32 %v3894_v61 }
0x107c   :  { %v3881_v56 = vpop.f32.mrf.mxu1 }
0x107d   :  { %v3882_v29 = vadd.f32 %v3881_v56, %v7063_v48  ;;  %v4004_v48 = vld [vmem:[#allocation11] sm:$0xff] }
0x107e   :  { %v4728_v26 = vpop.f32.mrf.mxu1  ;;  %4795 = vmatpush3.msra.mxu1 %v4004_v48 }
0x1080   :  { %v5007_v20 = vpop.eup %5006 }
0x1081   :  { %v3899_v32 = vmul.f32 %v5007_v20, %v3707_v16 }
0x1082   :  { %v5009_v6 = vpop.eup %5008 }
0x1083   :  { %v3900_v3 = vadd.f32 %v3899_v32, %v3882_v29  ;;  %v3902_v9 = vsub.f32 1.0, %v5009_v6  ;;  %v3904_v38 = vmul.f32 %v5009_v6, %v10151_v41  ;;  %v4111_v41 = vld [vmem:[#allocation14 + $0x68] sm:$0xff] }
0x1085   :  { %5010 = vtanh.f32 %v3900_v3 }
0x1092   :  { %v5011_v15 = vpop.eup %5010 }
0x1093   :  { %v3903_v27 = vmul.f32 %v5011_v15, %v3902_v9 }
0x1095   :  { %v3905_v10 = vadd.f32 %v3904_v38, %v3903_v27 }
0x1097   :  { %4762 = vmatmul.mubr.f32.vlgmr.msra.gmra.mxu0 %v3905_v10 }
0x1098   :  { %4831 = vmatprep.mubr.msk.f32.mxu0 %vm5986_vm1, %v11083_v62  ;;  %4800 = vmatpush3.msra.mxu0 %v4113_v17 }
0x1099   :  { %4801 = vmatprep.subr.mxu0 %v11083_v62 }
0x109a   :  { %4802 = vmatpush3.msra.mxu0 %v4112_v53 }
0x109b   :  { %4803 = vmatprep.subr.mxu0 %v11083_v62 }
0x109c   :  { %4804 = vmatpush3.msra.mxu0 %v4111_v41 }
0x109d   :  { %4805 = vmatprep.subr.mxu0 %v11083_v62 }
0x109e   :  { %4806 = vmatpush3.msra.mxu0 %v4110_v1 }
0x109f   :  { %4807 = vmatprep.subr.mxu0 %v11083_v62 }
0x10a0   :  { %4808 = vmatpush3.msra.mxu0 %v4109_v35 }
0x10a1   :  { %4809 = vmatprep.subr.mxu0 %v11083_v62 }
0x10a2   :  { %4810 = vmatpush3.msra.mxu0 %v4108_v18 }
0x10a3   :  { %4811 = vmatprep.subr.mxu0 %v11083_v62 }
0x10a4   :  { %4812 = vmatpush3.msra.mxu0 %v4107_v33 }
0x10a5   :  { %4813 = vmatprep.subr.mxu0 %v11083_v62 }
0x10a6   :  { %4814 = vmatpush3.msra.mxu0 %v4106_v5 }
0x10a7   :  { %4815 = vmatprep.subr.mxu0 %v11083_v62 }
0x10a8   :  { %4816 = vmatpush3.msra.mxu0 %v4105_v11 }
0x10a9   :  { %4817 = vmatprep.subr.mxu0 %v11083_v62 }
0x10aa   :  { %4818 = vmatpush3.msra.mxu0 %v4104_v45 }
0x10ab   :  { %4819 = vmatprep.subr.mxu0 %v11083_v62 }
0x10ac   :  { %4820 = vmatpush3.msra.mxu0 %v4103_v14 }
0x10ad   :  { %4821 = vmatprep.subr.mxu0 %v11083_v62 }
0x10ae   :  { %4822 = vmatpush3.msra.mxu0 %v4102_v44 }
0x10af   :  { %4823 = vmatprep.subr.mxu0 %v11083_v62 }
0x10b0   :  { %4824 = vmatpush3.msra.mxu0 %v4101_v25 }
0x10b1   :  { %4825 = vmatprep.subr.mxu0 %v11083_v62 }
0x10b2   :  { %4826 = vmatpush3.msra.mxu0 %v4100_v52 }
0x10b3   :  { %4827 = vmatprep.subr.mxu0 %v11083_v62 }
0x10b4   :  { %4828 = vmatpush3.msra.mxu0 %v4099_v30 }
0x10b5   :  { %4829 = vmatprep.subr.mxu0 %v11083_v62 }
0x10b6   :  { %4830 = vmatpush3.msra.mxu0 %v4098_v7 }
0x1157   :  { %v3999_v23 = vpop.f32.mrf.mxu0 }
0x1158   :  { %v4000_v57 = vadd.f32 %v4247_v19, %v3999_v23 }
0x1159   :  { %v4763_v8 = vpop.f32.mrf.mxu0 }
0x115a   :  { %v4003_v24 = vmax.f32 %v4000_v57, 0.0 }
0x115c   :  { %4797 = vmatmul.mubr.f32.vlgmr.msra.gmra.mxu1 %v4003_v24 }
0x121c   :  { %v4093_v21 = vpop.f32.mrf.mxu1 }
0x121d   :  { %v4094_v63 = vadd.f32 %v4249_v47, %v4093_v21 }
0x121e   :  { %v4798_v22 = vpop.f32.mrf.mxu1 }
0x121f   :  { %v4097_v58 = vmax.f32 %v4094_v63, 0.0 }
0x1221   :  { %4832 = vmatmul.mubr.f32.vlgmr.msra.gmra.mxu0 %v4097_v58 }
0x12e1   :  { %v4187_v12 = vpop.f32.mrf.mxu0 }
0x12e2   :  { %v4188_v2 = vadd.f32 %v4250_v49, %v4187_v12 }
0x12e3   :  { %v4833_v60 = vpop.f32.mrf.mxu0 }
0x12e4   :  { %4191 = vst [vmem:[#allocation17] sm:$0x3] %v4188_v2 }
0x12e5   :  { %5949 = shalt.err (!%p5946_p7)
}
0x12e6   :  { %4201 = dma.vmem_to_hbm [thread:$0]  %s4199_s14, 32, %s10375_s13, [#allocation4]  }
0x12e7   :  { %5968 = dma.done.wait [#allocation4], 32  }
0x12e8   :  { %5969 = vsyncadd [#allocation4], 4294967264 }
0x12e9   :  { %4205 = vsyncpa [#allocation3], 1 }
0x12ea   :  { %4206 = vsyncpa [#allocation6], 1 }
0x12eb   :  { %4207 = vsyncpa [#allocation9], 1 }
0x12ec   :  { %4208 = vsyncpa [#allocation12], 1 }
0x12ed   :  { %4209 = vsyncpa [#allocation15], 1 }
0x12ee   :  { %4210 = vsyncpa [#allocation4], 1 }

</bundles_post_ra>
